<compile_context>
chip_gen: v7x
topology: tpu7x:2x2x1
jax: 0.10.0
libtpu: 0.0.40
codegen_flags: <defaults>
</compile_context>

<pallas_src>
import functools

import jax
import jax.numpy as jnp
from jax import lax
from jax.experimental import pallas as pl
from jax.experimental.pallas import tpu as pltpu

NC = 3
NDF = 64
LRELU_SLOPE = 0.2
LN_EPS = 1e-5


# ----------------------------- Pallas kernels ------------------------------ #

def _accumulate_taps(x_ref, w_ref, b_ref, hw, wo):
    """Accumulate the 4 space-to-depth taps of a 4x4/stride-2 conv on the MXU.

    x_ref: (1, 2, Hs*wo, 4*Cin) bf16 -- dj-stacked, row-flattened s2d activation.
    w_ref: (4, 4*Cin, Cout) bf16     -- tap t = 2*di + dj.
    b_ref: (1, Cout) f32.
    Returns y = conv + bias as (hw, Cout) f32.
    """
    cout = w_ref.shape[2]
    acc = jnp.zeros((hw, cout), jnp.float32)
    for t in range(4):                                   # static unroll, 4 taps
        di, dj = divmod(t, 2)
        patch = x_ref[0, dj, pl.ds(di * wo, hw), :]      # (hw, 4*Cin) bf16, contiguous rows
        acc = acc + jnp.dot(patch, w_ref[t],
                            preferred_element_type=jnp.float32)
    return acc + b_ref[...]


def _layer_norm_lrelu(y, g_ref, be_ref):
    """Per-sample LayerNorm over the whole (HW, C) slab (one-pass stats) + LeakyReLU."""
    hw, cout = y.shape
    inv_n = 1.0 / (hw * cout)
    s1 = jnp.sum(y, keepdims=True)                       # (1, 1)
    s2 = jnp.sum(y * y, keepdims=True)
    mean = s1 * inv_n
    var = s2 * inv_n - mean * mean
    z = (y - mean) * lax.rsqrt(var + LN_EPS) * g_ref[...] + be_ref[...]   # (1, hw, cout)
    return jnp.where(z >= 0, z, LRELU_SLOPE * z)


def _conv_lrelu_kernel(x_ref, w_ref, b_ref, o_ref, *, ho, wo):
    """conv1: conv + bias + LeakyReLU for one sample."""
    hw = ho * wo
    y = _accumulate_taps(x_ref, w_ref, b_ref, hw, wo)    # (hw, Cout) f32
    y = jnp.where(y >= 0, y, LRELU_SLOPE * y)
    o_ref[...] = y[None].astype(o_ref.dtype)


def _conv_ln_lrelu_kernel(x_ref, w_ref, b_ref, g_ref, be_ref, o_ref, *, ho, wo):
    """conv2/conv3: conv + bias + LayerNorm + LeakyReLU for one sample."""
    hw = ho * wo
    y = _accumulate_taps(x_ref, w_ref, b_ref, hw, wo)
    z = _layer_norm_lrelu(y, g_ref, be_ref)              # (1, hw, Cout)
    o_ref[...] = z.astype(o_ref.dtype)


def _conv_ln_lrelu_head_kernel(x_ref, w_ref, b_ref, g_ref, be_ref,
                               w5_ref, b5_ref, o_ref, *, ho, wo):
    """conv4 + LN + LeakyReLU, with the final 4x4 conv (Cout=1) fused as a
    reduction epilogue (elementwise multiply + full sum) -> one scalar/sample."""
    hw = ho * wo
    y = _accumulate_taps(x_ref, w_ref, b_ref, hw, wo)
    z = _layer_norm_lrelu(y, g_ref, be_ref)              # (1, hw, Cout) f32
    head = jnp.sum(z * w5_ref[...], keepdims=True)       # (1, 1, 1)
    head = head + b5_ref[...]                            # + scalar bias
    o_ref[...] = jnp.broadcast_to(head, o_ref.shape)     # lane-padded scalar slot


# --------------------------- pallas_call wrapper ---------------------------- #

def conv_block(x_stk, w_taps, b, gamma=None, beta=None, w_head=None, b_head=None,
               *, ho, wo, out_dtype=jnp.bfloat16):
    """One fused conv layer; grid=(N,) (one sample per step, parallel for megacore)."""
    n, _, rows, cin4 = x_stk.shape
    cout = w_taps.shape[-1]
    hw = ho * wo

    in_specs = [
        pl.BlockSpec((1, 2, rows, cin4), lambda i: (i, 0, 0, 0)),
        pl.BlockSpec((4, cin4, cout), lambda i: (0, 0, 0)),
        pl.BlockSpec((1, cout), lambda i: (0, 0)),
    ]
    args = [x_stk, w_taps, b.reshape(1, cout)]

    if gamma is None:
        kernel = functools.partial(_conv_lrelu_kernel, ho=ho, wo=wo)
        out_shape = jax.ShapeDtypeStruct((n, hw, cout), out_dtype)
        out_spec = pl.BlockSpec((1, hw, cout), lambda i: (i, 0, 0))
    else:
        in_specs += [pl.BlockSpec((1, hw, cout), lambda i: (0, 0, 0)),
                     pl.BlockSpec((1, hw, cout), lambda i: (0, 0, 0))]
        args += [gamma, beta]
        if w_head is None:
            kernel = functools.partial(_conv_ln_lrelu_kernel, ho=ho, wo=wo)
            out_shape = jax.ShapeDtypeStruct((n, hw, cout), out_dtype)
            out_spec = pl.BlockSpec((1, hw, cout), lambda i: (i, 0, 0))
        else:
            in_specs += [pl.BlockSpec((hw, cout), lambda i: (0, 0)),
                         pl.BlockSpec((1, 1), lambda i: (0, 0))]
            args += [w_head, b_head.reshape(1, 1)]
            kernel = functools.partial(_conv_ln_lrelu_head_kernel, ho=ho, wo=wo)
            out_shape = jax.ShapeDtypeStruct((n, 1, 128), jnp.float32)
            out_spec = pl.BlockSpec((1, 1, 128), lambda i: (i, 0, 0))

    return pl.pallas_call(
        kernel,
        out_shape=out_shape,
        grid=(n,),
        in_specs=in_specs,
        out_specs=out_spec,
        compiler_params=pltpu.CompilerParams(
            dimension_semantics=("parallel",)),
    )(*args)


# ------------------------------- JAX glue ---------------------------------- #

def _prep_taps(x_nhwc):
    """pad=1 + space-to-depth(2x2) + dj in {0,1} row-flattened stack (layout only).

    x: (N, H, W, C) -> (N, 2, (H/2+1)*(H/2), 4*C), bf16.
    In the kernel, tap (di, dj) of the 4x4/stride-2 conv is the contiguous row
    range [di*Wo, di*Wo + Ho*Wo) of slice dj -- no patch duplication in HBM.
    """
    x = x_nhwc.astype(jnp.bfloat16)
    n, h, w, c = x.shape
    hs, ws = h // 2 + 1, w // 2 + 1
    ho = h // 2                                            # == wo (square maps)
    xp = jnp.pad(x, ((0, 0), (1, 1), (1, 1), (0, 0)))
    xs = jnp.transpose(xp.reshape(n, hs, 2, ws, 2, c),
                       (0, 1, 3, 2, 4, 5)).reshape(n, hs, ws, 4 * c)
    x0 = xs[:, :, 0:ho, :].reshape(n, hs * ho, 4 * c)
    x1 = xs[:, :, 1:1 + ho, :].reshape(n, hs * ho, 4 * c)
    return jnp.stack([x0, x1], axis=1)


def torch_weight_to_taps(w_oihw):
    """(Cout, Cin, 4, 4) torch weight -> (4, 4*Cin, Cout) s2d tap matrices."""
    cout, cin, _, _ = w_oihw.shape
    w = w_oihw.reshape(cout, cin, 2, 2, 2, 2)              # (co, ci, di, r, dj, s)
    w = jnp.transpose(w, (2, 4, 3, 5, 1, 0))               # (di, dj, r, s, ci, co)
    return w.reshape(4, 4 * cin, cout)                     # tap = 2*di+dj, row = (2r+s)*Cin+ci


def init_params(key):
    params = {}
    conv_specs = [(NDF, NC), (NDF * 2, NDF), (NDF * 4, NDF * 2),
                  (NDF * 8, NDF * 4), (1, NDF * 8)]
    for idx, (cout, cin) in enumerate(conv_specs, start=1):
        key, k_w, k_b = jax.random.split(key, 3)
        w = 0.02 * jax.random.normal(k_w, (cout, cin, 4, 4), jnp.float32)
        b = 0.01 * jax.random.normal(k_b, (cout,), jnp.float32)
        params[f"w{idx}_oihw"] = w
        params[f"b{idx}"] = b
        if idx <= 4:
            params[f"w{idx}t"] = torch_weight_to_taps(w).astype(jnp.bfloat16)
    # conv5 (4x4, stride 1, no pad, Cout=1): pure reduction weight in (kh*kw, Cin) layout.
    params["w5hw"] = jnp.transpose(params["w5_oihw"][0], (1, 2, 0)).reshape(16, NDF * 8)

    # LayerNorm affine params, PyTorch shape (C, H, W) -> kernel layout (1, H*W, C)
    ln_shapes = {2: (NDF * 2, 16, 16), 3: (NDF * 4, 8, 8), 4: (NDF * 8, 4, 4)}
    for idx, (c, h, w) in ln_shapes.items():
        key, k_g, k_b = jax.random.split(key, 3)
        g = 1.0 + 0.1 * jax.random.normal(k_g, (c, h, w), jnp.float32)
        bt = 0.05 * jax.random.normal(k_b, (c, h, w), jnp.float32)
        params[f"g{idx}_chw"] = g
        params[f"be{idx}_chw"] = bt
        params[f"g{idx}"] = jnp.transpose(g, (1, 2, 0)).reshape(1, h * w, c)
        params[f"be{idx}"] = jnp.transpose(bt, (1, 2, 0)).reshape(1, h * w, c)
    return params


def discriminator_forward(x_nchw, params):
    x = jnp.transpose(x_nchw, (0, 2, 3, 1))                # NHWC
    n = x.shape[0]

    # conv1 + LeakyReLU
    a = conv_block(_prep_taps(x), params["w1t"], params["b1"], ho=32, wo=32)
    h = a.reshape(n, 32, 32, NDF)

    # conv2, conv3: conv + LayerNorm + LeakyReLU (single fused kernel each)
    for idx, s, cout in ((2, 16, NDF * 2), (3, 8, NDF * 4)):
        a = conv_block(_prep_taps(h), params[f"w{idx}t"], params[f"b{idx}"],
                       params[f"g{idx}"], params[f"be{idx}"], ho=s, wo=s)
        h = a.reshape(n, s, s, cout)

    # conv4 + LayerNorm + LeakyReLU + conv5 head, fused -> one scalar per sample
    out = conv_block(_prep_taps(h), params["w4t"], params["b4"],
                     params["g4"], params["be4"],
                     params["w5hw"], params["b5"], ho=4, wo=4)
    return out[:, 0, 0]


# --------------------------- pure-JAX reference ----------------------------- #

def _ref_forward(x_nchw, params):
    def conv(x, w, b, stride, pad):
        y = lax.conv_general_dilated(
            x, w, (stride, stride), [(pad, pad), (pad, pad)],
            dimension_numbers=("NCHW", "OIHW", "NCHW"),
            precision=lax.Precision.HIGHEST)
        return y + b.reshape(1, -1, 1, 1)

    def lrelu(x):
        return jnp.where(x >= 0, x, LRELU_SLOPE * x)

    def ln(x, g_chw, b_chw):
        mean = jnp.mean(x, axis=(1, 2, 3), keepdims=True)
        var = jnp.mean((x - mean) ** 2, axis=(1, 2, 3), keepdims=True)
        return (x - mean) * lax.rsqrt(var + LN_EPS) * g_chw[None] + b_chw[None]

    x = lrelu(conv(x_nchw, params["w1_oihw"], params["b1"], 2, 1))
    x = lrelu(ln(conv(x, params["w2_oihw"], params["b2"], 2, 1),
                 params["g2_chw"], params["be2_chw"]))
    x = lrelu(ln(conv(x, params["w3_oihw"], params["b3"], 2, 1),
                 params["g3_chw"], params["be3_chw"]))
    x = lrelu(ln(conv(x, params["w4_oihw"], params["b4"], 2, 1),
                 params["g4_chw"], params["be4_chw"]))
    x = conv(x, params["w5_oihw"], params["b5"], 1, 0)
    return x.reshape(-1)


# ---------------------------------- main ------------------------------------ #

if __name__ == "__main__":
    key = jax.random.PRNGKey(0)
    k_params, k_x = jax.random.split(key)
    params = init_params(k_params)

    # batch=2, NCHW input (3x64x64 implied by the LayerNorm shapes)
    x = jax.random.normal(k_x, (2, NC, 64, 64), jnp.float32)

    out = jax.block_until_ready(jax.jit(discriminator_forward)(x, params))
    assert out.shape == (2,), out.shape

    ref = jax.block_until_ready(jax.jit(_ref_forward)(x, params))
    # Deliberately relaxed tolerance: kernels run bf16 operands / f32 accumulation
    # on the MXU, the reference is pure f32 at Precision.HIGHEST.
    assert jnp.allclose(out, ref, rtol=5e-2, atol=5e-2), (out, ref)

    print("KERNEL_OK")
</pallas_src>

<mosaic_0001>
module attributes {stable_mosaic.version = 11 : i64} {
  func.func @_conv_lrelu_kernel(%arg0: i32, %arg1: memref<1x2x1056x12xbf16, #tpu.memory_space<vmem>>, %arg2: memref<4x12x64xbf16, #tpu.memory_space<vmem>>, %arg3: memref<1x64xf32, #tpu.memory_space<vmem>>, %arg4: memref<1x1024x64xbf16, #tpu.memory_space<vmem>>) attributes {dimension_semantics = [#tpu.dimension_semantics<parallel>], iteration_bounds = array<i64: 2>, scalar_prefetch = 0 : i64, scratch_operands = 0 : i64, tpu.core_type = #tpu.core_type<tc>, window_params = [{transform_indices = @transform_0, window_bounds = array<i64: 1, 2, 1056, 12>}, {pipeline_mode = #tpu.pipeline_mode<synchronous>, transform_indices = @transform_1, window_bounds = array<i64: 4, 12, 64>}, {pipeline_mode = #tpu.pipeline_mode<synchronous>, transform_indices = @transform_2, window_bounds = array<i64: 1, 64>}, {transform_indices = @transform_3, window_bounds = array<i64: 1, 1024, 64>}]} {
    %cst = arith.constant 0.000000e+00 : f32
    %0 = vector.broadcast %cst : f32 to vector<1024x64xf32>
    %c0 = arith.constant 0 : index
    %c0_0 = arith.constant 0 : index
    %c0_1 = arith.constant 0 : index
    %c0_2 = arith.constant 0 : index
    %1 = vector.load %arg1[%c0, %c0_0, %c0_1, %c0_2] : memref<1x2x1056x12xbf16, #tpu.memory_space<vmem>>, vector<1x1x1024x12xbf16>
    %2 = vector.shape_cast %1 : vector<1x1x1024x12xbf16> to vector<1024x12xbf16>
    %c0_3 = arith.constant 0 : index
    %c0_4 = arith.constant 0 : index
    %c0_5 = arith.constant 0 : index
    %3 = vector.load %arg2[%c0_3, %c0_4, %c0_5] : memref<4x12x64xbf16, #tpu.memory_space<vmem>>, vector<1x12x64xbf16>
    %4 = vector.shape_cast %3 : vector<1x12x64xbf16> to vector<12x64xbf16>
    %cst_6 = arith.constant dense<0.000000e+00> : vector<1024x64xf32>
    %5 = tpu.matmul %2, %4, %cst_6 {dimension_numbers = #tpu.dot_dimension_numbers<[1], [0], [0], [1], [0, 0, 1, 1], [], []>} : vector<1024x12xbf16>, vector<12x64xbf16>, vector<1024x64xf32> -> vector<1024x64xf32>
    %6 = arith.addf %0, %5 : vector<1024x64xf32>
    %c0_7 = arith.constant 0 : index
    %c1 = arith.constant 1 : index
    %c0_8 = arith.constant 0 : index
    %c0_9 = arith.constant 0 : index
    %7 = vector.load %arg1[%c0_7, %c1, %c0_8, %c0_9] : memref<1x2x1056x12xbf16, #tpu.memory_space<vmem>>, vector<1x1x1024x12xbf16>
    %8 = vector.shape_cast %7 : vector<1x1x1024x12xbf16> to vector<1024x12xbf16>
    %c1_10 = arith.constant 1 : index
    %c0_11 = arith.constant 0 : index
    %c0_12 = arith.constant 0 : index
    %9 = vector.load %arg2[%c1_10, %c0_11, %c0_12] : memref<4x12x64xbf16, #tpu.memory_space<vmem>>, vector<1x12x64xbf16>
    %10 = vector.shape_cast %9 : vector<1x12x64xbf16> to vector<12x64xbf16>
    %cst_13 = arith.constant dense<0.000000e+00> : vector<1024x64xf32>
    %11 = tpu.matmul %8, %10, %cst_13 {dimension_numbers = #tpu.dot_dimension_numbers<[1], [0], [0], [1], [0, 0, 1, 1], [], []>} : vector<1024x12xbf16>, vector<12x64xbf16>, vector<1024x64xf32> -> vector<1024x64xf32>
    %12 = arith.addf %6, %11 : vector<1024x64xf32>
    %c0_14 = arith.constant 0 : index
    %c0_15 = arith.constant 0 : index
    %c32 = arith.constant 32 : index
    %c0_16 = arith.constant 0 : index
    %13 = vector.load %arg1[%c0_14, %c0_15, %c32, %c0_16] : memref<1x2x1056x12xbf16, #tpu.memory_space<vmem>>, vector<1x1x1024x12xbf16>
    %14 = vector.shape_cast %13 : vector<1x1x1024x12xbf16> to vector<1024x12xbf16>
    %c2 = arith.constant 2 : index
    %c0_17 = arith.constant 0 : index
    %c0_18 = arith.constant 0 : index
    %15 = vector.load %arg2[%c2, %c0_17, %c0_18] : memref<4x12x64xbf16, #tpu.memory_space<vmem>>, vector<1x12x64xbf16>
    %16 = vector.shape_cast %15 : vector<1x12x64xbf16> to vector<12x64xbf16>
    %cst_19 = arith.constant dense<0.000000e+00> : vector<1024x64xf32>
    %17 = tpu.matmul %14, %16, %cst_19 {dimension_numbers = #tpu.dot_dimension_numbers<[1], [0], [0], [1], [0, 0, 1, 1], [], []>} : vector<1024x12xbf16>, vector<12x64xbf16>, vector<1024x64xf32> -> vector<1024x64xf32>
    %18 = arith.addf %12, %17 : vector<1024x64xf32>
    %c0_20 = arith.constant 0 : index
    %c1_21 = arith.constant 1 : index
    %c32_22 = arith.constant 32 : index
    %c0_23 = arith.constant 0 : index
    %19 = vector.load %arg1[%c0_20, %c1_21, %c32_22, %c0_23] : memref<1x2x1056x12xbf16, #tpu.memory_space<vmem>>, vector<1x1x1024x12xbf16>
    %20 = vector.shape_cast %19 : vector<1x1x1024x12xbf16> to vector<1024x12xbf16>
    %c3 = arith.constant 3 : index
    %c0_24 = arith.constant 0 : index
    %c0_25 = arith.constant 0 : index
    %21 = vector.load %arg2[%c3, %c0_24, %c0_25] : memref<4x12x64xbf16, #tpu.memory_space<vmem>>, vector<1x12x64xbf16>
    %22 = vector.shape_cast %21 : vector<1x12x64xbf16> to vector<12x64xbf16>
    %cst_26 = arith.constant dense<0.000000e+00> : vector<1024x64xf32>
    %23 = tpu.matmul %20, %22, %cst_26 {dimension_numbers = #tpu.dot_dimension_numbers<[1], [0], [0], [1], [0, 0, 1, 1], [], []>} : vector<1024x12xbf16>, vector<12x64xbf16>, vector<1024x64xf32> -> vector<1024x64xf32>
    %24 = arith.addf %18, %23 : vector<1024x64xf32>
    %c0_27 = arith.constant 0 : index
    %c0_28 = arith.constant 0 : index
    %25 = vector.load %arg3[%c0_27, %c0_28] : memref<1x64xf32, #tpu.memory_space<vmem>>, vector<1x64xf32>
    %26 = vector.broadcast %25 : vector<1x64xf32> to vector<1024x64xf32>
    %27 = arith.addf %24, %26 : vector<1024x64xf32>
    %cst_29 = arith.constant 0.000000e+00 : f32
    %28 = vector.broadcast %cst_29 : f32 to vector<1024x64xf32>
    %29 = arith.cmpf oge, %27, %28 : vector<1024x64xf32>
    %cst_30 = arith.constant 2.000000e-01 : f32
    %30 = vector.broadcast %cst_30 : f32 to vector<1024x64xf32>
    %31 = arith.mulf %30, %27 : vector<1024x64xf32>
    %32 = arith.select %29, %27, %31 : vector<1024x64xi1>, vector<1024x64xf32>
    %33 = vector.shape_cast %32 : vector<1024x64xf32> to vector<1x1024x64xf32>
    %34 = arith.truncf %33 : vector<1x1024x64xf32> to vector<1x1024x64xbf16>
    %c0_31 = arith.constant 0 : index
    %c0_32 = arith.constant 0 : index
    %c0_33 = arith.constant 0 : index
    %35 = vector.load %arg4[%c0_31, %c0_32, %c0_33] : memref<1x1024x64xbf16, #tpu.memory_space<vmem>>, vector<1x1024x64xbf16>
    tpu.vector_store %arg4[%c0_31, %c0_32, %c0_33], %34 {strides = array<i32>} : memref<1x1024x64xbf16, #tpu.memory_space<vmem>>, vector<1x1024x64xbf16>,
    return
  }
  func.func @transform_0(%arg0: i32) -> (i32, i32, i32, i32) {
    %c0_i32 = arith.constant 0 : i32
    %c0_i32_0 = arith.constant 0 : i32
    %c0_i32_1 = arith.constant 0 : i32
    %c0_i32_2 = arith.constant 0 : i32
    return %arg0, %c0_i32, %c0_i32_0, %c0_i32_1 : i32, i32, i32, i32
  }
  func.func @transform_1(%arg0: i32) -> (i32, i32, i32) {
    %c0_i32 = arith.constant 0 : i32
    %c0_i32_0 = arith.constant 0 : i32
    %c0_i32_1 = arith.constant 0 : i32
    %c0_i32_2 = arith.constant 0 : i32
    return %c0_i32, %c0_i32_0, %c0_i32_1 : i32, i32, i32
  }
  func.func @transform_2(%arg0: i32) -> (i32, i32) {
    %c0_i32 = arith.constant 0 : i32
    %c0_i32_0 = arith.constant 0 : i32
    %c0_i32_1 = arith.constant 0 : i32
    return %c0_i32, %c0_i32_0 : i32, i32
  }
  func.func @transform_3(%arg0: i32) -> (i32, i32, i32) {
    %c0_i32 = arith.constant 0 : i32
    %c0_i32_0 = arith.constant 0 : i32
    %c0_i32_1 = arith.constant 0 : i32
    return %arg0, %c0_i32, %c0_i32_0 : i32, i32, i32
  }
}

module attributes {stable_mosaic.version = 11 : i64} {
  func.func @_conv_ln_lrelu_kernel(%arg0: i32, %arg1: memref<1x2x272x256xbf16, #tpu.memory_space<vmem>>, %arg2: memref<4x256x128xbf16, #tpu.memory_space<vmem>>, %arg3: memref<1x128xf32, #tpu.memory_space<vmem>>, %arg4: memref<1x256x128xf32, #tpu.memory_space<vmem>>, %arg5: memref<1x256x128xf32, #tpu.memory_space<vmem>>, %arg6: memref<1x256x128xbf16, #tpu.memory_space<vmem>>) attributes {dimension_semantics = [#tpu.dimension_semantics<parallel>], iteration_bounds = array<i64: 2>, scalar_prefetch = 0 : i64, scratch_operands = 0 : i64, tpu.core_type = #tpu.core_type<tc>, window_params = [{transform_indices = @transform_0, window_bounds = array<i64: 1, 2, 272, 256>}, {pipeline_mode = #tpu.pipeline_mode<synchronous>, transform_indices = @transform_1, window_bounds = array<i64: 4, 256, 128>}, {pipeline_mode = #tpu.pipeline_mode<synchronous>, transform_indices = @transform_2, window_bounds = array<i64: 1, 128>}, {pipeline_mode = #tpu.pipeline_mode<synchronous>, transform_indices = @transform_3, window_bounds = array<i64: 1, 256, 128>}, {pipeline_mode = #tpu.pipeline_mode<synchronous>, transform_indices = @transform_4, window_bounds = array<i64: 1, 256, 128>}, {transform_indices = @transform_5, window_bounds = array<i64: 1, 256, 128>}]} {
    %cst = arith.constant 0.000000e+00 : f32
    %0 = vector.broadcast %cst : f32 to vector<256x128xf32>
    %c0 = arith.constant 0 : index
    %c0_0 = arith.constant 0 : index
    %c0_1 = arith.constant 0 : index
    %c0_2 = arith.constant 0 : index
    %1 = vector.load %arg1[%c0, %c0_0, %c0_1, %c0_2] : memref<1x2x272x256xbf16, #tpu.memory_space<vmem>>, vector<1x1x256x256xbf16>
    %2 = vector.shape_cast %1 : vector<1x1x256x256xbf16> to vector<256x256xbf16>
    %c0_3 = arith.constant 0 : index
    %c0_4 = arith.constant 0 : index
    %c0_5 = arith.constant 0 : index
    %3 = vector.load %arg2[%c0_3, %c0_4, %c0_5] : memref<4x256x128xbf16, #tpu.memory_space<vmem>>, vector<1x256x128xbf16>
    %4 = vector.shape_cast %3 : vector<1x256x128xbf16> to vector<256x128xbf16>
    %cst_6 = arith.constant dense<0.000000e+00> : vector<256x128xf32>
    %5 = tpu.matmul %2, %4, %cst_6 {dimension_numbers = #tpu.dot_dimension_numbers<[1], [0], [0], [1], [0, 0, 1, 1], [], []>} : vector<256x256xbf16>, vector<256x128xbf16>, vector<256x128xf32> -> vector<256x128xf32>
    %6 = arith.addf %0, %5 : vector<256x128xf32>
    %c0_7 = arith.constant 0 : index
    %c1 = arith.constant 1 : index
    %c0_8 = arith.constant 0 : index
    %c0_9 = arith.constant 0 : index
    %7 = vector.load %arg1[%c0_7, %c1, %c0_8, %c0_9] : memref<1x2x272x256xbf16, #tpu.memory_space<vmem>>, vector<1x1x256x256xbf16>
    %8 = vector.shape_cast %7 : vector<1x1x256x256xbf16> to vector<256x256xbf16>
    %c1_10 = arith.constant 1 : index
    %c0_11 = arith.constant 0 : index
    %c0_12 = arith.constant 0 : index
    %9 = vector.load %arg2[%c1_10, %c0_11, %c0_12] : memref<4x256x128xbf16, #tpu.memory_space<vmem>>, vector<1x256x128xbf16>
    %10 = vector.shape_cast %9 : vector<1x256x128xbf16> to vector<256x128xbf16>
    %cst_13 = arith.constant dense<0.000000e+00> : vector<256x128xf32>
    %11 = tpu.matmul %8, %10, %cst_13 {dimension_numbers = #tpu.dot_dimension_numbers<[1], [0], [0], [1], [0, 0, 1, 1], [], []>} : vector<256x256xbf16>, vector<256x128xbf16>, vector<256x128xf32> -> vector<256x128xf32>
    %12 = arith.addf %6, %11 : vector<256x128xf32>
    %c0_14 = arith.constant 0 : index
    %c0_15 = arith.constant 0 : index
    %c16 = arith.constant 16 : index
    %c0_16 = arith.constant 0 : index
    %13 = vector.load %arg1[%c0_14, %c0_15, %c16, %c0_16] : memref<1x2x272x256xbf16, #tpu.memory_space<vmem>>, vector<1x1x256x256xbf16>
    %14 = vector.shape_cast %13 : vector<1x1x256x256xbf16> to vector<256x256xbf16>
    %c2 = arith.constant 2 : index
    %c0_17 = arith.constant 0 : index
    %c0_18 = arith.constant 0 : index
    %15 = vector.load %arg2[%c2, %c0_17, %c0_18] : memref<4x256x128xbf16, #tpu.memory_space<vmem>>, vector<1x256x128xbf16>
    %16 = vector.shape_cast %15 : vector<1x256x128xbf16> to vector<256x128xbf16>
    %cst_19 = arith.constant dense<0.000000e+00> : vector<256x128xf32>
    %17 = tpu.matmul %14, %16, %cst_19 {dimension_numbers = #tpu.dot_dimension_numbers<[1], [0], [0], [1], [0, 0, 1, 1], [], []>} : vector<256x256xbf16>, vector<256x128xbf16>, vector<256x128xf32> -> vector<256x128xf32>
    %18 = arith.addf %12, %17 : vector<256x128xf32>
    %c0_20 = arith.constant 0 : index
    %c1_21 = arith.constant 1 : index
    %c16_22 = arith.constant 16 : index
    %c0_23 = arith.constant 0 : index
    %19 = vector.load %arg1[%c0_20, %c1_21, %c16_22, %c0_23] : memref<1x2x272x256xbf16, #tpu.memory_space<vmem>>, vector<1x1x256x256xbf16>
    %20 = vector.shape_cast %19 : vector<1x1x256x256xbf16> to vector<256x256xbf16>
    %c3 = arith.constant 3 : index
    %c0_24 = arith.constant 0 : index
    %c0_25 = arith.constant 0 : index
    %21 = vector.load %arg2[%c3, %c0_24, %c0_25] : memref<4x256x128xbf16, #tpu.memory_space<vmem>>, vector<1x256x128xbf16>
    %22 = vector.shape_cast %21 : vector<1x256x128xbf16> to vector<256x128xbf16>
    %cst_26 = arith.constant dense<0.000000e+00> : vector<256x128xf32>
    %23 = tpu.matmul %20, %22, %cst_26 {dimension_numbers = #tpu.dot_dimension_numbers<[1], [0], [0], [1], [0, 0, 1, 1], [], []>} : vector<256x256xbf16>, vector<256x128xbf16>, vector<256x128xf32> -> vector<256x128xf32>
    %24 = arith.addf %18, %23 : vector<256x128xf32>
    %c0_27 = arith.constant 0 : index
    %c0_28 = arith.constant 0 : index
    %25 = vector.load %arg3[%c0_27, %c0_28] : memref<1x128xf32, #tpu.memory_space<vmem>>, vector<1x128xf32>
    %26 = vector.broadcast %25 : vector<1x128xf32> to vector<256x128xf32>
    %27 = arith.addf %24, %26 : vector<256x128xf32>
    %28 = vector.shape_cast %27 : vector<256x128xf32> to vector<1x256x128xf32>
    %cst_29 = arith.constant dense<0.000000e+00> : vector<1xf32>
    %29 = vector.multi_reduction <add>, %28, %cst_29 [1, 2] : vector<1x256x128xf32> to vector<1xf32>
    %30 = vector.shape_cast %29 : vector<1xf32> to vector<1x1x1xf32>
    %31 = vector.extract %30[0, 0, 0] : f32 from vector<1x1x1xf32>
    %32 = vector.broadcast %31 : f32 to vector<1x1xf32>
    %33 = arith.mulf %27, %27 : vector<256x128xf32>
    %34 = vector.shape_cast %33 : vector<256x128xf32> to vector<1x256x128xf32>
    %cst_30 = arith.constant dense<0.000000e+00> : vector<1xf32>
    %35 = vector.multi_reduction <add>, %34, %cst_30 [1, 2] : vector<1x256x128xf32> to vector<1xf32>
    %36 = vector.shape_cast %35 : vector<1xf32> to vector<1x1x1xf32>
    %37 = vector.extract %36[0, 0, 0] : f32 from vector<1x1x1xf32>
    %38 = vector.broadcast %37 : f32 to vector<1x1xf32>
    %cst_31 = arith.constant 3.05175781E-5 : f32
    %39 = vector.broadcast %cst_31 : f32 to vector<1x1xf32>
    %40 = arith.mulf %32, %39 : vector<1x1xf32>
    %cst_32 = arith.constant 3.05175781E-5 : f32
    %41 = vector.broadcast %cst_32 : f32 to vector<1x1xf32>
    %42 = arith.mulf %38, %41 : vector<1x1xf32>
    %43 = arith.mulf %40, %40 : vector<1x1xf32>
    %44 = arith.subf %42, %43 : vector<1x1xf32>
    %45 = vector.broadcast %40 : vector<1x1xf32> to vector<256x128xf32>
    %46 = arith.subf %27, %45 : vector<256x128xf32>
    %cst_33 = arith.constant 9.99999974E-6 : f32
    %47 = vector.broadcast %cst_33 : f32 to vector<1x1xf32>
    %48 = arith.addf %44, %47 : vector<1x1xf32>
    %49 = math.rsqrt %48 : vector<1x1xf32>
    %50 = vector.broadcast %49 : vector<1x1xf32> to vector<256x128xf32>
    %51 = arith.mulf %46, %50 : vector<256x128xf32>
    %c0_34 = arith.constant 0 : index
    %c0_35 = arith.constant 0 : index
    %c0_36 = arith.constant 0 : index
    %52 = vector.load %arg4[%c0_34, %c0_35, %c0_36] : memref<1x256x128xf32, #tpu.memory_space<vmem>>, vector<1x256x128xf32>
    %53 = vector.shape_cast %51 : vector<256x128xf32> to vector<1x256x128xf32>
    %54 = arith.mulf %53, %52 : vector<1x256x128xf32>
    %c0_37 = arith.constant 0 : index
    %c0_38 = arith.constant 0 : index
    %c0_39 = arith.constant 0 : index
    %55 = vector.load %arg5[%c0_37, %c0_38, %c0_39] : memref<1x256x128xf32, #tpu.memory_space<vmem>>, vector<1x256x128xf32>
    %56 = arith.addf %54, %55 : vector<1x256x128xf32>
    %cst_40 = arith.constant 0.000000e+00 : f32
    %57 = vector.broadcast %cst_40 : f32 to vector<1x256x128xf32>
    %58 = arith.cmpf oge, %56, %57 : vector<1x256x128xf32>
    %cst_41 = arith.constant 2.000000e-01 : f32
    %59 = vector.broadcast %cst_41 : f32 to vector<1x256x128xf32>
    %60 = arith.mulf %59, %56 : vector<1x256x128xf32>
    %61 = arith.select %58, %56, %60 : vector<1x256x128xi1>, vector<1x256x128xf32>
    %62 = arith.truncf %61 : vector<1x256x128xf32> to vector<1x256x128xbf16>
    %c0_42 = arith.constant 0 : index
    %c0_43 = arith.constant 0 : index
    %c0_44 = arith.constant 0 : index
    %63 = vector.load %arg6[%c0_42, %c0_43, %c0_44] : memref<1x256x128xbf16, #tpu.memory_space<vmem>>, vector<1x256x128xbf16>
    tpu.vector_store %arg6[%c0_42, %c0_43, %c0_44], %62 {strides = array<i32>} : memref<1x256x128xbf16, #tpu.memory_space<vmem>>, vector<1x256x128xbf16>,
    return
  }
  func.func @transform_0(%arg0: i32) -> (i32, i32, i32, i32) {
    %c0_i32 = arith.constant 0 : i32
    %c0_i32_0 = arith.constant 0 : i32
    %c0_i32_1 = arith.constant 0 : i32
    %c0_i32_2 = arith.constant 0 : i32
    return %arg0, %c0_i32, %c0_i32_0, %c0_i32_1 : i32, i32, i32, i32
  }
  func.func @transform_1(%arg0: i32) -> (i32, i32, i32) {
    %c0_i32 = arith.constant 0 : i32
    %c0_i32_0 = arith.constant 0 : i32
    %c0_i32_1 = arith.constant 0 : i32
    %c0_i32_2 = arith.constant 0 : i32
    return %c0_i32, %c0_i32_0, %c0_i32_1 : i32, i32, i32
  }
  func.func @transform_2(%arg0: i32) -> (i32, i32) {
    %c0_i32 = arith.constant 0 : i32
    %c0_i32_0 = arith.constant 0 : i32
    %c0_i32_1 = arith.constant 0 : i32
    return %c0_i32, %c0_i32_0 : i32, i32
  }
  func.func @transform_3(%arg0: i32) -> (i32, i32, i32) {
    %c0_i32 = arith.constant 0 : i32
    %c0_i32_0 = arith.constant 0 : i32
    %c0_i32_1 = arith.constant 0 : i32
    %c0_i32_2 = arith.constant 0 : i32
    return %c0_i32, %c0_i32_0, %c0_i32_1 : i32, i32, i32
  }
  func.func @transform_4(%arg0: i32) -> (i32, i32, i32) {
    %c0_i32 = arith.constant 0 : i32
    %c0_i32_0 = arith.constant 0 : i32
    %c0_i32_1 = arith.constant 0 : i32
    %c0_i32_2 = arith.constant 0 : i32
    return %c0_i32, %c0_i32_0, %c0_i32_1 : i32, i32, i32
  }
  func.func @transform_5(%arg0: i32) -> (i32, i32, i32) {
    %c0_i32 = arith.constant 0 : i32
    %c0_i32_0 = arith.constant 0 : i32
    %c0_i32_1 = arith.constant 0 : i32
    return %arg0, %c0_i32, %c0_i32_0 : i32, i32, i32
  }
}

module attributes {stable_mosaic.version = 11 : i64} {
  func.func @_conv_ln_lrelu_kernel(%arg0: i32, %arg1: memref<1x2x72x512xbf16, #tpu.memory_space<vmem>>, %arg2: memref<4x512x256xbf16, #tpu.memory_space<vmem>>, %arg3: memref<1x256xf32, #tpu.memory_space<vmem>>, %arg4: memref<1x64x256xf32, #tpu.memory_space<vmem>>, %arg5: memref<1x64x256xf32, #tpu.memory_space<vmem>>, %arg6: memref<1x64x256xbf16, #tpu.memory_space<vmem>>) attributes {dimension_semantics = [#tpu.dimension_semantics<parallel>], iteration_bounds = array<i64: 2>, scalar_prefetch = 0 : i64, scratch_operands = 0 : i64, tpu.core_type = #tpu.core_type<tc>, window_params = [{transform_indices = @transform_0, window_bounds = array<i64: 1, 2, 72, 512>}, {pipeline_mode = #tpu.pipeline_mode<synchronous>, transform_indices = @transform_1, window_bounds = array<i64: 4, 512, 256>}, {pipeline_mode = #tpu.pipeline_mode<synchronous>, transform_indices = @transform_2, window_bounds = array<i64: 1, 256>}, {pipeline_mode = #tpu.pipeline_mode<synchronous>, transform_indices = @transform_3, window_bounds = array<i64: 1, 64, 256>}, {pipeline_mode = #tpu.pipeline_mode<synchronous>, transform_indices = @transform_4, window_bounds = array<i64: 1, 64, 256>}, {transform_indices = @transform_5, window_bounds = array<i64: 1, 64, 256>}]} {
    %cst = arith.constant 0.000000e+00 : f32
    %0 = vector.broadcast %cst : f32 to vector<64x256xf32>
    %c0 = arith.constant 0 : index
    %c0_0 = arith.constant 0 : index
    %c0_1 = arith.constant 0 : index
    %c0_2 = arith.constant 0 : index
    %1 = vector.load %arg1[%c0, %c0_0, %c0_1, %c0_2] : memref<1x2x72x512xbf16, #tpu.memory_space<vmem>>, vector<1x1x64x512xbf16>
    %2 = vector.shape_cast %1 : vector<1x1x64x512xbf16> to vector<64x512xbf16>
    %c0_3 = arith.constant 0 : index
    %c0_4 = arith.constant 0 : index
    %c0_5 = arith.constant 0 : index
    %3 = vector.load %arg2[%c0_3, %c0_4, %c0_5] : memref<4x512x256xbf16, #tpu.memory_space<vmem>>, vector<1x512x256xbf16>
    %4 = vector.shape_cast %3 : vector<1x512x256xbf16> to vector<512x256xbf16>
    %cst_6 = arith.constant dense<0.000000e+00> : vector<64x256xf32>
    %5 = tpu.matmul %2, %4, %cst_6 {dimension_numbers = #tpu.dot_dimension_numbers<[1], [0], [0], [1], [0, 0, 1, 1], [], []>} : vector<64x512xbf16>, vector<512x256xbf16>, vector<64x256xf32> -> vector<64x256xf32>
    %6 = arith.addf %0, %5 : vector<64x256xf32>
    %c0_7 = arith.constant 0 : index
    %c1 = arith.constant 1 : index
    %c0_8 = arith.constant 0 : index
    %c0_9 = arith.constant 0 : index
    %7 = vector.load %arg1[%c0_7, %c1, %c0_8, %c0_9] : memref<1x2x72x512xbf16, #tpu.memory_space<vmem>>, vector<1x1x64x512xbf16>
    %8 = vector.shape_cast %7 : vector<1x1x64x512xbf16> to vector<64x512xbf16>
    %c1_10 = arith.constant 1 : index
    %c0_11 = arith.constant 0 : index
    %c0_12 = arith.constant 0 : index
    %9 = vector.load %arg2[%c1_10, %c0_11, %c0_12] : memref<4x512x256xbf16, #tpu.memory_space<vmem>>, vector<1x512x256xbf16>
    %10 = vector.shape_cast %9 : vector<1x512x256xbf16> to vector<512x256xbf16>
    %cst_13 = arith.constant dense<0.000000e+00> : vector<64x256xf32>
    %11 = tpu.matmul %8, %10, %cst_13 {dimension_numbers = #tpu.dot_dimension_numbers<[1], [0], [0], [1], [0, 0, 1, 1], [], []>} : vector<64x512xbf16>, vector<512x256xbf16>, vector<64x256xf32> -> vector<64x256xf32>
    %12 = arith.addf %6, %11 : vector<64x256xf32>
    %c0_14 = arith.constant 0 : index
    %c0_15 = arith.constant 0 : index
    %c8 = arith.constant 8 : index
    %c0_16 = arith.constant 0 : index
    %13 = vector.load %arg1[%c0_14, %c0_15, %c8, %c0_16] : memref<1x2x72x512xbf16, #tpu.memory_space<vmem>>, vector<1x1x64x512xbf16>
    %14 = vector.shape_cast %13 : vector<1x1x64x512xbf16> to vector<64x512xbf16>
    %c2 = arith.constant 2 : index
    %c0_17 = arith.constant 0 : index
    %c0_18 = arith.constant 0 : index
    %15 = vector.load %arg2[%c2, %c0_17, %c0_18] : memref<4x512x256xbf16, #tpu.memory_space<vmem>>, vector<1x512x256xbf16>
    %16 = vector.shape_cast %15 : vector<1x512x256xbf16> to vector<512x256xbf16>
    %cst_19 = arith.constant dense<0.000000e+00> : vector<64x256xf32>
    %17 = tpu.matmul %14, %16, %cst_19 {dimension_numbers = #tpu.dot_dimension_numbers<[1], [0], [0], [1], [0, 0, 1, 1], [], []>} : vector<64x512xbf16>, vector<512x256xbf16>, vector<64x256xf32> -> vector<64x256xf32>
    %18 = arith.addf %12, %17 : vector<64x256xf32>
    %c0_20 = arith.constant 0 : index
    %c1_21 = arith.constant 1 : index
    %c8_22 = arith.constant 8 : index
    %c0_23 = arith.constant 0 : index
    %19 = vector.load %arg1[%c0_20, %c1_21, %c8_22, %c0_23] : memref<1x2x72x512xbf16, #tpu.memory_space<vmem>>, vector<1x1x64x512xbf16>
    %20 = vector.shape_cast %19 : vector<1x1x64x512xbf16> to vector<64x512xbf16>
    %c3 = arith.constant 3 : index
    %c0_24 = arith.constant 0 : index
    %c0_25 = arith.constant 0 : index
    %21 = vector.load %arg2[%c3, %c0_24, %c0_25] : memref<4x512x256xbf16, #tpu.memory_space<vmem>>, vector<1x512x256xbf16>
    %22 = vector.shape_cast %21 : vector<1x512x256xbf16> to vector<512x256xbf16>
    %cst_26 = arith.constant dense<0.000000e+00> : vector<64x256xf32>
    %23 = tpu.matmul %20, %22, %cst_26 {dimension_numbers = #tpu.dot_dimension_numbers<[1], [0], [0], [1], [0, 0, 1, 1], [], []>} : vector<64x512xbf16>, vector<512x256xbf16>, vector<64x256xf32> -> vector<64x256xf32>
    %24 = arith.addf %18, %23 : vector<64x256xf32>
    %c0_27 = arith.constant 0 : index
    %c0_28 = arith.constant 0 : index
    %25 = vector.load %arg3[%c0_27, %c0_28] : memref<1x256xf32, #tpu.memory_space<vmem>>, vector<1x256xf32>
    %26 = vector.broadcast %25 : vector<1x256xf32> to vector<64x256xf32>
    %27 = arith.addf %24, %26 : vector<64x256xf32>
    %28 = vector.shape_cast %27 : vector<64x256xf32> to vector<1x64x256xf32>
    %cst_29 = arith.constant dense<0.000000e+00> : vector<1xf32>
    %29 = vector.multi_reduction <add>, %28, %cst_29 [1, 2] : vector<1x64x256xf32> to vector<1xf32>
    %30 = vector.shape_cast %29 : vector<1xf32> to vector<1x1x1xf32>
    %31 = vector.extract %30[0, 0, 0] : f32 from vector<1x1x1xf32>
    %32 = vector.broadcast %31 : f32 to vector<1x1xf32>
    %33 = arith.mulf %27, %27 : vector<64x256xf32>
    %34 = vector.shape_cast %33 : vector<64x256xf32> to vector<1x64x256xf32>
    %cst_30 = arith.constant dense<0.000000e+00> : vector<1xf32>
    %35 = vector.multi_reduction <add>, %34, %cst_30 [1, 2] : vector<1x64x256xf32> to vector<1xf32>
    %36 = vector.shape_cast %35 : vector<1xf32> to vector<1x1x1xf32>
    %37 = vector.extract %36[0, 0, 0] : f32 from vector<1x1x1xf32>
    %38 = vector.broadcast %37 : f32 to vector<1x1xf32>
    %cst_31 = arith.constant 6.10351563E-5 : f32
    %39 = vector.broadcast %cst_31 : f32 to vector<1x1xf32>
    %40 = arith.mulf %32, %39 : vector<1x1xf32>
    %cst_32 = arith.constant 6.10351563E-5 : f32
    %41 = vector.broadcast %cst_32 : f32 to vector<1x1xf32>
    %42 = arith.mulf %38, %41 : vector<1x1xf32>
    %43 = arith.mulf %40, %40 : vector<1x1xf32>
    %44 = arith.subf %42, %43 : vector<1x1xf32>
    %45 = vector.broadcast %40 : vector<1x1xf32> to vector<64x256xf32>
    %46 = arith.subf %27, %45 : vector<64x256xf32>
    %cst_33 = arith.constant 9.99999974E-6 : f32
    %47 = vector.broadcast %cst_33 : f32 to vector<1x1xf32>
    %48 = arith.addf %44, %47 : vector<1x1xf32>
    %49 = math.rsqrt %48 : vector<1x1xf32>
    %50 = vector.broadcast %49 : vector<1x1xf32> to vector<64x256xf32>
    %51 = arith.mulf %46, %50 : vector<64x256xf32>
    %c0_34 = arith.constant 0 : index
    %c0_35 = arith.constant 0 : index
    %c0_36 = arith.constant 0 : index
    %52 = vector.load %arg4[%c0_34, %c0_35, %c0_36] : memref<1x64x256xf32, #tpu.memory_space<vmem>>, vector<1x64x256xf32>
    %53 = vector.shape_cast %51 : vector<64x256xf32> to vector<1x64x256xf32>
    %54 = arith.mulf %53, %52 : vector<1x64x256xf32>
    %c0_37 = arith.constant 0 : index
    %c0_38 = arith.constant 0 : index
    %c0_39 = arith.constant 0 : index
    %55 = vector.load %arg5[%c0_37, %c0_38, %c0_39] : memref<1x64x256xf32, #tpu.memory_space<vmem>>, vector<1x64x256xf32>
    %56 = arith.addf %54, %55 : vector<1x64x256xf32>
    %cst_40 = arith.constant 0.000000e+00 : f32
    %57 = vector.broadcast %cst_40 : f32 to vector<1x64x256xf32>
    %58 = arith.cmpf oge, %56, %57 : vector<1x64x256xf32>
    %cst_41 = arith.constant 2.000000e-01 : f32
    %59 = vector.broadcast %cst_41 : f32 to vector<1x64x256xf32>
    %60 = arith.mulf %59, %56 : vector<1x64x256xf32>
    %61 = arith.select %58, %56, %60 : vector<1x64x256xi1>, vector<1x64x256xf32>
    %62 = arith.truncf %61 : vector<1x64x256xf32> to vector<1x64x256xbf16>
    %c0_42 = arith.constant 0 : index
    %c0_43 = arith.constant 0 : index
    %c0_44 = arith.constant 0 : index
    %63 = vector.load %arg6[%c0_42, %c0_43, %c0_44] : memref<1x64x256xbf16, #tpu.memory_space<vmem>>, vector<1x64x256xbf16>
    tpu.vector_store %arg6[%c0_42, %c0_43, %c0_44], %62 {strides = array<i32>} : memref<1x64x256xbf16, #tpu.memory_space<vmem>>, vector<1x64x256xbf16>,
    return
  }
  func.func @transform_0(%arg0: i32) -> (i32, i32, i32, i32) {
    %c0_i32 = arith.constant 0 : i32
    %c0_i32_0 = arith.constant 0 : i32
    %c0_i32_1 = arith.constant 0 : i32
    %c0_i32_2 = arith.constant 0 : i32
    return %arg0, %c0_i32, %c0_i32_0, %c0_i32_1 : i32, i32, i32, i32
  }
  func.func @transform_1(%arg0: i32) -> (i32, i32, i32) {
    %c0_i32 = arith.constant 0 : i32
    %c0_i32_0 = arith.constant 0 : i32
    %c0_i32_1 = arith.constant 0 : i32
    %c0_i32_2 = arith.constant 0 : i32
    return %c0_i32, %c0_i32_0, %c0_i32_1 : i32, i32, i32
  }
  func.func @transform_2(%arg0: i32) -> (i32, i32) {
    %c0_i32 = arith.constant 0 : i32
    %c0_i32_0 = arith.constant 0 : i32
    %c0_i32_1 = arith.constant 0 : i32
    return %c0_i32, %c0_i32_0 : i32, i32
  }
  func.func @transform_3(%arg0: i32) -> (i32, i32, i32) {
    %c0_i32 = arith.constant 0 : i32
    %c0_i32_0 = arith.constant 0 : i32
    %c0_i32_1 = arith.constant 0 : i32
    %c0_i32_2 = arith.constant 0 : i32
    return %c0_i32, %c0_i32_0, %c0_i32_1 : i32, i32, i32
  }
  func.func @transform_4(%arg0: i32) -> (i32, i32, i32) {
    %c0_i32 = arith.constant 0 : i32
    %c0_i32_0 = arith.constant 0 : i32
    %c0_i32_1 = arith.constant 0 : i32
    %c0_i32_2 = arith.constant 0 : i32
    return %c0_i32, %c0_i32_0, %c0_i32_1 : i32, i32, i32
  }
  func.func @transform_5(%arg0: i32) -> (i32, i32, i32) {
    %c0_i32 = arith.constant 0 : i32
    %c0_i32_0 = arith.constant 0 : i32
    %c0_i32_1 = arith.constant 0 : i32
    return %arg0, %c0_i32, %c0_i32_0 : i32, i32, i32
  }
}

module attributes {stable_mosaic.version = 11 : i64} {
  func.func @_conv_ln_lrelu_head_kernel(%arg0: i32, %arg1: memref<1x2x20x1024xbf16, #tpu.memory_space<vmem>>, %arg2: memref<4x1024x512xbf16, #tpu.memory_space<vmem>>, %arg3: memref<1x512xf32, #tpu.memory_space<vmem>>, %arg4: memref<1x16x512xf32, #tpu.memory_space<vmem>>, %arg5: memref<1x16x512xf32, #tpu.memory_space<vmem>>, %arg6: memref<16x512xf32, #tpu.memory_space<vmem>>, %arg7: memref<1x1xf32, #tpu.memory_space<vmem>>, %arg8: memref<1x1x128xf32, #tpu.memory_space<vmem>>) attributes {dimension_semantics = [#tpu.dimension_semantics<parallel>], iteration_bounds = array<i64: 2>, scalar_prefetch = 0 : i64, scratch_operands = 0 : i64, tpu.core_type = #tpu.core_type<tc>, window_params = [{transform_indices = @transform_0, window_bounds = array<i64: 1, 2, 20, 1024>}, {pipeline_mode = #tpu.pipeline_mode<synchronous>, transform_indices = @transform_1, window_bounds = array<i64: 4, 1024, 512>}, {pipeline_mode = #tpu.pipeline_mode<synchronous>, transform_indices = @transform_2, window_bounds = array<i64: 1, 512>}, {pipeline_mode = #tpu.pipeline_mode<synchronous>, transform_indices = @transform_3, window_bounds = array<i64: 1, 16, 512>}, {pipeline_mode = #tpu.pipeline_mode<synchronous>, transform_indices = @transform_4, window_bounds = array<i64: 1, 16, 512>}, {pipeline_mode = #tpu.pipeline_mode<synchronous>, transform_indices = @transform_5, window_bounds = array<i64: 16, 512>}, {pipeline_mode = #tpu.pipeline_mode<synchronous>, transform_indices = @transform_6, window_bounds = array<i64: 1, 1>}, {transform_indices = @transform_7, window_bounds = array<i64: 1, 1, 128>}]} {
    %cst = arith.constant 0.000000e+00 : f32
    %0 = vector.broadcast %cst : f32 to vector<16x512xf32>
    %c0 = arith.constant 0 : index
    %c0_0 = arith.constant 0 : index
    %c0_1 = arith.constant 0 : index
    %c0_2 = arith.constant 0 : index
    %1 = vector.load %arg1[%c0, %c0_0, %c0_1, %c0_2] : memref<1x2x20x1024xbf16, #tpu.memory_space<vmem>>, vector<1x1x16x1024xbf16>
    %2 = vector.shape_cast %1 : vector<1x1x16x1024xbf16> to vector<16x1024xbf16>
    %c0_3 = arith.constant 0 : index
    %c0_4 = arith.constant 0 : index
    %c0_5 = arith.constant 0 : index
    %3 = vector.load %arg2[%c0_3, %c0_4, %c0_5] : memref<4x1024x512xbf16, #tpu.memory_space<vmem>>, vector<1x1024x512xbf16>
    %4 = vector.shape_cast %3 : vector<1x1024x512xbf16> to vector<1024x512xbf16>
    %cst_6 = arith.constant dense<0.000000e+00> : vector<16x512xf32>
    %5 = tpu.matmul %2, %4, %cst_6 {dimension_numbers = #tpu.dot_dimension_numbers<[1], [0], [0], [1], [0, 0, 1, 1], [], []>} : vector<16x1024xbf16>, vector<1024x512xbf16>, vector<16x512xf32> -> vector<16x512xf32>
    %6 = arith.addf %0, %5 : vector<16x512xf32>
    %c0_7 = arith.constant 0 : index
    %c1 = arith.constant 1 : index
    %c0_8 = arith.constant 0 : index
    %c0_9 = arith.constant 0 : index
    %7 = vector.load %arg1[%c0_7, %c1, %c0_8, %c0_9] : memref<1x2x20x1024xbf16, #tpu.memory_space<vmem>>, vector<1x1x16x1024xbf16>
    %8 = vector.shape_cast %7 : vector<1x1x16x1024xbf16> to vector<16x1024xbf16>
    %c1_10 = arith.constant 1 : index
    %c0_11 = arith.constant 0 : index
    %c0_12 = arith.constant 0 : index
    %9 = vector.load %arg2[%c1_10, %c0_11, %c0_12] : memref<4x1024x512xbf16, #tpu.memory_space<vmem>>, vector<1x1024x512xbf16>
    %10 = vector.shape_cast %9 : vector<1x1024x512xbf16> to vector<1024x512xbf16>
    %cst_13 = arith.constant dense<0.000000e+00> : vector<16x512xf32>
    %11 = tpu.matmul %8, %10, %cst_13 {dimension_numbers = #tpu.dot_dimension_numbers<[1], [0], [0], [1], [0, 0, 1, 1], [], []>} : vector<16x1024xbf16>, vector<1024x512xbf16>, vector<16x512xf32> -> vector<16x512xf32>
    %12 = arith.addf %6, %11 : vector<16x512xf32>
    %c0_14 = arith.constant 0 : index
    %c0_15 = arith.constant 0 : index
    %c4 = arith.constant 4 : index
    %c0_16 = arith.constant 0 : index
    %13 = vector.load %arg1[%c0_14, %c0_15, %c4, %c0_16] : memref<1x2x20x1024xbf16, #tpu.memory_space<vmem>>, vector<1x1x16x1024xbf16>
    %14 = vector.shape_cast %13 : vector<1x1x16x1024xbf16> to vector<16x1024xbf16>
    %c2 = arith.constant 2 : index
    %c0_17 = arith.constant 0 : index
    %c0_18 = arith.constant 0 : index
    %15 = vector.load %arg2[%c2, %c0_17, %c0_18] : memref<4x1024x512xbf16, #tpu.memory_space<vmem>>, vector<1x1024x512xbf16>
    %16 = vector.shape_cast %15 : vector<1x1024x512xbf16> to vector<1024x512xbf16>
    %cst_19 = arith.constant dense<0.000000e+00> : vector<16x512xf32>
    %17 = tpu.matmul %14, %16, %cst_19 {dimension_numbers = #tpu.dot_dimension_numbers<[1], [0], [0], [1], [0, 0, 1, 1], [], []>} : vector<16x1024xbf16>, vector<1024x512xbf16>, vector<16x512xf32> -> vector<16x512xf32>
    %18 = arith.addf %12, %17 : vector<16x512xf32>
    %c0_20 = arith.constant 0 : index
    %c1_21 = arith.constant 1 : index
    %c4_22 = arith.constant 4 : index
    %c0_23 = arith.constant 0 : index
    %19 = vector.load %arg1[%c0_20, %c1_21, %c4_22, %c0_23] : memref<1x2x20x1024xbf16, #tpu.memory_space<vmem>>, vector<1x1x16x1024xbf16>
    %20 = vector.shape_cast %19 : vector<1x1x16x1024xbf16> to vector<16x1024xbf16>
    %c3 = arith.constant 3 : index
    %c0_24 = arith.constant 0 : index
    %c0_25 = arith.constant 0 : index
    %21 = vector.load %arg2[%c3, %c0_24, %c0_25] : memref<4x1024x512xbf16, #tpu.memory_space<vmem>>, vector<1x1024x512xbf16>
    %22 = vector.shape_cast %21 : vector<1x1024x512xbf16> to vector<1024x512xbf16>
    %cst_26 = arith.constant dense<0.000000e+00> : vector<16x512xf32>
    %23 = tpu.matmul %20, %22, %cst_26 {dimension_numbers = #tpu.dot_dimension_numbers<[1], [0], [0], [1], [0, 0, 1, 1], [], []>} : vector<16x1024xbf16>, vector<1024x512xbf16>, vector<16x512xf32> -> vector<16x512xf32>
    %24 = arith.addf %18, %23 : vector<16x512xf32>
    %c0_27 = arith.constant 0 : index
    %c0_28 = arith.constant 0 : index
    %25 = vector.load %arg3[%c0_27, %c0_28] : memref<1x512xf32, #tpu.memory_space<vmem>>, vector<1x512xf32>
    %26 = vector.broadcast %25 : vector<1x512xf32> to vector<16x512xf32>
    %27 = arith.addf %24, %26 : vector<16x512xf32>
    %28 = vector.shape_cast %27 : vector<16x512xf32> to vector<1x16x512xf32>
    %cst_29 = arith.constant dense<0.000000e+00> : vector<1xf32>
    %29 = vector.multi_reduction <add>, %28, %cst_29 [1, 2] : vector<1x16x512xf32> to vector<1xf32>
    %30 = vector.shape_cast %29 : vector<1xf32> to vector<1x1x1xf32>
    %31 = vector.extract %30[0, 0, 0] : f32 from vector<1x1x1xf32>
    %32 = vector.broadcast %31 : f32 to vector<1x1xf32>
    %33 = arith.mulf %27, %27 : vector<16x512xf32>
    %34 = vector.shape_cast %33 : vector<16x512xf32> to vector<1x16x512xf32>
    %cst_30 = arith.constant dense<0.000000e+00> : vector<1xf32>
    %35 = vector.multi_reduction <add>, %34, %cst_30 [1, 2] : vector<1x16x512xf32> to vector<1xf32>
    %36 = vector.shape_cast %35 : vector<1xf32> to vector<1x1x1xf32>
    %37 = vector.extract %36[0, 0, 0] : f32 from vector<1x1x1xf32>
    %38 = vector.broadcast %37 : f32 to vector<1x1xf32>
    %cst_31 = arith.constant 1.22070313E-4 : f32
    %39 = vector.broadcast %cst_31 : f32 to vector<1x1xf32>
    %40 = arith.mulf %32, %39 : vector<1x1xf32>
    %cst_32 = arith.constant 1.22070313E-4 : f32
    %41 = vector.broadcast %cst_32 : f32 to vector<1x1xf32>
    %42 = arith.mulf %38, %41 : vector<1x1xf32>
    %43 = arith.mulf %40, %40 : vector<1x1xf32>
    %44 = arith.subf %42, %43 : vector<1x1xf32>
    %45 = vector.broadcast %40 : vector<1x1xf32> to vector<16x512xf32>
    %46 = arith.subf %27, %45 : vector<16x512xf32>
    %cst_33 = arith.constant 9.99999974E-6 : f32
    %47 = vector.broadcast %cst_33 : f32 to vector<1x1xf32>
    %48 = arith.addf %44, %47 : vector<1x1xf32>
    %49 = math.rsqrt %48 : vector<1x1xf32>
    %50 = vector.broadcast %49 : vector<1x1xf32> to vector<16x512xf32>
    %51 = arith.mulf %46, %50 : vector<16x512xf32>
    %c0_34 = arith.constant 0 : index
    %c0_35 = arith.constant 0 : index
    %c0_36 = arith.constant 0 : index
    %52 = vector.load %arg4[%c0_34, %c0_35, %c0_36] : memref<1x16x512xf32, #tpu.memory_space<vmem>>, vector<1x16x512xf32>
    %53 = vector.shape_cast %51 : vector<16x512xf32> to vector<1x16x512xf32>
    %54 = arith.mulf %53, %52 : vector<1x16x512xf32>
    %c0_37 = arith.constant 0 : index
    %c0_38 = arith.constant 0 : index
    %c0_39 = arith.constant 0 : index
    %55 = vector.load %arg5[%c0_37, %c0_38, %c0_39] : memref<1x16x512xf32, #tpu.memory_space<vmem>>, vector<1x16x512xf32>
    %56 = arith.addf %54, %55 : vector<1x16x512xf32>
    %cst_40 = arith.constant 0.000000e+00 : f32
    %57 = vector.broadcast %cst_40 : f32 to vector<1x16x512xf32>
    %58 = arith.cmpf oge, %56, %57 : vector<1x16x512xf32>
    %cst_41 = arith.constant 2.000000e-01 : f32
    %59 = vector.broadcast %cst_41 : f32 to vector<1x16x512xf32>
    %60 = arith.mulf %59, %56 : vector<1x16x512xf32>
    %61 = arith.select %58, %56, %60 : vector<1x16x512xi1>, vector<1x16x512xf32>
    %c0_42 = arith.constant 0 : index
    %c0_43 = arith.constant 0 : index
    %62 = vector.load %arg6[%c0_42, %c0_43] : memref<16x512xf32, #tpu.memory_space<vmem>>, vector<16x512xf32>
    %63 = vector.shape_cast %62 : vector<16x512xf32> to vector<1x16x512xf32>
    %64 = arith.mulf %61, %63 : vector<1x16x512xf32>
    %65 = vector.shape_cast %64 : vector<1x16x512xf32> to vector<1x1x16x512xf32>
    %cst_44 = arith.constant dense<0.000000e+00> : vector<1xf32>
    %66 = vector.multi_reduction <add>, %65, %cst_44 [1, 2, 3] : vector<1x1x16x512xf32> to vector<1xf32>
    %67 = vector.shape_cast %66 : vector<1xf32> to vector<1x1x1x1xf32>
    %68 = vector.extract %67[0, 0, 0, 0] : f32 from vector<1x1x1x1xf32>
    %69 = vector.broadcast %68 : f32 to vector<1x1x1xf32>
    %c0_45 = arith.constant 0 : index
    %c0_46 = arith.constant 0 : index
    %70 = vector.load %arg7[%c0_45, %c0_46] : memref<1x1xf32, #tpu.memory_space<vmem>>, vector<1x1xf32>
    %71 = vector.shape_cast %70 : vector<1x1xf32> to vector<1x1x1xf32>
    %72 = arith.addf %69, %71 : vector<1x1x1xf32>
    %73 = vector.shape_cast %72 : vector<1x1x1xf32> to vector<1x1x1xf32>
    %74 = vector.broadcast %73 : vector<1x1x1xf32> to vector<1x1x128xf32>
    %c0_47 = arith.constant 0 : index
    %c0_48 = arith.constant 0 : index
    %c0_49 = arith.constant 0 : index
    %75 = vector.load %arg8[%c0_47, %c0_48, %c0_49] : memref<1x1x128xf32, #tpu.memory_space<vmem>>, vector<1x1x128xf32>
    tpu.vector_store %arg8[%c0_47, %c0_48, %c0_49], %74 {strides = array<i32>} : memref<1x1x128xf32, #tpu.memory_space<vmem>>, vector<1x1x128xf32>,
    return
  }
  func.func @transform_0(%arg0: i32) -> (i32, i32, i32, i32) {
    %c0_i32 = arith.constant 0 : i32
    %c0_i32_0 = arith.constant 0 : i32
    %c0_i32_1 = arith.constant 0 : i32
    %c0_i32_2 = arith.constant 0 : i32
    return %arg0, %c0_i32, %c0_i32_0, %c0_i32_1 : i32, i32, i32, i32
  }
  func.func @transform_1(%arg0: i32) -> (i32, i32, i32) {
    %c0_i32 = arith.constant 0 : i32
    %c0_i32_0 = arith.constant 0 : i32
    %c0_i32_1 = arith.constant 0 : i32
    %c0_i32_2 = arith.constant 0 : i32
    return %c0_i32, %c0_i32_0, %c0_i32_1 : i32, i32, i32
  }
  func.func @transform_2(%arg0: i32) -> (i32, i32) {
    %c0_i32 = arith.constant 0 : i32
    %c0_i32_0 = arith.constant 0 : i32
    %c0_i32_1 = arith.constant 0 : i32
    return %c0_i32, %c0_i32_0 : i32, i32
  }
  func.func @transform_3(%arg0: i32) -> (i32, i32, i32) {
    %c0_i32 = arith.constant 0 : i32
    %c0_i32_0 = arith.constant 0 : i32
    %c0_i32_1 = arith.constant 0 : i32
    %c0_i32_2 = arith.constant 0 : i32
    return %c0_i32, %c0_i32_0, %c0_i32_1 : i32, i32, i32
  }
  func.func @transform_4(%arg0: i32) -> (i32, i32, i32) {
    %c0_i32 = arith.constant 0 : i32
    %c0_i32_0 = arith.constant 0 : i32
    %c0_i32_1 = arith.constant 0 : i32
    %c0_i32_2 = arith.constant 0 : i32
    return %c0_i32, %c0_i32_0, %c0_i32_1 : i32, i32, i32
  }
  func.func @transform_5(%arg0: i32) -> (i32, i32) {
    %c0_i32 = arith.constant 0 : i32
    %c0_i32_0 = arith.constant 0 : i32
    %c0_i32_1 = arith.constant 0 : i32
    return %c0_i32, %c0_i32_0 : i32, i32
  }
  func.func @transform_6(%arg0: i32) -> (i32, i32) {
    %c0_i32 = arith.constant 0 : i32
    %c0_i32_0 = arith.constant 0 : i32
    %c0_i32_1 = arith.constant 0 : i32
    return %c0_i32, %c0_i32_0 : i32, i32
  }
  func.func @transform_7(%arg0: i32) -> (i32, i32, i32) {
    %c0_i32 = arith.constant 0 : i32
    %c0_i32_0 = arith.constant 0 : i32
    %c0_i32_1 = arith.constant 0 : i32
    return %arg0, %c0_i32, %c0_i32_0 : i32, i32, i32
  }
}

</mosaic_0001>

<bundles_post_ra>
// kernel: discriminator_forward.4
= control target key start
LH: loop header
LB: loop body
LE: loop exit
PB: predicated region body
PF: predicated region fallthrough
CT: control target
= control target key end

     0   :  { %s8942_s12 = smov 0   ;;  %s9898_s0 = inlined_call_operand.vmem [shape: bf16[2,2,1056,12], index: 0, kind: input, shape index: {}]   ;;  %s9899_s1 = inlined_call_operand.vmem [shape: bf16[4,12,64], index: 1, kind: input, shape index: {}]   ;;  %s9900_s2 = inlined_call_operand.vmem [shape: f32[1,64], index: 2, kind: input, shape index: {}]   ;;  %s9901_s3 = inlined_call_operand.vmem [shape: bf16[2,1024,64], index: 3, kind: output, shape index: {}]  }
   0x1 LB: > { %s6429_s13 = sadd.s32 4294967295, %s8920_s12   ;;  %p6433_p0 = scmp.ge.s32.totalorder %s8920_s12, 1  ;;  %s8920_s12 = sphi %s8942_s12, %s13_s12  }
   0x2   : > { %p137_p1 = scmp.lt.s32.totalorder %s8920_s12, 3 }
   0x4   : > { %p138_p2 = pnand %p6433_p0, %p137_p1 }
   0x5   : > { %v8652_v0 = vld [vmem:[%s9899_s1 + $0x8] sm:$0x3f] (!%p138_p2)   ;;  %vm952_vm0 = vcmask (!%p138_p2), 1045504   ;;  %p161_p3 = scmp.lt.s32.totalorder (!%p138_p2), %s6429_s13, 1  ;;  %v8653_v1 = vld [vmem:[%s9899_s1 + $0x10] sm:$0x3f] (!%p138_p2)  }
   0x6   : > { %141 = sbr.rel (%p138_p2) target bundleno = 749 (0x2ed), region = 32  ;;  %8639 = vmatprep.subr.msk.bf16.mxu1 (!%p138_p2), %vm952_vm0, %v8652_v0  ;;  %v954_v2 = vsel (!%p138_p2), %vm952_vm0, %v8652_v0, 0  ;;  %v8655_v3 = vld [vmem:[%s9899_s1] sm:$0x3f] (!%p138_p2)   ;;  %8641 = vmatprep.subr.msk.bf16.mxu0 (!%p138_p2), %vm952_vm0, %v8653_v1  ;;  %v3215_v4 = vsel (!%p138_p2), %vm952_vm0, %v8653_v1, 0  ;;  %vm759_vm1 = vcmask (!%p138_p2), 97280  }
   0x7   : > { %7736 = vmatpush3.bf16.msra.mxu1 (!%p138_p2), %v954_v2  ;;  %7996 = vmatpush3.bf16.msra.mxu0 (!%p138_p2), %v3215_v4  ;;  %v8657_v5 = vld [vmem:[%s9899_s1 + $0x18] sm:$0x3f] (!%p138_p2)   ;;  %v2019_v9 = vsel (!%p138_p2), %vm952_vm0, %v8655_v3, 0  ;;  %vm6245_vm4 = vcmask (!%p138_p2), 519168  }
   0x8   : > { %8640 = vmatprep.subr.msk.bf16.mxu1 (!%p138_p2), %vm952_vm0, %v8655_v3  ;;  %8642 = vmatprep.subr.msk.bf16.mxu0 (!%p138_p2), %vm952_vm0, %v8657_v5  ;;  %v4539_v11 = vsel (!%p138_p2), %vm952_vm0, %v8657_v5, 0 }
   0xd   : > { %s9903_s13 = smov (!%p161_p3, %s6429_s13), 1 }
   0xe   : > { %s8643_s20 = smul.u32 1056, %s9903_s13  ;;  %s7346_s28 = sshll.u32 %s9903_s13, 9 }
   0xf   : > { %s9475_s4 = scalar_lea.vmem %s9901_s3, %s7346_s28 }
  0x10   : > { %s8973_s25 = scalar_lea.vmem %s9898_s0, %s8643_s20 }
  0x11   : > { %v8654_v6 = vld [vmem:[%s8973_s25 + $0x210] sm:$0xff]   ;;  %v8658_v8 = vld [vmem:[%s8973_s25 + $0x218] sm:$0xff]   ;;  %v8660_v12 = vld [vmem:[%s8973_s25 + $0x220] sm:$0xff]  }
  0x12   : > { %v8656_v7 = vld [vmem:[%s8973_s25 + $0x10] sm:$0xff]   ;;  %7737 = vmatprep.mubr.msk.bf16.mxu1 %vm759_vm1, %v8654_v6  ;;  %v8659_v10 = vld [vmem:[%s8973_s25 + $0x18] sm:$0xff]   ;;  %v8661_v13 = vld [vmem:[%s8973_s25 + $0x20] sm:$0xff]  }
  0x13   : > { %7997 = vmatprep.mubr.msk.bf16.mxu0 %vm759_vm1, %v8656_v7  ;;  %7738 = vmatmul.mubr.msk.bf16.vlgmr.msra.gmra.mrb[0].mxu1 %vm759_vm1, %v8658_v8  ;;  %v8662_v14 = vld [vmem:[%s8973_s25 + $0x228] sm:$0xff]   ;;  %v8664_v16 = vld [vmem:[%s8973_s25 + $0x230] sm:$0xff]   ;;  %v8666_v18 = vld [vmem:[%s8973_s25 + $0x238] sm:$0xff]  }
  0x14   : > { %7866 = vmatpush3.bf16.msra.mxu1 %v2019_v9  ;;  %7998 = vmatmul.mubr.msk.bf16.vlgmr.msra.gmra.mrb[0].mxu0 %vm759_vm1, %v8659_v10  ;;  %v8663_v15 = vld [vmem:[%s8973_s25 + $0x28] sm:$0xff]   ;;  %v8665_v17 = vld [vmem:[%s8973_s25 + $0x30] sm:$0xff]   ;;  %v8667_v19 = vld [vmem:[%s8973_s25 + $0x38] sm:$0xff]  }
  0x15   : > { %8126 = vmatpush3.bf16.msra.mxu0 %v4539_v11  ;;  %7741 = vmatprep.mubr.msk.bf16.mxu1 %vm759_vm1, %v8660_v12  ;;  %v8668_v20 = vld [vmem:[%s8973_s25 + $0x240] sm:$0xff]   ;;  %v8670_v22 = vld [vmem:[%s8973_s25 + $0x248] sm:$0xff]   ;;  %v8672_v24 = vld [vmem:[%s8973_s25 + $0x250] sm:$0xff]  }
  0x16   : > { %8001 = vmatprep.mubr.msk.bf16.mxu0 %vm759_vm1, %v8661_v13  ;;  %v8669_v21 = vld [vmem:[%s8973_s25 + $0x40] sm:$0xff]   ;;  %v8671_v23 = vld [vmem:[%s8973_s25 + $0x48] sm:$0xff]   ;;  %v8673_v25 = vld [vmem:[%s8973_s25 + $0x50] sm:$0xff]  }
  0x17   : > { %v8674_v26 = vld [vmem:[%s8973_s25 + $0x258] sm:$0xff]   ;;  %v8676_v28 = vld [vmem:[%s8973_s25 + $0x260] sm:$0xff]   ;;  %v8678_v30 = vld [vmem:[%s8973_s25 + $0x268] sm:$0xff]  }
  0x18   : > { %v8675_v27 = vld [vmem:[%s8973_s25 + $0x58] sm:$0xff]   ;;  %v8677_v29 = vld [vmem:[%s8973_s25 + $0x60] sm:$0xff]   ;;  %v8679_v31 = vld [vmem:[%s8973_s25 + $0x68] sm:$0xff]  }
  0x19   : > { %v8680_v32 = vld [vmem:[%s8973_s25 + $0x270] sm:$0xff]   ;;  %v8682_v34 = vld [vmem:[%s8973_s25 + $0x278] sm:$0xff]   ;;  %v8684_v36 = vld [vmem:[%s8973_s25 + $0x280] sm:$0xff]  }
  0x1a   : > { %v8681_v33 = vld [vmem:[%s8973_s25 + $0x70] sm:$0xff]   ;;  %v8683_v35 = vld [vmem:[%s8973_s25 + $0x78] sm:$0xff]   ;;  %v8685_v37 = vld [vmem:[%s8973_s25 + $0x80] sm:$0xff]  }
  0x1b   : > { %7742 = vmatmul.mubr.msk.bf16.gmra.mrb[4].mxu1 %vm759_vm1, %v8662_v14  ;;  %v8686_v38 = vld [vmem:[%s8973_s25 + $0x288] sm:$0xff]   ;;  %v8688_v40 = vld [vmem:[%s8973_s25 + $0x290] sm:$0xff]   ;;  %v8690_v42 = vld [vmem:[%s8973_s25 + $0x298] sm:$0xff]  }
  0x1c   : > { %8002 = vmatmul.mubr.msk.bf16.gmra.mrb[4].mxu0 %vm759_vm1, %v8663_v15  ;;  %7745 = vmatprep.mubr.msk.bf16.mxu1 %vm759_vm1, %v8664_v16  ;;  %v8687_v39 = vld [vmem:[%s8973_s25 + $0x88] sm:$0xff]   ;;  %v8689_v41 = vld [vmem:[%s8973_s25 + $0x90] sm:$0xff]   ;;  %v8691_v43 = vld [vmem:[%s8973_s25 + $0x98] sm:$0xff]  }
  0x1d   : > { %8005 = vmatprep.mubr.msk.bf16.mxu0 %vm759_vm1, %v8665_v17  ;;  %v8692_v44 = vld [vmem:[%s8973_s25 + $0x2a0] sm:$0xff]   ;;  %v8694_v46 = vld [vmem:[%s8973_s25 + $0x2a8] sm:$0xff]   ;;  %v8696_v48 = vld [vmem:[%s8973_s25 + $0x2b0] sm:$0xff]  }
  0x1e   : > { %v8693_v45 = vld [vmem:[%s8973_s25 + $0xa0] sm:$0xff]   ;;  %v8695_v47 = vld [vmem:[%s8973_s25 + $0xa8] sm:$0xff]   ;;  %v8697_v49 = vld [vmem:[%s8973_s25 + $0xb0] sm:$0xff]  }
  0x1f   : > { %v8698_v50 = vld [vmem:[%s8973_s25 + $0x2b8] sm:$0xff]   ;;  %v8700_v52 = vld [vmem:[%s8973_s25 + $0x2c0] sm:$0xff]   ;;  %v8702_v54 = vld [vmem:[%s8973_s25 + $0x2c8] sm:$0xff]  }
  0x20   : > { %v8699_v51 = vld [vmem:[%s8973_s25 + $0xb8] sm:$0xff]   ;;  %v8701_v53 = vld [vmem:[%s8973_s25 + $0xc0] sm:$0xff]   ;;  %v8703_v55 = vld [vmem:[%s8973_s25 + $0xc8] sm:$0xff]  }
  0x21   : > { %v8704_v56 = vld [vmem:[%s8973_s25 + $0x2d0] sm:$0xff]   ;;  %v8706_v58 = vld [vmem:[%s8973_s25 + $0x2d8] sm:$0xff]   ;;  %v8708_v60 = vld [vmem:[%s8973_s25 + $0x2e0] sm:$0xff]  }
  0x22   : > { %v8705_v57 = vld [vmem:[%s8973_s25 + $0xd0] sm:$0xff]   ;;  %v8707_v59 = vld [vmem:[%s8973_s25 + $0xd8] sm:$0xff]   ;;  %v8709_v61 = vld [vmem:[%s8973_s25 + $0xe0] sm:$0xff]  }
  0x23   : > { %7746 = vmatmul.mubr.msk.bf16.gmra.mrb[8].mxu1 %vm759_vm1, %v8666_v18  ;;  %v8710_v62 = vld [vmem:[%s8973_s25 + $0x2e8] sm:$0xff]   ;;  %v8712_v0 = vld [vmem:[%s8973_s25 + $0x2f0] sm:$0xff]   ;;  %v8714_v2 = vld [vmem:[%s8973_s25 + $0x2f8] sm:$0xff]  }
  0x24   : > { %8006 = vmatmul.mubr.msk.bf16.gmra.mrb[8].mxu0 %vm759_vm1, %v8667_v19  ;;  %7749 = vmatprep.mubr.msk.bf16.mxu1 %vm759_vm1, %v8668_v20  ;;  %v8711_v63 = vld [vmem:[%s8973_s25 + $0xe8] sm:$0xff]   ;;  %v8713_v1 = vld [vmem:[%s8973_s25 + $0xf0] sm:$0xff]   ;;  %v8715_v3 = vld [vmem:[%s8973_s25 + $0xf8] sm:$0xff]  }
  0x25   : > { %8009 = vmatprep.mubr.msk.bf16.mxu0 %vm759_vm1, %v8669_v21  ;;  %v8716_v4 = vld [vmem:[%s8973_s25 + $0x300] sm:$0xff]   ;;  %v8718_v6 = vld [vmem:[%s8973_s25 + $0x308] sm:$0xff]   ;;  %v8720_v8 = vld [vmem:[%s8973_s25 + $0x310] sm:$0xff]  }
  0x26   : > { %v8717_v5 = vld [vmem:[%s8973_s25 + $0x100] sm:$0xff]   ;;  %v8719_v7 = vld [vmem:[%s8973_s25 + $0x108] sm:$0xff]   ;;  %v8721_v9 = vld [vmem:[%s8973_s25 + $0x110] sm:$0xff]  }
  0x27   : > { %v8722_v10 = vld [vmem:[%s8973_s25 + $0x318] sm:$0xff]   ;;  %v8724_v12 = vld [vmem:[%s8973_s25 + $0x320] sm:$0xff]   ;;  %v8726_v14 = vld [vmem:[%s8973_s25 + $0x328] sm:$0xff]  }
  0x28   : > { %v8723_v11 = vld [vmem:[%s8973_s25 + $0x118] sm:$0xff]   ;;  %v8725_v13 = vld [vmem:[%s8973_s25 + $0x120] sm:$0xff]   ;;  %v8727_v15 = vld [vmem:[%s8973_s25 + $0x128] sm:$0xff]  }
  0x29   : > { %v8728_v16 = vld [vmem:[%s8973_s25 + $0x330] sm:$0xff]   ;;  %v8730_v18 = vld [vmem:[%s8973_s25 + $0x338] sm:$0xff]   ;;  %v8732_v20 = vld [vmem:[%s8973_s25 + $0x340] sm:$0xff]  }
  0x2a   : > { %v8729_v17 = vld [vmem:[%s8973_s25 + $0x130] sm:$0xff]   ;;  %v8731_v19 = vld [vmem:[%s8973_s25 + $0x138] sm:$0xff]   ;;  %v8733_v21 = vld [vmem:[%s8973_s25 + $0x140] sm:$0xff]  }
  0x2b   : > { %7750 = vmatmul.mubr.msk.bf16.gmra.mrb[12].mxu1 %vm759_vm1, %v8670_v22  ;;  %v8734_v22 = vld [vmem:[%s8973_s25 + $0x348] sm:$0xff]  }
  0x2c   : > { %8010 = vmatmul.mubr.msk.bf16.gmra.mrb[12].mxu0 %vm759_vm1, %v8671_v23  ;;  %7753 = vmatprep.mubr.msk.bf16.mxu1 %vm759_vm1, %v8672_v24  ;;  %v8735_v23 = vld [vmem:[%s8973_s25 + $0x148] sm:$0xff]   ;;  %v8736_v24 = vld [vmem:[%s8973_s25 + $0x350] sm:$0xff]  }
  0x2d   : > { %8013 = vmatprep.mubr.msk.bf16.mxu0 %vm759_vm1, %v8673_v25  ;;  %v8737_v25 = vld [vmem:[%s8973_s25 + $0x150] sm:$0xff]  }
  0x33   : > { %7754 = vmatmul.mubr.msk.bf16.gmra.mrb[16].mxu1 %vm759_vm1, %v8674_v26  ;;  %v8738_v26 = vld [vmem:[%s8973_s25 + $0x358] sm:$0xff]  }
  0x34   : > { %8014 = vmatmul.mubr.msk.bf16.gmra.mrb[16].mxu0 %vm759_vm1, %v8675_v27  ;;  %7757 = vmatprep.mubr.msk.bf16.mxu1 %vm759_vm1, %v8676_v28  ;;  %v8739_v27 = vld [vmem:[%s8973_s25 + $0x158] sm:$0xff]   ;;  %v8740_v28 = vld [vmem:[%s8973_s25 + $0x360] sm:$0xff]  }
  0x35   : > { %8017 = vmatprep.mubr.msk.bf16.mxu0 %vm759_vm1, %v8677_v29  ;;  %v8741_v29 = vld [vmem:[%s8973_s25 + $0x160] sm:$0xff]  }
  0x3b   : > { %7758 = vmatmul.mubr.msk.bf16.gmra.mrb[20].mxu1 %vm759_vm1, %v8678_v30  ;;  %v8742_v30 = vld [vmem:[%s8973_s25 + $0x368] sm:$0xff]  }
  0x3c   : > { %8018 = vmatmul.mubr.msk.bf16.gmra.mrb[20].mxu0 %vm759_vm1, %v8679_v31  ;;  %7761 = vmatprep.mubr.msk.bf16.mxu1 %vm759_vm1, %v8680_v32  ;;  %v8743_v31 = vld [vmem:[%s8973_s25 + $0x168] sm:$0xff]   ;;  %v8744_v32 = vld [vmem:[%s8973_s25 + $0x370] sm:$0xff]  }
  0x3d   : > { %8021 = vmatprep.mubr.msk.bf16.mxu0 %vm759_vm1, %v8681_v33  ;;  %v8745_v33 = vld [vmem:[%s8973_s25 + $0x170] sm:$0xff]  }
  0x43   : > { %7762 = vmatmul.mubr.msk.bf16.gmra.mrb[24].mxu1 %vm759_vm1, %v8682_v34  ;;  %v8746_v34 = vld [vmem:[%s8973_s25 + $0x378] sm:$0xff]  }
  0x44   : > { %8022 = vmatmul.mubr.msk.bf16.gmra.mrb[24].mxu0 %vm759_vm1, %v8683_v35  ;;  %7765 = vmatprep.mubr.msk.bf16.mxu1 %vm759_vm1, %v8684_v36  ;;  %v8747_v35 = vld [vmem:[%s8973_s25 + $0x178] sm:$0xff]   ;;  %v8748_v36 = vld [vmem:[%s8973_s25 + $0x380] sm:$0xff]  }
  0x45   : > { %8025 = vmatprep.mubr.msk.bf16.mxu0 %vm759_vm1, %v8685_v37  ;;  %v8749_v37 = vld [vmem:[%s8973_s25 + $0x180] sm:$0xff]  }
  0x4b   : > { %7766 = vmatmul.mubr.msk.bf16.gmra.mrb[28].mxu1 %vm759_vm1, %v8686_v38  ;;  %v8750_v38 = vld [vmem:[%s8973_s25 + $0x388] sm:$0xff]  }
  0x4c   : > { %8026 = vmatmul.mubr.msk.bf16.gmra.mrb[28].mxu0 %vm759_vm1, %v8687_v39  ;;  %7769 = vmatprep.mubr.msk.bf16.mxu1 %vm759_vm1, %v8688_v40  ;;  %v8751_v39 = vld [vmem:[%s8973_s25 + $0x188] sm:$0xff]   ;;  %v8752_v40 = vld [vmem:[%s8973_s25 + $0x390] sm:$0xff]  }
  0x4d   : > { %8029 = vmatprep.mubr.msk.bf16.mxu0 %vm759_vm1, %v8689_v41  ;;  %v8753_v41 = vld [vmem:[%s8973_s25 + $0x190] sm:$0xff]  }
  0x53   : > { %7770 = vmatmul.mubr.msk.bf16.gmra.mrb[32].mxu1 %vm759_vm1, %v8690_v42  ;;  %v8754_v42 = vld [vmem:[%s8973_s25 + $0x398] sm:$0xff]  }
  0x54   : > { %8030 = vmatmul.mubr.msk.bf16.gmra.mrb[32].mxu0 %vm759_vm1, %v8691_v43  ;;  %7773 = vmatprep.mubr.msk.bf16.mxu1 %vm759_vm1, %v8692_v44  ;;  %v8755_v43 = vld [vmem:[%s8973_s25 + $0x198] sm:$0xff]   ;;  %v8756_v44 = vld [vmem:[%s8973_s25 + $0x3a0] sm:$0xff]  }
  0x55   : > { %8033 = vmatprep.mubr.msk.bf16.mxu0 %vm759_vm1, %v8693_v45  ;;  %v8757_v45 = vld [vmem:[%s8973_s25 + $0x1a0] sm:$0xff]  }
  0x5b   : > { %7774 = vmatmul.mubr.msk.bf16.gmra.mrb[36].mxu1 %vm759_vm1, %v8694_v46  ;;  %v8758_v46 = vld [vmem:[%s8973_s25 + $0x3a8] sm:$0xff]  }
  0x5c   : > { %8034 = vmatmul.mubr.msk.bf16.gmra.mrb[36].mxu0 %vm759_vm1, %v8695_v47  ;;  %7777 = vmatprep.mubr.msk.bf16.mxu1 %vm759_vm1, %v8696_v48  ;;  %v8759_v47 = vld [vmem:[%s8973_s25 + $0x1a8] sm:$0xff]   ;;  %v8760_v48 = vld [vmem:[%s8973_s25 + $0x3b0] sm:$0xff]  }
  0x5d   : > { %8037 = vmatprep.mubr.msk.bf16.mxu0 %vm759_vm1, %v8697_v49  ;;  %v8761_v49 = vld [vmem:[%s8973_s25 + $0x1b0] sm:$0xff]  }
  0x63   : > { %7778 = vmatmul.mubr.msk.bf16.gmra.mrb[40].mxu1 %vm759_vm1, %v8698_v50  ;;  %v8762_v50 = vld [vmem:[%s8973_s25 + $0x3b8] sm:$0xff]  }
  0x64   : > { %8038 = vmatmul.mubr.msk.bf16.gmra.mrb[40].mxu0 %vm759_vm1, %v8699_v51  ;;  %7781 = vmatprep.mubr.msk.bf16.mxu1 %vm759_vm1, %v8700_v52  ;;  %v8763_v51 = vld [vmem:[%s8973_s25 + $0x1b8] sm:$0xff]   ;;  %v8764_v52 = vld [vmem:[%s8973_s25 + $0x3c0] sm:$0xff]  }
  0x65   : > { %8041 = vmatprep.mubr.msk.bf16.mxu0 %vm759_vm1, %v8701_v53  ;;  %v8765_v53 = vld [vmem:[%s8973_s25 + $0x1c0] sm:$0xff]  }
  0x6b   : > { %7782 = vmatmul.mubr.msk.bf16.gmra.mrb[44].mxu1 %vm759_vm1, %v8702_v54  ;;  %v8766_v54 = vld [vmem:[%s8973_s25 + $0x3c8] sm:$0xff]  }
  0x6c   : > { %8042 = vmatmul.mubr.msk.bf16.gmra.mrb[44].mxu0 %vm759_vm1, %v8703_v55  ;;  %7785 = vmatprep.mubr.msk.bf16.mxu1 %vm759_vm1, %v8704_v56  ;;  %v8767_v55 = vld [vmem:[%s8973_s25 + $0x1c8] sm:$0xff]   ;;  %v8768_v56 = vld [vmem:[%s8973_s25 + $0x3d0] sm:$0xff]  }
  0x6d   : > { %8045 = vmatprep.mubr.msk.bf16.mxu0 %vm759_vm1, %v8705_v57  ;;  %v8769_v57 = vld [vmem:[%s8973_s25 + $0x1d0] sm:$0xff]  }
  0x73   : > { %7786 = vmatmul.mubr.msk.bf16.gmra.mrb[48].mxu1 %vm759_vm1, %v8706_v58  ;;  %v8770_v58 = vld [vmem:[%s8973_s25 + $0x3d8] sm:$0xff]  }
  0x74   : > { %8046 = vmatmul.mubr.msk.bf16.gmra.mrb[48].mxu0 %vm759_vm1, %v8707_v59  ;;  %7789 = vmatprep.mubr.msk.bf16.mxu1 %vm759_vm1, %v8708_v60  ;;  %v8771_v59 = vld [vmem:[%s8973_s25 + $0x1d8] sm:$0xff]   ;;  %v8772_v60 = vld [vmem:[%s8973_s25 + $0x3e0] sm:$0xff]  }
  0x75   : > { %8049 = vmatprep.mubr.msk.bf16.mxu0 %vm759_vm1, %v8709_v61  ;;  %v8773_v61 = vld [vmem:[%s8973_s25 + $0x1e0] sm:$0xff]  }
  0x7b   : > { %7790 = vmatmul.mubr.msk.bf16.gmra.mrb[52].mxu1 %vm759_vm1, %v8710_v62  ;;  %v8774_v62 = vld [vmem:[%s8973_s25 + $0x3e8] sm:$0xff]  }
  0x7c   : > { %8050 = vmatmul.mubr.msk.bf16.gmra.mrb[52].mxu0 %vm759_vm1, %v8711_v63  ;;  %7793 = vmatprep.mubr.msk.bf16.mxu1 %vm759_vm1, %v8712_v0  ;;  %v8775_v63 = vld [vmem:[%s8973_s25 + $0x1e8] sm:$0xff]   ;;  %v8776_v0 = vld [vmem:[%s8973_s25 + $0x3f0] sm:$0xff]  }
  0x7d   : > { %8053 = vmatprep.mubr.msk.bf16.mxu0 %vm759_vm1, %v8713_v1  ;;  %v8777_v1 = vld [vmem:[%s8973_s25 + $0x1f0] sm:$0xff]  }
  0x83   : > { %7794 = vmatmul.mubr.msk.bf16.gmra.mrb[56].mxu1 %vm759_vm1, %v8714_v2  ;;  %v8778_v2 = vld [vmem:[%s8973_s25 + $0x3f8] sm:$0xff]  }
  0x84   : > { %8054 = vmatmul.mubr.msk.bf16.gmra.mrb[56].mxu0 %vm759_vm1, %v8715_v3  ;;  %7797 = vmatprep.mubr.msk.bf16.mxu1 %vm759_vm1, %v8716_v4  ;;  %v8779_v3 = vld [vmem:[%s8973_s25 + $0x1f8] sm:$0xff]   ;;  %v8780_v4 = vld [vmem:[%s8973_s25 + $0x400] sm:$0xff]  }
  0x85   : > { %8057 = vmatprep.mubr.msk.bf16.mxu0 %vm759_vm1, %v8717_v5  ;;  %v8781_v5 = vld [vmem:[%s8973_s25 + $0x200] sm:$0xff]  }
  0x8b   : > { %7798 = vmatmul.mubr.msk.bf16.gmra.mrb[60].mxu1 %vm759_vm1, %v8718_v6  ;;  %v8782_v6 = vld [vmem:[%s8973_s25 + $0x408] sm:$0xff]  }
  0x8c   : > { %8058 = vmatmul.mubr.msk.bf16.gmra.mrb[60].mxu0 %vm759_vm1, %v8719_v7  ;;  %7801 = vmatprep.mubr.msk.bf16.mxu1 %vm759_vm1, %v8720_v8  ;;  %v8783_v7 = vld [vmem:[%s8973_s25 + $0x208] sm:$0xff]   ;;  %v8784_v8 = vld [vmem:[%s8973_s25] sm:$0xff]  }
  0x8d   : > { %8061 = vmatprep.mubr.msk.bf16.mxu0 %vm759_vm1, %v8721_v9  ;;  %v8785_v9 = vld [vmem:[%s8973_s25 + $0x220] sm:$0xff]  }
  0x93   : > { %7802 = vmatmul.mubr.msk.bf16.gmra.mrb[64].mxu1 %vm759_vm1, %v8722_v10  ;;  %v8786_v10 = vld [vmem:[%s8973_s25 + $0x8] sm:$0xff]  }
  0x94   : > { %8062 = vmatmul.mubr.msk.bf16.gmra.mrb[64].mxu0 %vm759_vm1, %v8723_v11  ;;  %7805 = vmatprep.mubr.msk.bf16.mxu1 %vm759_vm1, %v8724_v12  ;;  %v8787_v11 = vld [vmem:[%s8973_s25 + $0x228] sm:$0xff]   ;;  %v8788_v12 = vld [vmem:[%s8973_s25 + $0x10] sm:$0xff]  }
  0x95   : > { %8065 = vmatprep.mubr.msk.bf16.mxu0 %vm759_vm1, %v8725_v13  ;;  %v8789_v13 = vld [vmem:[%s8973_s25 + $0x230] sm:$0xff]  }
  0x9b   : > { %7806 = vmatmul.mubr.msk.bf16.gmra.mrb[68].mxu1 %vm759_vm1, %v8726_v14  ;;  %v8790_v14 = vld [vmem:[%s8973_s25 + $0x18] sm:$0xff]  }
  0x9c   : > { %8066 = vmatmul.mubr.msk.bf16.gmra.mrb[68].mxu0 %vm759_vm1, %v8727_v15  ;;  %7809 = vmatprep.mubr.msk.bf16.mxu1 %vm759_vm1, %v8728_v16  ;;  %v8791_v15 = vld [vmem:[%s8973_s25 + $0x238] sm:$0xff]   ;;  %v8792_v16 = vld [vmem:[%s8973_s25 + $0x20] sm:$0xff]  }
  0x9d   : > { %8069 = vmatprep.mubr.msk.bf16.mxu0 %vm759_vm1, %v8729_v17  ;;  %v8793_v17 = vld [vmem:[%s8973_s25 + $0x240] sm:$0xff]  }
  0xa3   : > { %7810 = vmatmul.mubr.msk.bf16.gmra.mrb[72].mxu1 %vm759_vm1, %v8730_v18  ;;  %v8794_v18 = vld [vmem:[%s8973_s25 + $0x28] sm:$0xff]  }
  0xa4   : > { %8070 = vmatmul.mubr.msk.bf16.gmra.mrb[72].mxu0 %vm759_vm1, %v8731_v19  ;;  %7813 = vmatprep.mubr.msk.bf16.mxu1 %vm759_vm1, %v8732_v20  ;;  %v8795_v19 = vld [vmem:[%s8973_s25 + $0x248] sm:$0xff]   ;;  %v8796_v20 = vld [vmem:[%s8973_s25 + $0x30] sm:$0xff]  }
  0xa5   : > { %8073 = vmatprep.mubr.msk.bf16.mxu0 %vm759_vm1, %v8733_v21  ;;  %v8797_v21 = vld [vmem:[%s8973_s25 + $0x250] sm:$0xff]  }
  0xab   : > { %7814 = vmatmul.mubr.msk.bf16.gmra.mrb[76].mxu1 %vm759_vm1, %v8734_v22  ;;  %v8798_v22 = vld [vmem:[%s8973_s25 + $0x38] sm:$0xff]  }
  0xac   : > { %8074 = vmatmul.mubr.msk.bf16.gmra.mrb[76].mxu0 %vm759_vm1, %v8735_v23  ;;  %7817 = vmatprep.mubr.msk.bf16.mxu1 %vm759_vm1, %v8736_v24  ;;  %v8799_v23 = vld [vmem:[%s8973_s25 + $0x258] sm:$0xff]   ;;  %v8800_v24 = vld [vmem:[%s8973_s25 + $0x40] sm:$0xff]  }
  0xad   : > { %8077 = vmatprep.mubr.msk.bf16.mxu0 %vm759_vm1, %v8737_v25  ;;  %v8801_v25 = vld [vmem:[%s8973_s25 + $0x260] sm:$0xff]  }
  0xb3   : > { %7818 = vmatmul.mubr.msk.bf16.gmra.mrb[80].mxu1 %vm759_vm1, %v8738_v26  ;;  %v8802_v26 = vld [vmem:[%s8973_s25 + $0x48] sm:$0xff]  }
  0xb4   : > { %8078 = vmatmul.mubr.msk.bf16.gmra.mrb[80].mxu0 %vm759_vm1, %v8739_v27  ;;  %7821 = vmatprep.mubr.msk.bf16.mxu1 %vm759_vm1, %v8740_v28  ;;  %v8803_v27 = vld [vmem:[%s8973_s25 + $0x268] sm:$0xff]   ;;  %v8804_v28 = vld [vmem:[%s8973_s25 + $0x50] sm:$0xff]  }
  0xb5   : > { %8081 = vmatprep.mubr.msk.bf16.mxu0 %vm759_vm1, %v8741_v29  ;;  %v8805_v29 = vld [vmem:[%s8973_s25 + $0x270] sm:$0xff]  }
  0xbb   : > { %7822 = vmatmul.mubr.msk.bf16.gmra.mrb[84].mxu1 %vm759_vm1, %v8742_v30  ;;  %v8806_v30 = vld [vmem:[%s8973_s25 + $0x58] sm:$0xff]  }
  0xbc   : > { %8082 = vmatmul.mubr.msk.bf16.gmra.mrb[84].mxu0 %vm759_vm1, %v8743_v31  ;;  %7825 = vmatprep.mubr.msk.bf16.mxu1 %vm759_vm1, %v8744_v32  ;;  %v8807_v31 = vld [vmem:[%s8973_s25 + $0x278] sm:$0xff]   ;;  %v8808_v32 = vld [vmem:[%s8973_s25 + $0x60] sm:$0xff]  }
  0xbd   : > { %8085 = vmatprep.mubr.msk.bf16.mxu0 %vm759_vm1, %v8745_v33  ;;  %v8809_v33 = vld [vmem:[%s8973_s25 + $0x280] sm:$0xff]  }
  0xc3   : > { %7826 = vmatmul.mubr.msk.bf16.gmra.mrb[88].mxu1 %vm759_vm1, %v8746_v34  ;;  %v8810_v34 = vld [vmem:[%s8973_s25 + $0x68] sm:$0xff]  }
  0xc4   : > { %8086 = vmatmul.mubr.msk.bf16.gmra.mrb[88].mxu0 %vm759_vm1, %v8747_v35  ;;  %7829 = vmatprep.mubr.msk.bf16.mxu1 %vm759_vm1, %v8748_v36  ;;  %v8811_v35 = vld [vmem:[%s8973_s25 + $0x288] sm:$0xff]   ;;  %v8812_v36 = vld [vmem:[%s8973_s25 + $0x70] sm:$0xff]  }
  0xc5   : > { %8089 = vmatprep.mubr.msk.bf16.mxu0 %vm759_vm1, %v8749_v37  ;;  %v8813_v37 = vld [vmem:[%s8973_s25 + $0x290] sm:$0xff]  }
  0xcb   : > { %7830 = vmatmul.mubr.msk.bf16.gmra.mrb[92].mxu1 %vm759_vm1, %v8750_v38  ;;  %v8814_v38 = vld [vmem:[%s8973_s25 + $0x78] sm:$0xff]  }
  0xcc   : > { %8090 = vmatmul.mubr.msk.bf16.gmra.mrb[92].mxu0 %vm759_vm1, %v8751_v39  ;;  %7833 = vmatprep.mubr.msk.bf16.mxu1 %vm759_vm1, %v8752_v40  ;;  %v8815_v39 = vld [vmem:[%s8973_s25 + $0x298] sm:$0xff]   ;;  %v8816_v40 = vld [vmem:[%s8973_s25 + $0x80] sm:$0xff]  }
  0xcd   : > { %8093 = vmatprep.mubr.msk.bf16.mxu0 %vm759_vm1, %v8753_v41  ;;  %v8817_v41 = vld [vmem:[%s8973_s25 + $0x2a0] sm:$0xff]  }
  0xd3   : > { %7834 = vmatmul.mubr.msk.bf16.gmra.mrb[96].mxu1 %vm759_vm1, %v8754_v42  ;;  %v8818_v42 = vld [vmem:[%s8973_s25 + $0x88] sm:$0xff]  }
  0xd4   : > { %8094 = vmatmul.mubr.msk.bf16.gmra.mrb[96].mxu0 %vm759_vm1, %v8755_v43  ;;  %7837 = vmatprep.mubr.msk.bf16.mxu1 %vm759_vm1, %v8756_v44  ;;  %v8819_v43 = vld [vmem:[%s8973_s25 + $0x2a8] sm:$0xff]   ;;  %v8820_v44 = vld [vmem:[%s8973_s25 + $0x90] sm:$0xff]  }
  0xd5   : > { %8097 = vmatprep.mubr.msk.bf16.mxu0 %vm759_vm1, %v8757_v45  ;;  %v8821_v45 = vld [vmem:[%s8973_s25 + $0x2b0] sm:$0xff]  }
  0xdb   : > { %7838 = vmatmul.mubr.msk.bf16.gmra.mrb[100].mxu1 %vm759_vm1, %v8758_v46  ;;  %v8822_v46 = vld [vmem:[%s8973_s25 + $0x98] sm:$0xff]  }
  0xdc   : > { %8098 = vmatmul.mubr.msk.bf16.gmra.mrb[100].mxu0 %vm759_vm1, %v8759_v47  ;;  %7841 = vmatprep.mubr.msk.bf16.mxu1 %vm759_vm1, %v8760_v48  ;;  %v8823_v47 = vld [vmem:[%s8973_s25 + $0x2b8] sm:$0xff]   ;;  %v8824_v48 = vld [vmem:[%s8973_s25 + $0xa0] sm:$0xff]  }
  0xdd   : > { %8101 = vmatprep.mubr.msk.bf16.mxu0 %vm759_vm1, %v8761_v49  ;;  %v8825_v49 = vld [vmem:[%s8973_s25 + $0x2c0] sm:$0xff]  }
  0xe3   : > { %7842 = vmatmul.mubr.msk.bf16.gmra.mrb[104].mxu1 %vm759_vm1, %v8762_v50  ;;  %v8826_v50 = vld [vmem:[%s8973_s25 + $0xa8] sm:$0xff]  }
  0xe4   : > { %8102 = vmatmul.mubr.msk.bf16.gmra.mrb[104].mxu0 %vm759_vm1, %v8763_v51  ;;  %7845 = vmatprep.mubr.msk.bf16.mxu1 %vm759_vm1, %v8764_v52  ;;  %v8827_v51 = vld [vmem:[%s8973_s25 + $0x2c8] sm:$0xff]   ;;  %v8828_v52 = vld [vmem:[%s8973_s25 + $0xb0] sm:$0xff]  }
  0xe5   : > { %8105 = vmatprep.mubr.msk.bf16.mxu0 %vm759_vm1, %v8765_v53  ;;  %v8829_v53 = vld [vmem:[%s8973_s25 + $0x2d0] sm:$0xff]  }
  0xeb   : > { %7846 = vmatmul.mubr.msk.bf16.gmra.mrb[108].mxu1 %vm759_vm1, %v8766_v54  ;;  %v8830_v54 = vld [vmem:[%s8973_s25 + $0xb8] sm:$0xff]  }
  0xec   : > { %8106 = vmatmul.mubr.msk.bf16.gmra.mrb[108].mxu0 %vm759_vm1, %v8767_v55  ;;  %7849 = vmatprep.mubr.msk.bf16.mxu1 %vm759_vm1, %v8768_v56  ;;  %v8831_v55 = vld [vmem:[%s8973_s25 + $0x2d8] sm:$0xff]   ;;  %v8832_v56 = vld [vmem:[%s8973_s25 + $0xc0] sm:$0xff]  }
  0xed   : > { %8109 = vmatprep.mubr.msk.bf16.mxu0 %vm759_vm1, %v8769_v57  ;;  %v8833_v57 = vld [vmem:[%s8973_s25 + $0x2e0] sm:$0xff]  }
  0xf3   : > { %7850 = vmatmul.mubr.msk.bf16.gmra.mrb[112].mxu1 %vm759_vm1, %v8770_v58  ;;  %v8834_v58 = vld [vmem:[%s8973_s25 + $0xc8] sm:$0xff]  }
  0xf4   : > { %8110 = vmatmul.mubr.msk.bf16.gmra.mrb[112].mxu0 %vm759_vm1, %v8771_v59  ;;  %7853 = vmatprep.mubr.msk.bf16.mxu1 %vm759_vm1, %v8772_v60  ;;  %v8835_v59 = vld [vmem:[%s8973_s25 + $0x2e8] sm:$0xff]   ;;  %v8836_v60 = vld [vmem:[%s8973_s25 + $0xd0] sm:$0xff]  }
  0xf5   : > { %8113 = vmatprep.mubr.msk.bf16.mxu0 %vm759_vm1, %v8773_v61  ;;  %v8837_v61 = vld [vmem:[%s8973_s25 + $0x2f0] sm:$0xff]  }
  0xfb   : > { %7854 = vmatmul.mubr.msk.bf16.gmra.mrb[116].mxu1 %vm759_vm1, %v8774_v62  ;;  %v8838_v62 = vld [vmem:[%s8973_s25 + $0xd8] sm:$0xff]  }
  0xfc   : > { %8114 = vmatmul.mubr.msk.bf16.gmra.mrb[116].mxu0 %vm759_vm1, %v8775_v63  ;;  %7857 = vmatprep.mubr.msk.bf16.mxu1 %vm759_vm1, %v8776_v0  ;;  %v8839_v63 = vld [vmem:[%s8973_s25 + $0x2f8] sm:$0xff]   ;;  %v8840_v0 = vld [vmem:[%s8973_s25 + $0xe0] sm:$0xff]  }
  0xfd   : > { %8117 = vmatprep.mubr.msk.bf16.mxu0 %vm759_vm1, %v8777_v1  ;;  %v8841_v1 = vld [vmem:[%s8973_s25 + $0x300] sm:$0xff]  }
 0x103   : > { %7858 = vmatmul.mubr.msk.bf16.gmra.mrb[120].mxu1 %vm759_vm1, %v8778_v2  ;;  %v8842_v2 = vld [vmem:[%s8973_s25 + $0xe8] sm:$0xff]  }
 0x104   : > { %8118 = vmatmul.mubr.msk.bf16.gmra.mrb[120].mxu0 %vm759_vm1, %v8779_v3  ;;  %7861 = vmatprep.mubr.msk.bf16.mxu1 %vm759_vm1, %v8780_v4  ;;  %v8843_v3 = vld [vmem:[%s8973_s25 + $0x308] sm:$0xff]   ;;  %v8844_v4 = vld [vmem:[%s8973_s25 + $0xf0] sm:$0xff]  }
 0x105   : > { %8121 = vmatprep.mubr.msk.bf16.mxu0 %vm759_vm1, %v8781_v5  ;;  %v8845_v5 = vld [vmem:[%s8973_s25 + $0x310] sm:$0xff]  }
 0x10b   : > { %7862 = vmatmul.mubr.msk.bf16.gmra.mrb[124].mxu1 %vm759_vm1, %v8782_v6  ;;  %v8846_v6 = vld [vmem:[%s8973_s25 + $0xf8] sm:$0xff]  }
 0x10c   : > { %8122 = vmatmul.mubr.msk.bf16.gmra.mrb[124].mxu0 %vm759_vm1, %v8783_v7  ;;  %7867 = vmatprep.mubr.msk.bf16.mxu1 %vm759_vm1, %v8784_v8  ;;  %v8847_v7 = vld [vmem:[%s8973_s25 + $0x318] sm:$0xff]   ;;  %v8848_v8 = vld [vmem:[%s8973_s25 + $0x100] sm:$0xff]  }
 0x10d   : > { %8127 = vmatprep.mubr.msk.bf16.mxu0 %vm759_vm1, %v8785_v9  ;;  %v8849_v9 = vld [vmem:[%s8973_s25 + $0x320] sm:$0xff]  }
 0x113   : > { %7868 = vmatmul.mubr.msk.bf16.vlgmr.msra.gmra.mrb[0].mxu1 %vm759_vm1, %v8786_v10  ;;  %v8850_v10 = vld [vmem:[%s8973_s25 + $0x108] sm:$0xff]  }
 0x114   : > { %8128 = vmatmul.mubr.msk.bf16.vlgmr.msra.gmra.mrb[0].mxu0 %vm759_vm1, %v8787_v11  ;;  %7871 = vmatprep.mubr.msk.bf16.mxu1 %vm759_vm1, %v8788_v12  ;;  %v8851_v11 = vld [vmem:[%s8973_s25 + $0x328] sm:$0xff]   ;;  %v8852_v12 = vld [vmem:[%s8973_s25 + $0x110] sm:$0xff]  }
 0x115   : > { %8131 = vmatprep.mubr.msk.bf16.mxu0 %vm759_vm1, %v8789_v13  ;;  %v8853_v13 = vld [vmem:[%s8973_s25 + $0x330] sm:$0xff]  }
 0x11b   : > { %7872 = vmatmul.mubr.msk.bf16.gmra.mrb[4].mxu1 %vm759_vm1, %v8790_v14  ;;  %v8854_v14 = vld [vmem:[%s8973_s25 + $0x118] sm:$0xff]  }
 0x11c   : > { %8132 = vmatmul.mubr.msk.bf16.gmra.mrb[4].mxu0 %vm759_vm1, %v8791_v15  ;;  %7875 = vmatprep.mubr.msk.bf16.mxu1 %vm759_vm1, %v8792_v16  ;;  %v8855_v15 = vld [vmem:[%s8973_s25 + $0x338] sm:$0xff]   ;;  %v8856_v16 = vld [vmem:[%s8973_s25 + $0x120] sm:$0xff]  }
 0x11d   : > { %8135 = vmatprep.mubr.msk.bf16.mxu0 %vm759_vm1, %v8793_v17  ;;  %v8857_v17 = vld [vmem:[%s8973_s25 + $0x340] sm:$0xff]  }
 0x123   : > { %7876 = vmatmul.mubr.msk.bf16.gmra.mrb[8].mxu1 %vm759_vm1, %v8794_v18  ;;  %v8858_v18 = vld [vmem:[%s8973_s25 + $0x128] sm:$0xff]  }
 0x124   : > { %8136 = vmatmul.mubr.msk.bf16.gmra.mrb[8].mxu0 %vm759_vm1, %v8795_v19  ;;  %7879 = vmatprep.mubr.msk.bf16.mxu1 %vm759_vm1, %v8796_v20  ;;  %v8859_v19 = vld [vmem:[%s8973_s25 + $0x348] sm:$0xff]   ;;  %v8860_v20 = vld [vmem:[%s8973_s25 + $0x130] sm:$0xff]  }
 0x125   : > { %8139 = vmatprep.mubr.msk.bf16.mxu0 %vm759_vm1, %v8797_v21  ;;  %v8861_v21 = vld [vmem:[%s8973_s25 + $0x350] sm:$0xff]  }
 0x12b   : > { %7880 = vmatmul.mubr.msk.bf16.gmra.mrb[12].mxu1 %vm759_vm1, %v8798_v22  ;;  %v8862_v22 = vld [vmem:[%s8973_s25 + $0x138] sm:$0xff]  }
 0x12c   : > { %8140 = vmatmul.mubr.msk.bf16.gmra.mrb[12].mxu0 %vm759_vm1, %v8799_v23  ;;  %7883 = vmatprep.mubr.msk.bf16.mxu1 %vm759_vm1, %v8800_v24  ;;  %v8863_v23 = vld [vmem:[%s8973_s25 + $0x358] sm:$0xff]   ;;  %v8864_v24 = vld [vmem:[%s8973_s25 + $0x140] sm:$0xff]  }
 0x12d   : > { %8143 = vmatprep.mubr.msk.bf16.mxu0 %vm759_vm1, %v8801_v25  ;;  %v8865_v25 = vld [vmem:[%s8973_s25 + $0x360] sm:$0xff]  }
 0x133   : > { %7884 = vmatmul.mubr.msk.bf16.gmra.mrb[16].mxu1 %vm759_vm1, %v8802_v26  ;;  %v8866_v26 = vld [vmem:[%s8973_s25 + $0x148] sm:$0xff]  }
 0x134   : > { %8144 = vmatmul.mubr.msk.bf16.gmra.mrb[16].mxu0 %vm759_vm1, %v8803_v27  ;;  %7887 = vmatprep.mubr.msk.bf16.mxu1 %vm759_vm1, %v8804_v28  ;;  %v8867_v27 = vld [vmem:[%s8973_s25 + $0x368] sm:$0xff]   ;;  %v8868_v28 = vld [vmem:[%s8973_s25 + $0x150] sm:$0xff]  }
 0x135   : > { %8147 = vmatprep.mubr.msk.bf16.mxu0 %vm759_vm1, %v8805_v29  ;;  %v8869_v29 = vld [vmem:[%s8973_s25 + $0x370] sm:$0xff]  }
 0x13b   : > { %7888 = vmatmul.mubr.msk.bf16.gmra.mrb[20].mxu1 %vm759_vm1, %v8806_v30  ;;  %v8870_v30 = vld [vmem:[%s8973_s25 + $0x158] sm:$0xff]  }
 0x13c   : > { %8148 = vmatmul.mubr.msk.bf16.gmra.mrb[20].mxu0 %vm759_vm1, %v8807_v31  ;;  %7891 = vmatprep.mubr.msk.bf16.mxu1 %vm759_vm1, %v8808_v32  ;;  %v8871_v31 = vld [vmem:[%s8973_s25 + $0x378] sm:$0xff]   ;;  %v8872_v32 = vld [vmem:[%s8973_s25 + $0x160] sm:$0xff]  }
 0x13d   : > { %8151 = vmatprep.mubr.msk.bf16.mxu0 %vm759_vm1, %v8809_v33  ;;  %v8873_v33 = vld [vmem:[%s8973_s25 + $0x380] sm:$0xff]  }
 0x143   : > { %7892 = vmatmul.mubr.msk.bf16.gmra.mrb[24].mxu1 %vm759_vm1, %v8810_v34  ;;  %v8874_v34 = vld [vmem:[%s8973_s25 + $0x168] sm:$0xff]  }
 0x144   : > { %8152 = vmatmul.mubr.msk.bf16.gmra.mrb[24].mxu0 %vm759_vm1, %v8811_v35  ;;  %7895 = vmatprep.mubr.msk.bf16.mxu1 %vm759_vm1, %v8812_v36  ;;  %v8875_v35 = vld [vmem:[%s8973_s25 + $0x388] sm:$0xff]   ;;  %v8876_v36 = vld [vmem:[%s8973_s25 + $0x170] sm:$0xff]  }
 0x145   : > { %8155 = vmatprep.mubr.msk.bf16.mxu0 %vm759_vm1, %v8813_v37  ;;  %v8877_v37 = vld [vmem:[%s8973_s25 + $0x390] sm:$0xff]  }
 0x14b   : > { %7896 = vmatmul.mubr.msk.bf16.gmra.mrb[28].mxu1 %vm759_vm1, %v8814_v38  ;;  %v8878_v38 = vld [vmem:[%s8973_s25 + $0x178] sm:$0xff]  }
 0x14c   : > { %8156 = vmatmul.mubr.msk.bf16.gmra.mrb[28].mxu0 %vm759_vm1, %v8815_v39  ;;  %7899 = vmatprep.mubr.msk.bf16.mxu1 %vm759_vm1, %v8816_v40  ;;  %v8879_v39 = vld [vmem:[%s8973_s25 + $0x398] sm:$0xff]   ;;  %v8880_v40 = vld [vmem:[%s8973_s25 + $0x180] sm:$0xff]  }
 0x14d   : > { %8159 = vmatprep.mubr.msk.bf16.mxu0 %vm759_vm1, %v8817_v41  ;;  %v8881_v41 = vld [vmem:[%s8973_s25 + $0x3a0] sm:$0xff]  }
 0x153   : > { %7900 = vmatmul.mubr.msk.bf16.gmra.mrb[32].mxu1 %vm759_vm1, %v8818_v42  ;;  %v8882_v42 = vld [vmem:[%s8973_s25 + $0x188] sm:$0xff]  }
 0x154   : > { %8160 = vmatmul.mubr.msk.bf16.gmra.mrb[32].mxu0 %vm759_vm1, %v8819_v43  ;;  %7903 = vmatprep.mubr.msk.bf16.mxu1 %vm759_vm1, %v8820_v44  ;;  %v8883_v43 = vld [vmem:[%s8973_s25 + $0x3a8] sm:$0xff]   ;;  %v8884_v44 = vld [vmem:[%s8973_s25 + $0x190] sm:$0xff]  }
 0x155   : > { %8163 = vmatprep.mubr.msk.bf16.mxu0 %vm759_vm1, %v8821_v45  ;;  %v8885_v45 = vld [vmem:[%s8973_s25 + $0x3b0] sm:$0xff]  }
 0x15b   : > { %7904 = vmatmul.mubr.msk.bf16.gmra.mrb[36].mxu1 %vm759_vm1, %v8822_v46  ;;  %v8886_v46 = vld [vmem:[%s8973_s25 + $0x198] sm:$0xff]  }
 0x15c   : > { %8164 = vmatmul.mubr.msk.bf16.gmra.mrb[36].mxu0 %vm759_vm1, %v8823_v47  ;;  %7907 = vmatprep.mubr.msk.bf16.mxu1 %vm759_vm1, %v8824_v48  ;;  %v8887_v47 = vld [vmem:[%s8973_s25 + $0x3b8] sm:$0xff]   ;;  %v8888_v48 = vld [vmem:[%s8973_s25 + $0x1a0] sm:$0xff]  }
 0x15d   : > { %8167 = vmatprep.mubr.msk.bf16.mxu0 %vm759_vm1, %v8825_v49  ;;  %v8889_v49 = vld [vmem:[%s8973_s25 + $0x3c0] sm:$0xff]  }
 0x163   : > { %7908 = vmatmul.mubr.msk.bf16.gmra.mrb[40].mxu1 %vm759_vm1, %v8826_v50  ;;  %v8890_v50 = vld [vmem:[%s8973_s25 + $0x1a8] sm:$0xff]  }
 0x164   : > { %8168 = vmatmul.mubr.msk.bf16.gmra.mrb[40].mxu0 %vm759_vm1, %v8827_v51  ;;  %7911 = vmatprep.mubr.msk.bf16.mxu1 %vm759_vm1, %v8828_v52  ;;  %v8891_v51 = vld [vmem:[%s8973_s25 + $0x3c8] sm:$0xff]   ;;  %v8892_v52 = vld [vmem:[%s8973_s25 + $0x1b0] sm:$0xff]  }
 0x165   : > { %8171 = vmatprep.mubr.msk.bf16.mxu0 %vm759_vm1, %v8829_v53  ;;  %v8893_v53 = vld [vmem:[%s8973_s25 + $0x3d0] sm:$0xff]  }
 0x16b   : > { %7912 = vmatmul.mubr.msk.bf16.gmra.mrb[44].mxu1 %vm759_vm1, %v8830_v54 }
 0x16c   : > { %8172 = vmatmul.mubr.msk.bf16.gmra.mrb[44].mxu0 %vm759_vm1, %v8831_v55  ;;  %7915 = vmatprep.mubr.msk.bf16.mxu1 %vm759_vm1, %v8832_v56  ;;  %v9457_v56 = vld [vmem:[%s9900_s2] ss:$0 sm:$0xff] }
 0x16d   : > { %8175 = vmatprep.mubr.msk.bf16.mxu0 %vm759_vm1, %v8833_v57 }
 0x173   : > { %7916 = vmatmul.mubr.msk.bf16.gmra.mrb[48].mxu1 %vm759_vm1, %v8834_v58  ;;  %v8894_v58 = vld [vmem:[%s8973_s25 + $0x1b8] sm:$0xff]  }
 0x174   : > { %8176 = vmatmul.mubr.msk.bf16.gmra.mrb[48].mxu0 %vm759_vm1, %v8835_v59  ;;  %7919 = vmatprep.mubr.msk.bf16.mxu1 %vm759_vm1, %v8836_v60 }
 0x175   : > { %8179 = vmatprep.mubr.msk.bf16.mxu0 %vm759_vm1, %v8837_v61 }
 0x17b   : > { %7920 = vmatmul.mubr.msk.bf16.gmra.mrb[52].mxu1 %vm759_vm1, %v8838_v62  ;;  %v8895_v62 = vld [vmem:[%s8973_s25 + $0x3d8] sm:$0xff]  }
 0x17c   : > { %8180 = vmatmul.mubr.msk.bf16.gmra.mrb[52].mxu0 %vm759_vm1, %v8839_v63  ;;  %7923 = vmatprep.mubr.msk.bf16.mxu1 %vm759_vm1, %v8840_v0  ;;  %v8896_v63 = vld [vmem:[%s8973_s25 + $0x1c0] sm:$0xff]  }
 0x17d   : > { %8183 = vmatprep.mubr.msk.bf16.mxu0 %vm759_vm1, %v8841_v1 }
 0x183   : > { %7924 = vmatmul.mubr.msk.bf16.gmra.mrb[56].mxu1 %vm759_vm1, %v8842_v2 }
 0x184   : > { %8184 = vmatmul.mubr.msk.bf16.gmra.mrb[56].mxu0 %vm759_vm1, %v8843_v3  ;;  %7927 = vmatprep.mubr.msk.bf16.mxu1 %vm759_vm1, %v8844_v4  ;;  %v8897_v3 = vld [vmem:[%s8973_s25 + $0x3e0] sm:$0xff]  }
 0x185   : > { %8187 = vmatprep.mubr.msk.bf16.mxu0 %vm759_vm1, %v8845_v5 }
 0x18b   : > { %7928 = vmatmul.mubr.msk.bf16.gmra.mrb[60].mxu1 %vm759_vm1, %v8846_v6 }
 0x18c   : > { %8188 = vmatmul.mubr.msk.bf16.gmra.mrb[60].mxu0 %vm759_vm1, %v8847_v7  ;;  %7931 = vmatprep.mubr.msk.bf16.mxu1 %vm759_vm1, %v8848_v8 }
 0x18d   : > { %8191 = vmatprep.mubr.msk.bf16.mxu0 %vm759_vm1, %v8849_v9 }
 0x193   : > { %7932 = vmatmul.mubr.msk.bf16.gmra.mrb[64].mxu1 %vm759_vm1, %v8850_v10 }
 0x194   : > { %8192 = vmatmul.mubr.msk.bf16.gmra.mrb[64].mxu0 %vm759_vm1, %v8851_v11  ;;  %7935 = vmatprep.mubr.msk.bf16.mxu1 %vm759_vm1, %v8852_v12 }
 0x195   : > { %8195 = vmatprep.mubr.msk.bf16.mxu0 %vm759_vm1, %v8853_v13 }
 0x19b   : > { %7936 = vmatmul.mubr.msk.bf16.gmra.mrb[68].mxu1 %vm759_vm1, %v8854_v14 }
 0x19c   : > { %8196 = vmatmul.mubr.msk.bf16.gmra.mrb[68].mxu0 %vm759_vm1, %v8855_v15  ;;  %7939 = vmatprep.mubr.msk.bf16.mxu1 %vm759_vm1, %v8856_v16 }
 0x19d   : > { %8199 = vmatprep.mubr.msk.bf16.mxu0 %vm759_vm1, %v8857_v17 }
 0x1a3   : > { %7940 = vmatmul.mubr.msk.bf16.gmra.mrb[72].mxu1 %vm759_vm1, %v8858_v18 }
 0x1a4   : > { %8200 = vmatmul.mubr.msk.bf16.gmra.mrb[72].mxu0 %vm759_vm1, %v8859_v19  ;;  %7943 = vmatprep.mubr.msk.bf16.mxu1 %vm759_vm1, %v8860_v20 }
 0x1a5   : > { %8203 = vmatprep.mubr.msk.bf16.mxu0 %vm759_vm1, %v8861_v21  ;;  %v8898_v21 = vld [vmem:[%s8973_s25 + $0x1c8] sm:$0xff]  }
 0x1ab   : > { %7944 = vmatmul.mubr.msk.bf16.gmra.mrb[76].mxu1 %vm759_vm1, %v8862_v22 }
 0x1ac   : > { %8204 = vmatmul.mubr.msk.bf16.gmra.mrb[76].mxu0 %vm759_vm1, %v8863_v23  ;;  %7947 = vmatprep.mubr.msk.bf16.mxu1 %vm759_vm1, %v8864_v24 }
 0x1ad   : > { %8207 = vmatprep.mubr.msk.bf16.mxu0 %vm759_vm1, %v8865_v25 }
 0x1b3   : > { %7948 = vmatmul.mubr.msk.bf16.gmra.mrb[80].mxu1 %vm759_vm1, %v8866_v26 }
 0x1b4   : > { %8208 = vmatmul.mubr.msk.bf16.gmra.mrb[80].mxu0 %vm759_vm1, %v8867_v27  ;;  %7951 = vmatprep.mubr.msk.bf16.mxu1 %vm759_vm1, %v8868_v28  ;;  %v8899_v27 = vld [vmem:[%s8973_s25 + $0x3e8] sm:$0xff]   ;;  %v8900_v28 = vld [vmem:[%s8973_s25 + $0x1d0] sm:$0xff]  }
 0x1b5   : > { %8211 = vmatprep.mubr.msk.bf16.mxu0 %vm759_vm1, %v8869_v29 }
 0x1bb   : > { %7952 = vmatmul.mubr.msk.bf16.gmra.mrb[84].mxu1 %vm759_vm1, %v8870_v30 }
 0x1bc   : > { %8212 = vmatmul.mubr.msk.bf16.gmra.mrb[84].mxu0 %vm759_vm1, %v8871_v31  ;;  %7955 = vmatprep.mubr.msk.bf16.mxu1 %vm759_vm1, %v8872_v32 }
 0x1bd   : > { %8215 = vmatprep.mubr.msk.bf16.mxu0 %vm759_vm1, %v8873_v33 }
 0x1c3   : > { %7956 = vmatmul.mubr.msk.bf16.gmra.mrb[88].mxu1 %vm759_vm1, %v8874_v34  ;;  %v8901_v34 = vld [vmem:[%s8973_s25 + $0x3f0] sm:$0xff]  }
 0x1c4   : > { %8216 = vmatmul.mubr.msk.bf16.gmra.mrb[88].mxu0 %vm759_vm1, %v8875_v35  ;;  %7959 = vmatprep.mubr.msk.bf16.mxu1 %vm759_vm1, %v8876_v36 }
 0x1c5   : > { %8219 = vmatprep.mubr.msk.bf16.mxu0 %vm759_vm1, %v8877_v37 }
 0x1cb   : > { %7960 = vmatmul.mubr.msk.bf16.gmra.mrb[92].mxu1 %vm759_vm1, %v8878_v38 }
 0x1cc   : > { %8220 = vmatmul.mubr.msk.bf16.gmra.mrb[92].mxu0 %vm759_vm1, %v8879_v39  ;;  %7963 = vmatprep.mubr.msk.bf16.mxu1 %vm759_vm1, %v8880_v40 }
 0x1cd   : > { %8223 = vmatprep.mubr.msk.bf16.mxu0 %vm759_vm1, %v8881_v41 }
 0x1d3   : > { %7964 = vmatmul.mubr.msk.bf16.gmra.mrb[96].mxu1 %vm759_vm1, %v8882_v42 }
 0x1d4   : > { %8224 = vmatmul.mubr.msk.bf16.gmra.mrb[96].mxu0 %vm759_vm1, %v8883_v43  ;;  %7967 = vmatprep.mubr.msk.bf16.mxu1 %vm759_vm1, %v8884_v44 }
 0x1d5   : > { %8227 = vmatprep.mubr.msk.bf16.mxu0 %vm759_vm1, %v8885_v45 }
 0x1db   : > { %7968 = vmatmul.mubr.msk.bf16.gmra.mrb[100].mxu1 %vm759_vm1, %v8886_v46 }
 0x1dc   : > { %8228 = vmatmul.mubr.msk.bf16.gmra.mrb[100].mxu0 %vm759_vm1, %v8887_v47  ;;  %7971 = vmatprep.mubr.msk.bf16.mxu1 %vm759_vm1, %v8888_v48 }
 0x1dd   : > { %8231 = vmatprep.mubr.msk.bf16.mxu0 %vm759_vm1, %v8889_v49 }
 0x1e3   : > { %7972 = vmatmul.mubr.msk.bf16.gmra.mrb[104].mxu1 %vm759_vm1, %v8890_v50 }
 0x1e4   : > { %8232 = vmatmul.mubr.msk.bf16.gmra.mrb[104].mxu0 %vm759_vm1, %v8891_v51  ;;  %7975 = vmatprep.mubr.msk.bf16.mxu1 %vm759_vm1, %v8892_v52 }
 0x1e5   : > { %8235 = vmatprep.mubr.msk.bf16.mxu0 %vm759_vm1, %v8893_v53  ;;  %v8902_v53 = vld [vmem:[%s8973_s25 + $0x1d8] sm:$0xff]  }
 0x1e6   : > { %v7869_v54 = vpop.f32.mrb[0].mxu1 }
 0x1e7   : > { %v8129_v55 = vpop.f32.mrb[0].mxu0  ;;  %v2055_v57 = vpop.f32.mrb[1].mxu1 }
 0x1e8   : > { %v8255_v59 = vadd.f32 %v8129_v55, %v7869_v54  ;;  %v4575_v60 = vpop.f32.mrb[1].mxu0  ;;  %v7870_v61 = vpop.f32.mrb[2].mxu1 }
 0x1e9   : > { %v8256_v0 = vadd.f32 %v4575_v60, %v2055_v57  ;;  %v8130_v1 = vpop.f32.mrb[2].mxu0  ;;  %v2058_v2 = vpop.f32.mrb[3].mxu1  ;;  %v8903_v60 = vld [vmem:[%s8973_s25 + $0x3f8] sm:$0xff]  }
 0x1ea   : > { %v5223_v4 = vadd.f32 %v8255_v59, %v9457_v56  ;;  %v8257_v5 = vadd.f32 %v8130_v1, %v7870_v61  ;;  %v4578_v6 = vpop.f32.mrb[3].mxu0  ;;  %v8904_v61 = vld [vmem:[%s8973_s25 + $0x1e0] sm:$0xff]  }
 0x1eb   : > { %v5221_v7 = vadd.f32 %v8256_v0, %v9457_v56  ;;  %v8258_v8 = vadd.f32 %v4578_v6, %v2058_v2  ;;  %7976 = vmatmul.mubr.msk.bf16.gmra.mrb[108].mxu1 %vm759_vm1, %v8894_v58 }
 0x1ec   : > { %vm5351_vm2 = vcmp.ge.f32.partialorder %v5223_v4, 0.0  ;;  %v5479_v9 = vmul.f32 0.2, %v5223_v4  ;;  %v5224_v10 = vadd.f32 %v8257_v5, %v9457_v56  ;;  %8236 = vmatmul.mubr.msk.bf16.gmra.mrb[108].mxu0 %vm759_vm1, %v8895_v62  ;;  %7979 = vmatprep.mubr.msk.bf16.mxu1 %vm759_vm1, %v8896_v63 }
 0x1ed   : > { %vm5349_vm3 = vcmp.ge.f32.partialorder %v5221_v7, 0.0  ;;  %v5477_v11 = vmul.f32 0.2, %v5221_v7  ;;  %v5222_v12 = vadd.f32 %v8258_v8, %v9457_v56  ;;  %8239 = vmatprep.mubr.msk.bf16.mxu0 %vm759_vm1, %v8897_v3  ;;  %v8905_v3 = vld [vmem:[%s8973_s25 + $0x400] sm:$0xff]  }
 0x1ee   : > { %v5607_v13 = vsel %vm5351_vm2, %v5223_v4, %v5479_v9  ;;  %vm5352_vm5 = vcmp.ge.f32.partialorder %v5224_v10, 0.0  ;;  %v5480_v14 = vmul.f32 0.2, %v5224_v10  ;;  %v7873_v15 = vpop.f32.mrb[4].mxu1 }
 0x1ef   : > { %v7349_v16 = vpack.c.bf16 %v5607_v13, %v5607_v13  ;;  %v5605_v17 = vsel %vm5349_vm3, %v5221_v7, %v5477_v11  ;;  %vm5350_vm6 = vcmp.ge.f32.partialorder %v5222_v12, 0.0  ;;  %v5478_v18 = vmul.f32 0.2, %v5222_v12  ;;  %v8133_v19 = vpop.f32.mrb[4].mxu0  ;;  %v2071_v20 = vpop.f32.mrb[5].mxu1 }
 0x1f0   : > { %v7347_v22 = vpack.c.bf16 %v5605_v17, %v5605_v17  ;;  %v5608_v23 = vsel %vm5352_vm5, %v5224_v10, %v5480_v14  ;;  %v8259_v24 = vadd.f32 %v8133_v19, %v7873_v15  ;;  %v4591_v25 = vpop.f32.mrb[5].mxu0  ;;  %v7874_v26 = vpop.f32.mrb[6].mxu1 }
 0x1f1   : > { %6248 = vst.msk [vmem:[%s9475_s4 + $0x8] sm:$0xf] %vm6245_vm4, %v7349_v16  ;;  %v7350_v29 = vpack.c.bf16 %v5608_v23, %v5608_v23  ;;  %v5606_v30 = vsel %vm5350_vm6, %v5222_v12, %v5478_v18  ;;  %v8260_v31 = vadd.f32 %v4591_v25, %v2071_v20  ;;  %v8134_v32 = vpop.f32.mrb[6].mxu0  ;;  %v2074_v33 = vpop.f32.mrb[7].mxu1 }
 0x1f2   : > { %6246 = vst.msk [vmem:[%s9475_s4] sm:$0xf] %vm6245_vm4, %v7347_v22  ;;  %v7348_v35 = vpack.c.bf16 %v5606_v30, %v5606_v30  ;;  %v5227_v36 = vadd.f32 %v8259_v24, %v9457_v56  ;;  %v8261_v37 = vadd.f32 %v8134_v32, %v7874_v26  ;;  %v4594_v38 = vpop.f32.mrb[7].mxu0  ;;  %v8906_v22 = vld [vmem:[%s8973_s25 + $0x1e8] sm:$0xff]  }
 0x1f3   : > { %6249 = vst.msk [vmem:[%s9475_s4 + $0xc] sm:$0xf] %vm6245_vm4, %v7350_v29  ;;  %v5225_v39 = vadd.f32 %v8260_v31, %v9457_v56  ;;  %v8262_v40 = vadd.f32 %v4594_v38, %v2074_v33  ;;  %7980 = vmatmul.mubr.msk.bf16.gmra.mrb[112].mxu1 %vm759_vm1, %v8898_v21  ;;  %v8908_v29 = vld [vmem:[%s8973_s25 + $0x1f0] sm:$0xff]  }
 0x1f4   : > { %6247 = vst.msk [vmem:[%s9475_s4 + $0x4] sm:$0xf] %vm6245_vm4, %v7348_v35  ;;  %vm5355_vm7 = vcmp.ge.f32.partialorder %v5227_v36, 0.0  ;;  %v5483_v41 = vmul.f32 0.2, %v5227_v36  ;;  %v5228_v42 = vadd.f32 %v8261_v37, %v9457_v56  ;;  %8240 = vmatmul.mubr.msk.bf16.gmra.mrb[112].mxu0 %vm759_vm1, %v8899_v27  ;;  %7983 = vmatprep.mubr.msk.bf16.mxu1 %vm759_vm1, %v8900_v28  ;;  %v8907_v28 = vld [vmem:[%s8973_s25 + $0x408] sm:$0xff]  }
 0x1f5   : > { %vm5353_vm8 = vcmp.ge.f32.partialorder %v5225_v39, 0.0  ;;  %v5481_v43 = vmul.f32 0.2, %v5225_v39  ;;  %v5226_v44 = vadd.f32 %v8262_v40, %v9457_v56  ;;  %8243 = vmatprep.mubr.msk.bf16.mxu0 %vm759_vm1, %v8901_v34  ;;  %v8909_v35 = vld [vmem:[%s8973_s25 + $0x410] sm:$0xff]  }
 0x1f6   : > { %v5611_v45 = vsel %vm5355_vm7, %v5227_v36, %v5483_v41  ;;  %vm5356_vm9 = vcmp.ge.f32.partialorder %v5228_v42, 0.0  ;;  %v5484_v46 = vmul.f32 0.2, %v5228_v42  ;;  %v7877_v47 = vpop.f32.mrb[8].mxu1 }
 0x1f7   : > { %v7353_v48 = vpack.c.bf16 %v5611_v45, %v5611_v45  ;;  %v5609_v49 = vsel %vm5353_vm8, %v5225_v39, %v5481_v43  ;;  %vm5354_vm10 = vcmp.ge.f32.partialorder %v5226_v44, 0.0  ;;  %v5482_v50 = vmul.f32 0.2, %v5226_v44  ;;  %v8137_v51 = vpop.f32.mrb[8].mxu0  ;;  %v2087_v52 = vpop.f32.mrb[9].mxu1 }
 0x1f8   : > { %v7351_v54 = vpack.c.bf16 %v5609_v49, %v5609_v49  ;;  %v5612_v55 = vsel %vm5356_vm9, %v5228_v42, %v5484_v46  ;;  %v8263_v57 = vadd.f32 %v8137_v51, %v7877_v47  ;;  %v4607_v58 = vpop.f32.mrb[9].mxu0  ;;  %v7878_v59 = vpop.f32.mrb[10].mxu1 }
 0x1f9   : > { %6252 = vst.msk [vmem:[%s9475_s4 + $0x18] sm:$0xf] %vm6245_vm4, %v7353_v48  ;;  %v7354_v62 = vpack.c.bf16 %v5612_v55, %v5612_v55  ;;  %v5610_v63 = vsel %vm5354_vm10, %v5226_v44, %v5482_v50  ;;  %v8264_v0 = vadd.f32 %v4607_v58, %v2087_v52  ;;  %v8138_v1 = vpop.f32.mrb[10].mxu0  ;;  %v2090_v2 = vpop.f32.mrb[11].mxu1 }
 0x1fa   : > { %6250 = vst.msk [vmem:[%s9475_s4 + $0x10] sm:$0xf] %vm6245_vm4, %v7351_v54  ;;  %v7352_v4 = vpack.c.bf16 %v5610_v63, %v5610_v63  ;;  %v5231_v5 = vadd.f32 %v8263_v57, %v9457_v56  ;;  %v8265_v6 = vadd.f32 %v8138_v1, %v7878_v59  ;;  %v4610_v7 = vpop.f32.mrb[11].mxu0  ;;  %v8910_v54 = vld [vmem:[%s8973_s25 + $0x1f8] sm:$0xff]  }
 0x1fb   : > { %6253 = vst.msk [vmem:[%s9475_s4 + $0x1c] sm:$0xf] %vm6245_vm4, %v7354_v62  ;;  %v5229_v8 = vadd.f32 %v8264_v0, %v9457_v56  ;;  %v8266_v9 = vadd.f32 %v4610_v7, %v2090_v2  ;;  %7984 = vmatmul.mubr.msk.bf16.gmra.mrb[116].mxu1 %vm759_vm1, %v8902_v53 }
 0x1fc   : > { %6251 = vst.msk [vmem:[%s9475_s4 + $0x14] sm:$0xf] %vm6245_vm4, %v7352_v4  ;;  %vm5359_vm11 = vcmp.ge.f32.partialorder %v5231_v5, 0.0  ;;  %v5487_v10 = vmul.f32 0.2, %v5231_v5  ;;  %v5232_v11 = vadd.f32 %v8265_v6, %v9457_v56  ;;  %8244 = vmatmul.mubr.msk.bf16.gmra.mrb[116].mxu0 %vm759_vm1, %v8903_v60  ;;  %7987 = vmatprep.mubr.msk.bf16.mxu1 %vm759_vm1, %v8904_v61  ;;  %v8911_v61 = vld [vmem:[%s8973_s25 + $0x418] sm:$0xff]  }
 0x1fd   : > { %vm5357_vm12 = vcmp.ge.f32.partialorder %v5229_v8, 0.0  ;;  %v5485_v12 = vmul.f32 0.2, %v5229_v8  ;;  %v5230_v13 = vadd.f32 %v8266_v9, %v9457_v56  ;;  %8247 = vmatprep.mubr.msk.bf16.mxu0 %vm759_vm1, %v8905_v3 }
 0x1fe   : > { %v5615_v14 = vsel %vm5359_vm11, %v5231_v5, %v5487_v10  ;;  %vm5360_vm13 = vcmp.ge.f32.partialorder %v5232_v11, 0.0  ;;  %v5488_v15 = vmul.f32 0.2, %v5232_v11  ;;  %v7881_v16 = vpop.f32.mrb[12].mxu1 }
 0x1ff   : > { %v7357_v17 = vpack.c.bf16 %v5615_v14, %v5615_v14  ;;  %v5613_v18 = vsel %vm5357_vm12, %v5229_v8, %v5485_v12  ;;  %vm5358_vm14 = vcmp.ge.f32.partialorder %v5230_v13, 0.0  ;;  %v5486_v19 = vmul.f32 0.2, %v5230_v13  ;;  %v8141_v20 = vpop.f32.mrb[12].mxu0  ;;  %v2103_v21 = vpop.f32.mrb[13].mxu1 }
 0x200   : > { %v7355_v23 = vpack.c.bf16 %v5613_v18, %v5613_v18  ;;  %v5616_v24 = vsel %vm5360_vm13, %v5232_v11, %v5488_v15  ;;  %v8267_v25 = vadd.f32 %v8141_v20, %v7881_v16  ;;  %v4623_v26 = vpop.f32.mrb[13].mxu0  ;;  %v7882_v27 = vpop.f32.mrb[14].mxu1 }
 0x201   : > { %6256 = vst.msk [vmem:[%s9475_s4 + $0x28] sm:$0xf] %vm6245_vm4, %v7357_v17  ;;  %v7358_v30 = vpack.c.bf16 %v5616_v24, %v5616_v24  ;;  %v5614_v31 = vsel %vm5358_vm14, %v5230_v13, %v5486_v19  ;;  %v8268_v32 = vadd.f32 %v4623_v26, %v2103_v21  ;;  %v8142_v33 = vpop.f32.mrb[14].mxu0  ;;  %v2106_v34 = vpop.f32.mrb[15].mxu1 }
 0x202   : > { %6254 = vst.msk [vmem:[%s9475_s4 + $0x20] sm:$0xf] %vm6245_vm4, %v7355_v23  ;;  %v7356_v36 = vpack.c.bf16 %v5614_v31, %v5614_v31  ;;  %v5235_v37 = vadd.f32 %v8267_v25, %v9457_v56  ;;  %v8269_v38 = vadd.f32 %v8142_v33, %v7882_v27  ;;  %v4626_v39 = vpop.f32.mrb[15].mxu0 }
 0x203   : > { %6257 = vst.msk [vmem:[%s9475_s4 + $0x2c] sm:$0xf] %vm6245_vm4, %v7358_v30  ;;  %v5233_v40 = vadd.f32 %v8268_v32, %v9457_v56  ;;  %v8270_v41 = vadd.f32 %v4626_v39, %v2106_v34  ;;  %7988 = vmatmul.mubr.msk.bf16.gmra.mrb[120].mxu1 %vm759_vm1, %v8906_v22 }
 0x204   : > { %6255 = vst.msk [vmem:[%s9475_s4 + $0x24] sm:$0xf] %vm6245_vm4, %v7356_v36  ;;  %vm5363_vm15 = vcmp.ge.f32.partialorder %v5235_v37, 0.0  ;;  %v5491_v42 = vmul.f32 0.2, %v5235_v37  ;;  %v5236_v43 = vadd.f32 %v8269_v38, %v9457_v56  ;;  %8248 = vmatmul.mubr.msk.bf16.gmra.mrb[120].mxu0 %vm759_vm1, %v8907_v28  ;;  %7991 = vmatprep.mubr.msk.bf16.mxu1 %vm759_vm1, %v8908_v29 }
 0x205   : > { %vm5361_vm0 = vcmp.ge.f32.partialorder %v5233_v40, 0.0  ;;  %v5489_v44 = vmul.f32 0.2, %v5233_v40  ;;  %v5234_v45 = vadd.f32 %v8270_v41, %v9457_v56  ;;  %8251 = vmatprep.mubr.msk.bf16.mxu0 %vm759_vm1, %v8909_v35 }
 0x206   : > { %v5619_v46 = vsel %vm5363_vm15, %v5235_v37, %v5491_v42  ;;  %vm5364_vm2 = vcmp.ge.f32.partialorder %v5236_v43, 0.0  ;;  %v5492_v47 = vmul.f32 0.2, %v5236_v43  ;;  %v7885_v48 = vpop.f32.mrb[16].mxu1 }
 0x207   : > { %v7361_v49 = vpack.c.bf16 %v5619_v46, %v5619_v46  ;;  %v5617_v50 = vsel %vm5361_vm0, %v5233_v40, %v5489_v44  ;;  %vm5362_vm3 = vcmp.ge.f32.partialorder %v5234_v45, 0.0  ;;  %v5490_v51 = vmul.f32 0.2, %v5234_v45  ;;  %v8145_v52 = vpop.f32.mrb[16].mxu0  ;;  %v2119_v53 = vpop.f32.mrb[17].mxu1 }
 0x208   : > { %v7359_v55 = vpack.c.bf16 %v5617_v50, %v5617_v50  ;;  %v5620_v57 = vsel %vm5364_vm2, %v5236_v43, %v5492_v47  ;;  %v8271_v58 = vadd.f32 %v8145_v52, %v7885_v48  ;;  %v4639_v59 = vpop.f32.mrb[17].mxu0  ;;  %v7886_v60 = vpop.f32.mrb[18].mxu1 }
 0x209   : > { %6260 = vst.msk [vmem:[%s9475_s4 + $0x38] sm:$0xf] %vm6245_vm4, %v7361_v49  ;;  %v7362_v62 = vpack.c.bf16 %v5620_v57, %v5620_v57  ;;  %v5618_v63 = vsel %vm5362_vm3, %v5234_v45, %v5490_v51  ;;  %v8272_v0 = vadd.f32 %v4639_v59, %v2119_v53  ;;  %v8146_v1 = vpop.f32.mrb[18].mxu0  ;;  %v2122_v2 = vpop.f32.mrb[19].mxu1 }
 0x20a   : > { %6258 = vst.msk [vmem:[%s9475_s4 + $0x30] sm:$0xf] %vm6245_vm4, %v7359_v55  ;;  %v7360_v3 = vpack.c.bf16 %v5618_v63, %v5618_v63  ;;  %v5239_v4 = vadd.f32 %v8271_v58, %v9457_v56  ;;  %v8273_v5 = vadd.f32 %v8146_v1, %v7886_v60  ;;  %v4642_v6 = vpop.f32.mrb[19].mxu0 }
 0x20b   : > { %6261 = vst.msk [vmem:[%s9475_s4 + $0x3c] sm:$0xf] %vm6245_vm4, %v7362_v62  ;;  %v5237_v7 = vadd.f32 %v8272_v0, %v9457_v56  ;;  %v8274_v8 = vadd.f32 %v4642_v6, %v2122_v2  ;;  %7992 = vmatmul.mubr.msk.bf16.gmra.mrb[124].mxu1 %vm759_vm1, %v8910_v54 }
 0x20c   : > { %6259 = vst.msk [vmem:[%s9475_s4 + $0x34] sm:$0xf] %vm6245_vm4, %v7360_v3  ;;  %vm5367_vm5 = vcmp.ge.f32.partialorder %v5239_v4, 0.0  ;;  %v5495_v9 = vmul.f32 0.2, %v5239_v4  ;;  %v5240_v10 = vadd.f32 %v8273_v5, %v9457_v56  ;;  %8252 = vmatmul.mubr.msk.bf16.gmra.mrb[124].mxu0 %vm759_vm1, %v8911_v61 }
 0x20d   : > { %vm5365_vm6 = vcmp.ge.f32.partialorder %v5237_v7, 0.0  ;;  %v5493_v11 = vmul.f32 0.2, %v5237_v7  ;;  %v5238_v12 = vadd.f32 %v8274_v8, %v9457_v56 }
 0x20e   : > { %v5623_v13 = vsel %vm5367_vm5, %v5239_v4, %v5495_v9  ;;  %vm5368_vm7 = vcmp.ge.f32.partialorder %v5240_v10, 0.0  ;;  %v5496_v14 = vmul.f32 0.2, %v5240_v10  ;;  %v7889_v15 = vpop.f32.mrb[20].mxu1 }
 0x20f   : > { %v7365_v16 = vpack.c.bf16 %v5623_v13, %v5623_v13  ;;  %v5621_v17 = vsel %vm5365_vm6, %v5237_v7, %v5493_v11  ;;  %vm5366_vm8 = vcmp.ge.f32.partialorder %v5238_v12, 0.0  ;;  %v5494_v18 = vmul.f32 0.2, %v5238_v12  ;;  %v8149_v19 = vpop.f32.mrb[20].mxu0  ;;  %v2135_v20 = vpop.f32.mrb[21].mxu1 }
 0x210   : > { %v7363_v21 = vpack.c.bf16 %v5621_v17, %v5621_v17  ;;  %v5624_v22 = vsel %vm5368_vm7, %v5240_v10, %v5496_v14  ;;  %v8275_v23 = vadd.f32 %v8149_v19, %v7889_v15  ;;  %v4655_v24 = vpop.f32.mrb[21].mxu0  ;;  %v7890_v25 = vpop.f32.mrb[22].mxu1 }
 0x211   : > { %6264 = vst.msk [vmem:[%s9475_s4 + $0x48] sm:$0xf] %vm6245_vm4, %v7365_v16  ;;  %v7366_v26 = vpack.c.bf16 %v5624_v22, %v5624_v22  ;;  %v5622_v27 = vsel %vm5366_vm8, %v5238_v12, %v5494_v18  ;;  %v8276_v28 = vadd.f32 %v4655_v24, %v2135_v20  ;;  %v8150_v29 = vpop.f32.mrb[22].mxu0  ;;  %v2138_v30 = vpop.f32.mrb[23].mxu1 }
 0x212   : > { %6262 = vst.msk [vmem:[%s9475_s4 + $0x40] sm:$0xf] %vm6245_vm4, %v7363_v21  ;;  %v7364_v31 = vpack.c.bf16 %v5622_v27, %v5622_v27  ;;  %v5243_v32 = vadd.f32 %v8275_v23, %v9457_v56  ;;  %v8277_v33 = vadd.f32 %v8150_v29, %v7890_v25  ;;  %v4658_v34 = vpop.f32.mrb[23].mxu0 }
 0x213   : > { %6265 = vst.msk [vmem:[%s9475_s4 + $0x4c] sm:$0xf] %vm6245_vm4, %v7366_v26  ;;  %v5241_v35 = vadd.f32 %v8276_v28, %v9457_v56  ;;  %v8278_v36 = vadd.f32 %v4658_v34, %v2138_v30 }
 0x214   : > { %6263 = vst.msk [vmem:[%s9475_s4 + $0x44] sm:$0xf] %vm6245_vm4, %v7364_v31  ;;  %vm5371_vm1 = vcmp.ge.f32.partialorder %v5243_v32, 0.0  ;;  %v5499_v37 = vmul.f32 0.2, %v5243_v32  ;;  %v5244_v38 = vadd.f32 %v8277_v33, %v9457_v56 }
 0x215   : > { %vm5369_vm9 = vcmp.ge.f32.partialorder %v5241_v35, 0.0  ;;  %v5497_v39 = vmul.f32 0.2, %v5241_v35  ;;  %v5242_v40 = vadd.f32 %v8278_v36, %v9457_v56 }
 0x216   : > { %v5627_v41 = vsel %vm5371_vm1, %v5243_v32, %v5499_v37  ;;  %vm5372_vm10 = vcmp.ge.f32.partialorder %v5244_v38, 0.0  ;;  %v5500_v42 = vmul.f32 0.2, %v5244_v38  ;;  %v7893_v43 = vpop.f32.mrb[24].mxu1 }
 0x217   : > { %v7369_v44 = vpack.c.bf16 %v5627_v41, %v5627_v41  ;;  %v5625_v45 = vsel %vm5369_vm9, %v5241_v35, %v5497_v39  ;;  %vm5370_vm11 = vcmp.ge.f32.partialorder %v5242_v40, 0.0  ;;  %v5498_v46 = vmul.f32 0.2, %v5242_v40  ;;  %v8153_v47 = vpop.f32.mrb[24].mxu0  ;;  %v2151_v48 = vpop.f32.mrb[25].mxu1 }
 0x218   : > { %v7367_v49 = vpack.c.bf16 %v5625_v45, %v5625_v45  ;;  %v5628_v50 = vsel %vm5372_vm10, %v5244_v38, %v5500_v42  ;;  %v8279_v51 = vadd.f32 %v8153_v47, %v7893_v43  ;;  %v4671_v52 = vpop.f32.mrb[25].mxu0  ;;  %v7894_v53 = vpop.f32.mrb[26].mxu1 }
 0x219   : > { %6268 = vst.msk [vmem:[%s9475_s4 + $0x58] sm:$0xf] %vm6245_vm4, %v7369_v44  ;;  %v7370_v54 = vpack.c.bf16 %v5628_v50, %v5628_v50  ;;  %v5626_v55 = vsel %vm5370_vm11, %v5242_v40, %v5498_v46  ;;  %v8280_v57 = vadd.f32 %v4671_v52, %v2151_v48  ;;  %v8154_v58 = vpop.f32.mrb[26].mxu0  ;;  %v2154_v59 = vpop.f32.mrb[27].mxu1 }
 0x21a   : > { %6266 = vst.msk [vmem:[%s9475_s4 + $0x50] sm:$0xf] %vm6245_vm4, %v7367_v49  ;;  %v7368_v60 = vpack.c.bf16 %v5626_v55, %v5626_v55  ;;  %v5247_v61 = vadd.f32 %v8279_v51, %v9457_v56  ;;  %v8281_v62 = vadd.f32 %v8154_v58, %v7894_v53  ;;  %v4674_v63 = vpop.f32.mrb[27].mxu0 }
 0x21b   : > { %6269 = vst.msk [vmem:[%s9475_s4 + $0x5c] sm:$0xf] %vm6245_vm4, %v7370_v54  ;;  %v5245_v0 = vadd.f32 %v8280_v57, %v9457_v56  ;;  %v8282_v1 = vadd.f32 %v4674_v63, %v2154_v59 }
 0x21c   : > { %6267 = vst.msk [vmem:[%s9475_s4 + $0x54] sm:$0xf] %vm6245_vm4, %v7368_v60  ;;  %vm5375_vm12 = vcmp.ge.f32.partialorder %v5247_v61, 0.0  ;;  %v5503_v2 = vmul.f32 0.2, %v5247_v61  ;;  %v5248_v3 = vadd.f32 %v8281_v62, %v9457_v56 }
 0x21d   : > { %vm5373_vm13 = vcmp.ge.f32.partialorder %v5245_v0, 0.0  ;;  %v5501_v4 = vmul.f32 0.2, %v5245_v0  ;;  %v5246_v5 = vadd.f32 %v8282_v1, %v9457_v56 }
 0x21e   : > { %v5631_v6 = vsel %vm5375_vm12, %v5247_v61, %v5503_v2  ;;  %vm5376_vm14 = vcmp.ge.f32.partialorder %v5248_v3, 0.0  ;;  %v5504_v7 = vmul.f32 0.2, %v5248_v3  ;;  %v7897_v8 = vpop.f32.mrb[28].mxu1 }
 0x21f   : > { %v7373_v9 = vpack.c.bf16 %v5631_v6, %v5631_v6  ;;  %v5629_v10 = vsel %vm5373_vm13, %v5245_v0, %v5501_v4  ;;  %vm5374_vm15 = vcmp.ge.f32.partialorder %v5246_v5, 0.0  ;;  %v5502_v11 = vmul.f32 0.2, %v5246_v5  ;;  %v8157_v12 = vpop.f32.mrb[28].mxu0  ;;  %v2167_v13 = vpop.f32.mrb[29].mxu1 }
 0x220   : > { %v7371_v14 = vpack.c.bf16 %v5629_v10, %v5629_v10  ;;  %v5632_v15 = vsel %vm5376_vm14, %v5248_v3, %v5504_v7  ;;  %v8283_v16 = vadd.f32 %v8157_v12, %v7897_v8  ;;  %v4687_v17 = vpop.f32.mrb[29].mxu0  ;;  %v7898_v18 = vpop.f32.mrb[30].mxu1 }
 0x221   : > { %6272 = vst.msk [vmem:[%s9475_s4 + $0x68] sm:$0xf] %vm6245_vm4, %v7373_v9  ;;  %v7374_v19 = vpack.c.bf16 %v5632_v15, %v5632_v15  ;;  %v5630_v20 = vsel %vm5374_vm15, %v5246_v5, %v5502_v11  ;;  %v8284_v21 = vadd.f32 %v4687_v17, %v2167_v13  ;;  %v8158_v22 = vpop.f32.mrb[30].mxu0  ;;  %v2170_v23 = vpop.f32.mrb[31].mxu1 }
 0x222   : > { %6270 = vst.msk [vmem:[%s9475_s4 + $0x60] sm:$0xf] %vm6245_vm4, %v7371_v14  ;;  %v7372_v24 = vpack.c.bf16 %v5630_v20, %v5630_v20  ;;  %v5251_v25 = vadd.f32 %v8283_v16, %v9457_v56  ;;  %v8285_v26 = vadd.f32 %v8158_v22, %v7898_v18  ;;  %v4690_v27 = vpop.f32.mrb[31].mxu0 }
 0x223   : > { %6273 = vst.msk [vmem:[%s9475_s4 + $0x6c] sm:$0xf] %vm6245_vm4, %v7374_v19  ;;  %v5249_v28 = vadd.f32 %v8284_v21, %v9457_v56  ;;  %v8286_v29 = vadd.f32 %v4690_v27, %v2170_v23 }
 0x224   : > { %6271 = vst.msk [vmem:[%s9475_s4 + $0x64] sm:$0xf] %vm6245_vm4, %v7372_v24  ;;  %vm5379_vm0 = vcmp.ge.f32.partialorder %v5251_v25, 0.0  ;;  %v5507_v30 = vmul.f32 0.2, %v5251_v25  ;;  %v5252_v31 = vadd.f32 %v8285_v26, %v9457_v56 }
 0x225   : > { %vm5377_vm2 = vcmp.ge.f32.partialorder %v5249_v28, 0.0  ;;  %v5505_v32 = vmul.f32 0.2, %v5249_v28  ;;  %v5250_v33 = vadd.f32 %v8286_v29, %v9457_v56 }
 0x226   : > { %v5635_v34 = vsel %vm5379_vm0, %v5251_v25, %v5507_v30  ;;  %vm5380_vm3 = vcmp.ge.f32.partialorder %v5252_v31, 0.0  ;;  %v5508_v35 = vmul.f32 0.2, %v5252_v31  ;;  %v7901_v36 = vpop.f32.mrb[32].mxu1 }
 0x227   : > { %v7377_v37 = vpack.c.bf16 %v5635_v34, %v5635_v34  ;;  %v5633_v38 = vsel %vm5377_vm2, %v5249_v28, %v5505_v32  ;;  %vm5378_vm5 = vcmp.ge.f32.partialorder %v5250_v33, 0.0  ;;  %v5506_v39 = vmul.f32 0.2, %v5250_v33  ;;  %v8161_v40 = vpop.f32.mrb[32].mxu0  ;;  %v2183_v41 = vpop.f32.mrb[33].mxu1 }
 0x228   : > { %v7375_v42 = vpack.c.bf16 %v5633_v38, %v5633_v38  ;;  %v5636_v43 = vsel %vm5380_vm3, %v5252_v31, %v5508_v35  ;;  %v8287_v44 = vadd.f32 %v8161_v40, %v7901_v36  ;;  %v4703_v45 = vpop.f32.mrb[33].mxu0  ;;  %v7902_v46 = vpop.f32.mrb[34].mxu1 }
 0x229   : > { %6276 = vst.msk [vmem:[%s9475_s4 + $0x78] sm:$0xf] %vm6245_vm4, %v7377_v37  ;;  %v7378_v47 = vpack.c.bf16 %v5636_v43, %v5636_v43  ;;  %v5634_v48 = vsel %vm5378_vm5, %v5250_v33, %v5506_v39  ;;  %v8288_v49 = vadd.f32 %v4703_v45, %v2183_v41  ;;  %v8162_v50 = vpop.f32.mrb[34].mxu0  ;;  %v2186_v51 = vpop.f32.mrb[35].mxu1 }
 0x22a   : > { %6274 = vst.msk [vmem:[%s9475_s4 + $0x70] sm:$0xf] %vm6245_vm4, %v7375_v42  ;;  %v7376_v52 = vpack.c.bf16 %v5634_v48, %v5634_v48  ;;  %v5255_v53 = vadd.f32 %v8287_v44, %v9457_v56  ;;  %v8289_v54 = vadd.f32 %v8162_v50, %v7902_v46  ;;  %v4706_v55 = vpop.f32.mrb[35].mxu0 }
 0x22b   : > { %6277 = vst.msk [vmem:[%s9475_s4 + $0x7c] sm:$0xf] %vm6245_vm4, %v7378_v47  ;;  %v5253_v57 = vadd.f32 %v8288_v49, %v9457_v56  ;;  %v8290_v58 = vadd.f32 %v4706_v55, %v2186_v51 }
 0x22c   : > { %6275 = vst.msk [vmem:[%s9475_s4 + $0x74] sm:$0xf] %vm6245_vm4, %v7376_v52  ;;  %vm5383_vm6 = vcmp.ge.f32.partialorder %v5255_v53, 0.0  ;;  %v5511_v59 = vmul.f32 0.2, %v5255_v53  ;;  %v5256_v60 = vadd.f32 %v8289_v54, %v9457_v56 }
 0x22d   : > { %vm5381_vm7 = vcmp.ge.f32.partialorder %v5253_v57, 0.0  ;;  %v5509_v61 = vmul.f32 0.2, %v5253_v57  ;;  %v5254_v62 = vadd.f32 %v8290_v58, %v9457_v56 }
 0x22e   : > { %v5639_v63 = vsel %vm5383_vm6, %v5255_v53, %v5511_v59  ;;  %vm5384_vm8 = vcmp.ge.f32.partialorder %v5256_v60, 0.0  ;;  %v5512_v0 = vmul.f32 0.2, %v5256_v60  ;;  %v7905_v1 = vpop.f32.mrb[36].mxu1 }
 0x22f   : > { %v7381_v2 = vpack.c.bf16 %v5639_v63, %v5639_v63  ;;  %v5637_v3 = vsel %vm5381_vm7, %v5253_v57, %v5509_v61  ;;  %vm5382_vm1 = vcmp.ge.f32.partialorder %v5254_v62, 0.0  ;;  %v5510_v4 = vmul.f32 0.2, %v5254_v62  ;;  %v8165_v5 = vpop.f32.mrb[36].mxu0  ;;  %v2199_v6 = vpop.f32.mrb[37].mxu1 }
 0x230   : > { %v7379_v7 = vpack.c.bf16 %v5637_v3, %v5637_v3  ;;  %v5640_v8 = vsel %vm5384_vm8, %v5256_v60, %v5512_v0  ;;  %v8291_v9 = vadd.f32 %v8165_v5, %v7905_v1  ;;  %v4719_v10 = vpop.f32.mrb[37].mxu0  ;;  %v7906_v11 = vpop.f32.mrb[38].mxu1 }
 0x231   : > { %6280 = vst.msk [vmem:[%s9475_s4 + $0x88] sm:$0xf] %vm6245_vm4, %v7381_v2  ;;  %v7382_v12 = vpack.c.bf16 %v5640_v8, %v5640_v8  ;;  %v5638_v13 = vsel %vm5382_vm1, %v5254_v62, %v5510_v4  ;;  %v8292_v14 = vadd.f32 %v4719_v10, %v2199_v6  ;;  %v8166_v15 = vpop.f32.mrb[38].mxu0  ;;  %v2202_v16 = vpop.f32.mrb[39].mxu1 }
 0x232   : > { %6278 = vst.msk [vmem:[%s9475_s4 + $0x80] sm:$0xf] %vm6245_vm4, %v7379_v7  ;;  %v7380_v17 = vpack.c.bf16 %v5638_v13, %v5638_v13  ;;  %v5259_v18 = vadd.f32 %v8291_v9, %v9457_v56  ;;  %v8293_v19 = vadd.f32 %v8166_v15, %v7906_v11  ;;  %v4722_v20 = vpop.f32.mrb[39].mxu0 }
 0x233   : > { %6281 = vst.msk [vmem:[%s9475_s4 + $0x8c] sm:$0xf] %vm6245_vm4, %v7382_v12  ;;  %v5257_v21 = vadd.f32 %v8292_v14, %v9457_v56  ;;  %v8294_v22 = vadd.f32 %v4722_v20, %v2202_v16 }
 0x234   : > { %6279 = vst.msk [vmem:[%s9475_s4 + $0x84] sm:$0xf] %vm6245_vm4, %v7380_v17  ;;  %vm5387_vm9 = vcmp.ge.f32.partialorder %v5259_v18, 0.0  ;;  %v5515_v23 = vmul.f32 0.2, %v5259_v18  ;;  %v5260_v24 = vadd.f32 %v8293_v19, %v9457_v56 }
 0x235   : > { %vm5385_vm10 = vcmp.ge.f32.partialorder %v5257_v21, 0.0  ;;  %v5513_v25 = vmul.f32 0.2, %v5257_v21  ;;  %v5258_v26 = vadd.f32 %v8294_v22, %v9457_v56 }
 0x236   : > { %v5643_v27 = vsel %vm5387_vm9, %v5259_v18, %v5515_v23  ;;  %vm5388_vm11 = vcmp.ge.f32.partialorder %v5260_v24, 0.0  ;;  %v5516_v28 = vmul.f32 0.2, %v5260_v24  ;;  %v7909_v29 = vpop.f32.mrb[40].mxu1 }
 0x237   : > { %v7385_v30 = vpack.c.bf16 %v5643_v27, %v5643_v27  ;;  %v5641_v31 = vsel %vm5385_vm10, %v5257_v21, %v5513_v25  ;;  %vm5386_vm12 = vcmp.ge.f32.partialorder %v5258_v26, 0.0  ;;  %v5514_v32 = vmul.f32 0.2, %v5258_v26  ;;  %v8169_v33 = vpop.f32.mrb[40].mxu0  ;;  %v2215_v34 = vpop.f32.mrb[41].mxu1 }
 0x238   : > { %v7383_v35 = vpack.c.bf16 %v5641_v31, %v5641_v31  ;;  %v5644_v36 = vsel %vm5388_vm11, %v5260_v24, %v5516_v28  ;;  %v8295_v37 = vadd.f32 %v8169_v33, %v7909_v29  ;;  %v4735_v38 = vpop.f32.mrb[41].mxu0  ;;  %v7910_v39 = vpop.f32.mrb[42].mxu1 }
 0x239   : > { %6284 = vst.msk [vmem:[%s9475_s4 + $0x98] sm:$0xf] %vm6245_vm4, %v7385_v30  ;;  %v7386_v40 = vpack.c.bf16 %v5644_v36, %v5644_v36  ;;  %v5642_v41 = vsel %vm5386_vm12, %v5258_v26, %v5514_v32  ;;  %v8296_v42 = vadd.f32 %v4735_v38, %v2215_v34  ;;  %v8170_v43 = vpop.f32.mrb[42].mxu0  ;;  %v2218_v44 = vpop.f32.mrb[43].mxu1 }
 0x23a   : > { %6282 = vst.msk [vmem:[%s9475_s4 + $0x90] sm:$0xf] %vm6245_vm4, %v7383_v35  ;;  %v7384_v45 = vpack.c.bf16 %v5642_v41, %v5642_v41  ;;  %v5263_v46 = vadd.f32 %v8295_v37, %v9457_v56  ;;  %v8297_v47 = vadd.f32 %v8170_v43, %v7910_v39  ;;  %v4738_v48 = vpop.f32.mrb[43].mxu0 }
 0x23b   : > { %6285 = vst.msk [vmem:[%s9475_s4 + $0x9c] sm:$0xf] %vm6245_vm4, %v7386_v40  ;;  %v5261_v49 = vadd.f32 %v8296_v42, %v9457_v56  ;;  %v8298_v50 = vadd.f32 %v4738_v48, %v2218_v44 }
 0x23c   : > { %6283 = vst.msk [vmem:[%s9475_s4 + $0x94] sm:$0xf] %vm6245_vm4, %v7384_v45  ;;  %vm5391_vm13 = vcmp.ge.f32.partialorder %v5263_v46, 0.0  ;;  %v5519_v51 = vmul.f32 0.2, %v5263_v46  ;;  %v5264_v52 = vadd.f32 %v8297_v47, %v9457_v56 }
 0x23d   : > { %vm5389_vm14 = vcmp.ge.f32.partialorder %v5261_v49, 0.0  ;;  %v5517_v53 = vmul.f32 0.2, %v5261_v49  ;;  %v5262_v54 = vadd.f32 %v8298_v50, %v9457_v56 }
 0x23e   : > { %v5647_v55 = vsel %vm5391_vm13, %v5263_v46, %v5519_v51  ;;  %vm5392_vm15 = vcmp.ge.f32.partialorder %v5264_v52, 0.0  ;;  %v5520_v57 = vmul.f32 0.2, %v5264_v52  ;;  %v7913_v58 = vpop.f32.mrb[44].mxu1 }
 0x23f   : > { %v7389_v59 = vpack.c.bf16 %v5647_v55, %v5647_v55  ;;  %v5645_v60 = vsel %vm5389_vm14, %v5261_v49, %v5517_v53  ;;  %vm5390_vm0 = vcmp.ge.f32.partialorder %v5262_v54, 0.0  ;;  %v5518_v61 = vmul.f32 0.2, %v5262_v54  ;;  %v8173_v62 = vpop.f32.mrb[44].mxu0  ;;  %v2231_v63 = vpop.f32.mrb[45].mxu1 }
 0x240   : > { %v7387_v0 = vpack.c.bf16 %v5645_v60, %v5645_v60  ;;  %v5648_v1 = vsel %vm5392_vm15, %v5264_v52, %v5520_v57  ;;  %v8299_v2 = vadd.f32 %v8173_v62, %v7913_v58  ;;  %v4751_v3 = vpop.f32.mrb[45].mxu0  ;;  %v7914_v4 = vpop.f32.mrb[46].mxu1 }
 0x241   : > { %6288 = vst.msk [vmem:[%s9475_s4 + $0xa8] sm:$0xf] %vm6245_vm4, %v7389_v59  ;;  %v7390_v5 = vpack.c.bf16 %v5648_v1, %v5648_v1  ;;  %v5646_v6 = vsel %vm5390_vm0, %v5262_v54, %v5518_v61  ;;  %v8300_v7 = vadd.f32 %v4751_v3, %v2231_v63  ;;  %v8174_v8 = vpop.f32.mrb[46].mxu0  ;;  %v2234_v9 = vpop.f32.mrb[47].mxu1  ;;  %v9656_v3 = vld [vmem:[%s9900_s2] ss:$0 sm:$0xff] }
 0x242   : > { %6286 = vst.msk [vmem:[%s9475_s4 + $0xa0] sm:$0xf] %vm6245_vm4, %v7387_v0  ;;  %v7388_v10 = vpack.c.bf16 %v5646_v6, %v5646_v6  ;;  %v5267_v11 = vadd.f32 %v8299_v2, %v9457_v56  ;;  %v8301_v12 = vadd.f32 %v8174_v8, %v7914_v4  ;;  %v4754_v13 = vpop.f32.mrb[47].mxu0 }
 0x243   : > { %6289 = vst.msk [vmem:[%s9475_s4 + $0xac] sm:$0xf] %vm6245_vm4, %v7390_v5  ;;  %v5265_v14 = vadd.f32 %v8300_v7, %v9457_v56  ;;  %v8302_v15 = vadd.f32 %v4754_v13, %v2234_v9 }
 0x244   : > { %6287 = vst.msk [vmem:[%s9475_s4 + $0xa4] sm:$0xf] %vm6245_vm4, %v7388_v10  ;;  %vm5395_vm2 = vcmp.ge.f32.partialorder %v5267_v11, 0.0  ;;  %v5523_v16 = vmul.f32 0.2, %v5267_v11  ;;  %v5268_v17 = vadd.f32 %v8301_v12, %v9457_v56 }
 0x245   : > { %vm5393_vm3 = vcmp.ge.f32.partialorder %v5265_v14, 0.0  ;;  %v5521_v18 = vmul.f32 0.2, %v5265_v14  ;;  %v5266_v19 = vadd.f32 %v8302_v15, %v9457_v56 }
 0x246   : > { %v5651_v20 = vsel %vm5395_vm2, %v5267_v11, %v5523_v16  ;;  %vm5396_vm5 = vcmp.ge.f32.partialorder %v5268_v17, 0.0  ;;  %v5524_v21 = vmul.f32 0.2, %v5268_v17  ;;  %v7917_v22 = vpop.f32.mrb[48].mxu1 }
 0x247   : > { %v7393_v23 = vpack.c.bf16 %v5651_v20, %v5651_v20  ;;  %v5649_v24 = vsel %vm5393_vm3, %v5265_v14, %v5521_v18  ;;  %vm5394_vm6 = vcmp.ge.f32.partialorder %v5266_v19, 0.0  ;;  %v5522_v25 = vmul.f32 0.2, %v5266_v19  ;;  %v8177_v26 = vpop.f32.mrb[48].mxu0  ;;  %v2247_v27 = vpop.f32.mrb[49].mxu1 }
 0x248   : > { %v7391_v28 = vpack.c.bf16 %v5649_v24, %v5649_v24  ;;  %v5652_v29 = vsel %vm5396_vm5, %v5268_v17, %v5524_v21  ;;  %v8303_v30 = vadd.f32 %v8177_v26, %v7917_v22  ;;  %v4767_v31 = vpop.f32.mrb[49].mxu0  ;;  %v7918_v32 = vpop.f32.mrb[50].mxu1 }
 0x249   : > { %6292 = vst.msk [vmem:[%s9475_s4 + $0xb8] sm:$0xf] %vm6245_vm4, %v7393_v23  ;;  %v7394_v33 = vpack.c.bf16 %v5652_v29, %v5652_v29  ;;  %v5650_v34 = vsel %vm5394_vm6, %v5266_v19, %v5522_v25  ;;  %v8304_v35 = vadd.f32 %v4767_v31, %v2247_v27  ;;  %v8178_v36 = vpop.f32.mrb[50].mxu0  ;;  %v2250_v37 = vpop.f32.mrb[51].mxu1 }
 0x24a   : > { %6290 = vst.msk [vmem:[%s9475_s4 + $0xb0] sm:$0xf] %vm6245_vm4, %v7391_v28  ;;  %v7392_v38 = vpack.c.bf16 %v5650_v34, %v5650_v34  ;;  %v5271_v39 = vadd.f32 %v8303_v30, %v9457_v56  ;;  %v8305_v40 = vadd.f32 %v8178_v36, %v7918_v32  ;;  %v4770_v41 = vpop.f32.mrb[51].mxu0 }
 0x24b   : > { %6293 = vst.msk [vmem:[%s9475_s4 + $0xbc] sm:$0xf] %vm6245_vm4, %v7394_v33  ;;  %v5269_v42 = vadd.f32 %v8304_v35, %v9457_v56  ;;  %v8306_v43 = vadd.f32 %v4770_v41, %v2250_v37 }
 0x24c   : > { %6291 = vst.msk [vmem:[%s9475_s4 + $0xb4] sm:$0xf] %vm6245_vm4, %v7392_v38  ;;  %vm5399_vm7 = vcmp.ge.f32.partialorder %v5271_v39, 0.0  ;;  %v5527_v44 = vmul.f32 0.2, %v5271_v39  ;;  %v5272_v45 = vadd.f32 %v8305_v40, %v9457_v56 }
 0x24d   : > { %vm5397_vm8 = vcmp.ge.f32.partialorder %v5269_v42, 0.0  ;;  %v5525_v46 = vmul.f32 0.2, %v5269_v42  ;;  %v5270_v47 = vadd.f32 %v8306_v43, %v9457_v56 }
 0x24e   : > { %v5655_v48 = vsel %vm5399_vm7, %v5271_v39, %v5527_v44  ;;  %vm5400_vm1 = vcmp.ge.f32.partialorder %v5272_v45, 0.0  ;;  %v5528_v49 = vmul.f32 0.2, %v5272_v45  ;;  %v7921_v50 = vpop.f32.mrb[52].mxu1 }
 0x24f   : > { %v7397_v51 = vpack.c.bf16 %v5655_v48, %v5655_v48  ;;  %v5653_v52 = vsel %vm5397_vm8, %v5269_v42, %v5525_v46  ;;  %vm5398_vm9 = vcmp.ge.f32.partialorder %v5270_v47, 0.0  ;;  %v5526_v53 = vmul.f32 0.2, %v5270_v47  ;;  %v8181_v54 = vpop.f32.mrb[52].mxu0  ;;  %v2263_v55 = vpop.f32.mrb[53].mxu1 }
 0x250   : > { %v7395_v57 = vpack.c.bf16 %v5653_v52, %v5653_v52  ;;  %v5656_v58 = vsel %vm5400_vm1, %v5272_v45, %v5528_v49  ;;  %v8307_v59 = vadd.f32 %v8181_v54, %v7921_v50  ;;  %v4783_v60 = vpop.f32.mrb[53].mxu0  ;;  %v7922_v61 = vpop.f32.mrb[54].mxu1 }
 0x251   : > { %6296 = vst.msk [vmem:[%s9475_s4 + $0xc8] sm:$0xf] %vm6245_vm4, %v7397_v51  ;;  %v7398_v56 = vpack.c.bf16 %v5656_v58, %v5656_v58  ;;  %v5654_v62 = vsel %vm5398_vm9, %v5270_v47, %v5526_v53  ;;  %v8308_v63 = vadd.f32 %v4783_v60, %v2263_v55  ;;  %v8182_v0 = vpop.f32.mrb[54].mxu0  ;;  %v2266_v1 = vpop.f32.mrb[55].mxu1 }
 0x252   : > { %6294 = vst.msk [vmem:[%s9475_s4 + $0xc0] sm:$0xf] %vm6245_vm4, %v7395_v57  ;;  %v7396_v2 = vpack.c.bf16 %v5654_v62, %v5654_v62  ;;  %v5275_v4 = vadd.f32 %v9656_v3, %v8307_v59  ;;  %v8309_v5 = vadd.f32 %v8182_v0, %v7922_v61  ;;  %v4786_v6 = vpop.f32.mrb[55].mxu0 }
 0x253   : > { %6297 = vst.msk [vmem:[%s9475_s4 + $0xcc] sm:$0xf] %vm6245_vm4, %v7398_v56  ;;  %v5273_v7 = vadd.f32 %v9656_v3, %v8308_v63  ;;  %v8310_v8 = vadd.f32 %v4786_v6, %v2266_v1 }
 0x254   : > { %6295 = vst.msk [vmem:[%s9475_s4 + $0xc4] sm:$0xf] %vm6245_vm4, %v7396_v2  ;;  %vm5403_vm10 = vcmp.ge.f32.partialorder %v5275_v4, 0.0  ;;  %v5531_v9 = vmul.f32 0.2, %v5275_v4  ;;  %v5276_v10 = vadd.f32 %v9656_v3, %v8309_v5 }
 0x255   : > { %vm5401_vm11 = vcmp.ge.f32.partialorder %v5273_v7, 0.0  ;;  %v5529_v11 = vmul.f32 0.2, %v5273_v7  ;;  %v5274_v12 = vadd.f32 %v9656_v3, %v8310_v8 }
 0x256   : > { %v5659_v13 = vsel %vm5403_vm10, %v5275_v4, %v5531_v9  ;;  %vm5404_vm12 = vcmp.ge.f32.partialorder %v5276_v10, 0.0  ;;  %v5532_v14 = vmul.f32 0.2, %v5276_v10  ;;  %v7925_v15 = vpop.f32.mrb[56].mxu1 }
 0x257   : > { %v7401_v16 = vpack.c.bf16 %v5659_v13, %v5659_v13  ;;  %v5657_v17 = vsel %vm5401_vm11, %v5273_v7, %v5529_v11  ;;  %vm5402_vm13 = vcmp.ge.f32.partialorder %v5274_v12, 0.0  ;;  %v5530_v18 = vmul.f32 0.2, %v5274_v12  ;;  %v8185_v19 = vpop.f32.mrb[56].mxu0  ;;  %v2279_v20 = vpop.f32.mrb[57].mxu1 }
 0x258   : > { %v7399_v21 = vpack.c.bf16 %v5657_v17, %v5657_v17  ;;  %v5660_v22 = vsel %vm5404_vm12, %v5276_v10, %v5532_v14  ;;  %v8311_v23 = vadd.f32 %v8185_v19, %v7925_v15  ;;  %v4799_v24 = vpop.f32.mrb[57].mxu0  ;;  %v7926_v25 = vpop.f32.mrb[58].mxu1 }
 0x259   : > { %6300 = vst.msk [vmem:[%s9475_s4 + $0xd8] sm:$0xf] %vm6245_vm4, %v7401_v16  ;;  %v7402_v26 = vpack.c.bf16 %v5660_v22, %v5660_v22  ;;  %v5658_v27 = vsel %vm5402_vm13, %v5274_v12, %v5530_v18  ;;  %v8312_v28 = vadd.f32 %v4799_v24, %v2279_v20  ;;  %v8186_v29 = vpop.f32.mrb[58].mxu0  ;;  %v2282_v30 = vpop.f32.mrb[59].mxu1 }
 0x25a   : > { %6298 = vst.msk [vmem:[%s9475_s4 + $0xd0] sm:$0xf] %vm6245_vm4, %v7399_v21  ;;  %v7400_v31 = vpack.c.bf16 %v5658_v27, %v5658_v27  ;;  %v5279_v32 = vadd.f32 %v9656_v3, %v8311_v23  ;;  %v8313_v33 = vadd.f32 %v8186_v29, %v7926_v25  ;;  %v4802_v34 = vpop.f32.mrb[59].mxu0 }
 0x25b   : > { %6301 = vst.msk [vmem:[%s9475_s4 + $0xdc] sm:$0xf] %vm6245_vm4, %v7402_v26  ;;  %v5277_v35 = vadd.f32 %v9656_v3, %v8312_v28  ;;  %v8314_v36 = vadd.f32 %v4802_v34, %v2282_v30 }
 0x25c   : > { %6299 = vst.msk [vmem:[%s9475_s4 + $0xd4] sm:$0xf] %vm6245_vm4, %v7400_v31  ;;  %vm5407_vm14 = vcmp.ge.f32.partialorder %v5279_v32, 0.0  ;;  %v5535_v37 = vmul.f32 0.2, %v5279_v32  ;;  %v5280_v38 = vadd.f32 %v9656_v3, %v8313_v33 }
 0x25d   : > { %vm5405_vm15 = vcmp.ge.f32.partialorder %v5277_v35, 0.0  ;;  %v5533_v39 = vmul.f32 0.2, %v5277_v35  ;;  %v5278_v40 = vadd.f32 %v9656_v3, %v8314_v36 }
 0x25e   : > { %v5663_v41 = vsel %vm5407_vm14, %v5279_v32, %v5535_v37  ;;  %vm5408_vm0 = vcmp.ge.f32.partialorder %v5280_v38, 0.0  ;;  %v5536_v42 = vmul.f32 0.2, %v5280_v38  ;;  %v7929_v43 = vpop.f32.mrb[60].mxu1 }
 0x25f   : > { %v7405_v44 = vpack.c.bf16 %v5663_v41, %v5663_v41  ;;  %v5661_v45 = vsel %vm5405_vm15, %v5277_v35, %v5533_v39  ;;  %vm5406_vm2 = vcmp.ge.f32.partialorder %v5278_v40, 0.0  ;;  %v5534_v46 = vmul.f32 0.2, %v5278_v40  ;;  %v8189_v47 = vpop.f32.mrb[60].mxu0  ;;  %v2295_v48 = vpop.f32.mrb[61].mxu1 }
 0x260   : > { %v7403_v49 = vpack.c.bf16 %v5661_v45, %v5661_v45  ;;  %v5664_v50 = vsel %vm5408_vm0, %v5280_v38, %v5536_v42  ;;  %v8315_v51 = vadd.f32 %v8189_v47, %v7929_v43  ;;  %v4815_v52 = vpop.f32.mrb[61].mxu0  ;;  %v7930_v53 = vpop.f32.mrb[62].mxu1 }
 0x261   : > { %6304 = vst.msk [vmem:[%s9475_s4 + $0xe8] sm:$0xf] %vm6245_vm4, %v7405_v44  ;;  %v7406_v54 = vpack.c.bf16 %v5664_v50, %v5664_v50  ;;  %v5662_v55 = vsel %vm5406_vm2, %v5278_v40, %v5534_v46  ;;  %v8316_v57 = vadd.f32 %v4815_v52, %v2295_v48  ;;  %v8190_v58 = vpop.f32.mrb[62].mxu0  ;;  %v2298_v59 = vpop.f32.mrb[63].mxu1 }
 0x262   : > { %6302 = vst.msk [vmem:[%s9475_s4 + $0xe0] sm:$0xf] %vm6245_vm4, %v7403_v49  ;;  %v7404_v60 = vpack.c.bf16 %v5662_v55, %v5662_v55  ;;  %v5283_v61 = vadd.f32 %v9656_v3, %v8315_v51  ;;  %v8317_v56 = vadd.f32 %v8190_v58, %v7930_v53  ;;  %v4818_v62 = vpop.f32.mrb[63].mxu0 }
 0x263   : > { %6305 = vst.msk [vmem:[%s9475_s4 + $0xec] sm:$0xf] %vm6245_vm4, %v7406_v54  ;;  %v5281_v63 = vadd.f32 %v9656_v3, %v8316_v57  ;;  %v8318_v0 = vadd.f32 %v4818_v62, %v2298_v59 }
 0x264   : > { %6303 = vst.msk [vmem:[%s9475_s4 + $0xe4] sm:$0xf] %vm6245_vm4, %v7404_v60  ;;  %vm5411_vm3 = vcmp.ge.f32.partialorder %v5283_v61, 0.0  ;;  %v5539_v1 = vmul.f32 0.2, %v5283_v61  ;;  %v5284_v2 = vadd.f32 %v9656_v3, %v8317_v56 }
 0x265   : > { %vm5409_vm5 = vcmp.ge.f32.partialorder %v5281_v63, 0.0  ;;  %v5537_v4 = vmul.f32 0.2, %v5281_v63  ;;  %v5282_v5 = vadd.f32 %v9656_v3, %v8318_v0 }
 0x266   : > { %v5667_v6 = vsel %vm5411_vm3, %v5283_v61, %v5539_v1  ;;  %vm5412_vm6 = vcmp.ge.f32.partialorder %v5284_v2, 0.0  ;;  %v5540_v7 = vmul.f32 0.2, %v5284_v2  ;;  %v7933_v8 = vpop.f32.mrb[64].mxu1 }
 0x267   : > { %v7409_v9 = vpack.c.bf16 %v5667_v6, %v5667_v6  ;;  %v5665_v10 = vsel %vm5409_vm5, %v5281_v63, %v5537_v4  ;;  %vm5410_vm7 = vcmp.ge.f32.partialorder %v5282_v5, 0.0  ;;  %v5538_v11 = vmul.f32 0.2, %v5282_v5  ;;  %v8193_v12 = vpop.f32.mrb[64].mxu0  ;;  %v2311_v13 = vpop.f32.mrb[65].mxu1 }
 0x268   : > { %v7407_v14 = vpack.c.bf16 %v5665_v10, %v5665_v10  ;;  %v5668_v15 = vsel %vm5412_vm6, %v5284_v2, %v5540_v7  ;;  %v8319_v16 = vadd.f32 %v8193_v12, %v7933_v8  ;;  %v4831_v17 = vpop.f32.mrb[65].mxu0  ;;  %v7934_v18 = vpop.f32.mrb[66].mxu1 }
 0x269   : > { %6308 = vst.msk [vmem:[%s9475_s4 + $0xf8] sm:$0xf] %vm6245_vm4, %v7409_v9  ;;  %v7410_v19 = vpack.c.bf16 %v5668_v15, %v5668_v15  ;;  %v5666_v20 = vsel %vm5410_vm7, %v5282_v5, %v5538_v11  ;;  %v8320_v21 = vadd.f32 %v4831_v17, %v2311_v13  ;;  %v8194_v22 = vpop.f32.mrb[66].mxu0  ;;  %v2314_v23 = vpop.f32.mrb[67].mxu1 }
 0x26a   : > { %6306 = vst.msk [vmem:[%s9475_s4 + $0xf0] sm:$0xf] %vm6245_vm4, %v7407_v14  ;;  %v7408_v24 = vpack.c.bf16 %v5666_v20, %v5666_v20  ;;  %v5287_v25 = vadd.f32 %v9656_v3, %v8319_v16  ;;  %v8321_v26 = vadd.f32 %v8194_v22, %v7934_v18  ;;  %v4834_v27 = vpop.f32.mrb[67].mxu0 }
 0x26b   : > { %6309 = vst.msk [vmem:[%s9475_s4 + $0xfc] sm:$0xf] %vm6245_vm4, %v7410_v19  ;;  %v5285_v28 = vadd.f32 %v9656_v3, %v8320_v21  ;;  %v8322_v29 = vadd.f32 %v4834_v27, %v2314_v23 }
 0x26c   : > { %6307 = vst.msk [vmem:[%s9475_s4 + $0xf4] sm:$0xf] %vm6245_vm4, %v7408_v24  ;;  %vm5415_vm8 = vcmp.ge.f32.partialorder %v5287_v25, 0.0  ;;  %v5543_v30 = vmul.f32 0.2, %v5287_v25  ;;  %v5288_v31 = vadd.f32 %v9656_v3, %v8321_v26 }
 0x26d   : > { %vm5413_vm1 = vcmp.ge.f32.partialorder %v5285_v28, 0.0  ;;  %v5541_v32 = vmul.f32 0.2, %v5285_v28  ;;  %v5286_v33 = vadd.f32 %v9656_v3, %v8322_v29 }
 0x26e   : > { %v5671_v34 = vsel %vm5415_vm8, %v5287_v25, %v5543_v30  ;;  %vm5416_vm9 = vcmp.ge.f32.partialorder %v5288_v31, 0.0  ;;  %v5544_v35 = vmul.f32 0.2, %v5288_v31  ;;  %v7937_v36 = vpop.f32.mrb[68].mxu1 }
 0x26f   : > { %v7413_v37 = vpack.c.bf16 %v5671_v34, %v5671_v34  ;;  %v5669_v38 = vsel %vm5413_vm1, %v5285_v28, %v5541_v32  ;;  %vm5414_vm10 = vcmp.ge.f32.partialorder %v5286_v33, 0.0  ;;  %v5542_v39 = vmul.f32 0.2, %v5286_v33  ;;  %v8197_v40 = vpop.f32.mrb[68].mxu0  ;;  %v2327_v41 = vpop.f32.mrb[69].mxu1 }
 0x270   : > { %v7411_v42 = vpack.c.bf16 %v5669_v38, %v5669_v38  ;;  %v5672_v43 = vsel %vm5416_vm9, %v5288_v31, %v5544_v35  ;;  %v8323_v44 = vadd.f32 %v8197_v40, %v7937_v36  ;;  %v4847_v45 = vpop.f32.mrb[69].mxu0  ;;  %v7938_v46 = vpop.f32.mrb[70].mxu1 }
 0x271   : > { %6312 = vst.msk [vmem:[%s9475_s4 + $0x108] sm:$0xf] %vm6245_vm4, %v7413_v37  ;;  %v7414_v47 = vpack.c.bf16 %v5672_v43, %v5672_v43  ;;  %v5670_v48 = vsel %vm5414_vm10, %v5286_v33, %v5542_v39  ;;  %v8324_v49 = vadd.f32 %v4847_v45, %v2327_v41  ;;  %v8198_v50 = vpop.f32.mrb[70].mxu0  ;;  %v2330_v51 = vpop.f32.mrb[71].mxu1 }
 0x272   : > { %6310 = vst.msk [vmem:[%s9475_s4 + $0x100] sm:$0xf] %vm6245_vm4, %v7411_v42  ;;  %v7412_v52 = vpack.c.bf16 %v5670_v48, %v5670_v48  ;;  %v5291_v53 = vadd.f32 %v9656_v3, %v8323_v44  ;;  %v8325_v54 = vadd.f32 %v8198_v50, %v7938_v46  ;;  %v4850_v55 = vpop.f32.mrb[71].mxu0 }
 0x273   : > { %6313 = vst.msk [vmem:[%s9475_s4 + $0x10c] sm:$0xf] %vm6245_vm4, %v7414_v47  ;;  %v5289_v57 = vadd.f32 %v9656_v3, %v8324_v49  ;;  %v8326_v58 = vadd.f32 %v4850_v55, %v2330_v51 }
 0x274   : > { %6311 = vst.msk [vmem:[%s9475_s4 + $0x104] sm:$0xf] %vm6245_vm4, %v7412_v52  ;;  %vm5419_vm11 = vcmp.ge.f32.partialorder %v5291_v53, 0.0  ;;  %v5547_v59 = vmul.f32 0.2, %v5291_v53  ;;  %v5292_v60 = vadd.f32 %v9656_v3, %v8325_v54 }
 0x275   : > { %vm5417_vm12 = vcmp.ge.f32.partialorder %v5289_v57, 0.0  ;;  %v5545_v61 = vmul.f32 0.2, %v5289_v57  ;;  %v5290_v56 = vadd.f32 %v9656_v3, %v8326_v58 }
 0x276   : > { %v5675_v62 = vsel %vm5419_vm11, %v5291_v53, %v5547_v59  ;;  %vm5420_vm13 = vcmp.ge.f32.partialorder %v5292_v60, 0.0  ;;  %v5548_v63 = vmul.f32 0.2, %v5292_v60  ;;  %v7941_v0 = vpop.f32.mrb[72].mxu1 }
 0x277   : > { %v7417_v1 = vpack.c.bf16 %v5675_v62, %v5675_v62  ;;  %v5673_v2 = vsel %vm5417_vm12, %v5289_v57, %v5545_v61  ;;  %vm5418_vm14 = vcmp.ge.f32.partialorder %v5290_v56, 0.0  ;;  %v5546_v4 = vmul.f32 0.2, %v5290_v56  ;;  %v8201_v5 = vpop.f32.mrb[72].mxu0  ;;  %v2343_v6 = vpop.f32.mrb[73].mxu1 }
 0x278   : > { %v7415_v7 = vpack.c.bf16 %v5673_v2, %v5673_v2  ;;  %v5676_v8 = vsel %vm5420_vm13, %v5292_v60, %v5548_v63  ;;  %v8327_v9 = vadd.f32 %v8201_v5, %v7941_v0  ;;  %v4863_v10 = vpop.f32.mrb[73].mxu0  ;;  %v7942_v11 = vpop.f32.mrb[74].mxu1 }
 0x279   : > { %6316 = vst.msk [vmem:[%s9475_s4 + $0x118] sm:$0xf] %vm6245_vm4, %v7417_v1  ;;  %v7418_v12 = vpack.c.bf16 %v5676_v8, %v5676_v8  ;;  %v5674_v13 = vsel %vm5418_vm14, %v5290_v56, %v5546_v4  ;;  %v8328_v14 = vadd.f32 %v4863_v10, %v2343_v6  ;;  %v8202_v15 = vpop.f32.mrb[74].mxu0  ;;  %v2346_v16 = vpop.f32.mrb[75].mxu1 }
 0x27a   : > { %6314 = vst.msk [vmem:[%s9475_s4 + $0x110] sm:$0xf] %vm6245_vm4, %v7415_v7  ;;  %v7416_v17 = vpack.c.bf16 %v5674_v13, %v5674_v13  ;;  %v5295_v18 = vadd.f32 %v9656_v3, %v8327_v9  ;;  %v8329_v19 = vadd.f32 %v8202_v15, %v7942_v11  ;;  %v4866_v20 = vpop.f32.mrb[75].mxu0 }
 0x27b   : > { %6317 = vst.msk [vmem:[%s9475_s4 + $0x11c] sm:$0xf] %vm6245_vm4, %v7418_v12  ;;  %v5293_v21 = vadd.f32 %v9656_v3, %v8328_v14  ;;  %v8330_v22 = vadd.f32 %v4866_v20, %v2346_v16 }
 0x27c   : > { %6315 = vst.msk [vmem:[%s9475_s4 + $0x114] sm:$0xf] %vm6245_vm4, %v7416_v17  ;;  %vm5423_vm15 = vcmp.ge.f32.partialorder %v5295_v18, 0.0  ;;  %v5551_v23 = vmul.f32 0.2, %v5295_v18  ;;  %v5296_v24 = vadd.f32 %v9656_v3, %v8329_v19 }
 0x27d   : > { %vm5421_vm0 = vcmp.ge.f32.partialorder %v5293_v21, 0.0  ;;  %v5549_v25 = vmul.f32 0.2, %v5293_v21  ;;  %v5294_v26 = vadd.f32 %v9656_v3, %v8330_v22 }
 0x27e   : > { %v5679_v27 = vsel %vm5423_vm15, %v5295_v18, %v5551_v23  ;;  %vm5424_vm2 = vcmp.ge.f32.partialorder %v5296_v24, 0.0  ;;  %v5552_v28 = vmul.f32 0.2, %v5296_v24  ;;  %v7945_v29 = vpop.f32.mrb[76].mxu1 }
 0x27f   : > { %v7421_v30 = vpack.c.bf16 %v5679_v27, %v5679_v27  ;;  %v5677_v31 = vsel %vm5421_vm0, %v5293_v21, %v5549_v25  ;;  %vm5422_vm3 = vcmp.ge.f32.partialorder %v5294_v26, 0.0  ;;  %v5550_v32 = vmul.f32 0.2, %v5294_v26  ;;  %v8205_v33 = vpop.f32.mrb[76].mxu0  ;;  %v2359_v34 = vpop.f32.mrb[77].mxu1 }
 0x280   : > { %v7419_v35 = vpack.c.bf16 %v5677_v31, %v5677_v31  ;;  %v5680_v36 = vsel %vm5424_vm2, %v5296_v24, %v5552_v28  ;;  %v8331_v37 = vadd.f32 %v8205_v33, %v7945_v29  ;;  %v4879_v38 = vpop.f32.mrb[77].mxu0  ;;  %v7946_v39 = vpop.f32.mrb[78].mxu1 }
 0x281   : > { %6320 = vst.msk [vmem:[%s9475_s4 + $0x128] sm:$0xf] %vm6245_vm4, %v7421_v30  ;;  %v7422_v40 = vpack.c.bf16 %v5680_v36, %v5680_v36  ;;  %v5678_v41 = vsel %vm5422_vm3, %v5294_v26, %v5550_v32  ;;  %v8332_v42 = vadd.f32 %v4879_v38, %v2359_v34  ;;  %v8206_v43 = vpop.f32.mrb[78].mxu0  ;;  %v2362_v44 = vpop.f32.mrb[79].mxu1 }
 0x282   : > { %6318 = vst.msk [vmem:[%s9475_s4 + $0x120] sm:$0xf] %vm6245_vm4, %v7419_v35  ;;  %v7420_v45 = vpack.c.bf16 %v5678_v41, %v5678_v41  ;;  %v5299_v46 = vadd.f32 %v9656_v3, %v8331_v37  ;;  %v8333_v47 = vadd.f32 %v8206_v43, %v7946_v39  ;;  %v4882_v48 = vpop.f32.mrb[79].mxu0 }
 0x283   : > { %6321 = vst.msk [vmem:[%s9475_s4 + $0x12c] sm:$0xf] %vm6245_vm4, %v7422_v40  ;;  %v5297_v49 = vadd.f32 %v9656_v3, %v8332_v42  ;;  %v8334_v50 = vadd.f32 %v4882_v48, %v2362_v44 }
 0x284   : > { %6319 = vst.msk [vmem:[%s9475_s4 + $0x124] sm:$0xf] %vm6245_vm4, %v7420_v45  ;;  %vm5427_vm5 = vcmp.ge.f32.partialorder %v5299_v46, 0.0  ;;  %v5555_v51 = vmul.f32 0.2, %v5299_v46  ;;  %v5300_v52 = vadd.f32 %v9656_v3, %v8333_v47 }
 0x285   : > { %vm5425_vm6 = vcmp.ge.f32.partialorder %v5297_v49, 0.0  ;;  %v5553_v53 = vmul.f32 0.2, %v5297_v49  ;;  %v5298_v54 = vadd.f32 %v9656_v3, %v8334_v50 }
 0x286   : > { %v5683_v55 = vsel %vm5427_vm5, %v5299_v46, %v5555_v51  ;;  %vm5428_vm7 = vcmp.ge.f32.partialorder %v5300_v52, 0.0  ;;  %v5556_v57 = vmul.f32 0.2, %v5300_v52  ;;  %v7949_v58 = vpop.f32.mrb[80].mxu1 }
 0x287   : > { %v7425_v59 = vpack.c.bf16 %v5683_v55, %v5683_v55  ;;  %v5681_v60 = vsel %vm5425_vm6, %v5297_v49, %v5553_v53  ;;  %vm5426_vm8 = vcmp.ge.f32.partialorder %v5298_v54, 0.0  ;;  %v5554_v61 = vmul.f32 0.2, %v5298_v54  ;;  %v8209_v56 = vpop.f32.mrb[80].mxu0  ;;  %v2375_v62 = vpop.f32.mrb[81].mxu1 }
 0x288   : > { %v7423_v63 = vpack.c.bf16 %v5681_v60, %v5681_v60  ;;  %v5684_v0 = vsel %vm5428_vm7, %v5300_v52, %v5556_v57  ;;  %v8335_v1 = vadd.f32 %v8209_v56, %v7949_v58  ;;  %v4895_v2 = vpop.f32.mrb[81].mxu0  ;;  %v7950_v4 = vpop.f32.mrb[82].mxu1 }
 0x289   : > { %6324 = vst.msk [vmem:[%s9475_s4 + $0x138] sm:$0xf] %vm6245_vm4, %v7425_v59  ;;  %v7426_v5 = vpack.c.bf16 %v5684_v0, %v5684_v0  ;;  %v5682_v6 = vsel %vm5426_vm8, %v5298_v54, %v5554_v61  ;;  %v8336_v7 = vadd.f32 %v4895_v2, %v2375_v62  ;;  %v8210_v8 = vpop.f32.mrb[82].mxu0  ;;  %v2378_v9 = vpop.f32.mrb[83].mxu1 }
 0x28a   : > { %6322 = vst.msk [vmem:[%s9475_s4 + $0x130] sm:$0xf] %vm6245_vm4, %v7423_v63  ;;  %v7424_v10 = vpack.c.bf16 %v5682_v6, %v5682_v6  ;;  %v5303_v11 = vadd.f32 %v9656_v3, %v8335_v1  ;;  %v8337_v12 = vadd.f32 %v8210_v8, %v7950_v4  ;;  %v4898_v13 = vpop.f32.mrb[83].mxu0 }
 0x28b   : > { %6325 = vst.msk [vmem:[%s9475_s4 + $0x13c] sm:$0xf] %vm6245_vm4, %v7426_v5  ;;  %v5301_v14 = vadd.f32 %v9656_v3, %v8336_v7  ;;  %v8338_v15 = vadd.f32 %v4898_v13, %v2378_v9 }
 0x28c   : > { %6323 = vst.msk [vmem:[%s9475_s4 + $0x134] sm:$0xf] %vm6245_vm4, %v7424_v10  ;;  %vm5431_vm1 = vcmp.ge.f32.partialorder %v5303_v11, 0.0  ;;  %v5559_v16 = vmul.f32 0.2, %v5303_v11  ;;  %v5304_v17 = vadd.f32 %v9656_v3, %v8337_v12 }
 0x28d   : > { %vm5429_vm9 = vcmp.ge.f32.partialorder %v5301_v14, 0.0  ;;  %v5557_v18 = vmul.f32 0.2, %v5301_v14  ;;  %v5302_v19 = vadd.f32 %v9656_v3, %v8338_v15 }
 0x28e   : > { %v5687_v20 = vsel %vm5431_vm1, %v5303_v11, %v5559_v16  ;;  %vm5432_vm10 = vcmp.ge.f32.partialorder %v5304_v17, 0.0  ;;  %v5560_v21 = vmul.f32 0.2, %v5304_v17  ;;  %v7953_v22 = vpop.f32.mrb[84].mxu1 }
 0x28f   : > { %v7429_v23 = vpack.c.bf16 %v5687_v20, %v5687_v20  ;;  %v5685_v24 = vsel %vm5429_vm9, %v5301_v14, %v5557_v18  ;;  %vm5430_vm11 = vcmp.ge.f32.partialorder %v5302_v19, 0.0  ;;  %v5558_v25 = vmul.f32 0.2, %v5302_v19  ;;  %v8213_v26 = vpop.f32.mrb[84].mxu0  ;;  %v2391_v27 = vpop.f32.mrb[85].mxu1 }
 0x290   : > { %v7427_v28 = vpack.c.bf16 %v5685_v24, %v5685_v24  ;;  %v5688_v29 = vsel %vm5432_vm10, %v5304_v17, %v5560_v21  ;;  %v8339_v30 = vadd.f32 %v8213_v26, %v7953_v22  ;;  %v4911_v31 = vpop.f32.mrb[85].mxu0  ;;  %v7954_v32 = vpop.f32.mrb[86].mxu1 }
 0x291   : > { %6328 = vst.msk [vmem:[%s9475_s4 + $0x148] sm:$0xf] %vm6245_vm4, %v7429_v23  ;;  %v7430_v33 = vpack.c.bf16 %v5688_v29, %v5688_v29  ;;  %v5686_v34 = vsel %vm5430_vm11, %v5302_v19, %v5558_v25  ;;  %v8340_v35 = vadd.f32 %v4911_v31, %v2391_v27  ;;  %v8214_v36 = vpop.f32.mrb[86].mxu0  ;;  %v2394_v37 = vpop.f32.mrb[87].mxu1 }
 0x292   : > { %6326 = vst.msk [vmem:[%s9475_s4 + $0x140] sm:$0xf] %vm6245_vm4, %v7427_v28  ;;  %v7428_v38 = vpack.c.bf16 %v5686_v34, %v5686_v34  ;;  %v5307_v39 = vadd.f32 %v9656_v3, %v8339_v30  ;;  %v8341_v40 = vadd.f32 %v8214_v36, %v7954_v32  ;;  %v4914_v41 = vpop.f32.mrb[87].mxu0 }
 0x293   : > { %6329 = vst.msk [vmem:[%s9475_s4 + $0x14c] sm:$0xf] %vm6245_vm4, %v7430_v33  ;;  %v5305_v42 = vadd.f32 %v9656_v3, %v8340_v35  ;;  %v8342_v43 = vadd.f32 %v4914_v41, %v2394_v37 }
 0x294   : > { %6327 = vst.msk [vmem:[%s9475_s4 + $0x144] sm:$0xf] %vm6245_vm4, %v7428_v38  ;;  %vm5435_vm12 = vcmp.ge.f32.partialorder %v5307_v39, 0.0  ;;  %v5563_v44 = vmul.f32 0.2, %v5307_v39  ;;  %v5308_v45 = vadd.f32 %v9656_v3, %v8341_v40 }
 0x295   : > { %vm5433_vm13 = vcmp.ge.f32.partialorder %v5305_v42, 0.0  ;;  %v5561_v46 = vmul.f32 0.2, %v5305_v42  ;;  %v5306_v47 = vadd.f32 %v9656_v3, %v8342_v43 }
 0x296   : > { %v5691_v48 = vsel %vm5435_vm12, %v5307_v39, %v5563_v44  ;;  %vm5436_vm14 = vcmp.ge.f32.partialorder %v5308_v45, 0.0  ;;  %v5564_v49 = vmul.f32 0.2, %v5308_v45  ;;  %v7957_v50 = vpop.f32.mrb[88].mxu1 }
 0x297   : > { %v7433_v51 = vpack.c.bf16 %v5691_v48, %v5691_v48  ;;  %v5689_v52 = vsel %vm5433_vm13, %v5305_v42, %v5561_v46  ;;  %vm5434_vm15 = vcmp.ge.f32.partialorder %v5306_v47, 0.0  ;;  %v5562_v53 = vmul.f32 0.2, %v5306_v47  ;;  %v8217_v54 = vpop.f32.mrb[88].mxu0  ;;  %v2407_v55 = vpop.f32.mrb[89].mxu1 }
 0x298   : > { %v7431_v57 = vpack.c.bf16 %v5689_v52, %v5689_v52  ;;  %v5692_v58 = vsel %vm5436_vm14, %v5308_v45, %v5564_v49  ;;  %v8343_v59 = vadd.f32 %v8217_v54, %v7957_v50  ;;  %v4927_v60 = vpop.f32.mrb[89].mxu0  ;;  %v7958_v61 = vpop.f32.mrb[90].mxu1 }
 0x299   : > { %6332 = vst.msk [vmem:[%s9475_s4 + $0x158] sm:$0xf] %vm6245_vm4, %v7433_v51  ;;  %v7434_v56 = vpack.c.bf16 %v5692_v58, %v5692_v58  ;;  %v5690_v62 = vsel %vm5434_vm15, %v5306_v47, %v5562_v53  ;;  %v8344_v63 = vadd.f32 %v4927_v60, %v2407_v55  ;;  %v8218_v0 = vpop.f32.mrb[90].mxu0  ;;  %v2410_v1 = vpop.f32.mrb[91].mxu1 }
 0x29a   : > { %6330 = vst.msk [vmem:[%s9475_s4 + $0x150] sm:$0xf] %vm6245_vm4, %v7431_v57  ;;  %v7432_v2 = vpack.c.bf16 %v5690_v62, %v5690_v62  ;;  %v5311_v4 = vadd.f32 %v9656_v3, %v8343_v59  ;;  %v8345_v5 = vadd.f32 %v8218_v0, %v7958_v61  ;;  %v4930_v6 = vpop.f32.mrb[91].mxu0 }
 0x29b   : > { %6333 = vst.msk [vmem:[%s9475_s4 + $0x15c] sm:$0xf] %vm6245_vm4, %v7434_v56  ;;  %v5309_v7 = vadd.f32 %v9656_v3, %v8344_v63  ;;  %v8346_v8 = vadd.f32 %v4930_v6, %v2410_v1 }
 0x29c   : > { %6331 = vst.msk [vmem:[%s9475_s4 + $0x154] sm:$0xf] %vm6245_vm4, %v7432_v2  ;;  %vm5439_vm0 = vcmp.ge.f32.partialorder %v5311_v4, 0.0  ;;  %v5567_v9 = vmul.f32 0.2, %v5311_v4  ;;  %v5312_v10 = vadd.f32 %v9656_v3, %v8345_v5 }
 0x29d   : > { %vm5437_vm2 = vcmp.ge.f32.partialorder %v5309_v7, 0.0  ;;  %v5565_v11 = vmul.f32 0.2, %v5309_v7  ;;  %v5310_v12 = vadd.f32 %v9656_v3, %v8346_v8 }
 0x29e   : > { %v5695_v13 = vsel %vm5439_vm0, %v5311_v4, %v5567_v9  ;;  %vm5440_vm3 = vcmp.ge.f32.partialorder %v5312_v10, 0.0  ;;  %v5568_v14 = vmul.f32 0.2, %v5312_v10  ;;  %v7961_v15 = vpop.f32.mrb[92].mxu1 }
 0x29f   : > { %v7437_v16 = vpack.c.bf16 %v5695_v13, %v5695_v13  ;;  %v5693_v17 = vsel %vm5437_vm2, %v5309_v7, %v5565_v11  ;;  %vm5438_vm5 = vcmp.ge.f32.partialorder %v5310_v12, 0.0  ;;  %v5566_v18 = vmul.f32 0.2, %v5310_v12  ;;  %v8221_v19 = vpop.f32.mrb[92].mxu0  ;;  %v2423_v20 = vpop.f32.mrb[93].mxu1 }
 0x2a0   : > { %v7435_v21 = vpack.c.bf16 %v5693_v17, %v5693_v17  ;;  %v5696_v22 = vsel %vm5440_vm3, %v5312_v10, %v5568_v14  ;;  %v8347_v23 = vadd.f32 %v8221_v19, %v7961_v15  ;;  %v4943_v24 = vpop.f32.mrb[93].mxu0  ;;  %v7962_v25 = vpop.f32.mrb[94].mxu1 }
 0x2a1   : > { %6336 = vst.msk [vmem:[%s9475_s4 + $0x168] sm:$0xf] %vm6245_vm4, %v7437_v16  ;;  %v7438_v26 = vpack.c.bf16 %v5696_v22, %v5696_v22  ;;  %v5694_v27 = vsel %vm5438_vm5, %v5310_v12, %v5566_v18  ;;  %v8348_v28 = vadd.f32 %v4943_v24, %v2423_v20  ;;  %v8222_v29 = vpop.f32.mrb[94].mxu0  ;;  %v2426_v30 = vpop.f32.mrb[95].mxu1 }
 0x2a2   : > { %6334 = vst.msk [vmem:[%s9475_s4 + $0x160] sm:$0xf] %vm6245_vm4, %v7435_v21  ;;  %v7436_v31 = vpack.c.bf16 %v5694_v27, %v5694_v27  ;;  %v5315_v32 = vadd.f32 %v9656_v3, %v8347_v23  ;;  %v8349_v33 = vadd.f32 %v8222_v29, %v7962_v25  ;;  %v4946_v34 = vpop.f32.mrb[95].mxu0 }
 0x2a3   : > { %6337 = vst.msk [vmem:[%s9475_s4 + $0x16c] sm:$0xf] %vm6245_vm4, %v7438_v26  ;;  %v5313_v35 = vadd.f32 %v9656_v3, %v8348_v28  ;;  %v8350_v36 = vadd.f32 %v4946_v34, %v2426_v30 }
 0x2a4   : > { %6335 = vst.msk [vmem:[%s9475_s4 + $0x164] sm:$0xf] %vm6245_vm4, %v7436_v31  ;;  %vm5443_vm6 = vcmp.ge.f32.partialorder %v5315_v32, 0.0  ;;  %v5571_v37 = vmul.f32 0.2, %v5315_v32  ;;  %v5316_v38 = vadd.f32 %v9656_v3, %v8349_v33 }
 0x2a5   : > { %vm5441_vm7 = vcmp.ge.f32.partialorder %v5313_v35, 0.0  ;;  %v5569_v39 = vmul.f32 0.2, %v5313_v35  ;;  %v5314_v40 = vadd.f32 %v9656_v3, %v8350_v36 }
 0x2a6   : > { %v5699_v41 = vsel %vm5443_vm6, %v5315_v32, %v5571_v37  ;;  %vm5444_vm8 = vcmp.ge.f32.partialorder %v5316_v38, 0.0  ;;  %v5572_v42 = vmul.f32 0.2, %v5316_v38  ;;  %v7965_v43 = vpop.f32.mrb[96].mxu1 }
 0x2a7   : > { %v7441_v44 = vpack.c.bf16 %v5699_v41, %v5699_v41  ;;  %v5697_v45 = vsel %vm5441_vm7, %v5313_v35, %v5569_v39  ;;  %vm5442_vm1 = vcmp.ge.f32.partialorder %v5314_v40, 0.0  ;;  %v5570_v46 = vmul.f32 0.2, %v5314_v40  ;;  %v8225_v47 = vpop.f32.mrb[96].mxu0  ;;  %v2439_v48 = vpop.f32.mrb[97].mxu1 }
 0x2a8   : > { %v7439_v49 = vpack.c.bf16 %v5697_v45, %v5697_v45  ;;  %v5700_v50 = vsel %vm5444_vm8, %v5316_v38, %v5572_v42  ;;  %v8351_v51 = vadd.f32 %v8225_v47, %v7965_v43  ;;  %v4959_v52 = vpop.f32.mrb[97].mxu0  ;;  %v7966_v53 = vpop.f32.mrb[98].mxu1 }
 0x2a9   : > { %6340 = vst.msk [vmem:[%s9475_s4 + $0x178] sm:$0xf] %vm6245_vm4, %v7441_v44  ;;  %v7442_v54 = vpack.c.bf16 %v5700_v50, %v5700_v50  ;;  %v5698_v55 = vsel %vm5442_vm1, %v5314_v40, %v5570_v46  ;;  %v8352_v57 = vadd.f32 %v4959_v52, %v2439_v48  ;;  %v8226_v58 = vpop.f32.mrb[98].mxu0  ;;  %v2442_v59 = vpop.f32.mrb[99].mxu1 }
 0x2aa   : > { %6338 = vst.msk [vmem:[%s9475_s4 + $0x170] sm:$0xf] %vm6245_vm4, %v7439_v49  ;;  %v7440_v60 = vpack.c.bf16 %v5698_v55, %v5698_v55  ;;  %v5319_v61 = vadd.f32 %v9656_v3, %v8351_v51  ;;  %v8353_v56 = vadd.f32 %v8226_v58, %v7966_v53  ;;  %v4962_v62 = vpop.f32.mrb[99].mxu0 }
 0x2ab   : > { %6341 = vst.msk [vmem:[%s9475_s4 + $0x17c] sm:$0xf] %vm6245_vm4, %v7442_v54  ;;  %v5317_v63 = vadd.f32 %v9656_v3, %v8352_v57  ;;  %v8354_v0 = vadd.f32 %v4962_v62, %v2442_v59 }
 0x2ac   : > { %6339 = vst.msk [vmem:[%s9475_s4 + $0x174] sm:$0xf] %vm6245_vm4, %v7440_v60  ;;  %vm5447_vm9 = vcmp.ge.f32.partialorder %v5319_v61, 0.0  ;;  %v5575_v1 = vmul.f32 0.2, %v5319_v61  ;;  %v5320_v2 = vadd.f32 %v9656_v3, %v8353_v56 }
 0x2ad   : > { %vm5445_vm10 = vcmp.ge.f32.partialorder %v5317_v63, 0.0  ;;  %v5573_v4 = vmul.f32 0.2, %v5317_v63  ;;  %v5318_v5 = vadd.f32 %v9656_v3, %v8354_v0 }
 0x2ae   : > { %v5703_v6 = vsel %vm5447_vm9, %v5319_v61, %v5575_v1  ;;  %vm5448_vm11 = vcmp.ge.f32.partialorder %v5320_v2, 0.0  ;;  %v5576_v7 = vmul.f32 0.2, %v5320_v2  ;;  %v7969_v8 = vpop.f32.mrb[100].mxu1 }
 0x2af   : > { %v7445_v9 = vpack.c.bf16 %v5703_v6, %v5703_v6  ;;  %v5701_v10 = vsel %vm5445_vm10, %v5317_v63, %v5573_v4  ;;  %vm5446_vm12 = vcmp.ge.f32.partialorder %v5318_v5, 0.0  ;;  %v5574_v11 = vmul.f32 0.2, %v5318_v5  ;;  %v8229_v12 = vpop.f32.mrb[100].mxu0  ;;  %v2455_v13 = vpop.f32.mrb[101].mxu1 }
 0x2b0   : > { %v7443_v14 = vpack.c.bf16 %v5701_v10, %v5701_v10  ;;  %v5704_v15 = vsel %vm5448_vm11, %v5320_v2, %v5576_v7  ;;  %v8355_v16 = vadd.f32 %v8229_v12, %v7969_v8  ;;  %v4975_v17 = vpop.f32.mrb[101].mxu0  ;;  %v7970_v18 = vpop.f32.mrb[102].mxu1 }
 0x2b1   : > { %6344 = vst.msk [vmem:[%s9475_s4 + $0x188] sm:$0xf] %vm6245_vm4, %v7445_v9  ;;  %v7446_v19 = vpack.c.bf16 %v5704_v15, %v5704_v15  ;;  %v5702_v20 = vsel %vm5446_vm12, %v5318_v5, %v5574_v11  ;;  %v8356_v21 = vadd.f32 %v4975_v17, %v2455_v13  ;;  %v8230_v22 = vpop.f32.mrb[102].mxu0  ;;  %v2458_v23 = vpop.f32.mrb[103].mxu1 }
 0x2b2   : > { %6342 = vst.msk [vmem:[%s9475_s4 + $0x180] sm:$0xf] %vm6245_vm4, %v7443_v14  ;;  %v7444_v24 = vpack.c.bf16 %v5702_v20, %v5702_v20  ;;  %v5323_v25 = vadd.f32 %v9656_v3, %v8355_v16  ;;  %v8357_v26 = vadd.f32 %v8230_v22, %v7970_v18  ;;  %v4978_v27 = vpop.f32.mrb[103].mxu0 }
 0x2b3   : > { %6345 = vst.msk [vmem:[%s9475_s4 + $0x18c] sm:$0xf] %vm6245_vm4, %v7446_v19  ;;  %v5321_v28 = vadd.f32 %v9656_v3, %v8356_v21  ;;  %v8358_v29 = vadd.f32 %v4978_v27, %v2458_v23 }
 0x2b4   : > { %6343 = vst.msk [vmem:[%s9475_s4 + $0x184] sm:$0xf] %vm6245_vm4, %v7444_v24  ;;  %vm5451_vm13 = vcmp.ge.f32.partialorder %v5323_v25, 0.0  ;;  %v5579_v30 = vmul.f32 0.2, %v5323_v25  ;;  %v5324_v31 = vadd.f32 %v9656_v3, %v8357_v26 }
 0x2b5   : > { %vm5449_vm14 = vcmp.ge.f32.partialorder %v5321_v28, 0.0  ;;  %v5577_v32 = vmul.f32 0.2, %v5321_v28  ;;  %v5322_v33 = vadd.f32 %v9656_v3, %v8358_v29  ;;  %v9835_v24 = vld [vmem:[%s9900_s2] ss:$0 sm:$0xff] }
 0x2b6   : > { %v5707_v34 = vsel %vm5451_vm13, %v5323_v25, %v5579_v30  ;;  %vm5452_vm15 = vcmp.ge.f32.partialorder %v5324_v31, 0.0  ;;  %v5580_v35 = vmul.f32 0.2, %v5324_v31  ;;  %v7973_v36 = vpop.f32.mrb[104].mxu1 }
 0x2b7   : > { %v7449_v37 = vpack.c.bf16 %v5707_v34, %v5707_v34  ;;  %v5705_v38 = vsel %vm5449_vm14, %v5321_v28, %v5577_v32  ;;  %vm5450_vm0 = vcmp.ge.f32.partialorder %v5322_v33, 0.0  ;;  %v5578_v39 = vmul.f32 0.2, %v5322_v33  ;;  %v8233_v40 = vpop.f32.mrb[104].mxu0  ;;  %v2471_v41 = vpop.f32.mrb[105].mxu1 }
 0x2b8   : > { %v7447_v42 = vpack.c.bf16 %v5705_v38, %v5705_v38  ;;  %v5708_v43 = vsel %vm5452_vm15, %v5324_v31, %v5580_v35  ;;  %v8359_v44 = vadd.f32 %v8233_v40, %v7973_v36  ;;  %v4991_v45 = vpop.f32.mrb[105].mxu0  ;;  %v7974_v46 = vpop.f32.mrb[106].mxu1 }
 0x2b9   : > { %6348 = vst.msk [vmem:[%s9475_s4 + $0x198] sm:$0xf] %vm6245_vm4, %v7449_v37  ;;  %v7450_v47 = vpack.c.bf16 %v5708_v43, %v5708_v43  ;;  %v5706_v48 = vsel %vm5450_vm0, %v5322_v33, %v5578_v39  ;;  %v8360_v49 = vadd.f32 %v4991_v45, %v2471_v41  ;;  %v8234_v50 = vpop.f32.mrb[106].mxu0  ;;  %v2474_v51 = vpop.f32.mrb[107].mxu1 }
 0x2ba   : > { %6346 = vst.msk [vmem:[%s9475_s4 + $0x190] sm:$0xf] %vm6245_vm4, %v7447_v42  ;;  %v7448_v52 = vpack.c.bf16 %v5706_v48, %v5706_v48  ;;  %v5327_v53 = vadd.f32 %v9656_v3, %v8359_v44  ;;  %v8361_v54 = vadd.f32 %v8234_v50, %v7974_v46  ;;  %v4994_v55 = vpop.f32.mrb[107].mxu0 }
 0x2bb   : > { %6349 = vst.msk [vmem:[%s9475_s4 + $0x19c] sm:$0xf] %vm6245_vm4, %v7450_v47  ;;  %v5325_v57 = vadd.f32 %v9656_v3, %v8360_v49  ;;  %v8362_v58 = vadd.f32 %v4994_v55, %v2474_v51 }
 0x2bc   : > { %6347 = vst.msk [vmem:[%s9475_s4 + $0x194] sm:$0xf] %vm6245_vm4, %v7448_v52  ;;  %vm5455_vm2 = vcmp.ge.f32.partialorder %v5327_v53, 0.0  ;;  %v5583_v59 = vmul.f32 0.2, %v5327_v53  ;;  %v5328_v60 = vadd.f32 %v9656_v3, %v8361_v54 }
 0x2bd   : > { %vm5453_vm3 = vcmp.ge.f32.partialorder %v5325_v57, 0.0  ;;  %v5581_v61 = vmul.f32 0.2, %v5325_v57  ;;  %v5326_v56 = vadd.f32 %v9656_v3, %v8362_v58 }
 0x2be   : > { %v5711_v62 = vsel %vm5455_vm2, %v5327_v53, %v5583_v59  ;;  %vm5456_vm5 = vcmp.ge.f32.partialorder %v5328_v60, 0.0  ;;  %v5584_v63 = vmul.f32 0.2, %v5328_v60  ;;  %v7977_v0 = vpop.f32.mrb[108].mxu1 }
 0x2bf   : > { %v7453_v1 = vpack.c.bf16 %v5711_v62, %v5711_v62  ;;  %v5709_v2 = vsel %vm5453_vm3, %v5325_v57, %v5581_v61  ;;  %vm5454_vm6 = vcmp.ge.f32.partialorder %v5326_v56, 0.0  ;;  %v5582_v4 = vmul.f32 0.2, %v5326_v56  ;;  %v8237_v5 = vpop.f32.mrb[108].mxu0  ;;  %v2487_v6 = vpop.f32.mrb[109].mxu1 }
 0x2c0   : > { %v7451_v7 = vpack.c.bf16 %v5709_v2, %v5709_v2  ;;  %v5712_v8 = vsel %vm5456_vm5, %v5328_v60, %v5584_v63  ;;  %v8363_v9 = vadd.f32 %v8237_v5, %v7977_v0  ;;  %v5007_v10 = vpop.f32.mrb[109].mxu0  ;;  %v7978_v11 = vpop.f32.mrb[110].mxu1 }
 0x2c1   : > { %6352 = vst.msk [vmem:[%s9475_s4 + $0x1a8] sm:$0xf] %vm6245_vm4, %v7453_v1  ;;  %v7454_v12 = vpack.c.bf16 %v5712_v8, %v5712_v8  ;;  %v5710_v13 = vsel %vm5454_vm6, %v5326_v56, %v5582_v4  ;;  %v8364_v14 = vadd.f32 %v5007_v10, %v2487_v6  ;;  %v8238_v15 = vpop.f32.mrb[110].mxu0  ;;  %v2490_v16 = vpop.f32.mrb[111].mxu1 }
 0x2c2   : > { %6350 = vst.msk [vmem:[%s9475_s4 + $0x1a0] sm:$0xf] %vm6245_vm4, %v7451_v7  ;;  %v7452_v17 = vpack.c.bf16 %v5710_v13, %v5710_v13  ;;  %v5331_v18 = vadd.f32 %v9656_v3, %v8363_v9  ;;  %v8365_v19 = vadd.f32 %v8238_v15, %v7978_v11  ;;  %v5010_v20 = vpop.f32.mrb[111].mxu0 }
 0x2c3   : > { %6353 = vst.msk [vmem:[%s9475_s4 + $0x1ac] sm:$0xf] %vm6245_vm4, %v7454_v12  ;;  %v5329_v21 = vadd.f32 %v9656_v3, %v8364_v14  ;;  %v8366_v22 = vadd.f32 %v5010_v20, %v2490_v16 }
 0x2c4   : > { %6351 = vst.msk [vmem:[%s9475_s4 + $0x1a4] sm:$0xf] %vm6245_vm4, %v7452_v17  ;;  %vm5459_vm7 = vcmp.ge.f32.partialorder %v5331_v18, 0.0  ;;  %v5587_v23 = vmul.f32 0.2, %v5331_v18  ;;  %v5332_v25 = vadd.f32 %v9835_v24, %v8365_v19 }
 0x2c5   : > { %vm5457_vm8 = vcmp.ge.f32.partialorder %v5329_v21, 0.0  ;;  %v5585_v26 = vmul.f32 0.2, %v5329_v21  ;;  %v5330_v27 = vadd.f32 %v9835_v24, %v8366_v22 }
 0x2c6   : > { %v5715_v28 = vsel %vm5459_vm7, %v5331_v18, %v5587_v23  ;;  %vm5460_vm1 = vcmp.ge.f32.partialorder %v5332_v25, 0.0  ;;  %v5588_v3 = vmul.f32 0.2, %v5332_v25  ;;  %v7981_v29 = vpop.f32.mrb[112].mxu1 }
 0x2c7   : > { %v7457_v30 = vpack.c.bf16 %v5715_v28, %v5715_v28  ;;  %v5713_v31 = vsel %vm5457_vm8, %v5329_v21, %v5585_v26  ;;  %vm5458_vm9 = vcmp.ge.f32.partialorder %v5330_v27, 0.0  ;;  %v5586_v32 = vmul.f32 0.2, %v5330_v27  ;;  %v8241_v33 = vpop.f32.mrb[112].mxu0  ;;  %v2503_v34 = vpop.f32.mrb[113].mxu1 }
 0x2c8   : > { %v7455_v35 = vpack.c.bf16 %v5713_v31, %v5713_v31  ;;  %v5716_v36 = vsel %vm5460_vm1, %v5332_v25, %v5588_v3  ;;  %v8367_v37 = vadd.f32 %v8241_v33, %v7981_v29  ;;  %v5023_v38 = vpop.f32.mrb[113].mxu0  ;;  %v7982_v39 = vpop.f32.mrb[114].mxu1 }
 0x2c9   : > { %6356 = vst.msk [vmem:[%s9475_s4 + $0x1b8] sm:$0xf] %vm6245_vm4, %v7457_v30  ;;  %v7458_v40 = vpack.c.bf16 %v5716_v36, %v5716_v36  ;;  %v5714_v41 = vsel %vm5458_vm9, %v5330_v27, %v5586_v32  ;;  %v8368_v42 = vadd.f32 %v5023_v38, %v2503_v34  ;;  %v8242_v43 = vpop.f32.mrb[114].mxu0  ;;  %v2506_v44 = vpop.f32.mrb[115].mxu1 }
 0x2ca   : > { %6354 = vst.msk [vmem:[%s9475_s4 + $0x1b0] sm:$0xf] %vm6245_vm4, %v7455_v35  ;;  %v7456_v45 = vpack.c.bf16 %v5714_v41, %v5714_v41  ;;  %v5335_v46 = vadd.f32 %v9835_v24, %v8367_v37  ;;  %v8369_v47 = vadd.f32 %v8242_v43, %v7982_v39  ;;  %v5026_v48 = vpop.f32.mrb[115].mxu0 }
 0x2cb   : > { %6357 = vst.msk [vmem:[%s9475_s4 + $0x1bc] sm:$0xf] %vm6245_vm4, %v7458_v40  ;;  %v5333_v49 = vadd.f32 %v9835_v24, %v8368_v42  ;;  %v8370_v50 = vadd.f32 %v5026_v48, %v2506_v44 }
 0x2cc   : > { %6355 = vst.msk [vmem:[%s9475_s4 + $0x1b4] sm:$0xf] %vm6245_vm4, %v7456_v45  ;;  %vm5463_vm10 = vcmp.ge.f32.partialorder %v5335_v46, 0.0  ;;  %v5591_v51 = vmul.f32 0.2, %v5335_v46  ;;  %v5336_v52 = vadd.f32 %v9835_v24, %v8369_v47 }
 0x2cd   : > { %vm5461_vm11 = vcmp.ge.f32.partialorder %v5333_v49, 0.0  ;;  %v5589_v53 = vmul.f32 0.2, %v5333_v49  ;;  %v5334_v54 = vadd.f32 %v9835_v24, %v8370_v50 }
 0x2ce   : > { %v5719_v55 = vsel %vm5463_vm10, %v5335_v46, %v5591_v51  ;;  %vm5464_vm12 = vcmp.ge.f32.partialorder %v5336_v52, 0.0  ;;  %v5592_v57 = vmul.f32 0.2, %v5336_v52  ;;  %v7985_v58 = vpop.f32.mrb[116].mxu1 }
 0x2cf   : > { %v7461_v59 = vpack.c.bf16 %v5719_v55, %v5719_v55  ;;  %v5717_v60 = vsel %vm5461_vm11, %v5333_v49, %v5589_v53  ;;  %vm5462_vm13 = vcmp.ge.f32.partialorder %v5334_v54, 0.0  ;;  %v5590_v61 = vmul.f32 0.2, %v5334_v54  ;;  %v8245_v56 = vpop.f32.mrb[116].mxu0  ;;  %v2519_v62 = vpop.f32.mrb[117].mxu1 }
 0x2d0   : > { %v7459_v63 = vpack.c.bf16 %v5717_v60, %v5717_v60  ;;  %v5720_v0 = vsel %vm5464_vm12, %v5336_v52, %v5592_v57  ;;  %v8371_v1 = vadd.f32 %v8245_v56, %v7985_v58  ;;  %v5039_v2 = vpop.f32.mrb[117].mxu0  ;;  %v7986_v4 = vpop.f32.mrb[118].mxu1 }
 0x2d1   : > { %6360 = vst.msk [vmem:[%s9475_s4 + $0x1c8] sm:$0xf] %vm6245_vm4, %v7461_v59  ;;  %v7462_v5 = vpack.c.bf16 %v5720_v0, %v5720_v0  ;;  %v5718_v6 = vsel %vm5462_vm13, %v5334_v54, %v5590_v61  ;;  %v8372_v7 = vadd.f32 %v5039_v2, %v2519_v62  ;;  %v8246_v8 = vpop.f32.mrb[118].mxu0  ;;  %v2522_v9 = vpop.f32.mrb[119].mxu1 }
 0x2d2   : > { %6358 = vst.msk [vmem:[%s9475_s4 + $0x1c0] sm:$0xf] %vm6245_vm4, %v7459_v63  ;;  %v7460_v10 = vpack.c.bf16 %v5718_v6, %v5718_v6  ;;  %v5339_v11 = vadd.f32 %v9835_v24, %v8371_v1  ;;  %v8373_v12 = vadd.f32 %v8246_v8, %v7986_v4  ;;  %v5042_v13 = vpop.f32.mrb[119].mxu0 }
 0x2d3   : > { %6361 = vst.msk [vmem:[%s9475_s4 + $0x1cc] sm:$0xf] %vm6245_vm4, %v7462_v5  ;;  %v5337_v14 = vadd.f32 %v9835_v24, %v8372_v7  ;;  %v8374_v15 = vadd.f32 %v5042_v13, %v2522_v9 }
 0x2d4   : > { %6359 = vst.msk [vmem:[%s9475_s4 + $0x1c4] sm:$0xf] %vm6245_vm4, %v7460_v10  ;;  %vm5467_vm14 = vcmp.ge.f32.partialorder %v5339_v11, 0.0  ;;  %v5595_v16 = vmul.f32 0.2, %v5339_v11  ;;  %v5340_v17 = vadd.f32 %v9835_v24, %v8373_v12 }
 0x2d5   : > { %vm5465_vm15 = vcmp.ge.f32.partialorder %v5337_v14, 0.0  ;;  %v5593_v18 = vmul.f32 0.2, %v5337_v14  ;;  %v5338_v19 = vadd.f32 %v9835_v24, %v8374_v15 }
 0x2d6   : > { %v5723_v20 = vsel %vm5467_vm14, %v5339_v11, %v5595_v16  ;;  %vm5468_vm0 = vcmp.ge.f32.partialorder %v5340_v17, 0.0  ;;  %v5596_v21 = vmul.f32 0.2, %v5340_v17  ;;  %v7989_v22 = vpop.f32.mrb[120].mxu1 }
 0x2d7   : > { %v7465_v23 = vpack.c.bf16 %v5723_v20, %v5723_v20  ;;  %v5721_v25 = vsel %vm5465_vm15, %v5337_v14, %v5593_v18  ;;  %vm5466_vm2 = vcmp.ge.f32.partialorder %v5338_v19, 0.0  ;;  %v5594_v26 = vmul.f32 0.2, %v5338_v19  ;;  %v8249_v27 = vpop.f32.mrb[120].mxu0  ;;  %v2535_v28 = vpop.f32.mrb[121].mxu1 }
 0x2d8   : > { %v7463_v3 = vpack.c.bf16 %v5721_v25, %v5721_v25  ;;  %v5724_v29 = vsel %vm5468_vm0, %v5340_v17, %v5596_v21  ;;  %v8375_v30 = vadd.f32 %v8249_v27, %v7989_v22  ;;  %v5055_v31 = vpop.f32.mrb[121].mxu0  ;;  %v7990_v32 = vpop.f32.mrb[122].mxu1 }
 0x2d9   : > { %6364 = vst.msk [vmem:[%s9475_s4 + $0x1d8] sm:$0xf] %vm6245_vm4, %v7465_v23  ;;  %v7466_v33 = vpack.c.bf16 %v5724_v29, %v5724_v29  ;;  %v5722_v34 = vsel %vm5466_vm2, %v5338_v19, %v5594_v26  ;;  %v8376_v35 = vadd.f32 %v5055_v31, %v2535_v28  ;;  %v8250_v36 = vpop.f32.mrb[122].mxu0  ;;  %v2538_v37 = vpop.f32.mrb[123].mxu1 }
 0x2da   : > { %6362 = vst.msk [vmem:[%s9475_s4 + $0x1d0] sm:$0xf] %vm6245_vm4, %v7463_v3  ;;  %v7464_v38 = vpack.c.bf16 %v5722_v34, %v5722_v34  ;;  %v5343_v39 = vadd.f32 %v9835_v24, %v8375_v30  ;;  %v8377_v40 = vadd.f32 %v8250_v36, %v7990_v32  ;;  %v5058_v41 = vpop.f32.mrb[123].mxu0 }
 0x2db   : > { %6365 = vst.msk [vmem:[%s9475_s4 + $0x1dc] sm:$0xf] %vm6245_vm4, %v7466_v33  ;;  %v5341_v42 = vadd.f32 %v9835_v24, %v8376_v35  ;;  %v8378_v43 = vadd.f32 %v5058_v41, %v2538_v37 }
 0x2dc   : > { %6363 = vst.msk [vmem:[%s9475_s4 + $0x1d4] sm:$0xf] %vm6245_vm4, %v7464_v38  ;;  %vm5471_vm3 = vcmp.ge.f32.partialorder %v5343_v39, 0.0  ;;  %v5599_v44 = vmul.f32 0.2, %v5343_v39  ;;  %v5344_v45 = vadd.f32 %v9835_v24, %v8377_v40 }
 0x2dd   : > { %vm5469_vm5 = vcmp.ge.f32.partialorder %v5341_v42, 0.0  ;;  %v5597_v46 = vmul.f32 0.2, %v5341_v42  ;;  %v5342_v47 = vadd.f32 %v9835_v24, %v8378_v43 }
 0x2de   : > { %v5727_v48 = vsel %vm5471_vm3, %v5343_v39, %v5599_v44  ;;  %vm5472_vm6 = vcmp.ge.f32.partialorder %v5344_v45, 0.0  ;;  %v5600_v49 = vmul.f32 0.2, %v5344_v45  ;;  %v7993_v50 = vpop.f32.mrb[124].mxu1 }
 0x2df   : > { %v7469_v51 = vpack.c.bf16 %v5727_v48, %v5727_v48  ;;  %v5725_v52 = vsel %vm5469_vm5, %v5341_v42, %v5597_v46  ;;  %vm5470_vm7 = vcmp.ge.f32.partialorder %v5342_v47, 0.0  ;;  %v5598_v53 = vmul.f32 0.2, %v5342_v47  ;;  %v8253_v54 = vpop.f32.mrb[124].mxu0  ;;  %v2551_v55 = vpop.f32.mrb[125].mxu1 }
 0x2e0   : > { %v7467_v57 = vpack.c.bf16 %v5725_v52, %v5725_v52  ;;  %v5728_v58 = vsel %vm5472_vm6, %v5344_v45, %v5600_v49  ;;  %v8379_v59 = vadd.f32 %v8253_v54, %v7993_v50  ;;  %v5071_v60 = vpop.f32.mrb[125].mxu0  ;;  %v7994_v61 = vpop.f32.mrb[126].mxu1 }
 0x2e1   : > { %6368 = vst.msk [vmem:[%s9475_s4 + $0x1e8] sm:$0xf] %vm6245_vm4, %v7469_v51  ;;  %v7470_v56 = vpack.c.bf16 %v5728_v58, %v5728_v58  ;;  %v5726_v62 = vsel %vm5470_vm7, %v5342_v47, %v5598_v53  ;;  %v8380_v63 = vadd.f32 %v5071_v60, %v2551_v55  ;;  %v8254_v0 = vpop.f32.mrb[126].mxu0  ;;  %v2554_v1 = vpop.f32.mrb[127].mxu1 }
 0x2e2   : > { %6366 = vst.msk [vmem:[%s9475_s4 + $0x1e0] sm:$0xf] %vm6245_vm4, %v7467_v57  ;;  %v7468_v2 = vpack.c.bf16 %v5726_v62, %v5726_v62  ;;  %v5347_v4 = vadd.f32 %v9835_v24, %v8379_v59  ;;  %v8381_v5 = vadd.f32 %v8254_v0, %v7994_v61  ;;  %v5074_v6 = vpop.f32.mrb[127].mxu0 }
 0x2e3   : > { %6369 = vst.msk [vmem:[%s9475_s4 + $0x1ec] sm:$0xf] %vm6245_vm4, %v7470_v56  ;;  %v5345_v7 = vadd.f32 %v9835_v24, %v8380_v63  ;;  %v8382_v8 = vadd.f32 %v5074_v6, %v2554_v1 }
 0x2e4   : > { %6367 = vst.msk [vmem:[%s9475_s4 + $0x1e4] sm:$0xf] %vm6245_vm4, %v7468_v2  ;;  %vm5475_vm8 = vcmp.ge.f32.partialorder %v5347_v4, 0.0  ;;  %v5603_v9 = vmul.f32 0.2, %v5347_v4  ;;  %v5348_v10 = vadd.f32 %v9835_v24, %v8381_v5 }
 0x2e5   : > { %vm5473_vm1 = vcmp.ge.f32.partialorder %v5345_v7, 0.0  ;;  %v5601_v11 = vmul.f32 0.2, %v5345_v7  ;;  %v5346_v12 = vadd.f32 %v9835_v24, %v8382_v8 }
 0x2e6   : > { %v5731_v13 = vsel %vm5475_vm8, %v5347_v4, %v5603_v9  ;;  %vm5476_vm9 = vcmp.ge.f32.partialorder %v5348_v10, 0.0  ;;  %v5604_v14 = vmul.f32 0.2, %v5348_v10 }
 0x2e7   : > { %v7473_v15 = vpack.c.bf16 %v5731_v13, %v5731_v13  ;;  %v5729_v16 = vsel %vm5473_vm1, %v5345_v7, %v5601_v11  ;;  %vm5474_vm10 = vcmp.ge.f32.partialorder %v5346_v12, 0.0  ;;  %v5602_v17 = vmul.f32 0.2, %v5346_v12 }
 0x2e8   : > { %v7471_v18 = vpack.c.bf16 %v5729_v16, %v5729_v16  ;;  %v5732_v19 = vsel %vm5476_vm9, %v5348_v10, %v5604_v14 }
 0x2e9   : > { %6372 = vst.msk [vmem:[%s9475_s4 + $0x1f8] sm:$0xf] %vm6245_vm4, %v7473_v15  ;;  %v7474_v20 = vpack.c.bf16 %v5732_v19, %v5732_v19  ;;  %v5730_v21 = vsel %vm5474_vm10, %v5346_v12, %v5602_v17 }
 0x2ea   : > { %6370 = vst.msk [vmem:[%s9475_s4 + $0x1f0] sm:$0xf] %vm6245_vm4, %v7471_v18  ;;  %v7472_v22 = vpack.c.bf16 %v5730_v21, %v5730_v21 }
 0x2eb   : > { %6373 = vst.msk [vmem:[%s9475_s4 + $0x1fc] sm:$0xf] %vm6245_vm4, %v7474_v20 }
 0x2ec   : > { %6371 = vst.msk [vmem:[%s9475_s4 + $0x1f4] sm:$0xf] %vm6245_vm4, %v7472_v22 }
 0x2ed PF: > { %s13_s12 = sadd.s32 1, %s8920_s12  }
 0x2ee   : > { %p10_p4 = scmp.ge.s32.totalorder %s13_s12, 4  }
 0x2f0   :  { %12 = sbr.rel (!%p10_p4) target bundleno = 1 (0x1), region = 66 }

// kernel: discriminator_forward.5
= control target key start
LH: loop header
LB: loop body
LE: loop exit
PB: predicated region body
PF: predicated region fallthrough
CT: control target
= control target key end

     0   :  { %s4070_s18 = smov 0   ;;  %s5476_s0 = inlined_call_operand.vmem [shape: bf16[2,2,272,256], index: 0, kind: input, shape index: {}]   ;;  %s5477_s1 = inlined_call_operand.vmem [shape: bf16[4,256,128], index: 1, kind: input, shape index: {}]   ;;  %s5478_s2 = inlined_call_operand.vmem [shape: f32[1,128], index: 2, kind: input, shape index: {}]   ;;  %s5479_s3 = inlined_call_operand.vmem [shape: f32[1,256,128], index: 3, kind: input, shape index: {}]   ;;  %s5480_s4 = inlined_call_operand.vmem [shape: f32[1,256,128], index: 4, kind: input, shape index: {}]   ;;  %s5481_s5 = inlined_call_operand.vmem [shape: bf16[2,256,128], index: 5, kind: output, shape index: {}]  }
   0x1 LB: > { %s2880_s19 = sadd.s32 4294967295, %s4038_s18   ;;  %p2884_p0 = scmp.ge.s32.totalorder %s4038_s18, 1  ;;  %s4038_s18 = sphi %s4070_s18, %s15_s18  }
   0x2   : > { %p187_p1 = scmp.lt.s32.totalorder %s4038_s18, 3 }
   0x4   : > { %p188_p2 = pnand %p2884_p0, %p187_p1 }
   0x6   : > { %191 = sbr.rel (%p188_p2) target bundleno = 804 (0x324), region = 40 }
   0xd   : > { %v3864_v0 = vld [vmem:[%s5477_s1 + $0xc0] sm:$0xff]   ;;  %v3868_v4 = vld [vmem:[%s5477_s1 + $0xc8] sm:$0xff]   ;;  %v3872_v8 = vld [vmem:[%s5477_s1 + $0xd0] sm:$0xff]   ;;  %p215_p3 = scmp.lt.s32.totalorder %s2880_s19, 1 }
   0xe   : > { %v3865_v1 = vld [vmem:[%s5477_s1 + $0x40] sm:$0xff]   ;;  %3403 = vmatprep.subr.bf16.mxu0 %v3864_v0  ;;  %v3869_v5 = vld [vmem:[%s5477_s1 + $0x48] sm:$0xff]   ;;  %v3873_v9 = vld [vmem:[%s5477_s1 + $0x50] sm:$0xff]  }
   0xf   : > { %v3866_v2 = vld [vmem:[%s5477_s1 + $0x80] sm:$0xff]   ;;  %3515 = vmatprep.subr.bf16.mxu1 %v3865_v1  ;;  %v3870_v6 = vld [vmem:[%s5477_s1 + $0x88] sm:$0xff]   ;;  %v3874_v10 = vld [vmem:[%s5477_s1 + $0x90] sm:$0xff]   ;;  %s5499_s19 = smov (!%p215_p3, %s2880_s19), 1 }
  0x10   : > { %v3867_v3 = vld [vmem:[%s5477_s1] sm:$0xff]   ;;  %3404 = vmatpush3.bf16.msra.mxu0 %v3866_v2  ;;  %v3871_v7 = vld [vmem:[%s5477_s1 + $0x8] sm:$0xff]   ;;  %v3875_v11 = vld [vmem:[%s5477_s1 + $0x10] sm:$0xff]   ;;  %s3851_s26 = smul.u32 544, %s5499_s19  ;;  %s3275_s8 = sshll.u32 %s5499_s19, 7 }
  0x11   : > { %3516 = vmatpush3.bf16.msra.mxu1 %v3867_v3  ;;  %3405 = vmatprep.subr.bf16.mxu0 %v3868_v4  ;;  %v3876_v12 = vld [vmem:[%s5477_s1 + $0xd8] sm:$0xff]   ;;  %v3880_v16 = vld [vmem:[%s5477_s1 + $0xe0] sm:$0xff]   ;;  %v3884_v20 = vld [vmem:[%s5477_s1 + $0xe8] sm:$0xff]   ;;  %s5435_s10 = scalar_lea.vmem %s5481_s5, %s3275_s8 }
  0x12   : > { %3517 = vmatprep.subr.bf16.mxu1 %v3869_v5  ;;  %v3877_v13 = vld [vmem:[%s5477_s1 + $0x58] sm:$0xff]   ;;  %v3881_v17 = vld [vmem:[%s5477_s1 + $0x60] sm:$0xff]   ;;  %v3885_v21 = vld [vmem:[%s5477_s1 + $0x68] sm:$0xff]   ;;  %s4178_s12 = scalar_lea.vmem %s5476_s0, %s3851_s26 }
  0x13   : > { %v3878_v14 = vld [vmem:[%s5477_s1 + $0x98] sm:$0xff]   ;;  %v3882_v18 = vld [vmem:[%s5477_s1 + $0xa0] sm:$0xff]   ;;  %v3886_v22 = vld [vmem:[%s5477_s1 + $0xa8] sm:$0xff]  }
  0x14   : > { %3406 = vmatpush3.bf16.msra.mxu0 %v3870_v6  ;;  %v3879_v15 = vld [vmem:[%s5477_s1 + $0x18] sm:$0xff]   ;;  %v3883_v19 = vld [vmem:[%s5477_s1 + $0x20] sm:$0xff]   ;;  %v3887_v23 = vld [vmem:[%s5477_s1 + $0x28] sm:$0xff]  }
  0x15   : > { %3518 = vmatpush3.bf16.msra.mxu1 %v3871_v7  ;;  %3407 = vmatprep.subr.bf16.mxu0 %v3872_v8  ;;  %v3888_v24 = vld [vmem:[%s5477_s1 + $0xf0] sm:$0xff]   ;;  %v3892_v28 = vld [vmem:[%s5477_s1 + $0xf8] sm:$0xff]   ;;  %v3899_v34 = vld [vmem:[%s4178_s12] ss:$8 sps:$4 sm:$0xff]  }
  0x16   : > { %3519 = vmatprep.subr.bf16.mxu1 %v3873_v9  ;;  %v3889_v25 = vld [vmem:[%s5477_s1 + $0x70] sm:$0xff]   ;;  %v3893_v29 = vld [vmem:[%s5477_s1 + $0x78] sm:$0xff]   ;;  %v3901_v35 = vld [vmem:[%s4178_s12 + $0x4] ss:$8 sps:$4 sm:$0xff]  }
  0x17   : > { %v3890_v26 = vld [vmem:[%s5477_s1 + $0xb0] sm:$0xff]   ;;  %v3894_v30 = vld [vmem:[%s5477_s1 + $0xb8] sm:$0xff]   ;;  %v3902_v36 = vld [vmem:[%s5477_s1 + $0x140] sm:$0xff]   ;;  %1061 = vmatprep.mubr.bf16.mxu1 %v3901_v35 }
  0x18   : > { %3408 = vmatpush3.bf16.msra.mxu0 %v3874_v10  ;;  %v3891_v27 = vld [vmem:[%s5477_s1 + $0x30] sm:$0xff]   ;;  %v3895_v31 = vld [vmem:[%s5477_s1 + $0x38] sm:$0xff]   ;;  %v3903_v37 = vld [vmem:[%s5477_s1 + $0x100] sm:$0xff]  }
  0x19   : > { %3520 = vmatpush3.bf16.msra.mxu1 %v3875_v11  ;;  %3409 = vmatprep.subr.bf16.mxu0 %v3876_v12  ;;  %v3896_v32 = vld [vmem:[%s4178_s12 + $0x110] ss:$8 sps:$4 sm:$0xff]   ;;  %v3898_v33 = vld [vmem:[%s4178_s12 + $0x114] ss:$8 sps:$4 sm:$0xff]   ;;  %v3904_v38 = vld [vmem:[%s5477_s1 + $0x1c0] sm:$0xff]  }
  0x1a   : > { %3521 = vmatprep.subr.bf16.mxu1 %v3877_v13  ;;  %644 = vmatprep.mubr.bf16.mxu0 %v3898_v33  ;;  %v3905_v39 = vld [vmem:[%s5477_s1 + $0x180] sm:$0xff]   ;;  %v4206_v41 = vld [vmem:[%s4178_s12 + $0x14] ss:$8 sps:$4 sm:$0xff]   ;;  %v4213_v43 = vld [vmem:[%s4178_s12 + $0x10] ss:$8 sps:$4 sm:$0xff]  }
  0x1b   : > { %v4203_v40 = vld [vmem:[%s4178_s12 + $0x124] ss:$8 sps:$4 sm:$0xff]   ;;  %v4209_v42 = vld [vmem:[%s4178_s12 + $0x120] ss:$8 sps:$4 sm:$0xff]   ;;  %v4217_v44 = vld [vmem:[%s4178_s12 + $0x134] ss:$8 sps:$4 sm:$0xff]  }
  0x1c   : > { %3410 = vmatpush3.bf16.msra.mxu0 %v3878_v14  ;;  %v4220_v45 = vld [vmem:[%s4178_s12 + $0x24] ss:$8 sps:$4 sm:$0xff]   ;;  %v4233_v48 = vld [vmem:[%s4178_s12 + $0x130] ss:$8 sps:$4 sm:$0xff]   ;;  %v4242_v51 = vld [vmem:[%s4178_s12 + $0x20] ss:$8 sps:$4 sm:$0xff]  }
  0x1d   : > { %3522 = vmatpush3.bf16.msra.mxu1 %v3879_v15  ;;  %3411 = vmatprep.subr.bf16.mxu0 %v3880_v16  ;;  %v3918_v46 = vld [vmem:[%s5477_s1 + $0x148] sm:$0xff]   ;;  %v4248_v53 = vld [vmem:[%s4178_s12 + $0x34] ss:$8 sps:$4 sm:$0xff]   ;;  %v4261_v56 = vld [vmem:[%s4178_s12 + $0x30] ss:$8 sps:$4 sm:$0xff]  }
  0x1e   : > { %3523 = vmatprep.subr.bf16.mxu1 %v3881_v17  ;;  %v3919_v47 = vld [vmem:[%s5477_s1 + $0x108] sm:$0xff]   ;;  %v3934_v55 = vld [vmem:[%s5477_s1 + $0x150] sm:$0xff]   ;;  %v3950_v1 = vld [vmem:[%s5477_s1 + $0x158] sm:$0xff]  }
  0x1f   : > { %v3920_v49 = vld [vmem:[%s5477_s1 + $0x1c8] sm:$0xff]   ;;  %v4264_v57 = vld [vmem:[%s4178_s12 + $0x154] ss:$8 sps:$4 sm:$0xff]   ;;  %v4283_v62 = vld [vmem:[%s4178_s12 + $0x150] ss:$8 sps:$4 sm:$0xff]  }
  0x20   : > { %3412 = vmatpush3.bf16.msra.mxu0 %v3882_v18  ;;  %v3921_v50 = vld [vmem:[%s5477_s1 + $0x188] sm:$0xff]   ;;  %v3935_v58 = vld [vmem:[%s5477_s1 + $0x110] sm:$0xff]   ;;  %v3951_v3 = vld [vmem:[%s5477_s1 + $0x118] sm:$0xff]  }
  0x21   : > { %3524 = vmatpush3.bf16.msra.mxu1 %v3883_v19  ;;  %3413 = vmatprep.subr.bf16.mxu0 %v3884_v20  ;;  %v4245_v52 = vld [vmem:[%s4178_s12 + $0x144] ss:$8 sps:$4 sm:$0xff]   ;;  %v4255_v54 = vld [vmem:[%s4178_s12 + $0x140] ss:$8 sps:$4 sm:$0xff]   ;;  %v3936_v59 = vld [vmem:[%s5477_s1 + $0x1d0] sm:$0xff]  }
  0x22   : > { %3525 = vmatprep.subr.bf16.mxu1 %v3885_v21  ;;  %v3937_v60 = vld [vmem:[%s5477_s1 + $0x190] sm:$0xff]   ;;  %v4276_v61 = vld [vmem:[%s4178_s12 + $0x44] ss:$8 sps:$4 sm:$0xff]   ;;  %v4286_v63 = vld [vmem:[%s4178_s12 + $0x40] ss:$8 sps:$4 sm:$0xff]  }
  0x23   : > { %v4289_v0 = vld [vmem:[%s4178_s12 + $0x164] ss:$8 sps:$4 sm:$0xff]   ;;  %v4295_v2 = vld [vmem:[%s4178_s12 + $0x54] ss:$8 sps:$4 sm:$0xff]   ;;  %v4311_v6 = vld [vmem:[%s4178_s12 + $0x160] ss:$8 sps:$4 sm:$0xff]  }
  0x24   : > { %3414 = vmatpush3.bf16.msra.mxu0 %v3886_v22  ;;  %v3952_v4 = vld [vmem:[%s5477_s1 + $0x1d8] sm:$0xff]   ;;  %v4320_v9 = vld [vmem:[%s4178_s12 + $0x64] ss:$8 sps:$4 sm:$0xff]   ;;  %v4342_v15 = vld [vmem:[%s4178_s12 + $0x60] ss:$8 sps:$4 sm:$0xff]  }
  0x25   : > { %3526 = vmatpush3.bf16.msra.mxu1 %v3887_v23  ;;  %3415 = vmatprep.subr.bf16.mxu0 %v3888_v24  ;;  %v3953_v5 = vld [vmem:[%s5477_s1 + $0x198] sm:$0xff]   ;;  %v3966_v10 = vld [vmem:[%s5477_s1 + $0x160] sm:$0xff]   ;;  %v3982_v18 = vld [vmem:[%s5477_s1 + $0x168] sm:$0xff]  }
  0x26   : > { %3527 = vmatprep.subr.bf16.mxu1 %v3889_v25  ;;  %v4314_v7 = vld [vmem:[%s4178_s12 + $0x50] ss:$8 sps:$4 sm:$0xff]   ;;  %v4317_v8 = vld [vmem:[%s4178_s12 + $0x174] ss:$8 sps:$4 sm:$0xff]   ;;  %v3967_v11 = vld [vmem:[%s5477_s1 + $0x120] sm:$0xff]  }
  0x27   : > { %v3968_v12 = vld [vmem:[%s5477_s1 + $0x1e0] sm:$0xff]   ;;  %v4339_v14 = vld [vmem:[%s4178_s12 + $0x170] ss:$8 sps:$4 sm:$0xff]   ;;  %v4348_v17 = vld [vmem:[%s4178_s12 + $0x74] ss:$8 sps:$4 sm:$0xff]  }
  0x28   : > { %3416 = vmatpush3.bf16.msra.mxu0 %v3890_v26  ;;  %v3969_v13 = vld [vmem:[%s5477_s1 + $0x1a0] sm:$0xff]   ;;  %v3983_v19 = vld [vmem:[%s5477_s1 + $0x128] sm:$0xff]   ;;  %v4370_v23 = vld [vmem:[%s4178_s12 + $0x70] ss:$8 sps:$4 sm:$0xff]  }
  0x29   : > { %3528 = vmatpush3.bf16.msra.mxu1 %v3891_v27  ;;  %3417 = vmatprep.subr.bf16.mxu0 %v3892_v28  ;;  %v4345_v16 = vld [vmem:[%s4178_s12 + $0x184] ss:$8 sps:$4 sm:$0xff]   ;;  %v4367_v22 = vld [vmem:[%s4178_s12 + $0x180] ss:$8 sps:$4 sm:$0xff]   ;;  %v4373_v24 = vld [vmem:[%s4178_s12 + $0x194] ss:$8 sps:$4 sm:$0xff]  }
  0x2a   : > { %3529 = vmatprep.subr.bf16.mxu1 %v3893_v29  ;;  %v3984_v20 = vld [vmem:[%s5477_s1 + $0x1e8] sm:$0xff]   ;;  %v3998_v26 = vld [vmem:[%s5477_s1 + $0x170] sm:$0xff]   ;;  %v4015_v35 = vld [vmem:[%s5477_s1 + $0x138] sm:$0xff]  }
  0x2b   : > { %v3985_v21 = vld [vmem:[%s5477_s1 + $0x1a8] sm:$0xff]   ;;  %v3999_v27 = vld [vmem:[%s5477_s1 + $0x130] sm:$0xff]  }
  0x2c   : > { %3418 = vmatpush3.bf16.msra.mxu0 %v3894_v30  ;;  %v4376_v25 = vld [vmem:[%s4178_s12 + $0x84] ss:$8 sps:$4 sm:$0xff]   ;;  %v4000_v28 = vld [vmem:[%s5477_s1 + $0x1f0] sm:$0xff]  }
  0x2d   : > { %3530 = vmatpush3.bf16.msra.mxu1 %v3895_v31  ;;  %3627 = vmatprep.subr.bf16.mxu0 %v3902_v36  ;;  %v4001_v29 = vld [vmem:[%s5477_s1 + $0x1b0] sm:$0xff]   ;;  %v4398_v31 = vld [vmem:[%s4178_s12 + $0x80] ss:$8 sps:$4 sm:$0xff]  }
  0x2e   : > { %3739 = vmatprep.subr.bf16.mxu1 %v3904_v38  ;;  %v4395_v30 = vld [vmem:[%s4178_s12 + $0x190] ss:$8 sps:$4 sm:$0xff]   ;;  %v4404_v33 = vld [vmem:[%s4178_s12 + $0x94] ss:$8 sps:$4 sm:$0xff]   ;;  %v4417_v36 = vld [vmem:[%s4178_s12 + $0x1a0] ss:$8 sps:$4 sm:$0xff]  }
  0x2f   : > { %645 = vmatmul.mubr.bf16.vlgmr.msra.gmra.mrb[0].mxu0 %v3896_v32  ;;  %v4401_v32 = vld [vmem:[%s4178_s12 + $0x1a4] ss:$8 sps:$4 sm:$0xff]   ;;  %v4017_v38 = vld [vmem:[%s5477_s1 + $0x1b8] sm:$0xff]  }
  0x30   : > { %1062 = vmatmul.mubr.bf16.vlgmr.msra.gmra.mrb[0].mxu1 %v3899_v34  ;;  %3628 = vmatpush3.bf16.msra.mxu0 %v3903_v37  ;;  %v4014_v34 = vld [vmem:[%s5477_s1 + $0x178] sm:$0xff]  }
  0x31   : > { %3740 = vmatpush3.bf16.msra.mxu1 %v3905_v39  ;;  %652 = vmatprep.mubr.bf16.mxu0 %v4203_v40  ;;  %v4016_v37 = vld [vmem:[%s5477_s1 + $0x1f8] sm:$0xff]  }
  0x32   : > { %1069 = vmatprep.mubr.bf16.mxu1 %v4206_v41  ;;  %3629 = vmatprep.subr.bf16.mxu0 %v3918_v46  ;;  %v4426_v39 = vld [vmem:[%s4178_s12 + $0x90] ss:$8 sps:$4 sm:$0xff]   ;;  %v4429_v46 = vld [vmem:[%s4178_s12 + $0x1b4] ss:$8 sps:$4 sm:$0xff]  }
  0x33   : > { %3741 = vmatprep.subr.bf16.mxu1 %v3920_v49  ;;  %v4439_v49 = vld [vmem:[%s4178_s12 + $0x1b0] ss:$8 sps:$4 sm:$0xff]  }
  0x34   : > { %3630 = vmatpush3.bf16.msra.mxu0 %v3919_v47  ;;  %v4432_v47 = vld [vmem:[%s4178_s12 + $0xa4] ss:$8 sps:$4 sm:$0xff]  }
  0x35   : > { %3742 = vmatpush3.bf16.msra.mxu1 %v3921_v50  ;;  %3631 = vmatprep.subr.bf16.mxu0 %v3934_v55  ;;  %v4442_v50 = vld [vmem:[%s4178_s12 + $0xa0] ss:$8 sps:$4 sm:$0xff]   ;;  %v4445_v55 = vld [vmem:[%s4178_s12 + $0x1c4] ss:$8 sps:$4 sm:$0xff]  }
  0x36   : > { %3743 = vmatprep.subr.bf16.mxu1 %v3936_v59  ;;  %v4455_v59 = vld [vmem:[%s4178_s12 + $0x1c0] ss:$8 sps:$4 sm:$0xff]  }
  0x37   : > { %653 = vmatmul.mubr.bf16.gmra.mrb[4].mxu0 %v4209_v42 }
  0x38   : > { %1070 = vmatmul.mubr.bf16.gmra.mrb[4].mxu1 %v4213_v43  ;;  %660 = vmatprep.mubr.bf16.mxu0 %v4217_v44 }
  0x39   : > { %1077 = vmatprep.mubr.bf16.mxu1 %v4220_v45  ;;  %3632 = vmatpush3.bf16.msra.mxu0 %v3935_v58  ;;  %v4448_v58 = vld [vmem:[%s4178_s12 + $0xb4] ss:$8 sps:$4 sm:$0xff]  }
  0x3a   : > { %3744 = vmatpush3.bf16.msra.mxu1 %v3937_v60  ;;  %3633 = vmatprep.subr.bf16.mxu0 %v3950_v1  ;;  %v4458_v60 = vld [vmem:[%s4178_s12 + $0xb0] ss:$8 sps:$4 sm:$0xff]   ;;  %v4461_v1 = vld [vmem:[%s4178_s12 + $0x1d4] ss:$8 sps:$4 sm:$0xff]  }
  0x3b   : > { %3745 = vmatprep.subr.bf16.mxu1 %v3952_v4  ;;  %v4471_v4 = vld [vmem:[%s4178_s12 + $0x1d0] ss:$8 sps:$4 sm:$0xff]  }
  0x3d   : > { %3634 = vmatpush3.bf16.msra.mxu0 %v3951_v3  ;;  %v4464_v3 = vld [vmem:[%s4178_s12 + $0xc4] ss:$8 sps:$4 sm:$0xff]  }
  0x3e   : > { %3746 = vmatpush3.bf16.msra.mxu1 %v3953_v5  ;;  %3635 = vmatprep.subr.bf16.mxu0 %v3966_v10  ;;  %v4474_v5 = vld [vmem:[%s4178_s12 + $0xc0] ss:$8 sps:$4 sm:$0xff]   ;;  %v4477_v10 = vld [vmem:[%s4178_s12 + $0x1e4] ss:$8 sps:$4 sm:$0xff]  }
  0x3f   : > { %661 = vmatmul.mubr.bf16.gmra.mrb[8].mxu0 %v4233_v48  ;;  %3747 = vmatprep.subr.bf16.mxu1 %v3968_v12  ;;  %v4487_v12 = vld [vmem:[%s4178_s12 + $0x1e0] ss:$8 sps:$4 sm:$0xff]  }
  0x40   : > { %1078 = vmatmul.mubr.bf16.gmra.mrb[8].mxu1 %v4242_v51  ;;  %668 = vmatprep.mubr.bf16.mxu0 %v4245_v52 }
  0x41   : > { %1085 = vmatprep.mubr.bf16.mxu1 %v4248_v53  ;;  %3636 = vmatpush3.bf16.msra.mxu0 %v3967_v11  ;;  %v4480_v11 = vld [vmem:[%s4178_s12 + $0xd4] ss:$8 sps:$4 sm:$0xff]  }
  0x42   : > { %3748 = vmatpush3.bf16.msra.mxu1 %v3969_v13  ;;  %3637 = vmatprep.subr.bf16.mxu0 %v3982_v18  ;;  %v4490_v13 = vld [vmem:[%s4178_s12 + $0xd0] ss:$8 sps:$4 sm:$0xff]   ;;  %v4493_v18 = vld [vmem:[%s4178_s12 + $0x1f4] ss:$8 sps:$4 sm:$0xff]  }
  0x43   : > { %3749 = vmatprep.subr.bf16.mxu1 %v3984_v20  ;;  %v4503_v20 = vld [vmem:[%s4178_s12 + $0x1f0] ss:$8 sps:$4 sm:$0xff]  }
  0x45   : > { %3638 = vmatpush3.bf16.msra.mxu0 %v3983_v19  ;;  %v4496_v19 = vld [vmem:[%s4178_s12 + $0xe4] ss:$8 sps:$4 sm:$0xff]  }
  0x46   : > { %3750 = vmatpush3.bf16.msra.mxu1 %v3985_v21  ;;  %3639 = vmatprep.subr.bf16.mxu0 %v3998_v26  ;;  %v4506_v21 = vld [vmem:[%s4178_s12 + $0xe0] ss:$8 sps:$4 sm:$0xff]   ;;  %v4509_v26 = vld [vmem:[%s4178_s12 + $0x204] ss:$8 sps:$4 sm:$0xff]  }
  0x47   : > { %669 = vmatmul.mubr.bf16.gmra.mrb[12].mxu0 %v4255_v54  ;;  %3751 = vmatprep.subr.bf16.mxu1 %v4000_v28  ;;  %v4519_v28 = vld [vmem:[%s4178_s12 + $0x200] ss:$8 sps:$4 sm:$0xff]  }
  0x48   : > { %1086 = vmatmul.mubr.bf16.gmra.mrb[12].mxu1 %v4261_v56  ;;  %676 = vmatprep.mubr.bf16.mxu0 %v4264_v57 }
  0x49   : > { %1093 = vmatprep.mubr.bf16.mxu1 %v4276_v61  ;;  %3640 = vmatpush3.bf16.msra.mxu0 %v3999_v27  ;;  %v4512_v27 = vld [vmem:[%s4178_s12 + $0xf4] ss:$8 sps:$4 sm:$0xff]  }
  0x4a   : > { %3752 = vmatpush3.bf16.msra.mxu1 %v4001_v29  ;;  %3641 = vmatprep.subr.bf16.mxu0 %v4014_v34  ;;  %v4522_v29 = vld [vmem:[%s4178_s12 + $0xf0] ss:$8 sps:$4 sm:$0xff]  }
  0x4b   : > { %3753 = vmatprep.subr.bf16.mxu1 %v4016_v37 }
  0x4d   : > { %3642 = vmatpush3.bf16.msra.mxu0 %v4015_v35 }
  0x4e   : > { %3754 = vmatpush3.bf16.msra.mxu1 %v4017_v38 }
  0x4f   : > { %677 = vmatmul.mubr.bf16.gmra.mrb[16].mxu0 %v4283_v62 }
  0x50   : > { %1094 = vmatmul.mubr.bf16.gmra.mrb[16].mxu1 %v4286_v63  ;;  %684 = vmatprep.mubr.bf16.mxu0 %v4289_v0 }
  0x51   : > { %1101 = vmatprep.mubr.bf16.mxu1 %v4295_v2 }
  0x57   : > { %685 = vmatmul.mubr.bf16.gmra.mrb[20].mxu0 %v4311_v6 }
  0x58   : > { %1102 = vmatmul.mubr.bf16.gmra.mrb[20].mxu1 %v4314_v7  ;;  %692 = vmatprep.mubr.bf16.mxu0 %v4317_v8 }
  0x59   : > { %1109 = vmatprep.mubr.bf16.mxu1 %v4320_v9 }
  0x5f   : > { %693 = vmatmul.mubr.bf16.gmra.mrb[24].mxu0 %v4339_v14 }
  0x60   : > { %1110 = vmatmul.mubr.bf16.gmra.mrb[24].mxu1 %v4342_v15  ;;  %700 = vmatprep.mubr.bf16.mxu0 %v4345_v16 }
  0x61   : > { %1117 = vmatprep.mubr.bf16.mxu1 %v4348_v17 }
  0x67   : > { %701 = vmatmul.mubr.bf16.gmra.mrb[28].mxu0 %v4367_v22 }
  0x68   : > { %1118 = vmatmul.mubr.bf16.gmra.mrb[28].mxu1 %v4370_v23  ;;  %708 = vmatprep.mubr.bf16.mxu0 %v4373_v24 }
  0x69   : > { %1125 = vmatprep.mubr.bf16.mxu1 %v4376_v25 }
  0x6f   : > { %709 = vmatmul.mubr.bf16.gmra.mrb[32].mxu0 %v4395_v30 }
  0x70   : > { %1126 = vmatmul.mubr.bf16.gmra.mrb[32].mxu1 %v4398_v31  ;;  %716 = vmatprep.mubr.bf16.mxu0 %v4401_v32 }
  0x71   : > { %1133 = vmatprep.mubr.bf16.mxu1 %v4404_v33 }
  0x77   : > { %717 = vmatmul.mubr.bf16.gmra.mrb[36].mxu0 %v4417_v36 }
  0x78   : > { %1134 = vmatmul.mubr.bf16.gmra.mrb[36].mxu1 %v4426_v39  ;;  %724 = vmatprep.mubr.bf16.mxu0 %v4429_v46 }
  0x79   : > { %1141 = vmatprep.mubr.bf16.mxu1 %v4432_v47 }
  0x7f   : > { %725 = vmatmul.mubr.bf16.gmra.mrb[40].mxu0 %v4439_v49 }
  0x80   : > { %1142 = vmatmul.mubr.bf16.gmra.mrb[40].mxu1 %v4442_v50  ;;  %732 = vmatprep.mubr.bf16.mxu0 %v4445_v55 }
  0x81   : > { %1149 = vmatprep.mubr.bf16.mxu1 %v4448_v58 }
  0x87   : > { %733 = vmatmul.mubr.bf16.gmra.mrb[44].mxu0 %v4455_v59 }
  0x88   : > { %1150 = vmatmul.mubr.bf16.gmra.mrb[44].mxu1 %v4458_v60  ;;  %740 = vmatprep.mubr.bf16.mxu0 %v4461_v1 }
  0x89   : > { %1157 = vmatprep.mubr.bf16.mxu1 %v4464_v3 }
  0x8f   : > { %741 = vmatmul.mubr.bf16.gmra.mrb[48].mxu0 %v4471_v4 }
  0x90   : > { %1158 = vmatmul.mubr.bf16.gmra.mrb[48].mxu1 %v4474_v5  ;;  %748 = vmatprep.mubr.bf16.mxu0 %v4477_v10 }
  0x91   : > { %1165 = vmatprep.mubr.bf16.mxu1 %v4480_v11 }
  0x97   : > { %749 = vmatmul.mubr.bf16.gmra.mrb[52].mxu0 %v4487_v12 }
  0x98   : > { %1166 = vmatmul.mubr.bf16.gmra.mrb[52].mxu1 %v4490_v13  ;;  %756 = vmatprep.mubr.bf16.mxu0 %v4493_v18 }
  0x99   : > { %1173 = vmatprep.mubr.bf16.mxu1 %v4496_v19 }
  0x9f   : > { %757 = vmatmul.mubr.bf16.gmra.mrb[56].mxu0 %v4503_v20 }
  0xa0   : > { %1174 = vmatmul.mubr.bf16.gmra.mrb[56].mxu1 %v4506_v21  ;;  %764 = vmatprep.mubr.bf16.mxu0 %v4509_v26 }
  0xa1   : > { %1181 = vmatprep.mubr.bf16.mxu1 %v4512_v27 }
  0xa7   : > { %765 = vmatmul.mubr.bf16.gmra.mrb[60].mxu0 %v4519_v28 }
  0xa8   : > { %1182 = vmatmul.mubr.bf16.gmra.mrb[60].mxu1 %v4522_v29  ;;  %1543 = vmatprep.mubr.bf16.mxu0 %v4206_v41 }
  0xa9   : > { %2057 = vmatprep.mubr.bf16.mxu1 %v4203_v40 }
  0xaf   : > { %1544 = vmatmul.mubr.bf16.vlgmr.msra.gmra.mrb[64].mxu0 %v4213_v43 }
  0xb0   : > { %2058 = vmatmul.mubr.bf16.vlgmr.msra.gmra.mrb[64].mxu1 %v4209_v42  ;;  %1551 = vmatprep.mubr.bf16.mxu0 %v4220_v45 }
  0xb1   : > { %2065 = vmatprep.mubr.bf16.mxu1 %v4217_v44 }
  0xb7   : > { %1552 = vmatmul.mubr.bf16.gmra.mrb[68].mxu0 %v4242_v51 }
  0xb8   : > { %2066 = vmatmul.mubr.bf16.gmra.mrb[68].mxu1 %v4233_v48  ;;  %1559 = vmatprep.mubr.bf16.mxu0 %v4248_v53 }
  0xb9   : > { %2073 = vmatprep.mubr.bf16.mxu1 %v4245_v52 }
  0xbf   : > { %1560 = vmatmul.mubr.bf16.gmra.mrb[72].mxu0 %v4261_v56 }
  0xc0   : > { %2074 = vmatmul.mubr.bf16.gmra.mrb[72].mxu1 %v4255_v54  ;;  %1567 = vmatprep.mubr.bf16.mxu0 %v4276_v61 }
  0xc1   : > { %2081 = vmatprep.mubr.bf16.mxu1 %v4264_v57 }
  0xc7   : > { %1568 = vmatmul.mubr.bf16.gmra.mrb[76].mxu0 %v4286_v63 }
  0xc8   : > { %2082 = vmatmul.mubr.bf16.gmra.mrb[76].mxu1 %v4283_v62  ;;  %1575 = vmatprep.mubr.bf16.mxu0 %v4295_v2 }
  0xc9   : > { %2089 = vmatprep.mubr.bf16.mxu1 %v4289_v0 }
  0xcf   : > { %1576 = vmatmul.mubr.bf16.gmra.mrb[80].mxu0 %v4314_v7 }
  0xd0   : > { %2090 = vmatmul.mubr.bf16.gmra.mrb[80].mxu1 %v4311_v6  ;;  %1583 = vmatprep.mubr.bf16.mxu0 %v4320_v9 }
  0xd1   : > { %2097 = vmatprep.mubr.bf16.mxu1 %v4317_v8 }
  0xd7   : > { %1584 = vmatmul.mubr.bf16.gmra.mrb[84].mxu0 %v4342_v15 }
  0xd8   : > { %2098 = vmatmul.mubr.bf16.gmra.mrb[84].mxu1 %v4339_v14  ;;  %1591 = vmatprep.mubr.bf16.mxu0 %v4348_v17 }
  0xd9   : > { %2105 = vmatprep.mubr.bf16.mxu1 %v4345_v16 }
  0xdf   : > { %1592 = vmatmul.mubr.bf16.gmra.mrb[88].mxu0 %v4370_v23 }
  0xe0   : > { %2106 = vmatmul.mubr.bf16.gmra.mrb[88].mxu1 %v4367_v22  ;;  %1599 = vmatprep.mubr.bf16.mxu0 %v4376_v25 }
  0xe1   : > { %2113 = vmatprep.mubr.bf16.mxu1 %v4373_v24 }
  0xe7   : > { %1600 = vmatmul.mubr.bf16.gmra.mrb[92].mxu0 %v4398_v31 }
  0xe8   : > { %2114 = vmatmul.mubr.bf16.gmra.mrb[92].mxu1 %v4395_v30  ;;  %1607 = vmatprep.mubr.bf16.mxu0 %v4404_v33 }
  0xe9   : > { %2121 = vmatprep.mubr.bf16.mxu1 %v4401_v32 }
  0xef   : > { %1608 = vmatmul.mubr.bf16.gmra.mrb[96].mxu0 %v4426_v39 }
  0xf0   : > { %2122 = vmatmul.mubr.bf16.gmra.mrb[96].mxu1 %v4417_v36  ;;  %1615 = vmatprep.mubr.bf16.mxu0 %v4432_v47 }
  0xf1   : > { %2129 = vmatprep.mubr.bf16.mxu1 %v4429_v46 }
  0xf7   : > { %1616 = vmatmul.mubr.bf16.gmra.mrb[100].mxu0 %v4442_v50 }
  0xf8   : > { %2130 = vmatmul.mubr.bf16.gmra.mrb[100].mxu1 %v4439_v49  ;;  %1623 = vmatprep.mubr.bf16.mxu0 %v4448_v58 }
  0xf9   : > { %2137 = vmatprep.mubr.bf16.mxu1 %v4445_v55 }
  0xff   : > { %1624 = vmatmul.mubr.bf16.gmra.mrb[104].mxu0 %v4458_v60 }
 0x100   : > { %2138 = vmatmul.mubr.bf16.gmra.mrb[104].mxu1 %v4455_v59  ;;  %1631 = vmatprep.mubr.bf16.mxu0 %v4464_v3 }
 0x101   : > { %2145 = vmatprep.mubr.bf16.mxu1 %v4461_v1  ;;  %v4024_v1 = vld [vmem:[%s4178_s12 + $0x104] ss:$8 sps:$4 sm:$0xff]  }
 0x102   : > { %v3419_v40 = vpop.f32.mrb[0].mxu0 }
 0x103   : > { %v3531_v41 = vpop.f32.mrb[0].mxu1  ;;  %v3420_v42 = vpop.f32.mrb[1].mxu0 }
 0x104   : > { %v3421_v43 = vadd.f32 %v3420_v42, %v3419_v40  ;;  %v3532_v44 = vpop.f32.mrb[1].mxu1  ;;  %v3422_v45 = vpop.f32.mrb[2].mxu0 }
 0x105   : > { %v3533_v48 = vadd.f32 %v3532_v44, %v3531_v41  ;;  %v3534_v51 = vpop.f32.mrb[2].mxu1  ;;  %v3423_v52 = vpop.f32.mrb[3].mxu0 }
 0x106   : > { %v3424_v53 = vadd.f32 %v3423_v52, %v3422_v45  ;;  %v3535_v54 = vpop.f32.mrb[3].mxu1 }
 0x107   : > { %v4572_v56 = vadd.f32 %v3533_v48, %v3421_v43  ;;  %v3536_v57 = vadd.f32 %v3535_v54, %v3534_v51  ;;  %1632 = vmatmul.mubr.bf16.gmra.mrb[108].mxu0 %v4474_v5  ;;  %v4029_v43 = vld [vmem:[%s4178_s12 + $0x210] ss:$8 sps:$4 sm:$0xff]  }
 0x108   : > { %2146 = vmatmul.mubr.bf16.gmra.mrb[108].mxu1 %v4471_v4  ;;  %1639 = vmatprep.mubr.bf16.mxu0 %v4480_v11 }
 0x109   : > { %v4577_v61 = vadd.f32 %v3536_v57, %v3424_v53  ;;  %2153 = vmatprep.mubr.bf16.mxu1 %v4477_v10  ;;  %v4026_v10 = vld [vmem:[%s4178_s12 + $0x214] ss:$8 sps:$4 sm:$0xff]  }
 0x10a   : > { %v3425_v62 = vpop.f32.mrb[4].mxu0 }
 0x10b   : > { %v3537_v63 = vpop.f32.mrb[4].mxu1  ;;  %v3426_v0 = vpop.f32.mrb[5].mxu0 }
 0x10c   : > { %v3427_v2 = vadd.f32 %v3426_v0, %v3425_v62  ;;  %v3538_v6 = vpop.f32.mrb[5].mxu1  ;;  %v3428_v7 = vpop.f32.mrb[6].mxu0 }
 0x10d   : > { %v3539_v8 = vadd.f32 %v3538_v6, %v3537_v63  ;;  %v3540_v9 = vpop.f32.mrb[6].mxu1  ;;  %v3429_v14 = vpop.f32.mrb[7].mxu0 }
 0x10e   : > { %v3430_v15 = vadd.f32 %v3429_v14, %v3428_v7  ;;  %v3541_v16 = vpop.f32.mrb[7].mxu1 }
 0x10f   : > { %v4580_v17 = vadd.f32 %v3539_v8, %v3427_v2  ;;  %v3542_v22 = vadd.f32 %v3541_v16, %v3540_v9  ;;  %1640 = vmatmul.mubr.bf16.gmra.mrb[112].mxu0 %v4490_v13 }
 0x110   : > { %2154 = vmatmul.mubr.bf16.gmra.mrb[112].mxu1 %v4487_v12  ;;  %1647 = vmatprep.mubr.bf16.mxu0 %v4496_v19 }
 0x111   : > { %v4585_v23 = vadd.f32 %v3542_v22, %v3430_v15  ;;  %2161 = vmatprep.mubr.bf16.mxu1 %v4493_v18 }
 0x112   : > { %v3431_v24 = vpop.f32.mrb[8].mxu0 }
 0x113   : > { %v3543_v25 = vpop.f32.mrb[8].mxu1  ;;  %v3432_v30 = vpop.f32.mrb[9].mxu0 }
 0x114   : > { %v3433_v31 = vadd.f32 %v3432_v30, %v3431_v24  ;;  %v3544_v32 = vpop.f32.mrb[9].mxu1  ;;  %v3434_v33 = vpop.f32.mrb[10].mxu0 }
 0x115   : > { %v3545_v34 = vadd.f32 %v3544_v32, %v3543_v25  ;;  %v3546_v35 = vpop.f32.mrb[10].mxu1  ;;  %v3435_v36 = vpop.f32.mrb[11].mxu0 }
 0x116   : > { %v3436_v37 = vadd.f32 %v3435_v36, %v3434_v33  ;;  %v3547_v38 = vpop.f32.mrb[11].mxu1 }
 0x117   : > { %v4588_v39 = vadd.f32 %v3545_v34, %v3433_v31  ;;  %v3548_v46 = vadd.f32 %v3547_v38, %v3546_v35  ;;  %1648 = vmatmul.mubr.bf16.gmra.mrb[116].mxu0 %v4506_v21 }
 0x118   : > { %2162 = vmatmul.mubr.bf16.gmra.mrb[116].mxu1 %v4503_v20  ;;  %1655 = vmatprep.mubr.bf16.mxu0 %v4512_v27  ;;  %v4028_v27 = vld [vmem:[%s4178_s12 + $0x100] ss:$8 sps:$4 sm:$0xff]  }
 0x119   : > { %v4593_v47 = vadd.f32 %v3548_v46, %v3436_v37  ;;  %2169 = vmatprep.mubr.bf16.mxu1 %v4509_v26 }
 0x11a   : > { %v3437_v49 = vpop.f32.mrb[12].mxu0 }
 0x11b   : > { %v3549_v50 = vpop.f32.mrb[12].mxu1  ;;  %v3438_v55 = vpop.f32.mrb[13].mxu0 }
 0x11c   : > { %v3439_v58 = vadd.f32 %v3438_v55, %v3437_v49  ;;  %v3550_v59 = vpop.f32.mrb[13].mxu1  ;;  %v3440_v60 = vpop.f32.mrb[14].mxu0 }
 0x11d   : > { %v3551_v3 = vadd.f32 %v3550_v59, %v3549_v50  ;;  %v3552_v4 = vpop.f32.mrb[14].mxu1  ;;  %v3441_v5 = vpop.f32.mrb[15].mxu0 }
 0x11e   : > { %v3442_v11 = vadd.f32 %v3441_v5, %v3440_v60  ;;  %v3553_v12 = vpop.f32.mrb[15].mxu1 }
 0x11f   : > { %v4598_v13 = vadd.f32 %v3551_v3, %v3439_v58  ;;  %v3554_v18 = vadd.f32 %v3553_v12, %v3552_v4  ;;  %1656 = vmatmul.mubr.bf16.gmra.mrb[120].mxu0 %v4522_v29 }
 0x120   : > { %2170 = vmatmul.mubr.bf16.gmra.mrb[120].mxu1 %v4519_v28  ;;  %1663 = vmatprep.mubr.bf16.mxu0 %v4024_v1 }
 0x121   : > { %v4602_v19 = vadd.f32 %v3554_v18, %v3442_v11  ;;  %2177 = vmatprep.mubr.bf16.mxu1 %v4026_v10 }
 0x122   : > { %v3443_v20 = vpop.f32.mrb[16].mxu0 }
 0x123   : > { %v3555_v21 = vpop.f32.mrb[16].mxu1  ;;  %v3444_v26 = vpop.f32.mrb[17].mxu0 }
 0x124   : > { %v3445_v40 = vadd.f32 %v3444_v26, %v3443_v20  ;;  %v3556_v41 = vpop.f32.mrb[17].mxu1  ;;  %v3446_v42 = vpop.f32.mrb[18].mxu0 }
 0x125   : > { %v3557_v44 = vadd.f32 %v3556_v41, %v3555_v21  ;;  %v3558_v45 = vpop.f32.mrb[18].mxu1  ;;  %v3447_v48 = vpop.f32.mrb[19].mxu0 }
 0x126   : > { %v3448_v51 = vadd.f32 %v3447_v48, %v3446_v42  ;;  %v3559_v52 = vpop.f32.mrb[19].mxu1 }
 0x127   : > { %v4606_v29 = vadd.f32 %v3557_v44, %v3445_v40  ;;  %v3560_v28 = vadd.f32 %v3559_v52, %v3558_v45  ;;  %1664 = vmatmul.mubr.bf16.gmra.mrb[124].mxu0 %v4028_v27 }
 0x128   : > { %2178 = vmatmul.mubr.bf16.gmra.mrb[124].mxu1 %v4029_v43 }
 0x129   : > { %v4608_v53 = vadd.f32 %v3560_v28, %v3448_v51 }
 0x12a   : > { %v3449_v54 = vpop.f32.mrb[20].mxu0 }
 0x12b   : > { %v3561_v57 = vpop.f32.mrb[20].mxu1  ;;  %v3450_v62 = vpop.f32.mrb[21].mxu0 }
 0x12c   : > { %v3451_v63 = vadd.f32 %v3450_v62, %v3449_v54  ;;  %v3562_v0 = vpop.f32.mrb[21].mxu1  ;;  %v3452_v2 = vpop.f32.mrb[22].mxu0 }
 0x12d   : > { %v3563_v6 = vadd.f32 %v3562_v0, %v3561_v57  ;;  %v3564_v7 = vpop.f32.mrb[22].mxu1  ;;  %v3453_v8 = vpop.f32.mrb[23].mxu0 }
 0x12e   : > { %v3454_v9 = vadd.f32 %v3453_v8, %v3452_v2  ;;  %v3565_v14 = vpop.f32.mrb[23].mxu1 }
 0x12f   : > { %v4610_v15 = vadd.f32 %v3563_v6, %v3451_v63  ;;  %v3566_v16 = vadd.f32 %v3565_v14, %v3564_v7 }
 0x131   : > { %v4612_v22 = vadd.f32 %v3566_v16, %v3454_v9 }
 0x132   : > { %v3455_v24 = vpop.f32.mrb[24].mxu0 }
 0x133   : > { %v3567_v25 = vpop.f32.mrb[24].mxu1  ;;  %v3456_v30 = vpop.f32.mrb[25].mxu0 }
 0x134   : > { %v3457_v31 = vadd.f32 %v3456_v30, %v3455_v24  ;;  %v3568_v32 = vpop.f32.mrb[25].mxu1  ;;  %v3458_v33 = vpop.f32.mrb[26].mxu0 }
 0x135   : > { %v3569_v34 = vadd.f32 %v3568_v32, %v3567_v25  ;;  %v3570_v35 = vpop.f32.mrb[26].mxu1  ;;  %v3459_v36 = vpop.f32.mrb[27].mxu0 }
 0x136   : > { %v3460_v37 = vadd.f32 %v3459_v36, %v3458_v33  ;;  %v3571_v38 = vpop.f32.mrb[27].mxu1 }
 0x137   : > { %v4614_v46 = vadd.f32 %v3569_v34, %v3457_v31  ;;  %v3572_v49 = vadd.f32 %v3571_v38, %v3570_v35 }
 0x139   : > { %v4616_v50 = vadd.f32 %v3572_v49, %v3460_v37 }
 0x13a   : > { %v3461_v55 = vpop.f32.mrb[28].mxu0 }
 0x13b   : > { %v3573_v58 = vpop.f32.mrb[28].mxu1  ;;  %v3462_v59 = vpop.f32.mrb[29].mxu0 }
 0x13c   : > { %v3463_v60 = vadd.f32 %v3462_v59, %v3461_v55  ;;  %v3574_v1 = vpop.f32.mrb[29].mxu1  ;;  %v3464_v3 = vpop.f32.mrb[30].mxu0 }
 0x13d   : > { %v3575_v4 = vadd.f32 %v3574_v1, %v3573_v58  ;;  %v3576_v5 = vpop.f32.mrb[30].mxu1  ;;  %v3465_v10 = vpop.f32.mrb[31].mxu0 }
 0x13e   : > { %v3466_v11 = vadd.f32 %v3465_v10, %v3464_v3  ;;  %v3577_v12 = vpop.f32.mrb[31].mxu1 }
 0x13f   : > { %v4618_v18 = vadd.f32 %v3575_v4, %v3463_v60  ;;  %v3578_v20 = vadd.f32 %v3577_v12, %v3576_v5 }
 0x141   : > { %v4620_v21 = vadd.f32 %v3578_v20, %v3466_v11 }
 0x142   : > { %v3467_v26 = vpop.f32.mrb[32].mxu0 }
 0x143   : > { %v3579_v27 = vpop.f32.mrb[32].mxu1  ;;  %v3468_v40 = vpop.f32.mrb[33].mxu0 }
 0x144   : > { %v3469_v41 = vadd.f32 %v3468_v40, %v3467_v26  ;;  %v3580_v42 = vpop.f32.mrb[33].mxu1  ;;  %v3470_v43 = vpop.f32.mrb[34].mxu0 }
 0x145   : > { %v3581_v44 = vadd.f32 %v3580_v42, %v3579_v27  ;;  %v3582_v45 = vpop.f32.mrb[34].mxu1  ;;  %v3471_v48 = vpop.f32.mrb[35].mxu0 }
 0x146   : > { %v3472_v51 = vadd.f32 %v3471_v48, %v3470_v43  ;;  %v3583_v52 = vpop.f32.mrb[35].mxu1 }
 0x147   : > { %v4622_v28 = vadd.f32 %v3581_v44, %v3469_v41  ;;  %v3584_v54 = vadd.f32 %v3583_v52, %v3582_v45 }
 0x149   : > { %v4624_v57 = vadd.f32 %v3584_v54, %v3472_v51 }
 0x14a   : > { %v3473_v62 = vpop.f32.mrb[36].mxu0 }
 0x14b   : > { %v3585_v63 = vpop.f32.mrb[36].mxu1  ;;  %v3474_v0 = vpop.f32.mrb[37].mxu0 }
 0x14c   : > { %v3475_v2 = vadd.f32 %v3474_v0, %v3473_v62  ;;  %v3586_v6 = vpop.f32.mrb[37].mxu1  ;;  %v3476_v7 = vpop.f32.mrb[38].mxu0 }
 0x14d   : > { %v3587_v8 = vadd.f32 %v3586_v6, %v3585_v63  ;;  %v3588_v9 = vpop.f32.mrb[38].mxu1  ;;  %v3477_v14 = vpop.f32.mrb[39].mxu0 }
 0x14e   : > { %v3478_v16 = vadd.f32 %v3477_v14, %v3476_v7  ;;  %v3589_v24 = vpop.f32.mrb[39].mxu1 }
 0x14f   : > { %v4626_v25 = vadd.f32 %v3587_v8, %v3475_v2  ;;  %v3590_v30 = vadd.f32 %v3589_v24, %v3588_v9 }
 0x151   : > { %v4628_v31 = vadd.f32 %v3590_v30, %v3478_v16 }
 0x152   : > { %v3479_v32 = vpop.f32.mrb[40].mxu0 }
 0x153   : > { %v3591_v33 = vpop.f32.mrb[40].mxu1  ;;  %v3480_v34 = vpop.f32.mrb[41].mxu0 }
 0x154   : > { %v3481_v35 = vadd.f32 %v3480_v34, %v3479_v32  ;;  %v3592_v36 = vpop.f32.mrb[41].mxu1  ;;  %v3482_v37 = vpop.f32.mrb[42].mxu0 }
 0x155   : > { %v3593_v38 = vadd.f32 %v3592_v36, %v3591_v33  ;;  %v3594_v49 = vpop.f32.mrb[42].mxu1  ;;  %v3483_v55 = vpop.f32.mrb[43].mxu0 }
 0x156   : > { %v3484_v58 = vadd.f32 %v3483_v55, %v3482_v37  ;;  %v3595_v59 = vpop.f32.mrb[43].mxu1 }
 0x157   : > { %v4630_v60 = vadd.f32 %v3593_v38, %v3481_v35  ;;  %v3596_v1 = vadd.f32 %v3595_v59, %v3594_v49 }
 0x159   : > { %v4632_v3 = vadd.f32 %v3596_v1, %v3484_v58 }
 0x15a   : > { %v3485_v4 = vpop.f32.mrb[44].mxu0 }
 0x15b   : > { %v3597_v5 = vpop.f32.mrb[44].mxu1  ;;  %v3486_v10 = vpop.f32.mrb[45].mxu0 }
 0x15c   : > { %v3487_v11 = vadd.f32 %v3486_v10, %v3485_v4  ;;  %v3598_v12 = vpop.f32.mrb[45].mxu1  ;;  %v3488_v20 = vpop.f32.mrb[46].mxu0 }
 0x15d   : > { %v3599_v26 = vadd.f32 %v3598_v12, %v3597_v5  ;;  %v3600_v27 = vpop.f32.mrb[46].mxu1  ;;  %v3489_v40 = vpop.f32.mrb[47].mxu0 }
 0x15e   : > { %v3490_v41 = vadd.f32 %v3489_v40, %v3488_v20  ;;  %v3601_v42 = vpop.f32.mrb[47].mxu1 }
 0x15f   : > { %v4634_v43 = vadd.f32 %v3599_v26, %v3487_v11  ;;  %v3602_v44 = vadd.f32 %v3601_v42, %v3600_v27 }
 0x161   : > { %v4636_v45 = vadd.f32 %v3602_v44, %v3490_v41 }
 0x162   : > { %v3491_v48 = vpop.f32.mrb[48].mxu0 }
 0x163   : > { %v3603_v51 = vpop.f32.mrb[48].mxu1  ;;  %v3492_v52 = vpop.f32.mrb[49].mxu0 }
 0x164   : > { %v3493_v54 = vadd.f32 %v3492_v52, %v3491_v48  ;;  %v3604_v62 = vpop.f32.mrb[49].mxu1  ;;  %v3494_v63 = vpop.f32.mrb[50].mxu0 }
 0x165   : > { %v3605_v0 = vadd.f32 %v3604_v62, %v3603_v51  ;;  %v3606_v2 = vpop.f32.mrb[50].mxu1  ;;  %v3495_v6 = vpop.f32.mrb[51].mxu0 }
 0x166   : > { %v3496_v7 = vadd.f32 %v3495_v6, %v3494_v63  ;;  %v3607_v8 = vpop.f32.mrb[51].mxu1 }
 0x167   : > { %v4638_v9 = vadd.f32 %v3605_v0, %v3493_v54  ;;  %v3608_v14 = vadd.f32 %v3607_v8, %v3606_v2 }
 0x169   : > { %v4640_v16 = vadd.f32 %v3608_v14, %v3496_v7 }
 0x16a   : > { %v3497_v24 = vpop.f32.mrb[52].mxu0 }
 0x16b   : > { %v3609_v30 = vpop.f32.mrb[52].mxu1  ;;  %v3498_v32 = vpop.f32.mrb[53].mxu0 }
 0x16c   : > { %v3499_v33 = vadd.f32 %v3498_v32, %v3497_v24  ;;  %v3610_v34 = vpop.f32.mrb[53].mxu1  ;;  %v3500_v35 = vpop.f32.mrb[54].mxu0 }
 0x16d   : > { %v3611_v36 = vadd.f32 %v3610_v34, %v3609_v30  ;;  %v3612_v37 = vpop.f32.mrb[54].mxu1  ;;  %v3501_v38 = vpop.f32.mrb[55].mxu0 }
 0x16e   : > { %v3502_v49 = vadd.f32 %v3501_v38, %v3500_v35  ;;  %v3613_v55 = vpop.f32.mrb[55].mxu1 }
 0x16f   : > { %v4642_v58 = vadd.f32 %v3611_v36, %v3499_v33  ;;  %v3614_v59 = vadd.f32 %v3613_v55, %v3612_v37 }
 0x171   : > { %v4644_v1 = vadd.f32 %v3614_v59, %v3502_v49 }
 0x172   : > { %v3503_v4 = vpop.f32.mrb[56].mxu0 }
 0x173   : > { %v3615_v5 = vpop.f32.mrb[56].mxu1  ;;  %v3504_v10 = vpop.f32.mrb[57].mxu0 }
 0x174   : > { %v3505_v11 = vadd.f32 %v3504_v10, %v3503_v4  ;;  %v3616_v12 = vpop.f32.mrb[57].mxu1  ;;  %v3506_v20 = vpop.f32.mrb[58].mxu0 }
 0x175   : > { %v3617_v26 = vadd.f32 %v3616_v12, %v3615_v5  ;;  %v3618_v27 = vpop.f32.mrb[58].mxu1  ;;  %v3507_v40 = vpop.f32.mrb[59].mxu0 }
 0x176   : > { %v3508_v41 = vadd.f32 %v3507_v40, %v3506_v20  ;;  %v3619_v42 = vpop.f32.mrb[59].mxu1 }
 0x177   : > { %v4646_v44 = vadd.f32 %v3617_v26, %v3505_v11  ;;  %v3620_v48 = vadd.f32 %v3619_v42, %v3618_v27 }
 0x179   : > { %v4648_v51 = vadd.f32 %v3620_v48, %v3508_v41 }
 0x17a   : > { %v3509_v52 = vpop.f32.mrb[60].mxu0 }
 0x17b   : > { %v3621_v54 = vpop.f32.mrb[60].mxu1  ;;  %v3510_v62 = vpop.f32.mrb[61].mxu0 }
 0x17c   : > { %v3511_v63 = vadd.f32 %v3510_v62, %v3509_v52  ;;  %v3622_v0 = vpop.f32.mrb[61].mxu1  ;;  %v3512_v2 = vpop.f32.mrb[62].mxu0 }
 0x17d   : > { %v3623_v6 = vadd.f32 %v3622_v0, %v3621_v54  ;;  %v3624_v7 = vpop.f32.mrb[62].mxu1  ;;  %v3513_v8 = vpop.f32.mrb[63].mxu0 }
 0x17e   : > { %v3514_v14 = vadd.f32 %v3513_v8, %v3512_v2  ;;  %v3625_v24 = vpop.f32.mrb[63].mxu1 }
 0x17f   : > { %v4650_v30 = vadd.f32 %v3623_v6, %v3511_v63  ;;  %v3626_v32 = vadd.f32 %v3625_v24, %v3624_v7 }
 0x181   : > { %v4652_v33 = vadd.f32 %v3626_v32, %v3514_v14 }
 0x182   : > { %v3643_v34 = vpop.f32.mrb[64].mxu0 }
 0x183   : > { %v3755_v35 = vpop.f32.mrb[64].mxu1  ;;  %v3644_v36 = vpop.f32.mrb[65].mxu0 }
 0x184   : > { %v3645_v37 = vadd.f32 %v3644_v36, %v3643_v34  ;;  %v3756_v38 = vpop.f32.mrb[65].mxu1  ;;  %v3646_v49 = vpop.f32.mrb[66].mxu0 }
 0x185   : > { %v3757_v55 = vadd.f32 %v3756_v38, %v3755_v35  ;;  %v3758_v59 = vpop.f32.mrb[66].mxu1  ;;  %v3647_v4 = vpop.f32.mrb[67].mxu0 }
 0x186   : > { %v1672_v5 = vadd.f32 %v3645_v37, %v4572_v56  ;;  %v3648_v10 = vadd.f32 %v3647_v4, %v3646_v49  ;;  %v3759_v11 = vpop.f32.mrb[67].mxu1 }
 0x187   : > { %v3760_v12 = vadd.f32 %v3759_v11, %v3758_v59 }
 0x188   : > { %v4655_v20 = vadd.f32 %v3757_v55, %v1672_v5  ;;  %v1673_v26 = vadd.f32 %v3648_v10, %v4577_v61 }
 0x18a   : > { %v4658_v27 = vadd.f32 %v3760_v12, %v1673_v26  ;;  %v3649_v40 = vpop.f32.mrb[68].mxu0 }
 0x18b   : > { %v3761_v41 = vpop.f32.mrb[68].mxu1  ;;  %v3650_v42 = vpop.f32.mrb[69].mxu0 }
 0x18c   : > { %v3651_v48 = vadd.f32 %v3650_v42, %v3649_v40  ;;  %v3762_v52 = vpop.f32.mrb[69].mxu1  ;;  %v3652_v54 = vpop.f32.mrb[70].mxu0 }
 0x18d   : > { %v3763_v62 = vadd.f32 %v3762_v52, %v3761_v41  ;;  %v3764_v63 = vpop.f32.mrb[70].mxu1  ;;  %v3653_v0 = vpop.f32.mrb[71].mxu0 }
 0x18e   : > { %v1674_v56 = vadd.f32 %v3651_v48, %v4580_v17  ;;  %v3654_v2 = vadd.f32 %v3653_v0, %v3652_v54  ;;  %v3765_v6 = vpop.f32.mrb[71].mxu1 }
 0x18f   : > { %v3766_v7 = vadd.f32 %v3765_v6, %v3764_v63 }
 0x190   : > { %v2188_v8 = vadd.f32 %v3763_v62, %v1674_v56  ;;  %v1675_v14 = vadd.f32 %v3654_v2, %v4585_v23 }
 0x192   : > { %v4662_v61 = vadd.f32 %v3766_v7, %v1675_v14  ;;  %v3655_v24 = vpop.f32.mrb[72].mxu0 }
 0x193   : > { %v3767_v32 = vpop.f32.mrb[72].mxu1  ;;  %v3656_v34 = vpop.f32.mrb[73].mxu0 }
 0x194   : > { %v3657_v35 = vadd.f32 %v3656_v34, %v3655_v24  ;;  %v3768_v36 = vpop.f32.mrb[73].mxu1  ;;  %v3658_v37 = vpop.f32.mrb[74].mxu0 }
 0x195   : > { %v3769_v38 = vadd.f32 %v3768_v36, %v3767_v32  ;;  %v3770_v49 = vpop.f32.mrb[74].mxu1  ;;  %v3659_v55 = vpop.f32.mrb[75].mxu0 }
 0x196   : > { %v1676_v59 = vadd.f32 %v3657_v35, %v4588_v39  ;;  %v3771_v17 = vpop.f32.mrb[75].mxu1  ;;  %v3660_v4 = vadd.f32 %v3659_v55, %v3658_v37 }
 0x197   : > { %v3772_v5 = vadd.f32 %v3771_v17, %v3770_v49 }
 0x198   : > { %v2190_v10 = vadd.f32 %v3769_v38, %v1676_v59  ;;  %v1677_v11 = vadd.f32 %v3660_v4, %v4593_v47 }
 0x19a   : > { %v3661_v23 = vpop.f32.mrb[76].mxu0  ;;  %v4666_v12 = vadd.f32 %v3772_v5, %v1677_v11 }
 0x19b   : > { %v3773_v26 = vpop.f32.mrb[76].mxu1  ;;  %v3662_v40 = vpop.f32.mrb[77].mxu0 }
 0x19c   : > { %v3663_v41 = vadd.f32 %v3662_v40, %v3661_v23  ;;  %v3774_v42 = vpop.f32.mrb[77].mxu1  ;;  %v3664_v48 = vpop.f32.mrb[78].mxu0 }
 0x19d   : > { %v3775_v52 = vadd.f32 %v3774_v42, %v3773_v26  ;;  %v3776_v54 = vpop.f32.mrb[78].mxu1  ;;  %v3665_v62 = vpop.f32.mrb[79].mxu0 }
 0x19e   : > { %v1678_v63 = vadd.f32 %v3663_v41, %v4598_v13  ;;  %v3666_v39 = vadd.f32 %v3665_v62, %v3664_v48  ;;  %v3777_v0 = vpop.f32.mrb[79].mxu1  ;;  %v4677_v13 = vld [vmem:[%s5478_s2] ss:$0 sm:$0xff] }
 0x19f   : > { %v3778_v56 = vadd.f32 %v3777_v0, %v3776_v54  ;;  %v4682_v17 = vadd.f32 %v4677_v13, %v4658_v27  ;;  %v4688_v5 = vadd.f32 %v4677_v13, %v4655_v20  ;;  %v4692_v23 = vadd.f32 %v4677_v13, %v2188_v8 }
 0x1a0   : > { %v4669_v2 = vadd.f32 %v3775_v52, %v1678_v63  ;;  %v1679_v47 = vadd.f32 %v3666_v39, %v4602_v19  ;;  %v4706_v39 = vadd.f32 %v4677_v13, %v4662_v61 }
 0x1a1   : > { %v2299_v27 = vmul.f32 %v4682_v17, %v4682_v17  ;;  %v2298_v20 = vmul.f32 %v4688_v5, %v4688_v5  ;;  %v2300_v63 = vmul.f32 %v4692_v23, %v4692_v23 }
 0x1a2   : > { %v4672_v6 = vadd.f32 %v3778_v56, %v1679_v47  ;;  %v3667_v7 = vpop.f32.mrb[80].mxu0 }
 0x1a3   : > { %v3779_v14 = vpop.f32.mrb[80].mxu1  ;;  %v3668_v24 = vpop.f32.mrb[81].mxu0 }
 0x1a4   : > { %v3669_v32 = vadd.f32 %v3668_v24, %v3667_v7  ;;  %v3780_v34 = vpop.f32.mrb[81].mxu1  ;;  %v3670_v35 = vpop.f32.mrb[82].mxu0  ;;  %v2330_v24 = vadd.f32 %v2299_v27, %v2298_v20 }
 0x1a5   : > { %v3781_v36 = vadd.f32 %v3780_v34, %v3779_v14  ;;  %v3782_v37 = vpop.f32.mrb[82].mxu1  ;;  %v3671_v38 = vpop.f32.mrb[83].mxu0 }
 0x1a6   : > { %v1680_v49 = vadd.f32 %v3669_v32, %v4606_v29  ;;  %v3783_v55 = vpop.f32.mrb[83].mxu1  ;;  %v3672_v19 = vadd.f32 %v3671_v38, %v3670_v35  ;;  %v4711_v32 = vadd.f32 %v4677_v13, %v2190_v10  ;;  %v4723_v10 = vadd.f32 %v4677_v13, %v4666_v12 }
 0x1a7   : > { %v3784_v59 = vadd.f32 %v3783_v55, %v3782_v37  ;;  %v2301_v37 = vmul.f32 %v4706_v39, %v4706_v39 }
 0x1a8   : > { %v4684_v4 = vadd.f32 %v3781_v36, %v1680_v49  ;;  %v1681_v11 = vadd.f32 %v3672_v19, %v4608_v53  ;;  %v2257_v53 = vadd.f32 %v4682_v17, %v4688_v5  ;;  %v2331_v36 = vadd.f32 %v2330_v24, %v2300_v63 }
 0x1a9   : > { %v2302_v19 = vmul.f32 %v4711_v32, %v4711_v32 }
 0x1aa   : > { %v3673_v26 = vpop.f32.mrb[84].mxu0  ;;  %v4694_v29 = vadd.f32 %v3784_v59, %v1681_v11  ;;  %v2258_v7 = vadd.f32 %v2257_v53, %v4692_v23 }
 0x1ab   : > { %v3785_v40 = vpop.f32.mrb[84].mxu1  ;;  %v3674_v41 = vpop.f32.mrb[85].mxu0 }
 0x1ac   : > { %v3675_v42 = vadd.f32 %v3674_v41, %v3673_v26  ;;  %v3786_v48 = vpop.f32.mrb[85].mxu1  ;;  %v3676_v52 = vpop.f32.mrb[86].mxu0 }
 0x1ad   : > { %v3787_v54 = vadd.f32 %v3786_v48, %v3785_v40  ;;  %v3788_v8 = vpop.f32.mrb[86].mxu1  ;;  %v3677_v62 = vpop.f32.mrb[87].mxu0  ;;  %v4728_v48 = vadd.f32 %v4677_v13, %v4669_v2  ;;  %v4739_v2 = vadd.f32 %v4677_v13, %v4672_v6 }
 0x1ae   : > { %v1682_v0 = vadd.f32 %v3675_v42, %v4610_v15  ;;  %v3678_v56 = vadd.f32 %v3677_v62, %v3676_v52  ;;  %v3789_v47 = vpop.f32.mrb[87].mxu1  ;;  %v2259_v15 = vadd.f32 %v2258_v7, %v4706_v39  ;;  %v2332_v42 = vadd.f32 %v2331_v36, %v2301_v37 }
 0x1af   : > { %v3790_v14 = vadd.f32 %v3789_v47, %v3788_v8  ;;  %v2303_v8 = vmul.f32 %v4723_v10, %v4723_v10  ;;  %v4744_v36 = vadd.f32 %v4677_v13, %v4684_v4  ;;  %v2305_v6 = vmul.f32 %v4739_v2, %v4739_v2 }
 0x1b0   : > { %v2196_v34 = vadd.f32 %v3787_v54, %v1682_v0  ;;  %v1683_v35 = vadd.f32 %v3678_v56, %v4612_v22  ;;  %v2260_v26 = vadd.f32 %v2259_v15, %v4711_v32  ;;  %v2333_v12 = vadd.f32 %v2332_v42, %v2302_v19 }
 0x1b1   : > { %v2304_v56 = vmul.f32 %v4728_v48, %v4728_v48  ;;  %v2306_v4 = vmul.f32 %v4744_v36, %v4744_v36 }
 0x1b2   : > { %v4716_v61 = vadd.f32 %v3790_v14, %v1683_v35  ;;  %v3679_v38 = vpop.f32.mrb[88].mxu0  ;;  %v2261_v63 = vadd.f32 %v2260_v26, %v4723_v10  ;;  %v2334_v35 = vadd.f32 %v2333_v12, %v2303_v8 }
 0x1b3   : > { %v3791_v49 = vpop.f32.mrb[88].mxu1  ;;  %v3680_v55 = vpop.f32.mrb[89].mxu0 }
 0x1b4   : > { %v3681_v59 = vadd.f32 %v3680_v55, %v3679_v38  ;;  %v3792_v22 = vpop.f32.mrb[89].mxu1  ;;  %v3682_v11 = vpop.f32.mrb[90].mxu0  ;;  %v2262_v47 = vadd.f32 %v2261_v63, %v4728_v48  ;;  %v2335_v19 = vadd.f32 %v2334_v35, %v2304_v56  ;;  %v4768_v35 = vadd.f32 %v4677_v13, %v4716_v61 }
 0x1b5   : > { %v3793_v40 = vadd.f32 %v3792_v22, %v3791_v49  ;;  %v3794_v41 = vpop.f32.mrb[90].mxu1  ;;  %v3683_v27 = vpop.f32.mrb[91].mxu0 }
 0x1b6   : > { %v1684_v52 = vadd.f32 %v3681_v59, %v4614_v46  ;;  %v3795_v20 = vpop.f32.mrb[91].mxu1  ;;  %v3684_v53 = vadd.f32 %v3683_v27, %v3682_v11  ;;  %v2263_v26 = vadd.f32 %v2262_v47, %v4739_v2 }
 0x1b7   : > { %v3796_v54 = vadd.f32 %v3795_v20, %v3794_v41  ;;  %v4754_v41 = vadd.f32 %v4677_v13, %v4694_v29  ;;  %v2336_v20 = vadd.f32 %v2335_v19, %v2305_v6 }
 0x1b8   : > { %v2198_v62 = vadd.f32 %v3793_v40, %v1684_v52  ;;  %v1685_v0 = vadd.f32 %v3684_v53, %v4616_v50  ;;  %v2264_v52 = vadd.f32 %v2263_v26, %v4744_v36 }
 0x1b9   : > { %v2337_v63 = vadd.f32 %v2336_v20, %v2306_v4 }
 0x1ba   : > { %v3685_v46 = vpop.f32.mrb[92].mxu0  ;;  %v2199_v7 = vadd.f32 %v3796_v54, %v1685_v0  ;;  %v2307_v0 = vmul.f32 %v4754_v41, %v4754_v41  ;;  %v2265_v47 = vadd.f32 %v2264_v52, %v4754_v41  ;;  %v4773_v19 = vadd.f32 %v4677_v13, %v2198_v62 }
 0x1bb   : > { %v3797_v14 = vpop.f32.mrb[92].mxu1  ;;  %v3686_v24 = vpop.f32.mrb[93].mxu0 }
 0x1bc   : > { %v3687_v37 = vadd.f32 %v3686_v24, %v3685_v46  ;;  %v3798_v50 = vpop.f32.mrb[93].mxu1  ;;  %v3688_v38 = vpop.f32.mrb[94].mxu0  ;;  %v4782_v52 = vadd.f32 %v4677_v13, %v2199_v7 }
 0x1bd   : > { %v3799_v15 = vadd.f32 %v3798_v50, %v3797_v14  ;;  %v3800_v49 = vpop.f32.mrb[94].mxu1  ;;  %v3689_v55 = vpop.f32.mrb[95].mxu0 }
 0x1be   : > { %v1686_v59 = vadd.f32 %v3687_v37, %v4618_v18  ;;  %v3690_v22 = vadd.f32 %v3689_v55, %v3688_v38  ;;  %v3801_v11 = vpop.f32.mrb[95].mxu1  ;;  %v4759_v18 = vadd.f32 %v4677_v13, %v2196_v34  ;;  %v2338_v55 = vadd.f32 %v2337_v63, %v2307_v0 }
 0x1bf   : > { %v3802_v40 = vadd.f32 %v3801_v11, %v3800_v49  ;;  %v2309_v11 = vmul.f32 %v4768_v35, %v4768_v35  ;;  %v2311_v7 = vmul.f32 %v4782_v52, %v4782_v52 }
 0x1c0   : > { %v2200_v27 = vadd.f32 %v3799_v15, %v1686_v59  ;;  %v1687_v42 = vadd.f32 %v3690_v22, %v4620_v21  ;;  %v2308_v34 = vmul.f32 %v4759_v18, %v4759_v18  ;;  %v2266_v38 = vadd.f32 %v2265_v47, %v4759_v18 }
 0x1c2   : > { %v2201_v53 = vadd.f32 %v3802_v40, %v1687_v42  ;;  %v3691_v54 = vpop.f32.mrb[96].mxu0  ;;  %v2339_v22 = vadd.f32 %v2338_v55, %v2308_v34  ;;  %v2267_v26 = vadd.f32 %v2266_v38, %v4768_v35  ;;  %v2310_v42 = vmul.f32 %v4773_v19, %v4773_v19 }
 0x1c3   : > { %v3803_v12 = vpop.f32.mrb[96].mxu1  ;;  %v3692_v8 = vpop.f32.mrb[97].mxu0 }
 0x1c4   : > { %v3693_v56 = vadd.f32 %v3692_v8, %v3691_v54  ;;  %v3804_v29 = vpop.f32.mrb[97].mxu1  ;;  %v3694_v46 = vpop.f32.mrb[98].mxu0  ;;  %v2340_v0 = vadd.f32 %v2339_v22, %v2309_v11 }
 0x1c5   : > { %v3805_v21 = vadd.f32 %v3804_v29, %v3803_v12  ;;  %v3806_v14 = vpop.f32.mrb[98].mxu1  ;;  %v3695_v24 = vpop.f32.mrb[99].mxu0 }
 0x1c6   : > { %v1688_v37 = vadd.f32 %v3693_v56, %v4622_v28  ;;  %v3807_v50 = vpop.f32.mrb[99].mxu1  ;;  %v3696_v15 = vadd.f32 %v3695_v24, %v3694_v46  ;;  %v4786_v56 = vadd.f32 %v4677_v13, %v2200_v27  ;;  %v4796_v27 = vadd.f32 %v4677_v13, %v2201_v53 }
 0x1c7   : > { %v3808_v49 = vadd.f32 %v3807_v50, %v3806_v14  ;;  %v2341_v14 = vadd.f32 %v2340_v0, %v2310_v42 }
 0x1c8   : > { %v2202_v6 = vadd.f32 %v3805_v21, %v1688_v37  ;;  %v1689_v59 = vadd.f32 %v3696_v15, %v4624_v57  ;;  %v2268_v57 = vadd.f32 %v2267_v26, %v4773_v19  ;;  %v2312_v50 = vmul.f32 %v4786_v56, %v4786_v56 }
 0x1c9   : > { %v2313_v53 = vmul.f32 %v4796_v27, %v4796_v27 }
 0x1ca   : > { %v3697_v61 = vpop.f32.mrb[100].mxu0  ;;  %v2203_v28 = vadd.f32 %v3808_v49, %v1689_v59  ;;  %v2269_v37 = vadd.f32 %v2268_v57, %v4782_v52  ;;  %v2342_v59 = vadd.f32 %v2341_v14, %v2311_v7  ;;  %v4800_v22 = vadd.f32 %v4677_v13, %v2202_v6 }
 0x1cb   : > { %v3809_v40 = vpop.f32.mrb[100].mxu1  ;;  %v3698_v4 = vpop.f32.mrb[101].mxu0 }
 0x1cc   : > { %v3699_v62 = vadd.f32 %v3698_v4, %v3697_v61  ;;  %v3810_v20 = vpop.f32.mrb[101].mxu1  ;;  %v3700_v54 = vpop.f32.mrb[102].mxu0  ;;  %v2270_v15 = vadd.f32 %v2269_v37, %v4786_v56  ;;  %v2343_v42 = vadd.f32 %v2342_v59, %v2312_v50  ;;  %v2314_v6 = vmul.f32 %v4800_v22, %v4800_v22 }
 0x1cd   : > { %v3811_v12 = vadd.f32 %v3810_v20, %v3809_v40  ;;  %v3812_v8 = vpop.f32.mrb[102].mxu1  ;;  %v3701_v63 = vpop.f32.mrb[103].mxu0 }
 0x1ce   : > { %v1690_v29 = vadd.f32 %v3699_v62, %v4626_v25  ;;  %v3702_v46 = vadd.f32 %v3701_v63, %v3700_v54  ;;  %v3813_v47 = vpop.f32.mrb[103].mxu1  ;;  %v2271_v54 = vadd.f32 %v2270_v15, %v4796_v27 }
 0x1cf   : > { %v3814_v21 = vadd.f32 %v3813_v47, %v3812_v8  ;;  %v4809_v8 = vadd.f32 %v4677_v13, %v2203_v28 }
 0x1d0   : > { %v2204_v24 = vadd.f32 %v3811_v12, %v1690_v29  ;;  %v1691_v34 = vadd.f32 %v3702_v46, %v4628_v31  ;;  %v2272_v0 = vadd.f32 %v2271_v54, %v4800_v22  ;;  %v2344_v46 = vadd.f32 %v2343_v42, %v2313_v53 }
 0x1d1   : > { %v2315_v37 = vmul.f32 %v4809_v8, %v4809_v8 }
 0x1d2   : > { %v2205_v38 = vadd.f32 %v3814_v21, %v1691_v34  ;;  %v3703_v25 = vpop.f32.mrb[104].mxu0  ;;  %v4814_v47 = vadd.f32 %v4677_v13, %v2204_v24  ;;  %v2345_v34 = vadd.f32 %v2344_v46, %v2314_v6  ;;  %v2273_v15 = vadd.f32 %v2272_v0, %v4809_v8 }
 0x1d3   : > { %v3815_v49 = vpop.f32.mrb[104].mxu1  ;;  %v3704_v55 = vpop.f32.mrb[105].mxu0 }
 0x1d4   : > { %v3705_v11 = vadd.f32 %v3704_v55, %v3703_v25  ;;  %v3816_v31 = vpop.f32.mrb[105].mxu1  ;;  %v3706_v61 = vpop.f32.mrb[106].mxu0  ;;  %v2316_v24 = vmul.f32 %v4814_v47, %v4814_v47  ;;  %v4822_v59 = vadd.f32 %v4677_v13, %v2205_v38 }
 0x1d5   : > { %v3817_v26 = vadd.f32 %v3816_v31, %v3815_v49  ;;  %v3818_v40 = vpop.f32.mrb[106].mxu1  ;;  %v3707_v4 = vpop.f32.mrb[107].mxu0 }
 0x1d6   : > { %v1692_v62 = vadd.f32 %v3705_v11, %v4630_v60  ;;  %v3819_v20 = vpop.f32.mrb[107].mxu1  ;;  %v3708_v57 = vadd.f32 %v3707_v4, %v3706_v61  ;;  %v2346_v4 = vadd.f32 %v2345_v34, %v2315_v37  ;;  %v2317_v54 = vmul.f32 %v4822_v59, %v4822_v59 }
 0x1d7   : > { %v3820_v12 = vadd.f32 %v3819_v20, %v3818_v40 }
 0x1d8   : > { %v2206_v63 = vadd.f32 %v3817_v26, %v1692_v62  ;;  %v1693_v29 = vadd.f32 %v3708_v57, %v4632_v3  ;;  %v2274_v26 = vadd.f32 %v2273_v15, %v4814_v47  ;;  %v2347_v20 = vadd.f32 %v2346_v4, %v2316_v24 }
 0x1da   : > { %v3709_v60 = vpop.f32.mrb[108].mxu0  ;;  %v2207_v21 = vadd.f32 %v3820_v12, %v1693_v29  ;;  %v4827_v42 = vadd.f32 %v4677_v13, %v2206_v63  ;;  %v2348_v37 = vadd.f32 %v2347_v20, %v2317_v54 }
 0x1db   : > { %v3821_v14 = vpop.f32.mrb[108].mxu1  ;;  %v3710_v7 = vpop.f32.mrb[109].mxu0 }
 0x1dc   : > { %v3711_v50 = vadd.f32 %v3710_v7, %v3709_v60  ;;  %v3822_v28 = vpop.f32.mrb[109].mxu1  ;;  %v3712_v25 = vpop.f32.mrb[110].mxu0  ;;  %v2318_v0 = vmul.f32 %v4827_v42, %v4827_v42  ;;  %v4836_v29 = vadd.f32 %v4677_v13, %v2207_v21 }
 0x1dd   : > { %v3823_v49 = vadd.f32 %v3822_v28, %v3821_v14  ;;  %v3824_v55 = vpop.f32.mrb[110].mxu1  ;;  %v3713_v3 = vpop.f32.mrb[111].mxu0 }
 0x1de   : > { %v1694_v11 = vadd.f32 %v3711_v50, %v4634_v43  ;;  %v3714_v31 = vadd.f32 %v3713_v3, %v3712_v25  ;;  %v3825_v61 = vpop.f32.mrb[111].mxu1  ;;  %v2275_v43 = vadd.f32 %v2274_v26, %v4822_v59  ;;  %v2319_v21 = vmul.f32 %v4836_v29, %v4836_v29 }
 0x1df   : > { %v3826_v40 = vadd.f32 %v3825_v61, %v3824_v55  ;;  %v2349_v55 = vadd.f32 %v2348_v37, %v2318_v0 }
 0x1e0   : > { %v2208_v53 = vadd.f32 %v3823_v49, %v1694_v11  ;;  %v1695_v62 = vadd.f32 %v3714_v31, %v4636_v45  ;;  %v2276_v45 = vadd.f32 %v2275_v43, %v4827_v42 }
 0x1e2   : > { %v2209_v38 = vadd.f32 %v3826_v40, %v1695_v62  ;;  %v3715_v57 = vpop.f32.mrb[112].mxu0  ;;  %v4840_v50 = vadd.f32 %v4677_v13, %v2208_v53  ;;  %v2277_v24 = vadd.f32 %v2276_v45, %v4836_v29  ;;  %v2350_v62 = vadd.f32 %v2349_v55, %v2319_v21 }
 0x1e3   : > { %v3827_v12 = vpop.f32.mrb[112].mxu1  ;;  %v3716_v6 = vpop.f32.mrb[113].mxu0 }
 0x1e4   : > { %v3717_v63 = vadd.f32 %v3716_v6, %v3715_v57  ;;  %v3828_v46 = vpop.f32.mrb[113].mxu1  ;;  %v3718_v60 = vpop.f32.mrb[114].mxu0  ;;  %v2320_v31 = vmul.f32 %v4840_v50, %v4840_v50  ;;  %v4850_v61 = vadd.f32 %v4677_v13, %v2209_v38 }
 0x1e5   : > { %v3829_v14 = vadd.f32 %v3828_v46, %v3827_v12  ;;  %v3830_v7 = vpop.f32.mrb[114].mxu1  ;;  %v3719_v34 = vpop.f32.mrb[115].mxu0 }
 0x1e6   : > { %v1696_v28 = vadd.f32 %v3717_v63, %v4638_v9  ;;  %v3831_v25 = vpop.f32.mrb[115].mxu1  ;;  %v3720_v15 = vadd.f32 %v3719_v34, %v3718_v60  ;;  %v2278_v9 = vadd.f32 %v2277_v24, %v4840_v50  ;;  %v2351_v0 = vadd.f32 %v2350_v62, %v2320_v31 }
 0x1e7   : > { %v3832_v49 = vadd.f32 %v3831_v25, %v3830_v7  ;;  %v2321_v38 = vmul.f32 %v4850_v61, %v4850_v61 }
 0x1e8   : > { %v2210_v3 = vadd.f32 %v3829_v14, %v1696_v28  ;;  %v1697_v11 = vadd.f32 %v3720_v15, %v4640_v16  ;;  %v2279_v45 = vadd.f32 %v2278_v9, %v4850_v61 }
 0x1e9   : > { %v2352_v15 = vadd.f32 %v2351_v0, %v2321_v38 }
 0x1ea   : > { %v3721_v26 = vpop.f32.mrb[116].mxu0  ;;  %v2211_v40 = vadd.f32 %v3832_v49, %v1697_v11  ;;  %v4854_v20 = vadd.f32 %v4677_v13, %v2210_v3 }
 0x1eb   : > { %v3833_v4 = vpop.f32.mrb[116].mxu1  ;;  %v3722_v53 = vpop.f32.mrb[117].mxu0 }
 0x1ec   : > { %v3723_v54 = vadd.f32 %v3722_v53, %v3721_v26  ;;  %v3834_v57 = vpop.f32.mrb[117].mxu1  ;;  %v3724_v43 = vpop.f32.mrb[118].mxu0  ;;  %v2322_v7 = vmul.f32 %v4854_v20, %v4854_v20  ;;  %v4863_v34 = vadd.f32 %v4677_v13, %v2211_v40  ;;  %v2280_v25 = vadd.f32 %v2279_v45, %v4854_v20 }
 0x1ed   : > { %v3835_v16 = vadd.f32 %v3834_v57, %v3833_v4  ;;  %v3836_v12 = vpop.f32.mrb[118].mxu1  ;;  %v3725_v6 = vpop.f32.mrb[119].mxu0 }
 0x1ee   : > { %v1698_v63 = vadd.f32 %v3723_v54, %v4642_v58  ;;  %v3726_v46 = vadd.f32 %v3725_v6, %v3724_v43  ;;  %v3837_v60 = vpop.f32.mrb[119].mxu1  ;;  %v2353_v24 = vadd.f32 %v2352_v15, %v2322_v7  ;;  %v2323_v11 = vmul.f32 %v4863_v34, %v4863_v34 }
 0x1ef   : > { %v3838_v14 = vadd.f32 %v3837_v60, %v3836_v12  ;;  %v2281_v40 = vadd.f32 %v2280_v25, %v4863_v34 }
 0x1f0   : > { %v2212_v37 = vadd.f32 %v3835_v16, %v1698_v63  ;;  %v1699_v28 = vadd.f32 %v3726_v46, %v4644_v1  ;;  %v2354_v6 = vadd.f32 %v2353_v24, %v2323_v11 }
 0x1f2   : > { %v4868_v49 = vadd.f32 %v4677_v13, %v2212_v37  ;;  %v2213_v58 = vadd.f32 %v3838_v14, %v1699_v28  ;;  %v3727_v55 = vpop.f32.mrb[120].mxu0 }
 0x1f3   : > { %v3839_v21 = vpop.f32.mrb[120].mxu1  ;;  %v3728_v3 = vpop.f32.mrb[121].mxu0 }
 0x1f4   : > { %v3729_v31 = vadd.f32 %v3728_v3, %v3727_v55  ;;  %v3840_v26 = vpop.f32.mrb[121].mxu1  ;;  %v3730_v9 = vpop.f32.mrb[122].mxu0  ;;  %v2324_v62 = vmul.f32 %v4868_v49, %v4868_v49  ;;  %v4876_v54 = vadd.f32 %v4677_v13, %v2213_v58  ;;  %v2282_v0 = vadd.f32 %v2281_v40, %v4868_v49 }
 0x1f5   : > { %v3841_v1 = vadd.f32 %v3840_v26, %v3839_v21  ;;  %v3842_v4 = vpop.f32.mrb[122].mxu1  ;;  %v3731_v53 = vpop.f32.mrb[123].mxu0 }
 0x1f6   : > { %v1700_v57 = vadd.f32 %v3729_v31, %v4646_v44  ;;  %v3732_v43 = vadd.f32 %v3731_v53, %v3730_v9  ;;  %v3843_v16 = vpop.f32.mrb[123].mxu1  ;;  %v2355_v46 = vadd.f32 %v2354_v6, %v2324_v62  ;;  %v2325_v60 = vmul.f32 %v4876_v54, %v4876_v54 }
 0x1f7   : > { %v3844_v12 = vadd.f32 %v3843_v16, %v3842_v4  ;;  %v2283_v55 = vadd.f32 %v2282_v0, %v4876_v54 }
 0x1f8   : > { %v2214_v38 = vadd.f32 %v3841_v1, %v1700_v57  ;;  %v1701_v63 = vadd.f32 %v3732_v43, %v4648_v51  ;;  %v2356_v40 = vadd.f32 %v2355_v46, %v2325_v60 }
 0x1fa   : > { %v4884_v45 = vadd.f32 %v4677_v13, %v2214_v38  ;;  %v2215_v14 = vadd.f32 %v3844_v12, %v1701_v63  ;;  %v3733_v7 = vpop.f32.mrb[124].mxu0 }
 0x1fb   : > { %v3845_v37 = vpop.f32.mrb[124].mxu1  ;;  %v3734_v44 = vpop.f32.mrb[125].mxu0 }
 0x1fc   : > { %v2326_v28 = vmul.f32 %v4884_v45, %v4884_v45  ;;  %v4889_v25 = vadd.f32 %v4677_v13, %v2215_v14  ;;  %v3735_v15 = vadd.f32 %v3734_v44, %v3733_v7  ;;  %v3846_v58 = vpop.f32.mrb[125].mxu1  ;;  %v3736_v51 = vpop.f32.mrb[126].mxu0  ;;  %v2284_v9 = vadd.f32 %v2283_v55, %v4884_v45 }
 0x1fd   : > { %v3847_v21 = vadd.f32 %v3846_v58, %v3845_v37  ;;  %v3848_v3 = vpop.f32.mrb[126].mxu1  ;;  %v3737_v24 = vpop.f32.mrb[127].mxu0 }
 0x1fe   : > { %v1702_v11 = vadd.f32 %v3735_v15, %v4650_v30  ;;  %v3738_v31 = vadd.f32 %v3737_v24, %v3736_v51  ;;  %v3849_v26 = vpop.f32.mrb[127].mxu1  ;;  %v2327_v62 = vmul.f32 %v4889_v25, %v4889_v25  ;;  %v2357_v57 = vadd.f32 %v2356_v40, %v2326_v28 }
 0x1ff   : > { %v3850_v1 = vadd.f32 %v3849_v26, %v3848_v3  ;;  %v2285_v12 = vadd.f32 %v2284_v9, %v4889_v25 }
 0x200   : > { %v2216_v4 = vadd.f32 %v3847_v21, %v1702_v11  ;;  %v1703_v53 = vadd.f32 %v3738_v31, %v4652_v33  ;;  %v2358_v38 = vadd.f32 %v2357_v57, %v2327_v62 }
 0x202   : > { %v4898_v43 = vadd.f32 %v4677_v13, %v2216_v4  ;;  %v2217_v16 = vadd.f32 %v3850_v1, %v1703_v53 }
 0x204   : > { %v4902_v30 = vadd.f32 %v4677_v13, %v2217_v16  ;;  %v2286_v6 = vadd.f32 %v2285_v12, %v4898_v43  ;;  %v2328_v0 = vmul.f32 %v4898_v43, %v4898_v43 }
 0x206   : > { %v2287_v33 = vadd.f32 %v2286_v6, %v4902_v30  ;;  %v2329_v63 = vmul.f32 %v4902_v30, %v4902_v30  ;;  %v2359_v46 = vadd.f32 %v2358_v38, %v2328_v0 }
 0x208   : > { %2288 = vadd.xlane.f32.xlu0 %v2287_v33  ;;  %v2360_v60 = vadd.f32 %v2359_v46, %v2329_v63 }
 0x20c   : > { %2361 = vadd.xlane.f32.xlu0 %v2360_v60 }
 0x295   : > { %v2289_v14 = vpop.xlane.xlu0 %2288 }
 0x296   : > { %v2290_v7 = vrot.slane %v2289_v14, 4 }
 0x298   : > { %v2291_v37 = vadd.f32 %v2290_v7, %v2289_v14 }
 0x299   : > { %v2362_v13 = vpop.xlane.xlu0 %2361 }
 0x29a   : > { %v2292_v44 = vrot.slane %v2291_v37, 2  ;;  %v2363_v28 = vrot.slane %v2362_v13, 4 }
 0x29c   : > { %v2364_v15 = vadd.f32 %v2363_v28, %v2362_v13  ;;  %v2293_v58 = vadd.f32 %v2292_v44, %v2291_v37 }
 0x29e   : > { %v2365_v51 = vrot.slane %v2364_v15, 2  ;;  %v2294_v55 = vrot.slane %v2293_v58, 1 }
 0x2a0   : > { %v2366_v21 = vadd.f32 %v2365_v51, %v2364_v15  ;;  %v2295_v3 = vadd.f32 %v2294_v55, %v2293_v58  ;;  %v2441_v15 = vld [vmem:[%s5479_s3] sm:$0xff]  ;;  %v2442_v58 = vld [vmem:[%s5479_s3 + $0x8] sm:$0xff]  ;;  %v2443_v51 = vld [vmem:[%s5479_s3 + $0x10] sm:$0xff] }
 0x2a1   : > { %v2444_v55 = vld [vmem:[%s5479_s3 + $0x18] sm:$0xff] }
 0x2a2   : > { %3852 = vpush %v2295_v3  ;;  %v2367_v24 = vrot.slane %v2366_v21, 1 }
 0x2a4   : > { %v2368_v11 = vadd.f32 %v2367_v24, %v2366_v21 }
 0x2a6   : > { %3854 = vpush %v2368_v11 }
 0x2d3   : > { %s3853_s16 = spop %3852 }
 0x2d4   : > { %v2297_v31 = vstv %s3853_s16 }
 0x2d5   : > { %v4910_v26 = vmul.f32 3.0517578e-05, %v2297_v31  ;;  %v2445_v31 = vld [vmem:[%s5479_s3 + $0x20] sm:$0xff] }
 0x2d7   : > { %s3855_s17 = spop %3854  ;;  %v2373_v1 = vmul.f32 %v4910_v26, %v4910_v26  ;;  %v2375_v62 = vsub.f32 %v4688_v5, %v4910_v26  ;;  %v2376_v57 = vsub.f32 %v4682_v17, %v4910_v26  ;;  %v2377_v16 = vsub.f32 %v4692_v23, %v4910_v26 }
 0x2d8   : > { %v2370_v9 = vstv %s3855_s17  ;;  %v2378_v12 = vsub.f32 %v4706_v39, %v4910_v26  ;;  %v2379_v6 = vsub.f32 %v4711_v32, %v4910_v26  ;;  %v2380_v0 = vsub.f32 %v4723_v10, %v4910_v26 }
 0x2d9   : > { %v2372_v40 = vmul.f32 3.0517578e-05, %v2370_v9  ;;  %v2381_v38 = vsub.f32 %v4728_v48, %v4910_v26  ;;  %v2382_v5 = vsub.f32 %v4739_v2, %v4910_v26  ;;  %v2383_v17 = vsub.f32 %v4744_v36, %v4910_v26  ;;  %v2447_v9 = vld [vmem:[%s5479_s3 + $0x30] sm:$0xff] }
 0x2da   : > { %v2384_v23 = vsub.f32 %v4754_v41, %v4910_v26  ;;  %v2385_v39 = vsub.f32 %v4759_v18, %v4910_v26  ;;  %v2386_v32 = vsub.f32 %v4768_v35, %v4910_v26  ;;  %v2387_v10 = vsub.f32 %v4773_v19, %v4910_v26 }
 0x2db   : > { %v2374_v4 = vsub.f32 %v2372_v40, %v2373_v1  ;;  %v2388_v48 = vsub.f32 %v4782_v52, %v4910_v26  ;;  %v2389_v2 = vsub.f32 %v4786_v56, %v4910_v26  ;;  %v2390_v36 = vsub.f32 %v4796_v27, %v4910_v26  ;;  %v2448_v40 = vld [vmem:[%s5479_s3 + $0x38] sm:$0xff] }
 0x2dc   : > { %v2391_v41 = vsub.f32 %v4800_v22, %v4910_v26  ;;  %v2392_v18 = vsub.f32 %v4809_v8, %v4910_v26  ;;  %v2393_v35 = vsub.f32 %v4814_v47, %v4910_v26  ;;  %v2394_v19 = vsub.f32 %v4822_v59, %v4910_v26 }
 0x2dd   : > { %v2407_v53 = vadd.f32 1e-05, %v2374_v4  ;;  %v2395_v52 = vsub.f32 %v4827_v42, %v4910_v26  ;;  %v2396_v56 = vsub.f32 %v4836_v29, %v4910_v26  ;;  %v2397_v27 = vsub.f32 %v4840_v50, %v4910_v26 }
 0x2de   : > { %v2398_v22 = vsub.f32 %v4850_v61, %v4910_v26  ;;  %v2399_v8 = vsub.f32 %v4854_v20, %v4910_v26  ;;  %v2400_v47 = vsub.f32 %v4863_v34, %v4910_v26  ;;  %v2401_v59 = vsub.f32 %v4868_v49, %v4910_v26 }
 0x2df   : > { %4030 = vrsqrt.f32 %v2407_v53  ;;  %v2402_v42 = vsub.f32 %v4876_v54, %v4910_v26  ;;  %v2403_v29 = vsub.f32 %v4884_v45, %v4910_v26  ;;  %v2404_v50 = vsub.f32 %v4889_v25, %v4910_v26 }
 0x2e0   : > { %v2405_v61 = vsub.f32 %v4898_v43, %v4910_v26  ;;  %v2406_v20 = vsub.f32 %v4902_v30, %v4910_v26  ;;  %v2446_v26 = vld [vmem:[%s5479_s3 + $0x28] sm:$0xff] }
 0x2e9   : > { %v4031_v33 = vpop.eup %4030 }
 0x2ea   : > { %v2409_v63 = vmul.f32 %v4031_v33, %v2375_v62  ;;  %v2410_v34 = vmul.f32 %v4031_v33, %v2376_v57  ;;  %v2411_v46 = vmul.f32 %v4031_v33, %v2377_v16  ;;  %v2412_v60 = vmul.f32 %v4031_v33, %v2378_v12  ;;  %v2449_v57 = vld [vmem:[%s5479_s3 + $0x40] sm:$0xff]  ;;  %v2450_v16 = vld [vmem:[%s5479_s3 + $0x48] sm:$0xff]  ;;  %v2451_v12 = vld [vmem:[%s5479_s3 + $0x50] sm:$0xff] }
 0x2eb   : > { %v2413_v49 = vmul.f32 %v4031_v33, %v2379_v6  ;;  %v2414_v14 = vmul.f32 %v4031_v33, %v2380_v0  ;;  %v2415_v7 = vmul.f32 %v4031_v33, %v2381_v38  ;;  %v2416_v54 = vmul.f32 %v4031_v33, %v2382_v5  ;;  %v2452_v6 = vld [vmem:[%s5479_s3 + $0x58] sm:$0xff] }
 0x2ec   : > { %v4978_v37 = vmul.f32 %v4031_v33, %v2383_v17  ;;  %v4980_v45 = vmul.f32 %v4031_v33, %v2384_v23  ;;  %v4982_v13 = vmul.f32 %v4031_v33, %v2385_v39  ;;  %v4984_v25 = vmul.f32 %v4031_v33, %v2386_v32  ;;  %v2453_v23 = vld [vmem:[%s5479_s3 + $0x60] sm:$0xff]  ;;  %v2454_v39 = vld [vmem:[%s5479_s3 + $0x68] sm:$0xff]  ;;  %v2455_v32 = vld [vmem:[%s5479_s3 + $0x70] sm:$0xff] }
 0x2ed   : > { %v4986_v43 = vmul.f32 %v4031_v33, %v2387_v10  ;;  %v4988_v44 = vmul.f32 %v4031_v33, %v2388_v48  ;;  %v4990_v30 = vmul.f32 %v4031_v33, %v2389_v2  ;;  %v4992_v28 = vmul.f32 %v4031_v33, %v2390_v36  ;;  %v2456_v10 = vld [vmem:[%s5479_s3 + $0x78] sm:$0xff] }
 0x2ee   : > { %v5006_v21 = vmul.f32 %v4031_v33, %v2391_v41  ;;  %v5008_v3 = vmul.f32 %v4031_v33, %v2392_v18  ;;  %v5010_v24 = vmul.f32 %v4031_v33, %v2393_v35  ;;  %v5012_v11 = vmul.f32 %v4031_v33, %v2394_v19  ;;  %v2457_v18 = vld [vmem:[%s5479_s3 + $0x80] sm:$0xff]  ;;  %v2458_v35 = vld [vmem:[%s5479_s3 + $0x88] sm:$0xff]  ;;  %v2459_v19 = vld [vmem:[%s5479_s3 + $0x90] sm:$0xff] }
 0x2ef   : > { %v5026_v1 = vmul.f32 %v4031_v33, %v2395_v52  ;;  %v5028_v4 = vmul.f32 %v4031_v33, %v2396_v56  ;;  %v5030_v53 = vmul.f32 %v4031_v33, %v2397_v27  ;;  %v5032_v62 = vmul.f32 %v4031_v33, %v2398_v22  ;;  %v2460_v52 = vld [vmem:[%s5479_s3 + $0x98] sm:$0xff]  ;;  %v2462_v56 = vld [vmem:[%s5479_s3 + $0xa8] sm:$0xff]  ;;  %v2463_v27 = vld [vmem:[%s5479_s3 + $0xb0] sm:$0xff] }
 0x2f0   : > { %v2433_v0 = vmul.f32 %v4031_v33, %v2399_v8  ;;  %v2434_v38 = vmul.f32 %v4031_v33, %v2400_v47  ;;  %v2435_v5 = vmul.f32 %v4031_v33, %v2401_v59  ;;  %v2436_v17 = vmul.f32 %v4031_v33, %v2402_v42  ;;  %v2464_v22 = vld [vmem:[%s5479_s3 + $0xb8] sm:$0xff] }
 0x2f1   : > { %5482 = vst [vmem:[#allocation2_spill] sm:$0xff] %v5032_v62  ;;  %v2437_v48 = vmul.f32 %v4031_v33, %v2403_v29  ;;  %v2438_v2 = vmul.f32 %v4031_v33, %v2404_v50  ;;  %v2439_v36 = vmul.f32 %v4031_v33, %v2405_v61  ;;  %v2440_v41 = vmul.f32 %v4031_v33, %v2406_v20  ;;  %v2461_v33 = vld [vmem:[%s5479_s3 + $0xa0] sm:$0xff]  ;;  %v2466_v50 = vld [vmem:[%s5479_s3 + $0xc8] sm:$0xff]  ;;  %v2467_v61 = vld [vmem:[%s5479_s3 + $0xd0] sm:$0xff] }
 0x2f2   : > { %v2473_v8 = vmul.f32 %v2441_v15, %v2409_v63  ;;  %v2474_v47 = vmul.f32 %v2442_v58, %v2410_v34  ;;  %v2475_v59 = vmul.f32 %v2443_v51, %v2411_v46  ;;  %v2476_v42 = vmul.f32 %v2444_v55, %v2412_v60  ;;  %v2465_v29 = vld [vmem:[%s5479_s3 + $0xc0] sm:$0xff]  ;;  %v2468_v20 = vld [vmem:[%s5479_s3 + $0xd8] sm:$0xff]  ;;  %v2470_v58 = vld [vmem:[%s5479_s3 + $0xe8] sm:$0xff] }
 0x2f3   : > { %v2477_v63 = vmul.f32 %v2445_v31, %v2413_v49  ;;  %v2478_v34 = vmul.f32 %v2446_v26, %v2414_v14  ;;  %v2479_v46 = vmul.f32 %v2447_v9, %v2415_v7  ;;  %v2480_v60 = vmul.f32 %v2448_v40, %v2416_v54  ;;  %v2469_v15 = vld [vmem:[%s5479_s3 + $0xe0] sm:$0xff]  ;;  %v2471_v51 = vld [vmem:[%s5479_s3 + $0xf0] sm:$0xff]  ;;  %v2472_v55 = vld [vmem:[%s5479_s3 + $0xf8] sm:$0xff] }
 0x2f4   : > { %v2481_v49 = vmul.f32 %v2449_v57, %v4978_v37  ;;  %v2482_v14 = vmul.f32 %v2450_v16, %v4980_v45  ;;  %v2483_v7 = vmul.f32 %v2451_v12, %v4982_v13  ;;  %v2484_v54 = vmul.f32 %v2452_v6, %v4984_v25  ;;  %v2505_v62 = vld [vmem:[%s5480_s4] sm:$0xff]  ;;  %v2506_v37 = vld [vmem:[%s5480_s4 + $0x8] sm:$0xff]  ;;  %v2507_v45 = vld [vmem:[%s5480_s4 + $0x10] sm:$0xff] }
 0x2f5   : > { %v2485_v31 = vmul.f32 %v2453_v23, %v4986_v43  ;;  %v2486_v26 = vmul.f32 %v2454_v39, %v4988_v44  ;;  %v2487_v9 = vmul.f32 %v2455_v32, %v4990_v30  ;;  %v2488_v40 = vmul.f32 %v2456_v10, %v4992_v28  ;;  %v2508_v13 = vld [vmem:[%s5480_s4 + $0x18] sm:$0xff]  ;;  %v2509_v28 = vld [vmem:[%s5480_s4 + $0x20] sm:$0xff]  ;;  %v2510_v57 = vld [vmem:[%s5480_s4 + $0x28] sm:$0xff] }
 0x2f6   : > { %v2489_v25 = vmul.f32 %v2457_v18, %v5006_v21  ;;  %v2490_v43 = vmul.f32 %v2458_v35, %v5008_v3  ;;  %v2491_v44 = vmul.f32 %v2459_v19, %v5010_v24  ;;  %v2492_v30 = vmul.f32 %v2460_v52, %v5012_v11  ;;  %v2511_v16 = vld [vmem:[%s5480_s4 + $0x30] sm:$0xff]  ;;  %v2512_v6 = vld [vmem:[%s5480_s4 + $0x38] sm:$0xff]  ;;  %v2513_v23 = vld [vmem:[%s5480_s4 + $0x40] sm:$0xff] }
 0x2f7   : > { %v2493_v21 = vmul.f32 %v2461_v33, %v5026_v1  ;;  %v2494_v3 = vmul.f32 %v2462_v56, %v5028_v4  ;;  %v2495_v24 = vmul.f32 %v2463_v27, %v5030_v53  ;;  %v2514_v39 = vld [vmem:[%s5480_s4 + $0x48] sm:$0xff]  ;;  %v2497_v32 = vmul.f32 %v2465_v29, %v2433_v0  ;;  %v2515_v53 = vld [vmem:[%s5480_s4 + $0x50] sm:$0xff]  ;;  %v2516_v18 = vld [vmem:[%s5480_s4 + $0x58] sm:$0xff] }
 0x2f8   : > { %v5483_v12 = vld [vmem:[#allocation2_spill] sm:$0xff]  ;;  %v2498_v1 = vmul.f32 %v2466_v50, %v2434_v38  ;;  %v2499_v10 = vmul.f32 %v2467_v61, %v2435_v5  ;;  %v2500_v4 = vmul.f32 %v2468_v20, %v2436_v17  ;;  %v2501_v19 = vmul.f32 %v2469_v15, %v2437_v48  ;;  %v2518_v0 = vld [vmem:[%s5480_s4 + $0x68] sm:$0xff]  ;;  %v2519_v38 = vld [vmem:[%s5480_s4 + $0x70] sm:$0xff] }
 0x2f9   : > { %v2496_v11 = vmul.f32 %v2464_v22, %v5483_v12  ;;  %v2517_v35 = vld [vmem:[%s5480_s4 + $0x60] sm:$0xff]  ;;  %v2502_v52 = vmul.f32 %v2470_v58, %v2438_v2  ;;  %v2503_v33 = vmul.f32 %v2471_v51, %v2439_v36  ;;  %v5161_v56 = vmul.f32 %v2472_v55, %v2440_v41  ;;  %v2520_v5 = vld [vmem:[%s5480_s4 + $0x78] sm:$0xff]  ;;  %v2522_v48 = vld [vmem:[%s5480_s4 + $0x88] sm:$0xff] }
 0x2fa   : > { %v2521_v17 = vld [vmem:[%s5480_s4 + $0x80] sm:$0xff]  ;;  %v2523_v2 = vld [vmem:[%s5480_s4 + $0x90] sm:$0xff]  ;;  %v5181_v36 = vadd.f32 %v2505_v62, %v2473_v8  ;;  %v5183_v41 = vadd.f32 %v2506_v37, %v2474_v47  ;;  %v5185_v27 = vadd.f32 %v2507_v45, %v2475_v59  ;;  %v5187_v22 = vadd.f32 %v2508_v13, %v2476_v42  ;;  %v2524_v29 = vld [vmem:[%s5480_s4 + $0x98] sm:$0xff] }
 0x2fb   : > { %v2525_v50 = vld [vmem:[%s5480_s4 + $0xa0] sm:$0xff]  ;;  %v2526_v61 = vld [vmem:[%s5480_s4 + $0xa8] sm:$0xff]  ;;  %v5198_v62 = vadd.f32 %v2509_v28, %v2477_v63  ;;  %v5200_v8 = vadd.f32 %v2510_v57, %v2478_v34  ;;  %v5202_v47 = vadd.f32 %v2511_v16, %v2479_v46  ;;  %v5204_v59 = vadd.f32 %v2512_v6, %v2480_v60  ;;  %v2527_v42 = vld [vmem:[%s5480_s4 + $0xb0] sm:$0xff] }
 0x2fc   : > { %v2528_v20 = vld [vmem:[%s5480_s4 + $0xb8] sm:$0xff]  ;;  %v2529_v15 = vld [vmem:[%s5480_s4 + $0xc0] sm:$0xff]  ;;  %v5215_v63 = vadd.f32 %v2513_v23, %v2481_v49  ;;  %v5217_v34 = vadd.f32 %v2514_v39, %v2482_v14  ;;  %v5219_v46 = vadd.f32 %v2515_v53, %v2483_v7  ;;  %v5221_v60 = vadd.f32 %v2516_v18, %v2484_v54  ;;  %v2530_v58 = vld [vmem:[%s5480_s4 + $0xc8] sm:$0xff] }
 0x2fd   : > { %v2531_v51 = vld [vmem:[%s5480_s4 + $0xd0] sm:$0xff]  ;;  %v2532_v55 = vld [vmem:[%s5480_s4 + $0xd8] sm:$0xff]  ;;  %v5232_v49 = vadd.f32 %v2517_v35, %v2485_v31  ;;  %v5234_v14 = vadd.f32 %v2518_v0, %v2486_v26  ;;  %v5236_v7 = vadd.f32 %v2519_v38, %v2487_v9  ;;  %v5238_v54 = vadd.f32 %v2520_v5, %v2488_v40  ;;  %v2533_v37 = vld [vmem:[%s5480_s4 + $0xe0] sm:$0xff] }
 0x2fe   : > { %v2534_v45 = vld [vmem:[%s5480_s4 + $0xe8] sm:$0xff]  ;;  %v5246_v13 = vadd.f32 %v2521_v17, %v2489_v25  ;;  %v5248_v28 = vadd.f32 %v2522_v48, %v2490_v43  ;;  %v5250_v31 = vadd.f32 %v2523_v2, %v2491_v44  ;;  %v5252_v26 = vadd.f32 %v2524_v29, %v2492_v30  ;;  %v2535_v44 = vld [vmem:[%s5480_s4 + $0xf0] sm:$0xff] }
 0x2ff   : > { %v5254_v9 = vadd.f32 %v2525_v50, %v2493_v21  ;;  %v5256_v40 = vadd.f32 %v2526_v61, %v2494_v3  ;;  %v5258_v57 = vadd.f32 %v2527_v42, %v2495_v24  ;;  %v5260_v16 = vadd.f32 %v2528_v20, %v2496_v11  ;;  %v2536_v3 = vld [vmem:[%s5480_s4 + $0xf8] sm:$0xff] }
 0x300   : > { %v5262_v12 = vadd.f32 %v2529_v15, %v2497_v32  ;;  %v5264_v6 = vadd.f32 %v2530_v58, %v2498_v1  ;;  %v5266_v25 = vadd.f32 %v2531_v51, %v2499_v10  ;;  %v5268_v43 = vadd.f32 %v2532_v55, %v2500_v4 }
 0x301   : > { %v5273_v30 = vadd.f32 %v2533_v37, %v2501_v19  ;;  %v5275_v21 = vadd.f32 %v2534_v45, %v2502_v52  ;;  %vm2569_vm0 = vcmp.ge.f32.partialorder %v5181_v36, 0.0  ;;  %vm2570_vm1 = vcmp.ge.f32.partialorder %v5183_v41, 0.0 }
 0x302   : > { %vm2571_vm2 = vcmp.ge.f32.partialorder %v5185_v27, 0.0  ;;  %vm2572_vm3 = vcmp.ge.f32.partialorder %v5187_v22, 0.0  ;;  %vm2573_vm4 = vcmp.ge.f32.partialorder %v5198_v62, 0.0  ;;  %vm2574_vm5 = vcmp.ge.f32.partialorder %v5200_v8, 0.0 }
 0x303   : > { %vm2575_vm6 = vcmp.ge.f32.partialorder %v5202_v47, 0.0  ;;  %vm2576_vm7 = vcmp.ge.f32.partialorder %v5204_v59, 0.0  ;;  %vm2577_vm8 = vcmp.ge.f32.partialorder %v5215_v63, 0.0  ;;  %v5290_v24 = vadd.f32 %v2535_v44, %v2503_v33 }
 0x304   : > { %v2601_v11 = vmul.f32 0.2, %v5181_v36  ;;  %v2602_v23 = vmul.f32 0.2, %v5183_v41  ;;  %v2603_v39 = vmul.f32 0.2, %v5185_v27  ;;  %v5300_v32 = vadd.f32 %v2536_v3, %v5161_v56 }
 0x305   : > { %vm2584_vm15 = vcmp.ge.f32.partialorder %v5238_v54, 0.0  ;;  %vm2585_vm10 = vcmp.ge.f32.partialorder %v5246_v13, 0.0  ;;  %v2604_v1 = vmul.f32 0.2, %v5187_v22  ;;  %v2605_v10 = vmul.f32 0.2, %v5198_v62 }
 0x306   : > { %v2606_v4 = vmul.f32 0.2, %v5200_v8  ;;  %vm2590_vm14 = vcmp.ge.f32.partialorder %v5256_v40, 0.0  ;;  %v2607_v53 = vmul.f32 0.2, %v5202_v47  ;;  %v5319_v19 = vsel %vm2569_vm0, %v5181_v36, %v2601_v11 }
 0x307   : > { %v2608_v18 = vmul.f32 0.2, %v5204_v59  ;;  %v2609_v35 = vmul.f32 0.2, %v5215_v63  ;;  %vm2594_vm9 = vcmp.ge.f32.partialorder %v5264_v6, 0.0  ;;  %v5331_v0 = vsel %vm2570_vm1, %v5183_v41, %v2602_v23 }
 0x308   : > { %v2610_v52 = vmul.f32 0.2, %v5217_v34  ;;  %v2611_v33 = vmul.f32 0.2, %v5219_v46  ;;  %v2612_v56 = vmul.f32 0.2, %v5221_v60  ;;  %v2635_v48 = vsel %vm2571_vm2, %v5185_v27, %v2603_v39 }
 0x309   : > { %vm2596_vm11 = vcmp.ge.f32.partialorder %v5268_v43, 0.0  ;;  %vm2597_vm13 = vcmp.ge.f32.partialorder %v5273_v30, 0.0  ;;  %vm2598_vm12 = vcmp.ge.f32.partialorder %v5275_v21, 0.0  ;;  %v2613_v38 = vmul.f32 0.2, %v5232_v49 }
 0x30a   : > { %v2614_v5 = vmul.f32 0.2, %v5234_v14  ;;  %v2615_v17 = vmul.f32 0.2, %v5236_v7  ;;  %vm2599_vm1 = vcmp.ge.f32.partialorder %v5290_v24, 0.0  ;;  %vm2600_vm0 = vcmp.ge.f32.partialorder %v5300_v32, 0.0 }
 0x30b   : > { %v2616_v2 = vmul.f32 0.2, %v5238_v54  ;;  %v2617_v36 = vmul.f32 0.2, %v5246_v13  ;;  %v2618_v41 = vmul.f32 0.2, %v5248_v28  ;;  %v2636_v29 = vsel %vm2572_vm3, %v5187_v22, %v2604_v1 }
 0x30c   : > { %v2619_v50 = vmul.f32 0.2, %v5250_v31  ;;  %v2620_v61 = vmul.f32 0.2, %v5252_v26  ;;  %v2621_v27 = vmul.f32 0.2, %v5254_v9  ;;  %v2637_v42 = vsel %vm2573_vm4, %v5198_v62, %v2605_v10 }
 0x30d   : > { %v2622_v20 = vmul.f32 0.2, %v5256_v40  ;;  %v2623_v15 = vmul.f32 0.2, %v5258_v57  ;;  %v2624_v58 = vmul.f32 0.2, %v5260_v16  ;;  %v2638_v22 = vsel %vm2574_vm5, %v5200_v8, %v2606_v4 }
 0x30e   : > { %v2625_v51 = vmul.f32 0.2, %v5262_v12  ;;  %v2626_v55 = vmul.f32 0.2, %v5264_v6  ;;  %v2627_v37 = vmul.f32 0.2, %v5266_v25  ;;  %v2639_v62 = vsel %vm2575_vm6, %v5202_v47, %v2607_v53 }
 0x30f   : > { %v2628_v45 = vmul.f32 0.2, %v5268_v43  ;;  %v2629_v44 = vmul.f32 0.2, %v5273_v30  ;;  %v2630_v3 = vmul.f32 0.2, %v5275_v21  ;;  %v2640_v8 = vsel %vm2576_vm7, %v5204_v59, %v2608_v18 }
 0x310   : > { %v2631_v11 = vmul.f32 0.2, %v5290_v24  ;;  %v2632_v23 = vmul.f32 0.2, %v5300_v32  ;;  %v2641_v39 = vsel %vm2577_vm8, %v5215_v63, %v2609_v35  ;;  %vm5484_vm2 = vcmp.ge.f32.partialorder %v5217_v34, 0.0 }
 0x311   : > { %v2642_v47 = vsel %vm5484_vm2, %v5217_v34, %v2610_v52  ;;  %vm5485_vm3 = vcmp.ge.f32.partialorder %v5219_v46, 0.0  ;;  %vm5486_vm4 = vcmp.ge.f32.partialorder %v5221_v60, 0.0  ;;  %vm5487_vm5 = vcmp.ge.f32.partialorder %v5232_v49, 0.0 }
 0x312   : > { %v2643_v1 = vsel %vm5485_vm3, %v5219_v46, %v2611_v33  ;;  %v2644_v59 = vsel %vm5486_vm4, %v5221_v60, %v2612_v56  ;;  %v2645_v10 = vsel %vm5487_vm5, %v5232_v49, %v2613_v38  ;;  %vm5488_vm6 = vcmp.ge.f32.partialorder %v5234_v14, 0.0 }
 0x313   : > { %v2646_v63 = vsel %vm5488_vm6, %v5234_v14, %v2614_v5  ;;  %vm5489_vm7 = vcmp.ge.f32.partialorder %v5236_v7, 0.0  ;;  %v2648_v46 = vsel %vm2584_vm15, %v5238_v54, %v2616_v2  ;;  %v2649_v60 = vsel %vm2585_vm10, %v5246_v13, %v2617_v36 }
 0x314   : > { %v2647_v34 = vsel %vm5489_vm7, %v5236_v7, %v2615_v17  ;;  %vm5490_vm8 = vcmp.ge.f32.partialorder %v5248_v28, 0.0  ;;  %vm5491_vm2 = vcmp.ge.f32.partialorder %v5250_v31, 0.0  ;;  %vm5492_vm3 = vcmp.ge.f32.partialorder %v5252_v26, 0.0 }
 0x315   : > { %v2650_v49 = vsel %vm5490_vm8, %v5248_v28, %v2618_v41  ;;  %v2651_v14 = vsel %vm5491_vm2, %v5250_v31, %v2619_v50  ;;  %v2652_v7 = vsel %vm5492_vm3, %v5252_v26, %v2620_v61  ;;  %vm5493_vm4 = vcmp.ge.f32.partialorder %v5254_v9, 0.0 }
 0x316   : > { %v2653_v54 = vsel %vm5493_vm4, %v5254_v9, %v2621_v27  ;;  %v2654_v13 = vsel %vm2590_vm14, %v5256_v40, %v2622_v20  ;;  %vm5494_vm10 = vcmp.ge.f32.partialorder %v5258_v57, 0.0  ;;  %vm5495_vm15 = vcmp.ge.f32.partialorder %v5260_v16, 0.0 }
 0x317   : > { %v2655_v28 = vsel %vm5494_vm10, %v5258_v57, %v2623_v15  ;;  %v2656_v31 = vsel %vm5495_vm15, %v5260_v16, %v2624_v58  ;;  %vm5496_vm5 = vcmp.ge.f32.partialorder %v5262_v12, 0.0  ;;  %v2658_v9 = vsel %vm2594_vm9, %v5264_v6, %v2626_v55 }
 0x318   : > { %v2657_v26 = vsel %vm5496_vm5, %v5262_v12, %v2625_v51  ;;  %vm5497_vm14 = vcmp.ge.f32.partialorder %v5266_v25, 0.0  ;;  %v2660_v57 = vsel %vm2596_vm11, %v5268_v43, %v2628_v45  ;;  %v2661_v16 = vsel %vm2597_vm13, %v5273_v30, %v2629_v44 }
 0x319   : > { %v2659_v40 = vsel %vm5497_vm14, %v5266_v25, %v2627_v37  ;;  %v2662_v12 = vsel %vm2598_vm12, %v5275_v21, %v2630_v3  ;;  %v2663_v6 = vsel %vm2599_vm1, %v5290_v24, %v2631_v11  ;;  %v2664_v25 = vsel %vm2600_vm0, %v5300_v32, %v2632_v23 }
 0x31a   : > { %v3311_v43 = vpack.c.bf16 %v5331_v0, %v5319_v19  ;;  %v3316_v30 = vpack.c.bf16 %v2636_v29, %v2635_v48  ;;  %v3321_v4 = vpack.c.bf16 %v2638_v22, %v2637_v42  ;;  %v3326_v53 = vpack.c.bf16 %v2640_v8, %v2639_v62 }
 0x31b   : > { %v3331_v18 = vpack.c.bf16 %v2642_v47, %v2641_v39  ;;  %v3336_v21 = vpack.c.bf16 %v2644_v59, %v2643_v1  ;;  %v3341_v24 = vpack.c.bf16 %v2646_v63, %v2645_v10  ;;  %v3346_v35 = vpack.c.bf16 %v2648_v46, %v2647_v34 }
 0x31c   : > { %3312 = vst [vmem:[%s5435_s10] sm:$0xff] %v3311_v43   ;;  %3388 = vst [vmem:[%s5435_s10 + $0x8] sm:$0xff] %v3316_v30   ;;  %v3351_v52 = vpack.c.bf16 %v2650_v49, %v2649_v60  ;;  %v3356_v32 = vpack.c.bf16 %v2652_v7, %v2651_v14  ;;  %v3361_v19 = vpack.c.bf16 %v2654_v13, %v2653_v54 }
 0x31d   : > { %3389 = vst [vmem:[%s5435_s10 + $0x10] sm:$0xff] %v3321_v4   ;;  %3390 = vst [vmem:[%s5435_s10 + $0x18] sm:$0xff] %v3326_v53   ;;  %v3366_v33 = vpack.c.bf16 %v2656_v31, %v2655_v28  ;;  %v3371_v56 = vpack.c.bf16 %v2658_v9, %v2657_v26  ;;  %v3376_v0 = vpack.c.bf16 %v2660_v57, %v2659_v40 }
 0x31e   : > { %3391 = vst [vmem:[%s5435_s10 + $0x20] sm:$0xff] %v3331_v18   ;;  %3392 = vst [vmem:[%s5435_s10 + $0x28] sm:$0xff] %v3336_v21   ;;  %v3381_v38 = vpack.c.bf16 %v2662_v12, %v2661_v16  ;;  %v3386_v5 = vpack.c.bf16 %v2664_v25, %v2663_v6 }
 0x31f   : > { %3393 = vst [vmem:[%s5435_s10 + $0x30] sm:$0xff] %v3341_v24   ;;  %3394 = vst [vmem:[%s5435_s10 + $0x38] sm:$0xff] %v3346_v35  }
 0x320   : > { %3395 = vst [vmem:[%s5435_s10 + $0x40] sm:$0xff] %v3351_v52   ;;  %3396 = vst [vmem:[%s5435_s10 + $0x48] sm:$0xff] %v3356_v32  }
 0x321   : > { %3397 = vst [vmem:[%s5435_s10 + $0x50] sm:$0xff] %v3361_v19   ;;  %3398 = vst [vmem:[%s5435_s10 + $0x58] sm:$0xff] %v3366_v33  }
 0x322   : > { %3399 = vst [vmem:[%s5435_s10 + $0x60] sm:$0xff] %v3371_v56   ;;  %3400 = vst [vmem:[%s5435_s10 + $0x68] sm:$0xff] %v3376_v0  }
 0x323   : > { %3401 = vst [vmem:[%s5435_s10 + $0x70] sm:$0xff] %v3381_v38   ;;  %3402 = vst [vmem:[%s5435_s10 + $0x78] sm:$0xff] %v3386_v5  }
 0x324 PF: > { %s15_s18 = sadd.s32 1, %s4038_s18  }
 0x325   : > { %p12_p4 = scmp.ge.s32.totalorder %s15_s18, 4  }
 0x327   :  { %14 = sbr.rel (!%p12_p4) target bundleno = 1 (0x1), region = 74 }

// kernel: discriminator_forward.6
= control target key start
LH: loop header
LB: loop body
LE: loop exit
PB: predicated region body
PF: predicated region fallthrough
CT: control target
= control target key end

     0   :  { %s4307_s18 = smov 0   ;;  %s5612_s0 = inlined_call_operand.vmem [shape: bf16[2,2,72,512], index: 0, kind: input, shape index: {}]   ;;  %s5613_s1 = inlined_call_operand.vmem [shape: bf16[4,512,256], index: 1, kind: input, shape index: {}]   ;;  %s5614_s2 = inlined_call_operand.vmem [shape: f32[1,256], index: 2, kind: input, shape index: {}]   ;;  %s5615_s3 = inlined_call_operand.vmem [shape: f32[1,64,256], index: 3, kind: input, shape index: {}]   ;;  %s5616_s4 = inlined_call_operand.vmem [shape: f32[1,64,256], index: 4, kind: input, shape index: {}]   ;;  %s5617_s5 = inlined_call_operand.vmem [shape: bf16[2,64,256], index: 5, kind: output, shape index: {}]  }
   0x1 LB: > { %s3120_s19 = sadd.s32 4294967295, %s4275_s18   ;;  %p3124_p0 = scmp.ge.s32.totalorder %s4275_s18, 1  ;;  %s4275_s18 = sphi %s4307_s18, %s15_s18  }
   0x2   : > { %p187_p1 = scmp.lt.s32.totalorder %s4275_s18, 3 }
   0x4   : > { %p188_p2 = pnand %p3124_p0, %p187_p1 }
   0x5   : > { %v3816_v0 = vld [vmem:[%s5613_s1 + $0x204] ss:$8 sps:$4 sm:$0xff] (!%p188_p2)   ;;  %v3820_v2 = vld [vmem:[%s5613_s1 + $0x200] ss:$8 sps:$4 sm:$0xff] (!%p188_p2)   ;;  %v3822_v4 = vld [vmem:[%s5613_s1 + $0x214] ss:$8 sps:$4 sm:$0xff] (!%p188_p2)  }
   0x6   : > { %191 = sbr.rel (%p188_p2) target bundleno = 767 (0x2ff), region = 40  ;;  %v3818_v1 = vld [vmem:[%s5613_s1 + $0x404] ss:$8 sps:$4 sm:$0xff] (!%p188_p2)   ;;  %787 = vmatprep.subr.bf16.mxu1 (!%p188_p2), %v3816_v0  ;;  %v3821_v3 = vld [vmem:[%s5613_s1 + $0x400] ss:$8 sps:$4 sm:$0xff] (!%p188_p2)   ;;  %p215_p3 = scmp.lt.s32.totalorder (!%p188_p2), %s3120_s19, 1 }
   0x7   : > { %1960 = vmatprep.subr.bf16.mxu0 (!%p188_p2), %v3818_v1  ;;  %788 = vmatpush1.bf16.msra.mxu1 (!%p188_p2), %v3820_v2  ;;  %v3824_v5 = vld [vmem:[%s5613_s1 + $0x414] ss:$8 sps:$4 sm:$0xff] (!%p188_p2)   ;;  %v3826_v6 = vld [vmem:[%s5613_s1 + $0x210] ss:$8 sps:$4 sm:$0xff] (!%p188_p2)   ;;  %v3828_v8 = vld [vmem:[%s5613_s1 + $0x224] ss:$8 sps:$4 sm:$0xff] (!%p188_p2)  }
   0x8   : > { %1961 = vmatpush1.bf16.msra.mxu0 (!%p188_p2), %v3821_v3  ;;  %789 = vmatprep.subr.bf16.mxu1 (!%p188_p2), %v3822_v4  ;;  %v3827_v7 = vld [vmem:[%s5613_s1 + $0x410] ss:$8 sps:$4 sm:$0xff] (!%p188_p2)   ;;  %v3830_v9 = vld [vmem:[%s5613_s1 + $0x424] ss:$8 sps:$4 sm:$0xff] (!%p188_p2)   ;;  %v3832_v10 = vld [vmem:[%s5613_s1 + $0x220] ss:$8 sps:$4 sm:$0xff] (!%p188_p2)  }
   0x9   : > { %1962 = vmatprep.subr.bf16.mxu0 (!%p188_p2), %v3824_v5  ;;  %v3833_v11 = vld [vmem:[%s5613_s1 + $0x420] ss:$8 sps:$4 sm:$0xff] (!%p188_p2)   ;;  %v3834_v12 = vld [vmem:[%s5613_s1 + $0x234] ss:$8 sps:$4 sm:$0xff] (!%p188_p2)   ;;  %v3838_v14 = vld [vmem:[%s5613_s1 + $0x230] ss:$8 sps:$4 sm:$0xff] (!%p188_p2)  }
   0xa   : > { %v3836_v13 = vld [vmem:[%s5613_s1 + $0x434] ss:$8 sps:$4 sm:$0xff] (!%p188_p2)   ;;  %v3839_v15 = vld [vmem:[%s5613_s1 + $0x430] ss:$8 sps:$4 sm:$0xff] (!%p188_p2)   ;;  %v3840_v16 = vld [vmem:[%s5613_s1 + $0x244] ss:$8 sps:$4 sm:$0xff] (!%p188_p2)  }
   0xb   : > { %790 = vmatpush1.bf16.msra.mxu1 (!%p188_p2), %v3826_v6  ;;  %v3842_v17 = vld [vmem:[%s5613_s1 + $0x444] ss:$8 sps:$4 sm:$0xff] (!%p188_p2)   ;;  %v3844_v18 = vld [vmem:[%s5613_s1 + $0x240] ss:$8 sps:$4 sm:$0xff] (!%p188_p2)   ;;  %v3846_v20 = vld [vmem:[%s5613_s1 + $0x254] ss:$8 sps:$4 sm:$0xff] (!%p188_p2)  }
   0xc   : > { %1963 = vmatpush1.bf16.msra.mxu0 (!%p188_p2), %v3827_v7  ;;  %791 = vmatprep.subr.bf16.mxu1 (!%p188_p2), %v3828_v8  ;;  %v3845_v19 = vld [vmem:[%s5613_s1 + $0x440] ss:$8 sps:$4 sm:$0xff] (!%p188_p2)   ;;  %v3848_v21 = vld [vmem:[%s5613_s1 + $0x454] ss:$8 sps:$4 sm:$0xff] (!%p188_p2)   ;;  %v3850_v22 = vld [vmem:[%s5613_s1 + $0x250] ss:$8 sps:$4 sm:$0xff] (!%p188_p2)  }
   0xd   : > { %1964 = vmatprep.subr.bf16.mxu0 %v3830_v9  ;;  %v3851_v23 = vld [vmem:[%s5613_s1 + $0x450] ss:$8 sps:$4 sm:$0xff]   ;;  %v3852_v24 = vld [vmem:[%s5613_s1 + $0x264] ss:$8 sps:$4 sm:$0xff]   ;;  %v3856_v26 = vld [vmem:[%s5613_s1 + $0x260] ss:$8 sps:$4 sm:$0xff]  }
   0xe   : > { %v3854_v25 = vld [vmem:[%s5613_s1 + $0x464] ss:$8 sps:$4 sm:$0xff]   ;;  %v3857_v27 = vld [vmem:[%s5613_s1 + $0x460] ss:$8 sps:$4 sm:$0xff]   ;;  %v3858_v28 = vld [vmem:[%s5613_s1 + $0x274] ss:$8 sps:$4 sm:$0xff]  }
   0xf   : > { %792 = vmatpush1.bf16.msra.mxu1 %v3832_v10  ;;  %v3860_v29 = vld [vmem:[%s5613_s1 + $0x474] ss:$8 sps:$4 sm:$0xff]   ;;  %v3862_v30 = vld [vmem:[%s5613_s1 + $0x270] ss:$8 sps:$4 sm:$0xff]   ;;  %v3864_v32 = vld [vmem:[%s5613_s1 + $0x284] ss:$8 sps:$4 sm:$0xff]  }
  0x10   : > { %1965 = vmatpush1.bf16.msra.mxu0 %v3833_v11  ;;  %793 = vmatprep.subr.bf16.mxu1 %v3834_v12  ;;  %v3863_v31 = vld [vmem:[%s5613_s1 + $0x470] ss:$8 sps:$4 sm:$0xff]   ;;  %v3866_v33 = vld [vmem:[%s5613_s1 + $0x484] ss:$8 sps:$4 sm:$0xff]   ;;  %v3868_v34 = vld [vmem:[%s5613_s1 + $0x280] ss:$8 sps:$4 sm:$0xff]  }
  0x11   : > { %1966 = vmatprep.subr.bf16.mxu0 %v3836_v13  ;;  %v3869_v35 = vld [vmem:[%s5613_s1 + $0x480] ss:$8 sps:$4 sm:$0xff]   ;;  %s5619_s19 = smov (!%p215_p3, %s3120_s19), 1  ;;  %v3870_v36 = vld [vmem:[%s5613_s1 + $0x294] ss:$8 sps:$4 sm:$0xff]  }
  0x12   : > { %v3872_v37 = vld [vmem:[%s5613_s1 + $0x494] ss:$8 sps:$4 sm:$0xff]   ;;  %v3874_v38 = vld [vmem:[%s5613_s1 + $0x290] ss:$8 sps:$4 sm:$0xff]   ;;  %s3803_s29 = smul.u32 288, %s5619_s19  ;;  %s3682_s25 = sshll.u32 %s5619_s19, 6 }
  0x13   : > { %794 = vmatpush1.bf16.msra.mxu1 %v3838_v14  ;;  %v3875_v39 = vld [vmem:[%s5613_s1 + $0x490] ss:$8 sps:$4 sm:$0xff]   ;;  %v3876_v40 = vld [vmem:[%s5613_s1 + $0x2a4] ss:$8 sps:$4 sm:$0xff]   ;;  %v3880_v42 = vld [vmem:[%s5613_s1 + $0x2a0] ss:$8 sps:$4 sm:$0xff]  }
  0x14   : > { %1967 = vmatpush1.bf16.msra.mxu0 %v3839_v15  ;;  %795 = vmatprep.subr.bf16.mxu1 %v3840_v16  ;;  %v3878_v41 = vld [vmem:[%s5613_s1 + $0x4a4] ss:$8 sps:$4 sm:$0xff]   ;;  %v3881_v43 = vld [vmem:[%s5613_s1 + $0x4a0] ss:$8 sps:$4 sm:$0xff]   ;;  %s4457_s17 = scalar_lea.vmem %s5612_s0, %s3803_s29  ;;  %v3882_v44 = vld [vmem:[%s5613_s1 + $0x2b4] ss:$8 sps:$4 sm:$0xff]  }
  0x15   : > { %1968 = vmatprep.subr.bf16.mxu0 %v3842_v17  ;;  %v3884_v45 = vld [vmem:[%s5613_s1 + $0x4b4] ss:$8 sps:$4 sm:$0xff]   ;;  %v3886_v46 = vld [vmem:[%s5613_s1 + $0x2b0] ss:$8 sps:$4 sm:$0xff]   ;;  %v4473_v49 = vld [vmem:[%s4457_s17 + $0xa0] sm:$0xff] }
  0x16   : > { %v3887_v47 = vld [vmem:[%s5613_s1 + $0x4b0] ss:$8 sps:$4 sm:$0xff]   ;;  %v3888_v50 = vld [vmem:[%s5613_s1 + $0x2c4] ss:$8 sps:$4 sm:$0xff]   ;;  %v3892_v56 = vld [vmem:[%s5613_s1 + $0x2c0] ss:$8 sps:$4 sm:$0xff]  }
  0x17   : > { %796 = vmatpush1.bf16.msra.mxu1 %v3844_v18  ;;  %v3128_v48 = vld [vmem:[%s4457_s17 + $0x90] sm:$0xff]  ;;  %v3890_v51 = vld [vmem:[%s5613_s1 + $0x4c4] ss:$8 sps:$4 sm:$0xff]   ;;  %v3893_v57 = vld [vmem:[%s5613_s1 + $0x4c0] ss:$8 sps:$4 sm:$0xff]  }
  0x18   : > { %1969 = vmatpush1.bf16.msra.mxu0 %v3845_v19  ;;  %797 = vmatprep.subr.bf16.mxu1 %v3846_v20  ;;  %v3209_v52 = vcombine.high %v3128_v48, %v4473_v49  ;;  %v4483_v53 = vld [vmem:[%s4457_s17 + $0x10] sm:$0xff]  ;;  %v1481_v54 = vld [vmem:[%s4457_s17 + $0x20] sm:$0xff]  ;;  %v3208_v8 = vcombine.low %v3128_v48, %v4473_v49 }
  0x19   : > { %1970 = vmatprep.subr.bf16.mxu0 %v3848_v21  ;;  %v3433_v55 = vcombine.high %v4483_v53, %v1481_v54  ;;  %v3894_v58 = vld [vmem:[%s5613_s1 + $0x2d4] ss:$8 sps:$4 sm:$0xff]   ;;  %v3898_v60 = vld [vmem:[%s5613_s1 + $0x2d0] ss:$8 sps:$4 sm:$0xff]   ;;  %v3900_v62 = vld [vmem:[%s5613_s1 + $0x2e4] ss:$8 sps:$4 sm:$0xff]   ;;  %v3432_v10 = vcombine.low %v4483_v53, %v1481_v54 }
  0x1a   : > { %819 = vmatprep.mubr.bf16.mxu1 %v3209_v52  ;;  %v3896_v59 = vld [vmem:[%s5613_s1 + $0x4d4] ss:$8 sps:$4 sm:$0xff]   ;;  %v3899_v61 = vld [vmem:[%s5613_s1 + $0x4d0] ss:$8 sps:$4 sm:$0xff]   ;;  %v3902_v63 = vld [vmem:[%s5613_s1 + $0x4e4] ss:$8 sps:$4 sm:$0xff]  }
  0x1b   : > { %798 = vmatpush1.bf16.msra.mxu1 %v3850_v22  ;;  %1992 = vmatprep.mubr.bf16.mxu0 %v3433_v55  ;;  %v3904_v0 = vld [vmem:[%s5613_s1 + $0x2e0] ss:$8 sps:$4 sm:$0xff]   ;;  %v3906_v2 = vld [vmem:[%s5613_s1 + $0x2f4] ss:$8 sps:$4 sm:$0xff]   ;;  %v3910_v4 = vld [vmem:[%s5613_s1 + $0x2f0] ss:$8 sps:$4 sm:$0xff]  }
  0x1c   : > { %1971 = vmatpush1.bf16.msra.mxu0 %v3851_v23  ;;  %799 = vmatprep.subr.bf16.mxu1 %v3852_v24  ;;  %v3905_v1 = vld [vmem:[%s5613_s1 + $0x4e0] ss:$8 sps:$4 sm:$0xff]   ;;  %v3908_v3 = vld [vmem:[%s5613_s1 + $0x4f4] ss:$8 sps:$4 sm:$0xff]   ;;  %v3911_v5 = vld [vmem:[%s5613_s1 + $0x4f0] ss:$8 sps:$4 sm:$0xff]  }
  0x1d   : > { %1972 = vmatprep.subr.bf16.mxu0 %v3854_v25  ;;  %v3916_v6 = vld [vmem:[%s5613_s1 + $0x304] ss:$8 sps:$4 sm:$0xff]   ;;  %v3914_v9 = vld [vmem:[%s5613_s1 + $0x300] ss:$8 sps:$4 sm:$0xff]   ;;  %v3924_v12 = vld [vmem:[%s5613_s1 + $0x314] ss:$8 sps:$4 sm:$0xff]  }
  0x1e   : > { %v3921_v7 = vld [vmem:[%s5613_s1 + $0x504] ss:$8 sps:$4 sm:$0xff]   ;;  %v3919_v11 = vld [vmem:[%s5613_s1 + $0x500] ss:$8 sps:$4 sm:$0xff]   ;;  %v3927_v13 = vld [vmem:[%s5613_s1 + $0x514] ss:$8 sps:$4 sm:$0xff]  }
  0x1f   : > { %800 = vmatpush1.bf16.msra.mxu1 %v3856_v26  ;;  %v3922_v14 = vld [vmem:[%s5613_s1 + $0x310] ss:$8 sps:$4 sm:$0xff]   ;;  %v3930_v16 = vld [vmem:[%s5613_s1 + $0x324] ss:$8 sps:$4 sm:$0xff]   ;;  %v3928_v18 = vld [vmem:[%s5613_s1 + $0x320] ss:$8 sps:$4 sm:$0xff]  }
  0x20   : > { %1973 = vmatpush1.bf16.msra.mxu0 %v3857_v27  ;;  %801 = vmatprep.subr.bf16.mxu1 %v3858_v28  ;;  %v3925_v15 = vld [vmem:[%s5613_s1 + $0x510] ss:$8 sps:$4 sm:$0xff]   ;;  %v3933_v17 = vld [vmem:[%s5613_s1 + $0x524] ss:$8 sps:$4 sm:$0xff]   ;;  %v3931_v19 = vld [vmem:[%s5613_s1 + $0x520] ss:$8 sps:$4 sm:$0xff]  }
  0x21   : > { %1974 = vmatprep.subr.bf16.mxu0 %v3860_v29  ;;  %v4568_v20 = vld [vmem:[%s4457_s17 + $0xb0] sm:$0xff]  ;;  %v4571_v21 = vld [vmem:[%s4457_s17 + $0xc0] sm:$0xff] }
  0x22   : > { %v3592_v22 = vcombine.low %v4473_v49, %v4568_v20  ;;  %v3593_v23 = vcombine.high %v4473_v49, %v4568_v20  ;;  %v3936_v24 = vld [vmem:[%s5613_s1 + $0x334] ss:$8 sps:$4 sm:$0xff]   ;;  %v3213_v26 = vcombine.high %v4568_v20, %v4571_v21  ;;  %v3212_v28 = vcombine.low %v4568_v20, %v4571_v21  ;;  %v4591_v29 = vld [vmem:[%s4457_s17 + $0x40] sm:$0xff]  ;;  %v3949_v48 = vld [vmem:[%s5613_s1 + $0x550] ss:$8 sps:$4 sm:$0xff]  }
  0x23   : > { %802 = vmatpush1.bf16.msra.mxu1 %v3862_v30  ;;  %v3939_v25 = vld [vmem:[%s5613_s1 + $0x534] ss:$8 sps:$4 sm:$0xff]   ;;  %v4651_v52 = vld [vmem:[%s4457_s17 + $0x100] sm:$0xff] }
  0x24   : > { %1975 = vmatpush1.bf16.msra.mxu0 %v3863_v31  ;;  %803 = vmatprep.subr.bf16.mxu1 %v3864_v32  ;;  %v4586_v27 = vld [vmem:[%s4457_s17 + $0x30] sm:$0xff]  ;;  %v3954_v54 = vld [vmem:[%s5613_s1 + $0x364] ss:$8 sps:$4 sm:$0xff]  }
  0x25   : > { %1976 = vmatprep.subr.bf16.mxu0 %v3866_v33  ;;  %v3437_v30 = vcombine.high %v4586_v27, %v4591_v29  ;;  %v3934_v31 = vld [vmem:[%s5613_s1 + $0x330] ss:$8 sps:$4 sm:$0xff]   ;;  %v3436_v33 = vcombine.low %v4586_v27, %v4591_v29  ;;  %v3957_v55 = vld [vmem:[%s5613_s1 + $0x564] ss:$8 sps:$4 sm:$0xff]  }
  0x26   : > { %v3937_v32 = vld [vmem:[%s5613_s1 + $0x530] ss:$8 sps:$4 sm:$0xff]   ;;  %v4157_v49 = vld [vmem:[%s5613_s1 + $0x724] ss:$8 sps:$4 sm:$0xff]  }
  0x27   : > { %804 = vmatpush1.bf16.msra.mxu1 %v3868_v34  ;;  %v3942_v34 = vld [vmem:[%s5613_s1 + $0x344] ss:$8 sps:$4 sm:$0xff]   ;;  %v4267_v20 = vld [vmem:[%s4457_s17 + $0x30] sm:$0xff] }
  0x28   : > { %1977 = vmatpush1.bf16.msra.mxu0 %v3869_v35  ;;  %805 = vmatprep.subr.bf16.mxu1 %v3870_v36  ;;  %v3945_v35 = vld [vmem:[%s5613_s1 + $0x544] ss:$8 sps:$4 sm:$0xff]   ;;  %v4610_v36 = vld [vmem:[%s4457_s17 + $0xd0] sm:$0xff] }
  0x29   : > { %1978 = vmatprep.subr.bf16.mxu0 %v3872_v37  ;;  %v4613_v37 = vld [vmem:[%s4457_s17 + $0xe0] sm:$0xff] }
  0x2b   : > { %806 = vmatpush1.bf16.msra.mxu1 %v3874_v38  ;;  %v3940_v38 = vld [vmem:[%s5613_s1 + $0x340] ss:$8 sps:$4 sm:$0xff]  }
  0x2c   : > { %1979 = vmatpush1.bf16.msra.mxu0 %v3875_v39  ;;  %807 = vmatprep.subr.bf16.mxu1 %v3876_v40  ;;  %v3217_v39 = vcombine.high %v4610_v36, %v4613_v37  ;;  %v3943_v40 = vld [vmem:[%s5613_s1 + $0x540] ss:$8 sps:$4 sm:$0xff]  }
  0x2d   : > { %1980 = vmatprep.subr.bf16.mxu0 %v3878_v41  ;;  %v4624_v41 = vld [vmem:[%s4457_s17 + $0x50] sm:$0xff] }
  0x2f   : > { %808 = vmatpush1.bf16.msra.mxu1 %v3880_v42  ;;  %v4627_v42 = vld [vmem:[%s4457_s17 + $0x60] sm:$0xff] }
  0x30   : > { %1981 = vmatpush1.bf16.msra.mxu0 %v3881_v43  ;;  %809 = vmatprep.subr.bf16.mxu1 %v3882_v44  ;;  %v3216_v43 = vcombine.low %v4610_v36, %v4613_v37  ;;  %v3948_v44 = vld [vmem:[%s5613_s1 + $0x354] ss:$8 sps:$4 sm:$0xff]  }
  0x31   : > { %1982 = vmatprep.subr.bf16.mxu0 %v3884_v45  ;;  %v3441_v45 = vcombine.high %v4624_v41, %v4627_v42 }
  0x33   : > { %810 = vmatpush1.bf16.msra.mxu1 %v3886_v46  ;;  %v3951_v46 = vld [vmem:[%s5613_s1 + $0x554] ss:$8 sps:$4 sm:$0xff]  }
  0x34   : > { %1983 = vmatpush1.bf16.msra.mxu0 %v3887_v47  ;;  %811 = vmatprep.subr.bf16.mxu1 %v3888_v50  ;;  %v3946_v47 = vld [vmem:[%s5613_s1 + $0x350] ss:$8 sps:$4 sm:$0xff]   ;;  %v3440_v50 = vcombine.low %v4624_v41, %v4627_v42 }
  0x35   : > { %1984 = vmatprep.subr.bf16.mxu0 %v3890_v51  ;;  %v4648_v51 = vld [vmem:[%s4457_s17 + $0xf0] sm:$0xff] }
  0x37   : > { %812 = vmatpush1.bf16.msra.mxu1 %v3892_v56  ;;  %v3221_v56 = vcombine.high %v4648_v51, %v4651_v52 }
  0x38   : > { %1985 = vmatpush1.bf16.msra.mxu0 %v3893_v57  ;;  %813 = vmatprep.subr.bf16.mxu1 %v3894_v58  ;;  %v4662_v57 = vld [vmem:[%s4457_s17 + $0x70] sm:$0xff]  ;;  %v1493_v58 = vld [vmem:[%s4457_s17 + $0x80] sm:$0xff] }
  0x39   : > { %1986 = vmatprep.subr.bf16.mxu0 %v3896_v59  ;;  %v3952_v59 = vld [vmem:[%s5613_s1 + $0x360] ss:$8 sps:$4 sm:$0xff]  }
  0x3b   : > { %814 = vmatpush1.bf16.msra.mxu1 %v3898_v60  ;;  %v3955_v60 = vld [vmem:[%s5613_s1 + $0x560] ss:$8 sps:$4 sm:$0xff]  }
  0x3c   : > { %1987 = vmatpush1.bf16.msra.mxu0 %v3899_v61  ;;  %815 = vmatprep.subr.bf16.mxu1 %v3900_v62  ;;  %v3445_v61 = vcombine.high %v4662_v57, %v1493_v58  ;;  %v3220_v62 = vcombine.low %v4648_v51, %v4651_v52 }
  0x3d   : > { %1988 = vmatprep.subr.bf16.mxu0 %v3902_v63  ;;  %v3960_v63 = vld [vmem:[%s5613_s1 + $0x374] ss:$8 sps:$4 sm:$0xff]  }
  0x3f   : > { %816 = vmatpush1.bf16.msra.mxu1 %v3904_v0  ;;  %v3963_v0 = vld [vmem:[%s5613_s1 + $0x574] ss:$8 sps:$4 sm:$0xff]  }
  0x40   : > { %1989 = vmatpush1.bf16.msra.mxu0 %v3905_v1  ;;  %817 = vmatprep.subr.bf16.mxu1 %v3906_v2  ;;  %v3958_v1 = vld [vmem:[%s5613_s1 + $0x370] ss:$8 sps:$4 sm:$0xff]  }
  0x41   : > { %1990 = vmatprep.subr.bf16.mxu0 %v3908_v3  ;;  %v3961_v2 = vld [vmem:[%s5613_s1 + $0x570] ss:$8 sps:$4 sm:$0xff]  }
  0x42   : > { %v4687_v3 = vld [vmem:[%s4457_s17 + $0x98] sm:$0xff] }
  0x43   : > { %818 = vmatpush1.bf16.msra.mxu1 %v3910_v4  ;;  %v3444_v4 = vcombine.low %v4662_v57, %v1493_v58  ;;  %v4013_v58 = vld [vmem:[%s5613_s1 + $0x5e0] ss:$8 sps:$4 sm:$0xff]  }
  0x44   : > { %1991 = vmatpush1.bf16.msra.mxu0 %v3911_v5  ;;  %860 = vmatprep.subr.bf16.mxu1 %v3916_v6  ;;  %v4691_v5 = vld [vmem:[%s4457_s17 + $0xa8] sm:$0xff] }
  0x45   : > { %2033 = vmatprep.subr.bf16.mxu0 %v3921_v7  ;;  %v3966_v6 = vld [vmem:[%s5613_s1 + $0x384] ss:$8 sps:$4 sm:$0xff]  }
  0x46   : > { %820 = vmatmul.mubr.bf16.vlgmr.msra.gmra.mrb[0].mxu1 %v3208_v8  ;;  %v3969_v7 = vld [vmem:[%s5613_s1 + $0x584] ss:$8 sps:$4 sm:$0xff]   ;;  %v3211_v8 = vcombine.high %v4687_v3, %v4691_v5 }
  0x47   : > { %1993 = vmatmul.mubr.bf16.vlgmr.msra.gmra.mrb[0].mxu0 %v3432_v10  ;;  %861 = vmatpush1.bf16.msra.mxu1 %v3914_v9  ;;  %v4702_v9 = vld [vmem:[%s4457_s17 + $0x18] sm:$0xff]  ;;  %v4705_v10 = vld [vmem:[%s4457_s17 + $0x28] sm:$0xff] }
  0x48   : > { %2034 = vmatpush1.bf16.msra.mxu0 %v3919_v11  ;;  %862 = vmatprep.subr.bf16.mxu1 %v3924_v12  ;;  %v3435_v11 = vcombine.high %v4702_v9, %v4705_v10  ;;  %v3964_v12 = vld [vmem:[%s5613_s1 + $0x380] ss:$8 sps:$4 sm:$0xff]  }
  0x49   : > { %2035 = vmatprep.subr.bf16.mxu0 %v3927_v13  ;;  %829 = vmatprep.mubr.bf16.mxu1 %v3213_v26  ;;  %v3967_v13 = vld [vmem:[%s5613_s1 + $0x580] ss:$8 sps:$4 sm:$0xff]   ;;  %v3988_v26 = vld [vmem:[%s5613_s1 + $0x3b4] ss:$8 sps:$4 sm:$0xff]  }
  0x4a   : > { %2002 = vmatprep.mubr.bf16.mxu0 %v3437_v30  ;;  %v3991_v30 = vld [vmem:[%s5613_s1 + $0x5b4] ss:$8 sps:$4 sm:$0xff]  }
  0x4b   : > { %863 = vmatpush1.bf16.msra.mxu1 %v3922_v14  ;;  %v3972_v14 = vld [vmem:[%s5613_s1 + $0x394] ss:$8 sps:$4 sm:$0xff]  }
  0x4c   : > { %2036 = vmatpush1.bf16.msra.mxu0 %v3925_v15  ;;  %864 = vmatprep.subr.bf16.mxu1 %v3930_v16  ;;  %v3975_v15 = vld [vmem:[%s5613_s1 + $0x594] ss:$8 sps:$4 sm:$0xff]   ;;  %v3970_v16 = vld [vmem:[%s5613_s1 + $0x390] ss:$8 sps:$4 sm:$0xff]  }
  0x4d   : > { %2037 = vmatprep.subr.bf16.mxu0 %v3933_v17  ;;  %v3973_v17 = vld [vmem:[%s5613_s1 + $0x590] ss:$8 sps:$4 sm:$0xff]  }
  0x4e   : > { %830 = vmatmul.mubr.bf16.gmra.mrb[4].mxu1 %v3212_v28  ;;  %v3597_v28 = vcombine.high %v4571_v21, %v4610_v36 }
  0x4f   : > { %865 = vmatpush1.bf16.msra.mxu1 %v3928_v18  ;;  %2003 = vmatmul.mubr.bf16.gmra.mrb[4].mxu0 %v3436_v33  ;;  %v3979_v18 = vld [vmem:[%s5613_s1 + $0x3a4] ss:$8 sps:$4 sm:$0xff]   ;;  %v3989_v33 = vld [vmem:[%s5613_s1 + $0x5b0] ss:$8 sps:$4 sm:$0xff]  }
  0x50   : > { %2038 = vmatpush1.bf16.msra.mxu0 %v3931_v19  ;;  %866 = vmatprep.subr.bf16.mxu1 %v3936_v24  ;;  %v3983_v19 = vld [vmem:[%s5613_s1 + $0x5a4] ss:$8 sps:$4 sm:$0xff]   ;;  %v3977_v24 = vld [vmem:[%s5613_s1 + $0x3a0] ss:$8 sps:$4 sm:$0xff]  }
  0x51   : > { %2039 = vmatprep.subr.bf16.mxu0 %v3939_v25  ;;  %839 = vmatprep.mubr.bf16.mxu1 %v3217_v39  ;;  %v3981_v25 = vld [vmem:[%s5613_s1 + $0x5a0] ss:$8 sps:$4 sm:$0xff]  }
  0x52   : > { %2012 = vmatprep.mubr.bf16.mxu0 %v3441_v45  ;;  %v3997_v39 = vld [vmem:[%s5613_s1 + $0x5c0] ss:$8 sps:$4 sm:$0xff]   ;;  %v3296_v45 = vcombine.low %v4591_v29, %v4624_v41 }
  0x53   : > { %867 = vmatpush1.bf16.msra.mxu1 %v3934_v31  ;;  %v3596_v31 = vcombine.low %v4571_v21, %v4610_v36  ;;  %v4169_v21 = vld [vmem:[%s5613_s1 + $0x744] ss:$8 sps:$4 sm:$0xff]   ;;  %v3526_v36 = vld [vmem:[%s4457_s17 + $0x110] sm:$0xff] }
  0x54   : > { %2040 = vmatpush1.bf16.msra.mxu0 %v3937_v32  ;;  %868 = vmatprep.subr.bf16.mxu1 %v3942_v34  ;;  %v3986_v32 = vld [vmem:[%s5613_s1 + $0x3b0] ss:$8 sps:$4 sm:$0xff]   ;;  %v3995_v34 = vld [vmem:[%s5613_s1 + $0x3c4] ss:$8 sps:$4 sm:$0xff]  }
  0x55   : > { %2041 = vmatprep.subr.bf16.mxu0 %v3945_v35  ;;  %v3999_v35 = vld [vmem:[%s5613_s1 + $0x5c4] ss:$8 sps:$4 sm:$0xff]  }
  0x56   : > { %840 = vmatmul.mubr.bf16.gmra.mrb[8].mxu1 %v3216_v43  ;;  %v3297_v43 = vcombine.high %v4591_v29, %v4624_v41  ;;  %v4178_v29 = vld [vmem:[%s5613_s1 + $0x164] ss:$8 sps:$4 sm:$0xff]   ;;  %v3604_v41 = vcombine.low %v4651_v52, %v3526_v36 }
  0x57   : > { %869 = vmatpush1.bf16.msra.mxu1 %v3940_v38  ;;  %2013 = vmatmul.mubr.bf16.gmra.mrb[8].mxu0 %v3440_v50  ;;  %v3993_v38 = vld [vmem:[%s5613_s1 + $0x3c0] ss:$8 sps:$4 sm:$0xff]   ;;  %v4005_v50 = vld [vmem:[%s5613_s1 + $0x5d0] ss:$8 sps:$4 sm:$0xff]  }
  0x58   : > { %2042 = vmatpush1.bf16.msra.mxu0 %v3943_v40  ;;  %870 = vmatprep.subr.bf16.mxu1 %v3948_v44  ;;  %v4004_v40 = vld [vmem:[%s5613_s1 + $0x3d4] ss:$8 sps:$4 sm:$0xff]   ;;  %v3601_v44 = vcombine.high %v4613_v37, %v4648_v51 }
  0x59   : > { %2043 = vmatprep.subr.bf16.mxu0 %v3951_v46  ;;  %849 = vmatprep.mubr.bf16.mxu1 %v3221_v56  ;;  %v4007_v46 = vld [vmem:[%s5613_s1 + $0x5d4] ss:$8 sps:$4 sm:$0xff]   ;;  %v4009_v56 = vld [vmem:[%s5613_s1 + $0x3e0] ss:$8 sps:$4 sm:$0xff]  }
  0x5a   : > { %2022 = vmatprep.mubr.bf16.mxu0 %v3445_v61  ;;  %v4023_v61 = vld [vmem:[%s5613_s1 + $0x5f4] ss:$8 sps:$4 sm:$0xff]  }
  0x5b   : > { %871 = vmatpush1.bf16.msra.mxu1 %v3946_v47  ;;  %v3600_v47 = vcombine.low %v4613_v37, %v4648_v51  ;;  %v4181_v37 = vld [vmem:[%s5613_s1 + $0x764] ss:$8 sps:$4 sm:$0xff]  }
  0x5c   : > { %2044 = vmatpush1.bf16.msra.mxu0 %v3949_v48  ;;  %872 = vmatprep.subr.bf16.mxu1 %v3954_v54  ;;  %v4002_v48 = vld [vmem:[%s5613_s1 + $0x3d0] ss:$8 sps:$4 sm:$0xff]   ;;  %v4011_v54 = vld [vmem:[%s5613_s1 + $0x3e4] ss:$8 sps:$4 sm:$0xff]  }
  0x5d   : > { %2045 = vmatprep.subr.bf16.mxu0 %v3957_v55  ;;  %v4015_v55 = vld [vmem:[%s5613_s1 + $0x5e4] ss:$8 sps:$4 sm:$0xff]  }
  0x5e   : > { %850 = vmatmul.mubr.bf16.gmra.mrb[12].mxu1 %v3220_v62  ;;  %v3300_v62 = vcombine.low %v4627_v42, %v4662_v57  ;;  %v5210_v51 = vld [vmem:[%s4457_s17 + $0x8] sm:$0xff] }
  0x5f   : > { %873 = vmatpush1.bf16.msra.mxu1 %v3952_v59  ;;  %892 = vmatprep.mubr.bf16.mxu1 %v3211_v8  ;;  %v4020_v59 = vld [vmem:[%s5613_s1 + $0x3f4] ss:$8 sps:$4 sm:$0xff]   ;;  %v3210_v8 = vcombine.low %v4687_v3, %v4691_v5 }
  0x60   : > { %2046 = vmatpush1.bf16.msra.mxu0 %v3955_v60  ;;  %874 = vmatprep.subr.bf16.mxu1 %v3960_v63  ;;  %v3301_v60 = vcombine.high %v4627_v42, %v4662_v57  ;;  %v4018_v63 = vld [vmem:[%s5613_s1 + $0x3f0] ss:$8 sps:$4 sm:$0xff]   ;;  %v4039_v3 = vld [vmem:[%s5613_s1 + $0x614] ss:$8 sps:$4 sm:$0xff]   ;;  %v4193_v42 = vld [vmem:[%s5613_s1 + $0x784] ss:$8 sps:$4 sm:$0xff]  }
  0x61   : > { %2047 = vmatprep.subr.bf16.mxu0 %v3963_v0  ;;  %2023 = vmatmul.mubr.bf16.gmra.mrb[12].mxu0 %v3444_v4  ;;  %v4021_v0 = vld [vmem:[%s5613_s1 + $0x5f0] ss:$8 sps:$4 sm:$0xff]   ;;  %v4026_v4 = vld [vmem:[%s5613_s1] ss:$8 sps:$4 sm:$0xff]  }
  0x62   : > { %2065 = vmatprep.mubr.bf16.mxu0 %v3435_v11  ;;  %v3434_v11 = vcombine.low %v4702_v9, %v4705_v10  ;;  %v4188_v57 = vld [vmem:[%s5613_s1 + $0x180] ss:$8 sps:$4 sm:$0xff]  }
  0x63   : > { %875 = vmatpush1.bf16.msra.mxu1 %v3958_v1  ;;  %v4028_v1 = vld [vmem:[%s5613_s1 + $0x4] ss:$8 sps:$4 sm:$0xff]  }
  0x64   : > { %2048 = vmatpush1.bf16.msra.mxu0 %v3961_v2  ;;  %876 = vmatprep.subr.bf16.mxu1 %v3966_v6  ;;  %v4033_v2 = vld [vmem:[%s5613_s1 + $0x604] ss:$8 sps:$4 sm:$0xff]   ;;  %v4031_v6 = vld [vmem:[%s5613_s1 + $0x600] ss:$8 sps:$4 sm:$0xff]  }
  0x65   : > { %2049 = vmatprep.subr.bf16.mxu0 %v3969_v7  ;;  %v4828_v7 = vld [vmem:[%s4457_s17 + $0xb8] sm:$0xff] }
  0x67   : > { %877 = vmatpush1.bf16.msra.mxu1 %v3964_v12  ;;  %v4835_v12 = vld [vmem:[%s4457_s17 + $0xc8] sm:$0xff] }
  0x68   : > { %2050 = vmatpush1.bf16.msra.mxu0 %v3967_v13  ;;  %878 = vmatprep.subr.bf16.mxu1 %v3972_v14  ;;  %v4838_v13 = vld [vmem:[%s4457_s17 + $0x38] sm:$0xff]  ;;  %v4841_v14 = vld [vmem:[%s4457_s17 + $0x48] sm:$0xff] }
  0x69   : > { %2051 = vmatprep.subr.bf16.mxu0 %v3975_v15  ;;  %v4036_v15 = vld [vmem:[%s5613_s1 + $0x14] ss:$8 sps:$4 sm:$0xff]  }
  0x6b   : > { %879 = vmatpush1.bf16.msra.mxu1 %v3970_v16  ;;  %v3594_v16 = vcombine.low %v4691_v5, %v4828_v7 }
  0x6c   : > { %2052 = vmatpush1.bf16.msra.mxu0 %v3973_v17  ;;  %880 = vmatprep.subr.bf16.mxu1 %v3979_v18  ;;  %v3595_v17 = vcombine.high %v4691_v5, %v4828_v7  ;;  %v3215_v18 = vcombine.high %v4828_v7, %v4835_v12  ;;  %v3527_v5 = vld [vmem:[%s4457_s17 + $0x118] sm:$0xff] }
  0x6d   : > { %2053 = vmatprep.subr.bf16.mxu0 %v3983_v19  ;;  %v3439_v19 = vcombine.high %v4838_v13, %v4841_v14 }
  0x6f   : > { %881 = vmatpush1.bf16.msra.mxu1 %v3977_v24  ;;  %v4858_v24 = vld [vmem:[%s4457_s17 + $0xd8] sm:$0xff] }
  0x70   : > { %2054 = vmatpush1.bf16.msra.mxu0 %v3981_v25  ;;  %882 = vmatprep.subr.bf16.mxu1 %v3988_v26  ;;  %v3295_v25 = vcombine.high %v4705_v10, %v4838_v13  ;;  %v4034_v26 = vld [vmem:[%s5613_s1 + $0x10] ss:$8 sps:$4 sm:$0xff]  }
  0x71   : > { %2055 = vmatprep.subr.bf16.mxu0 %v3991_v30  ;;  %v4037_v30 = vld [vmem:[%s5613_s1 + $0x610] ss:$8 sps:$4 sm:$0xff]  }
  0x73   : > { %883 = vmatpush1.bf16.msra.mxu1 %v3986_v32  ;;  %v3599_v32 = vcombine.high %v4835_v12, %v4858_v24 }
  0x74   : > { %2056 = vmatpush1.bf16.msra.mxu0 %v3989_v33  ;;  %884 = vmatprep.subr.bf16.mxu1 %v3995_v34  ;;  %v3294_v33 = vcombine.low %v4705_v10, %v4838_v13  ;;  %v4042_v34 = vld [vmem:[%s5613_s1 + $0x24] ss:$8 sps:$4 sm:$0xff]  }
  0x75   : > { %2057 = vmatprep.subr.bf16.mxu0 %v3999_v35  ;;  %v4045_v35 = vld [vmem:[%s5613_s1 + $0x624] ss:$8 sps:$4 sm:$0xff]  }
  0x77   : > { %885 = vmatpush1.bf16.msra.mxu1 %v3993_v38  ;;  %v4040_v38 = vld [vmem:[%s5613_s1 + $0x20] ss:$8 sps:$4 sm:$0xff]  }
  0x78   : > { %2058 = vmatpush1.bf16.msra.mxu0 %v3997_v39  ;;  %886 = vmatprep.subr.bf16.mxu1 %v4004_v40  ;;  %v4043_v39 = vld [vmem:[%s5613_s1 + $0x620] ss:$8 sps:$4 sm:$0xff]  }
  0x79   : > { %2059 = vmatprep.subr.bf16.mxu0 %v4007_v46  ;;  %v4885_v40 = vld [vmem:[%s4457_s17 + $0xe8] sm:$0xff]  ;;  %v3214_v46 = vcombine.low %v4828_v7, %v4835_v12 }
  0x7b   : > { %887 = vmatpush1.bf16.msra.mxu1 %v4002_v48  ;;  %v3438_v48 = vcombine.low %v4838_v13, %v4841_v14 }
  0x7c   : > { %2060 = vmatpush1.bf16.msra.mxu0 %v4005_v50  ;;  %888 = vmatprep.subr.bf16.mxu1 %v4011_v54  ;;  %v4892_v50 = vld [vmem:[%s4457_s17 + $0x58] sm:$0xff]  ;;  %v4895_v54 = vld [vmem:[%s4457_s17 + $0x68] sm:$0xff] }
  0x7d   : > { %2061 = vmatprep.subr.bf16.mxu0 %v4015_v55  ;;  %v4048_v55 = vld [vmem:[%s5613_s1 + $0x34] ss:$8 sps:$4 sm:$0xff]  }
  0x7f   : > { %889 = vmatpush1.bf16.msra.mxu1 %v4009_v56  ;;  %v4051_v56 = vld [vmem:[%s5613_s1 + $0x634] ss:$8 sps:$4 sm:$0xff]  }
  0x80   : > { %2062 = vmatpush1.bf16.msra.mxu0 %v4013_v58  ;;  %890 = vmatprep.subr.bf16.mxu1 %v4020_v59  ;;  %v3598_v58 = vcombine.low %v4835_v12, %v4858_v24  ;;  %v4046_v59 = vld [vmem:[%s5613_s1 + $0x30] ss:$8 sps:$4 sm:$0xff]   ;;  %v2767_v12 = vlaneseq }
  0x81   : > { %2063 = vmatprep.subr.bf16.mxu0 %v4023_v61  ;;  %v3219_v61 = vcombine.high %v4858_v24, %v4885_v40 }
  0x82   : > { %v2768_v13 = vshrl.u32 %v2767_v12, 7 }
  0x83   : > { %891 = vmatpush1.bf16.msra.mxu1 %v4018_v63  ;;  %v3443_v63 = vcombine.high %v4892_v50, %v4895_v54 }
  0x84   : > { %2064 = vmatpush1.bf16.msra.mxu0 %v4021_v0  ;;  %1333 = vmatprep.subr.bf16.mxu1 %v4028_v1  ;;  %v4913_v0 = vld [vmem:[%s4457_s17 + $0xf8] sm:$0xff]  ;;  %v3299_v1 = vcombine.high %v4841_v14, %v4892_v50 }
  0x85   : > { %2603 = vmatprep.subr.bf16.mxu0 %v4033_v2  ;;  %v4049_v2 = vld [vmem:[%s5613_s1 + $0x630] ss:$8 sps:$4 sm:$0xff]  }
  0x86   : > { %893 = vmatmul.mubr.bf16.vlgmr.msra.gmra.mrb[0].mxu1 %v3210_v8  ;;  %v4054_v8 = vld [vmem:[%s5613_s1 + $0x44] ss:$8 sps:$4 sm:$0xff]  }
  0x87   : > { %2066 = vmatmul.mubr.bf16.vlgmr.msra.gmra.mrb[0].mxu0 %v3434_v11  ;;  %1334 = vmatpush1.bf16.msra.mxu1 %v4026_v4  ;;  %v3603_v4 = vcombine.high %v4885_v40, %v4913_v0  ;;  %v4057_v11 = vld [vmem:[%s5613_s1 + $0x644] ss:$8 sps:$4 sm:$0xff]  }
  0x88   : > { %2604 = vmatpush1.bf16.msra.mxu0 %v4031_v6  ;;  %1335 = vmatprep.subr.bf16.mxu1 %v4036_v15  ;;  %v3298_v6 = vcombine.low %v4841_v14, %v4892_v50  ;;  %v4052_v15 = vld [vmem:[%s5613_s1 + $0x40] ss:$8 sps:$4 sm:$0xff]   ;;  %v2769_v14 = vsub.s32 0, %v2768_v13 }
  0x89   : > { %2605 = vmatprep.subr.bf16.mxu0 %v4039_v3  ;;  %902 = vmatprep.mubr.bf16.mxu1 %v3215_v18  ;;  %v4934_v3 = vld [vmem:[%s4457_s17 + $0x108] sm:$0xff]  ;;  %v4937_v18 = vld [vmem:[%s4457_s17 + $0x78] sm:$0xff] }
  0x8a   : > { %2075 = vmatprep.mubr.bf16.mxu0 %v3439_v19  ;;  %v3218_v19 = vcombine.low %v4858_v24, %v4885_v40  ;;  %v3607_v7 = vcombine.high %v4934_v3, %v3527_v5  ;;  %v3606_v10 = vcombine.low %v4934_v3, %v3527_v5  ;;  %v2773_v24 = vsub.s32 1, %v2768_v13 }
  0x8b   : > { %1336 = vmatpush1.bf16.msra.mxu1 %v4034_v26  ;;  %v3442_v26 = vcombine.low %v4892_v50, %v4895_v54 }
  0x8c   : > { %2606 = vmatpush1.bf16.msra.mxu0 %v4037_v30  ;;  %1337 = vmatprep.subr.bf16.mxu1 %v4042_v34  ;;  %v1494_v30 = vld [vmem:[%s4457_s17 + $0x88] sm:$0xff] }
  0x8d   : > { %2607 = vmatprep.subr.bf16.mxu0 %v4045_v35  ;;  %v4055_v34 = vld [vmem:[%s5613_s1 + $0x640] ss:$8 sps:$4 sm:$0xff]   ;;  %v4060_v35 = vld [vmem:[%s5613_s1 + $0x54] ss:$8 sps:$4 sm:$0xff]  }
  0x8e   : > { %903 = vmatmul.mubr.bf16.gmra.mrb[4].mxu1 %v3214_v46  ;;  %v3223_v46 = vcombine.high %v4913_v0, %v4934_v3 }
  0x8f   : > { %2076 = vmatmul.mubr.bf16.gmra.mrb[4].mxu0 %v3438_v48  ;;  %1338 = vmatpush1.bf16.msra.mxu1 %v4040_v38  ;;  %v4063_v38 = vld [vmem:[%s5613_s1 + $0x654] ss:$8 sps:$4 sm:$0xff]   ;;  %v3447_v48 = vcombine.high %v4937_v18, %v1494_v30 }
  0x90   : > { %2608 = vmatpush1.bf16.msra.mxu0 %v4043_v39  ;;  %1339 = vmatprep.subr.bf16.mxu1 %v4048_v55  ;;  %v3602_v39 = vcombine.low %v4885_v40, %v4913_v0  ;;  %v4058_v55 = vld [vmem:[%s5613_s1 + $0x50] ss:$8 sps:$4 sm:$0xff]  }
  0x91   : > { %2609 = vmatprep.subr.bf16.mxu0 %v4051_v56  ;;  %912 = vmatprep.mubr.bf16.mxu1 %v3219_v61  ;;  %v3303_v56 = vcombine.high %v4895_v54, %v4937_v18  ;;  %v3302_v61 = vcombine.low %v4895_v54, %v4937_v18 }
  0x92   : > { %2085 = vmatprep.mubr.bf16.mxu0 %v3443_v63  ;;  %v4066_v63 = vld [vmem:[%s5613_s1 + $0x64] ss:$8 sps:$4 sm:$0xff]  }
  0x93   : > { %1340 = vmatpush1.bf16.msra.mxu1 %v4046_v59  ;;  %v4061_v59 = vld [vmem:[%s5613_s1 + $0x650] ss:$8 sps:$4 sm:$0xff]  }
  0x94   : > { %2610 = vmatpush1.bf16.msra.mxu0 %v4049_v2  ;;  %1341 = vmatprep.subr.bf16.mxu1 %v4054_v8  ;;  %v4069_v2 = vld [vmem:[%s5613_s1 + $0x664] ss:$8 sps:$4 sm:$0xff]   ;;  %v4064_v8 = vld [vmem:[%s5613_s1 + $0x60] ss:$8 sps:$4 sm:$0xff]  }
  0x95   : > { %2611 = vmatprep.subr.bf16.mxu0 %v4057_v11  ;;  %v3222_v11 = vcombine.low %v4913_v0, %v4934_v3 }
  0x96   : > { %913 = vmatmul.mubr.bf16.gmra.mrb[8].mxu1 %v3218_v19  ;;  %v4981_v19 = vld [vmem:[%s4457_s17] sm:$0xff] }
  0x97   : > { %2086 = vmatmul.mubr.bf16.gmra.mrb[8].mxu0 %v3442_v26  ;;  %1342 = vmatpush1.bf16.msra.mxu1 %v4052_v15  ;;  %v3446_v15 = vcombine.low %v4937_v18, %v1494_v30  ;;  %v4067_v26 = vld [vmem:[%s5613_s1 + $0x660] ss:$8 sps:$4 sm:$0xff]   ;;  %v3289_v30 = vcombine.high %v4981_v19, %v4483_v53  ;;  %v4081_v53 = vld [vmem:[%s5613_s1 + $0x684] ss:$8 sps:$4 sm:$0xff]  }
  0x98   : > { %2612 = vmatpush1.bf16.msra.mxu0 %v4055_v34  ;;  %1343 = vmatprep.subr.bf16.mxu1 %v4060_v35  ;;  %v4072_v34 = vld [vmem:[%s5613_s1 + $0x74] ss:$8 sps:$4 sm:$0xff]  }
  0x99   : > { %2613 = vmatprep.subr.bf16.mxu0 %v4063_v38  ;;  %922 = vmatprep.mubr.bf16.mxu1 %v3223_v46  ;;  %v4075_v35 = vld [vmem:[%s5613_s1 + $0x674] ss:$8 sps:$4 sm:$0xff]   ;;  %v4070_v38 = vld [vmem:[%s5613_s1 + $0x70] ss:$8 sps:$4 sm:$0xff]  }
  0x9a   : > { %2095 = vmatprep.mubr.bf16.mxu0 %v3447_v48  ;;  %v4073_v46 = vld [vmem:[%s5613_s1 + $0x670] ss:$8 sps:$4 sm:$0xff]   ;;  %v4078_v48 = vld [vmem:[%s5613_s1 + $0x84] ss:$8 sps:$4 sm:$0xff]  }
  0x9b   : > { %1344 = vmatpush1.bf16.msra.mxu1 %v4058_v55  ;;  %v4076_v55 = vld [vmem:[%s5613_s1 + $0x80] ss:$8 sps:$4 sm:$0xff]  }
  0x9c   : > { %2614 = vmatpush1.bf16.msra.mxu0 %v4061_v59  ;;  %1345 = vmatprep.subr.bf16.mxu1 %v4066_v63  ;;  %v4079_v59 = vld [vmem:[%s5613_s1 + $0x680] ss:$8 sps:$4 sm:$0xff]   ;;  %v4084_v63 = vld [vmem:[%s5613_s1 + $0x94] ss:$8 sps:$4 sm:$0xff]  }
  0x9d   : > { %2615 = vmatprep.subr.bf16.mxu0 %v4069_v2  ;;  %v4082_v2 = vld [vmem:[%s5613_s1 + $0x90] ss:$8 sps:$4 sm:$0xff]  }
  0x9e   : > { %923 = vmatmul.mubr.bf16.gmra.mrb[12].mxu1 %v3222_v11  ;;  %v4091_v11 = vld [vmem:[%s5613_s1 + $0xa4] ss:$8 sps:$4 sm:$0xff]  }
  0x9f   : > { %2096 = vmatmul.mubr.bf16.gmra.mrb[12].mxu0 %v3446_v15  ;;  %1346 = vmatpush1.bf16.msra.mxu1 %v4064_v8  ;;  %v4085_v8 = vld [vmem:[%s5613_s1 + $0x690] ss:$8 sps:$4 sm:$0xff]   ;;  %v4095_v15 = vld [vmem:[%s5613_s1 + $0x6a4] ss:$8 sps:$4 sm:$0xff]  }
  0xa0   : > { %2616 = vmatpush1.bf16.msra.mxu0 %v4067_v26  ;;  %1347 = vmatprep.subr.bf16.mxu1 %v4072_v34  ;;  %v4089_v26 = vld [vmem:[%s5613_s1 + $0xa0] ss:$8 sps:$4 sm:$0xff]  }
  0xa1   : > { %2617 = vmatprep.subr.bf16.mxu0 %v4075_v35  ;;  %1365 = vmatprep.mubr.bf16.mxu1 %v3289_v30  ;;  %v4093_v34 = vld [vmem:[%s5613_s1 + $0x6a0] ss:$8 sps:$4 sm:$0xff]   ;;  %v4100_v35 = vld [vmem:[%s5613_s1 + $0xb4] ss:$8 sps:$4 sm:$0xff]  }
  0xa2   : > { %2635 = vmatprep.mubr.bf16.mxu0 %v3593_v23  ;;  %v4087_v23 = vld [vmem:[%s5613_s1 + $0x694] ss:$8 sps:$4 sm:$0xff]  }
  0xa3   : > { %1348 = vmatpush1.bf16.msra.mxu1 %v4070_v38  ;;  %v4103_v30 = vld [vmem:[%s5613_s1 + $0x6b4] ss:$8 sps:$4 sm:$0xff]   ;;  %v4098_v38 = vld [vmem:[%s5613_s1 + $0xb0] ss:$8 sps:$4 sm:$0xff]  }
  0xa4   : > { %2618 = vmatpush1.bf16.msra.mxu0 %v4073_v46  ;;  %1349 = vmatprep.subr.bf16.mxu1 %v4078_v48  ;;  %v4101_v46 = vld [vmem:[%s5613_s1 + $0x6b0] ss:$8 sps:$4 sm:$0xff]   ;;  %v4107_v48 = vld [vmem:[%s5613_s1 + $0xc4] ss:$8 sps:$4 sm:$0xff]  }
  0xa5   : > { %2619 = vmatprep.subr.bf16.mxu0 %v4081_v53  ;;  %v4111_v53 = vld [vmem:[%s5613_s1 + $0x6c4] ss:$8 sps:$4 sm:$0xff]  }
  0xa7   : > { %1350 = vmatpush1.bf16.msra.mxu1 %v4076_v55  ;;  %v4105_v55 = vld [vmem:[%s5613_s1 + $0xc0] ss:$8 sps:$4 sm:$0xff]  }
  0xa8   : > { %2620 = vmatpush1.bf16.msra.mxu0 %v4079_v59  ;;  %1351 = vmatprep.subr.bf16.mxu1 %v4084_v63  ;;  %v4109_v59 = vld [vmem:[%s5613_s1 + $0x6c0] ss:$8 sps:$4 sm:$0xff]   ;;  %v4116_v63 = vld [vmem:[%s5613_s1 + $0xd4] ss:$8 sps:$4 sm:$0xff]  }
  0xa9   : > { %2621 = vmatprep.subr.bf16.mxu0 %v4087_v23  ;;  %v4119_v23 = vld [vmem:[%s5613_s1 + $0x6d4] ss:$8 sps:$4 sm:$0xff]  }
  0xab   : > { %1352 = vmatpush1.bf16.msra.mxu1 %v4082_v2  ;;  %v4114_v2 = vld [vmem:[%s5613_s1 + $0xd0] ss:$8 sps:$4 sm:$0xff]  }
  0xac   : > { %2622 = vmatpush1.bf16.msra.mxu0 %v4085_v8  ;;  %1353 = vmatprep.subr.bf16.mxu1 %v4091_v11  ;;  %v4117_v8 = vld [vmem:[%s5613_s1 + $0x6d0] ss:$8 sps:$4 sm:$0xff]   ;;  %v4123_v11 = vld [vmem:[%s5613_s1 + $0xe4] ss:$8 sps:$4 sm:$0xff]  }
  0xad   : > { %2623 = vmatprep.subr.bf16.mxu0 %v4095_v15  ;;  %v4127_v15 = vld [vmem:[%s5613_s1 + $0x6e4] ss:$8 sps:$4 sm:$0xff]  }
  0xaf   : > { %1354 = vmatpush1.bf16.msra.mxu1 %v4089_v26  ;;  %v4121_v26 = vld [vmem:[%s5613_s1 + $0xe0] ss:$8 sps:$4 sm:$0xff]  }
  0xb0   : > { %2624 = vmatpush1.bf16.msra.mxu0 %v4093_v34  ;;  %1355 = vmatprep.subr.bf16.mxu1 %v4100_v35  ;;  %v4125_v34 = vld [vmem:[%s5613_s1 + $0x6e0] ss:$8 sps:$4 sm:$0xff]   ;;  %v4132_v35 = vld [vmem:[%s5613_s1 + $0xf4] ss:$8 sps:$4 sm:$0xff]  }
  0xb1   : > { %2625 = vmatprep.subr.bf16.mxu0 %v4103_v30  ;;  %v4135_v30 = vld [vmem:[%s5613_s1 + $0x6f4] ss:$8 sps:$4 sm:$0xff]  }
  0xb3   : > { %1356 = vmatpush1.bf16.msra.mxu1 %v4098_v38  ;;  %v4130_v38 = vld [vmem:[%s5613_s1 + $0xf0] ss:$8 sps:$4 sm:$0xff]  }
  0xb4   : > { %2626 = vmatpush1.bf16.msra.mxu0 %v4101_v46  ;;  %1357 = vmatprep.subr.bf16.mxu1 %v4107_v48  ;;  %v4133_v46 = vld [vmem:[%s5613_s1 + $0x6f0] ss:$8 sps:$4 sm:$0xff]   ;;  %v4140_v48 = vld [vmem:[%s5613_s1 + $0x104] ss:$8 sps:$4 sm:$0xff]  }
  0xb5   : > { %2627 = vmatprep.subr.bf16.mxu0 %v4111_v53  ;;  %v4145_v53 = vld [vmem:[%s5613_s1 + $0x704] ss:$8 sps:$4 sm:$0xff]  }
  0xb7   : > { %1358 = vmatpush1.bf16.msra.mxu1 %v4105_v55  ;;  %v4266_v55 = vld [vmem:[%s4457_s17 + $0x10] sm:$0xff] }
  0xb8   : > { %2628 = vmatpush1.bf16.msra.mxu0 %v4109_v59  ;;  %1359 = vmatprep.subr.bf16.mxu1 %v4116_v63  ;;  %v3288_v59 = vcombine.low %v4981_v19, %v4266_v55  ;;  %v229_v63 = vld [vmem:[%s4457_s17 + $0x20] sm:$0xff]  ;;  %v4151_v19 = vld [vmem:[%s5613_s1 + $0x714] ss:$8 sps:$4 sm:$0xff]   ;;  %v3605_v55 = vcombine.high %v4651_v52, %v3526_v36 }
  0xb9   : > { %2629 = vmatprep.subr.bf16.mxu0 %v4119_v23  ;;  %v4138_v23 = vld [vmem:[%s5613_s1 + $0x100] ss:$8 sps:$4 sm:$0xff]   ;;  %v4187_v52 = vld [vmem:[%s5613_s1 + $0x774] ss:$8 sps:$4 sm:$0xff]  }
  0xba   : > { %v4231_v36 = vld [vmem:[%s5613_s1 + $0x7d4] ss:$8 sps:$4 sm:$0xff]  }
  0xbb   : > { %1360 = vmatpush1.bf16.msra.mxu1 %v4114_v2  ;;  %v4143_v2 = vld [vmem:[%s5613_s1 + $0x700] ss:$8 sps:$4 sm:$0xff]  }
  0xbc   : > { %2630 = vmatpush1.bf16.msra.mxu0 %v4117_v8  ;;  %1361 = vmatprep.subr.bf16.mxu1 %v4123_v11  ;;  %v4148_v8 = vld [vmem:[%s5613_s1 + $0x114] ss:$8 sps:$4 sm:$0xff]   ;;  %v3293_v11 = vcombine.high %v229_v63, %v4586_v27  ;;  %v4154_v27 = vld [vmem:[%s5613_s1 + $0x124] ss:$8 sps:$4 sm:$0xff]  }
  0xbd   : > { %2631 = vmatprep.subr.bf16.mxu0 %v4127_v15  ;;  %v4146_v15 = vld [vmem:[%s5613_s1 + $0x110] ss:$8 sps:$4 sm:$0xff]  }
  0xbf   : > { %1362 = vmatpush1.bf16.msra.mxu1 %v4121_v26  ;;  %v4149_v26 = vld [vmem:[%s5613_s1 + $0x710] ss:$8 sps:$4 sm:$0xff]  }
  0xc0   : > { %2632 = vmatpush1.bf16.msra.mxu0 %v4125_v34  ;;  %1363 = vmatprep.subr.bf16.mxu1 %v4132_v35  ;;  %v4152_v34 = vld [vmem:[%s5613_s1 + $0x120] ss:$8 sps:$4 sm:$0xff]  }
  0xc1   : > { %2633 = vmatprep.subr.bf16.mxu0 %v4135_v30  ;;  %v4155_v35 = vld [vmem:[%s5613_s1 + $0x720] ss:$8 sps:$4 sm:$0xff]   ;;  %v4160_v30 = vld [vmem:[%s5613_s1 + $0x134] ss:$8 sps:$4 sm:$0xff]  }
  0xc3   : > { %1364 = vmatpush1.bf16.msra.mxu1 %v4130_v38  ;;  %v4158_v38 = vld [vmem:[%s5613_s1 + $0x130] ss:$8 sps:$4 sm:$0xff]  }
  0xc4   : > { %2634 = vmatpush1.bf16.msra.mxu0 %v4133_v46  ;;  %1406 = vmatprep.subr.bf16.mxu1 %v4140_v48  ;;  %v4161_v46 = vld [vmem:[%s5613_s1 + $0x730] ss:$8 sps:$4 sm:$0xff]   ;;  %v4166_v48 = vld [vmem:[%s5613_s1 + $0x144] ss:$8 sps:$4 sm:$0xff]  }
  0xc5   : > { %2676 = vmatprep.subr.bf16.mxu0 %v4145_v53  ;;  %v4167_v53 = vld [vmem:[%s5613_s1 + $0x740] ss:$8 sps:$4 sm:$0xff]  }
  0xc6   : > { %1366 = vmatmul.mubr.bf16.vlgmr.msra.gmra.mrb[0].mxu1 %v3288_v59  ;;  %v4170_v59 = vld [vmem:[%s5613_s1 + $0x150] ss:$8 sps:$4 sm:$0xff]  }
  0xc7   : > { %2636 = vmatmul.mubr.bf16.vlgmr.msra.gmra.mrb[0].mxu0 %v3592_v22  ;;  %1407 = vmatpush1.bf16.msra.mxu1 %v4138_v23  ;;  %v3292_v22 = vcombine.low %v229_v63, %v4267_v20  ;;  %v4173_v63 = vld [vmem:[%s5613_s1 + $0x750] ss:$8 sps:$4 sm:$0xff]   ;;  %v3291_v23 = vcombine.high %v5210_v51, %v4702_v9  ;;  %v4190_v9 = vld [vmem:[%s5613_s1 + $0x184] ss:$8 sps:$4 sm:$0xff]   ;;  %v4207_v20 = vld [vmem:[%s5613_s1 + $0x7a0] ss:$8 sps:$4 sm:$0xff]  }
  0xc8   : > { %2677 = vmatpush1.bf16.msra.mxu0 %v4143_v2  ;;  %1408 = vmatprep.subr.bf16.mxu1 %v4148_v8  ;;  %v4182_v2 = vld [vmem:[%s5613_s1 + $0x170] ss:$8 sps:$4 sm:$0xff]  }
  0xc9   : > { %2678 = vmatprep.subr.bf16.mxu0 %v4151_v19  ;;  %1375 = vmatprep.mubr.bf16.mxu1 %v3293_v11  ;;  %v4185_v8 = vld [vmem:[%s5613_s1 + $0x770] ss:$8 sps:$4 sm:$0xff]   ;;  %v4196_v19 = vld [vmem:[%s5613_s1 + $0x194] ss:$8 sps:$4 sm:$0xff]  }
  0xca   : > { %2645 = vmatprep.mubr.bf16.mxu0 %v3597_v28  ;;  %v4163_v28 = vld [vmem:[%s5613_s1 + $0x734] ss:$8 sps:$4 sm:$0xff]   ;;  %v4194_v11 = vld [vmem:[%s5613_s1 + $0x190] ss:$8 sps:$4 sm:$0xff]  }
  0xcb   : > { %1409 = vmatpush1.bf16.msra.mxu1 %v4146_v15  ;;  %v4197_v15 = vld [vmem:[%s5613_s1 + $0x790] ss:$8 sps:$4 sm:$0xff]  }
  0xcc   : > { %2679 = vmatpush1.bf16.msra.mxu0 %v4149_v26  ;;  %1410 = vmatprep.subr.bf16.mxu1 %v4154_v27  ;;  %v4205_v26 = vld [vmem:[%s5613_s1 + $0x1a4] ss:$8 sps:$4 sm:$0xff]  }
  0xcd   : > { %2680 = vmatprep.subr.bf16.mxu0 %v4157_v49  ;;  %v4209_v27 = vld [vmem:[%s5613_s1 + $0x7a4] ss:$8 sps:$4 sm:$0xff]   ;;  %v4203_v49 = vld [vmem:[%s5613_s1 + $0x1a0] ss:$8 sps:$4 sm:$0xff]  }
  0xce   : > { %1376 = vmatmul.mubr.bf16.gmra.mrb[4].mxu1 %v3292_v22  ;;  %v4212_v22 = vld [vmem:[%s5613_s1 + $0x1b4] ss:$8 sps:$4 sm:$0xff]  }
  0xcf   : > { %2646 = vmatmul.mubr.bf16.gmra.mrb[4].mxu0 %v3596_v31  ;;  %1411 = vmatpush1.bf16.msra.mxu1 %v4152_v34  ;;  %v4164_v31 = vld [vmem:[%s5613_s1 + $0x140] ss:$8 sps:$4 sm:$0xff]   ;;  %v4215_v34 = vld [vmem:[%s5613_s1 + $0x7b4] ss:$8 sps:$4 sm:$0xff]  }
  0xd0   : > { %2681 = vmatpush1.bf16.msra.mxu0 %v4155_v35  ;;  %1412 = vmatprep.subr.bf16.mxu1 %v4160_v30  ;;  %v4210_v35 = vld [vmem:[%s5613_s1 + $0x1b0] ss:$8 sps:$4 sm:$0xff]  }
  0xd1   : > { %2682 = vmatprep.subr.bf16.mxu0 %v4163_v28  ;;  %1385 = vmatprep.mubr.bf16.mxu1 %v3297_v43  ;;  %v4172_v43 = vld [vmem:[%s5613_s1 + $0x154] ss:$8 sps:$4 sm:$0xff]   ;;  %v4213_v30 = vld [vmem:[%s5613_s1 + $0x7b0] ss:$8 sps:$4 sm:$0xff]   ;;  %v4221_v28 = vld [vmem:[%s5613_s1 + $0x1c4] ss:$8 sps:$4 sm:$0xff]  }
  0xd2   : > { %2655 = vmatprep.mubr.bf16.mxu0 %v3601_v44  ;;  %v4175_v44 = vld [vmem:[%s5613_s1 + $0x754] ss:$8 sps:$4 sm:$0xff]  }
  0xd3   : > { %1413 = vmatpush1.bf16.msra.mxu1 %v4158_v38  ;;  %v4225_v38 = vld [vmem:[%s5613_s1 + $0x7c4] ss:$8 sps:$4 sm:$0xff]  }
  0xd4   : > { %2683 = vmatpush1.bf16.msra.mxu0 %v4161_v46  ;;  %1414 = vmatprep.subr.bf16.mxu1 %v4166_v48  ;;  %v4219_v46 = vld [vmem:[%s5613_s1 + $0x1c0] ss:$8 sps:$4 sm:$0xff]  }
  0xd5   : > { %2684 = vmatprep.subr.bf16.mxu0 %v4169_v21  ;;  %v4223_v48 = vld [vmem:[%s5613_s1 + $0x7c0] ss:$8 sps:$4 sm:$0xff]   ;;  %v4228_v21 = vld [vmem:[%s5613_s1 + $0x1d4] ss:$8 sps:$4 sm:$0xff]  }
  0xd6   : > { %1386 = vmatmul.mubr.bf16.gmra.mrb[8].mxu1 %v3296_v45  ;;  %v4176_v45 = vld [vmem:[%s5613_s1 + $0x160] ss:$8 sps:$4 sm:$0xff]  }
  0xd7   : > { %2656 = vmatmul.mubr.bf16.gmra.mrb[8].mxu0 %v3600_v47  ;;  %1415 = vmatpush1.bf16.msra.mxu1 %v4164_v31  ;;  %v4179_v47 = vld [vmem:[%s5613_s1 + $0x760] ss:$8 sps:$4 sm:$0xff]   ;;  %v4226_v31 = vld [vmem:[%s5613_s1 + $0x1d0] ss:$8 sps:$4 sm:$0xff]  }
  0xd8   : > { %2685 = vmatpush1.bf16.msra.mxu0 %v4167_v53  ;;  %1416 = vmatprep.subr.bf16.mxu1 %v4172_v43  ;;  %v4229_v53 = vld [vmem:[%s5613_s1 + $0x7d0] ss:$8 sps:$4 sm:$0xff]   ;;  %v4237_v43 = vld [vmem:[%s5613_s1 + $0x1e4] ss:$8 sps:$4 sm:$0xff]  }
  0xd9   : > { %2686 = vmatprep.subr.bf16.mxu0 %v4175_v44  ;;  %1395 = vmatprep.mubr.bf16.mxu1 %v3301_v60  ;;  %v4184_v60 = vld [vmem:[%s5613_s1 + $0x174] ss:$8 sps:$4 sm:$0xff]   ;;  %v4241_v44 = vld [vmem:[%s5613_s1 + $0x7e4] ss:$8 sps:$4 sm:$0xff]  }
  0xda   : > { %2665 = vmatprep.mubr.bf16.mxu0 %v3605_v55  ;;  %v4235_v55 = vld [vmem:[%s5613_s1 + $0x1e0] ss:$8 sps:$4 sm:$0xff]  }
  0xdb   : > { %1417 = vmatpush1.bf16.msra.mxu1 %v4170_v59  ;;  %v4239_v59 = vld [vmem:[%s5613_s1 + $0x7e0] ss:$8 sps:$4 sm:$0xff]  }
  0xdc   : > { %2687 = vmatpush1.bf16.msra.mxu0 %v4173_v63  ;;  %1418 = vmatprep.subr.bf16.mxu1 %v4178_v29  ;;  %v4244_v63 = vld [vmem:[%s5613_s1 + $0x1f4] ss:$8 sps:$4 sm:$0xff]  }
  0xdd   : > { %2688 = vmatprep.subr.bf16.mxu0 %v4181_v37  ;;  %v4247_v29 = vld [vmem:[%s5613_s1 + $0x7f4] ss:$8 sps:$4 sm:$0xff]   ;;  %v4242_v37 = vld [vmem:[%s5613_s1 + $0x1f0] ss:$8 sps:$4 sm:$0xff]  }
  0xde   : > { %1396 = vmatmul.mubr.bf16.gmra.mrb[12].mxu1 %v3300_v62  ;;  %v4191_v62 = vld [vmem:[%s5613_s1 + $0x780] ss:$8 sps:$4 sm:$0xff]  }
  0xdf   : > { %2666 = vmatmul.mubr.bf16.gmra.mrb[12].mxu0 %v3604_v41  ;;  %1419 = vmatpush1.bf16.msra.mxu1 %v4176_v45  ;;  %v4245_v41 = vld [vmem:[%s5613_s1 + $0x7f0] ss:$8 sps:$4 sm:$0xff]  }
  0xe0   : > { %2689 = vmatpush1.bf16.msra.mxu0 %v4179_v47  ;;  %1420 = vmatprep.subr.bf16.mxu1 %v4184_v60  ;;  %v4268_v45 = vld [vmem:[%s4457_s17 + $0x18] sm:$0xff] }
  0xe1   : > { %2690 = vmatprep.subr.bf16.mxu0 %v4187_v52  ;;  %1438 = vmatprep.mubr.bf16.mxu1 %v3291_v23  ;;  %v3290_v47 = vcombine.low %v5210_v51, %v4268_v45 }
  0xe2   : > { %2708 = vmatprep.mubr.bf16.mxu0 %v3595_v17  ;;  %v4199_v17 = vld [vmem:[%s5613_s1 + $0x794] ss:$8 sps:$4 sm:$0xff]  }
  0xe3   : > { %1421 = vmatpush1.bf16.msra.mxu1 %v4182_v2 }
  0xe4   : > { %2691 = vmatpush1.bf16.msra.mxu0 %v4185_v8  ;;  %1422 = vmatprep.subr.bf16.mxu1 %v4190_v9 }
  0xe5   : > { %2692 = vmatprep.subr.bf16.mxu0 %v4193_v42 }
  0xe7   : > { %1423 = vmatpush1.bf16.msra.mxu1 %v4188_v57 }
  0xe8   : > { %2693 = vmatpush1.bf16.msra.mxu0 %v4191_v62  ;;  %1424 = vmatprep.subr.bf16.mxu1 %v4196_v19 }
  0xe9   : > { %2694 = vmatprep.subr.bf16.mxu0 %v4199_v17 }
  0xeb   : > { %1425 = vmatpush1.bf16.msra.mxu1 %v4194_v11 }
  0xec   : > { %2695 = vmatpush1.bf16.msra.mxu0 %v4197_v15  ;;  %1426 = vmatprep.subr.bf16.mxu1 %v4205_v26 }
  0xed   : > { %2696 = vmatprep.subr.bf16.mxu0 %v4209_v27 }
  0xef   : > { %1427 = vmatpush1.bf16.msra.mxu1 %v4203_v49 }
  0xf0   : > { %2697 = vmatpush1.bf16.msra.mxu0 %v4207_v20  ;;  %1428 = vmatprep.subr.bf16.mxu1 %v4212_v22 }
  0xf1   : > { %2698 = vmatprep.subr.bf16.mxu0 %v4215_v34 }
  0xf3   : > { %1429 = vmatpush1.bf16.msra.mxu1 %v4210_v35 }
  0xf4   : > { %2699 = vmatpush1.bf16.msra.mxu0 %v4213_v30  ;;  %1430 = vmatprep.subr.bf16.mxu1 %v4221_v28 }
  0xf5   : > { %2700 = vmatprep.subr.bf16.mxu0 %v4225_v38 }
  0xf7   : > { %1431 = vmatpush1.bf16.msra.mxu1 %v4219_v46 }
  0xf8   : > { %2701 = vmatpush1.bf16.msra.mxu0 %v4223_v48  ;;  %1432 = vmatprep.subr.bf16.mxu1 %v4228_v21 }
  0xf9   : > { %2702 = vmatprep.subr.bf16.mxu0 %v4231_v36 }
  0xfb   : > { %1433 = vmatpush1.bf16.msra.mxu1 %v4226_v31 }
  0xfc   : > { %2703 = vmatpush1.bf16.msra.mxu0 %v4229_v53  ;;  %1434 = vmatprep.subr.bf16.mxu1 %v4237_v43 }
  0xfd   : > { %2704 = vmatprep.subr.bf16.mxu0 %v4241_v44 }
  0xff   : > { %1435 = vmatpush1.bf16.msra.mxu1 %v4235_v55 }
 0x100   : > { %2705 = vmatpush1.bf16.msra.mxu0 %v4239_v59  ;;  %1436 = vmatprep.subr.bf16.mxu1 %v4244_v63 }
 0x101   : > { %2706 = vmatprep.subr.bf16.mxu0 %v4247_v29 }
 0x103   : > { %1437 = vmatpush1.bf16.msra.mxu1 %v4242_v37 }
 0x104   : > { %2707 = vmatpush1.bf16.msra.mxu0 %v4245_v41 }
 0x106   : > { %1439 = vmatmul.mubr.bf16.vlgmr.msra.gmra.mrb[0].mxu1 %v3290_v47 }
 0x107   : > { %2709 = vmatmul.mubr.bf16.vlgmr.msra.gmra.mrb[0].mxu0 %v3594_v16  ;;  %1448 = vmatprep.mubr.bf16.mxu1 %v3295_v25  ;;  %v2765_v16 = vld [vmem:[%s5614_s2] sm:$0x3] }
 0x108   : > { %2718 = vmatprep.mubr.bf16.mxu0 %v3599_v32  ;;  %v5375_v25 = vrot.slane %v2765_v16, %v2769_v14  ;;  %v5377_v40 = vrot.slane %v2765_v16, %v2773_v24 }
 0x10e   : > { %1449 = vmatmul.mubr.bf16.gmra.mrb[4].mxu1 %v3294_v33 }
 0x10f   : > { %2719 = vmatmul.mubr.bf16.gmra.mrb[4].mxu0 %v3598_v58  ;;  %1458 = vmatprep.mubr.bf16.mxu1 %v3299_v1 }
 0x110   : > { %2728 = vmatprep.mubr.bf16.mxu0 %v3603_v4 }
 0x116   : > { %1459 = vmatmul.mubr.bf16.gmra.mrb[8].mxu1 %v3298_v6 }
 0x117   : > { %2729 = vmatmul.mubr.bf16.gmra.mrb[8].mxu0 %v3602_v39  ;;  %1468 = vmatprep.mubr.bf16.mxu1 %v3303_v56 }
 0x118   : > { %2738 = vmatprep.mubr.bf16.mxu0 %v3607_v7 }
 0x11e   : > { %1469 = vmatmul.mubr.bf16.gmra.mrb[12].mxu1 %v3302_v61 }
 0x11f   : > { %2739 = vmatmul.mubr.bf16.gmra.mrb[12].mxu0 %v3606_v10 }
 0x1d9   : > { %v1440_v32 = vpop.f32.mrb[0].mxu1 }
 0x1da   : > { %v2710_v33 = vpop.f32.mrb[0].mxu0  ;;  %v1442_v58 = vpop.f32.mrb[1].mxu1 }
 0x1db   : > { %v3691_v50 = vadd.f32 %v2710_v33, %v1440_v32  ;;  %v2712_v0 = vpop.f32.mrb[1].mxu0  ;;  %v1444_v1 = vpop.f32.mrb[2].mxu1 }
 0x1dc   : > { %v3692_v54 = vadd.f32 %v2712_v0, %v1442_v58  ;;  %v2714_v4 = vpop.f32.mrb[2].mxu0  ;;  %v1446_v18 = vpop.f32.mrb[3].mxu1 }
 0x1dd   : > { %v5380_v6 = vadd.f32 %v3691_v50, %v5375_v25  ;;  %v3693_v3 = vadd.f32 %v2714_v4, %v1444_v1  ;;  %v2716_v39 = vpop.f32.mrb[3].mxu0 }
 0x1de   : > { %v5383_v56 = vadd.f32 %v3692_v54, %v5377_v40  ;;  %v3694_v61 = vadd.f32 %v2716_v39, %v1446_v18 }
 0x1df   : > { %v2818_v51 = vmul.f32 %v5380_v6, %v5380_v6  ;;  %v5388_v60 = vadd.f32 %v3693_v3, %v5375_v25 }
 0x1e0   : > { %v2793_v52 = vadd.f32 %v5383_v56, %v5380_v6  ;;  %v2819_v23 = vmul.f32 %v5383_v56, %v5383_v56  ;;  %v5395_v2 = vadd.f32 %v3694_v61, %v5377_v40 }
 0x1e1   : > { %v2820_v8 = vmul.f32 %v5388_v60, %v5388_v60  ;;  %v1450_v57 = vpop.f32.mrb[4].mxu1 }
 0x1e2   : > { %v2834_v9 = vadd.f32 %v2819_v23, %v2818_v51  ;;  %v2794_v42 = vadd.f32 %v2793_v52, %v5388_v60  ;;  %v2720_v62 = vpop.f32.mrb[4].mxu0  ;;  %v1452_v17 = vpop.f32.mrb[5].mxu1  ;;  %v2821_v27 = vmul.f32 %v5395_v2, %v5395_v2 }
 0x1e3   : > { %v3695_v19 = vadd.f32 %v2720_v62, %v1450_v57  ;;  %v2722_v11 = vpop.f32.mrb[5].mxu0  ;;  %v1454_v20 = vpop.f32.mrb[6].mxu1 }
 0x1e4   : > { %v2835_v15 = vadd.f32 %v2834_v9, %v2820_v8  ;;  %v2795_v26 = vadd.f32 %v2794_v42, %v5395_v2  ;;  %v3696_v49 = vadd.f32 %v2722_v11, %v1452_v17  ;;  %v2724_v22 = vpop.f32.mrb[6].mxu0  ;;  %v1456_v30 = vpop.f32.mrb[7].mxu1 }
 0x1e5   : > { %v5404_v34 = vadd.f32 %v3695_v19, %v5375_v25  ;;  %v3697_v35 = vadd.f32 %v2724_v22, %v1454_v20  ;;  %v2726_v28 = vpop.f32.mrb[7].mxu0 }
 0x1e6   : > { %v2836_v38 = vadd.f32 %v2835_v15, %v2821_v27  ;;  %v5407_v46 = vadd.f32 %v3696_v49, %v5377_v40  ;;  %v3698_v48 = vadd.f32 %v2726_v28, %v1456_v30 }
 0x1e7   : > { %v2796_v21 = vadd.f32 %v2795_v26, %v5404_v34  ;;  %v2822_v36 = vmul.f32 %v5404_v34, %v5404_v34  ;;  %v5413_v31 = vadd.f32 %v3697_v35, %v5375_v25 }
 0x1e8   : > { %v2823_v53 = vmul.f32 %v5407_v46, %v5407_v46  ;;  %v5418_v43 = vadd.f32 %v3698_v48, %v5377_v40 }
 0x1e9   : > { %v2837_v44 = vadd.f32 %v2836_v38, %v2822_v36  ;;  %v2797_v55 = vadd.f32 %v2796_v21, %v5407_v46  ;;  %v1460_v59 = vpop.f32.mrb[8].mxu1  ;;  %v2824_v41 = vmul.f32 %v5413_v31, %v5413_v31 }
 0x1ea   : > { %v2730_v63 = vpop.f32.mrb[8].mxu0  ;;  %v1462_v47 = vpop.f32.mrb[9].mxu1  ;;  %v2825_v7 = vmul.f32 %v5418_v43, %v5418_v43 }
 0x1eb   : > { %v2838_v29 = vadd.f32 %v2837_v44, %v2823_v53  ;;  %v2798_v37 = vadd.f32 %v2797_v55, %v5413_v31  ;;  %v3699_v45 = vadd.f32 %v2730_v63, %v1460_v59  ;;  %v2732_v5 = vpop.f32.mrb[9].mxu0  ;;  %v1464_v12 = vpop.f32.mrb[10].mxu1 }
 0x1ec   : > { %v3700_v10 = vadd.f32 %v2732_v5, %v1462_v47  ;;  %v2734_v13 = vpop.f32.mrb[10].mxu0  ;;  %v1466_v33 = vpop.f32.mrb[11].mxu1 }
 0x1ed   : > { %v2839_v14 = vadd.f32 %v2838_v29, %v2824_v41  ;;  %v2799_v16 = vadd.f32 %v2798_v37, %v5418_v43  ;;  %v5428_v24 = vadd.f32 %v3699_v45, %v5375_v25  ;;  %v3701_v32 = vadd.f32 %v2734_v13, %v1464_v12  ;;  %v2736_v50 = vpop.f32.mrb[11].mxu0 }
 0x1ee   : > { %v5431_v58 = vadd.f32 %v3700_v10, %v5377_v40  ;;  %v3702_v0 = vadd.f32 %v2736_v50, %v1466_v33 }
 0x1ef   : > { %v2840_v54 = vadd.f32 %v2839_v14, %v2825_v7  ;;  %v2800_v1 = vadd.f32 %v2799_v16, %v5428_v24  ;;  %v2826_v4 = vmul.f32 %v5428_v24, %v5428_v24  ;;  %v5437_v3 = vadd.f32 %v3701_v32, %v5375_v25 }
 0x1f0   : > { %v2827_v18 = vmul.f32 %v5431_v58, %v5431_v58  ;;  %v5442_v39 = vadd.f32 %v3702_v0, %v5377_v40 }
 0x1f1   : > { %v2841_v61 = vadd.f32 %v2840_v54, %v2826_v4  ;;  %v2801_v51 = vadd.f32 %v2800_v1, %v5431_v58  ;;  %v1470_v52 = vpop.f32.mrb[12].mxu1  ;;  %v2828_v42 = vmul.f32 %v5437_v3, %v5437_v3 }
 0x1f2   : > { %v2740_v23 = vpop.f32.mrb[12].mxu0  ;;  %v1472_v62 = vpop.f32.mrb[13].mxu1  ;;  %v2829_v17 = vmul.f32 %v5442_v39, %v5442_v39 }
 0x1f3   : > { %v2842_v8 = vadd.f32 %v2841_v61, %v2827_v18  ;;  %v2802_v9 = vadd.f32 %v2801_v51, %v5437_v3  ;;  %v3703_v57 = vadd.f32 %v2740_v23, %v1470_v52  ;;  %v2742_v19 = vpop.f32.mrb[13].mxu0  ;;  %v1474_v15 = vpop.f32.mrb[14].mxu1 }
 0x1f4   : > { %v3704_v11 = vadd.f32 %v2742_v19, %v1472_v62  ;;  %v2744_v26 = vpop.f32.mrb[14].mxu0  ;;  %v1476_v35 = vpop.f32.mrb[15].mxu1 }
 0x1f5   : > { %v2843_v27 = vadd.f32 %v2842_v8, %v2828_v42  ;;  %v2803_v49 = vadd.f32 %v2802_v9, %v5442_v39  ;;  %v5452_v20 = vadd.f32 %v3703_v57, %v5375_v25  ;;  %v3705_v22 = vadd.f32 %v2744_v26, %v1474_v15  ;;  %v2746_v30 = vpop.f32.mrb[15].mxu0 }
 0x1f6   : > { %v5455_v28 = vadd.f32 %v3704_v11, %v5377_v40  ;;  %v3706_v38 = vadd.f32 %v2746_v30, %v1476_v35  ;;  %v2901_v30 = vld [vmem:[%s5615_s3 + $0x20] sm:$0xff] }
 0x1f7   : > { %v2844_v48 = vadd.f32 %v2843_v27, %v2829_v17  ;;  %v2830_v21 = vmul.f32 %v5452_v20, %v5452_v20  ;;  %v5460_v36 = vadd.f32 %v3705_v22, %v5375_v25  ;;  %v2804_v53 = vadd.f32 %v2803_v49, %v5452_v20 }
 0x1f8   : > { %v2831_v44 = vmul.f32 %v5455_v28, %v5455_v28  ;;  %v5467_v63 = vadd.f32 %v3706_v38, %v5377_v40  ;;  %v2903_v38 = vld [vmem:[%s5615_s3 + $0x30] sm:$0xff] }
 0x1f9   : > { %v2805_v55 = vadd.f32 %v2804_v53, %v5455_v28  ;;  %v2845_v59 = vadd.f32 %v2844_v48, %v2830_v21  ;;  %v2832_v37 = vmul.f32 %v5460_v36, %v5460_v36  ;;  %v2904_v48 = vld [vmem:[%s5615_s3 + $0x38] sm:$0xff] }
 0x1fa   : > { %v2833_v47 = vmul.f32 %v5467_v63, %v5467_v63 }
 0x1fb   : > { %v2806_v29 = vadd.f32 %v2805_v55, %v5460_v36  ;;  %v2846_v41 = vadd.f32 %v2845_v59, %v2831_v44  ;;  %v2905_v55 = vld [vmem:[%s5615_s3 + $0x40] sm:$0xff]  ;;  %v2906_v59 = vld [vmem:[%s5615_s3 + $0x48] sm:$0xff] }
 0x1fd   : > { %v2807_v25 = vadd.f32 %v2806_v29, %v5467_v63  ;;  %v2847_v45 = vadd.f32 %v2846_v41, %v2832_v37 }
 0x1ff   : > { %2808 = vadd.xlane.f32.xlu0 %v2807_v25  ;;  %v2848_v5 = vadd.f32 %v2847_v45, %v2833_v47  ;;  %v2908_v45 = vld [vmem:[%s5615_s3 + $0x58] sm:$0xff]  ;;  %v2909_v47 = vld [vmem:[%s5615_s3 + $0x60] sm:$0xff] }
 0x203   : > { %2849 = vadd.xlane.f32.xlu0 %v2848_v5  ;;  %v2910_v5 = vld [vmem:[%s5615_s3 + $0x68] sm:$0xff] }
 0x28c   : > { %v2809_v7 = vpop.xlane.xlu0 %2808 }
 0x28d   : > { %v2810_v10 = vrot.slane %v2809_v7, 4 }
 0x28f   : > { %v2811_v12 = vadd.f32 %v2810_v10, %v2809_v7 }
 0x290   : > { %v2850_v40 = vpop.xlane.xlu0 %2849 }
 0x291   : > { %v2812_v13 = vrot.slane %v2811_v12, 2  ;;  %v2851_v14 = vrot.slane %v2850_v40, 4 }
 0x293   : > { %v2852_v16 = vadd.f32 %v2851_v14, %v2850_v40  ;;  %v2813_v32 = vadd.f32 %v2812_v13, %v2811_v12  ;;  %v2911_v13 = vld [vmem:[%s5615_s3 + $0x70] sm:$0xff]  ;;  %v2912_v14 = vld [vmem:[%s5615_s3 + $0x78] sm:$0xff] }
 0x295   : > { %v2853_v33 = vrot.slane %v2852_v16, 2  ;;  %v2814_v50 = vrot.slane %v2813_v32, 1 }
 0x297   : > { %v2854_v0 = vadd.f32 %v2853_v33, %v2852_v16  ;;  %v2815_v54 = vadd.f32 %v2814_v50, %v2813_v32  ;;  %v2929_v16 = vld [vmem:[%s5616_s4] sm:$0xff] }
 0x299   : > { %3804 = vpush %v2815_v54  ;;  %v2855_v1 = vrot.slane %v2854_v0, 1  ;;  %v2930_v54 = vld [vmem:[%s5616_s4 + $0x8] sm:$0xff] }
 0x29b   : > { %v2856_v4 = vadd.f32 %v2855_v1, %v2854_v0  ;;  %v2931_v1 = vld [vmem:[%s5616_s4 + $0x10] sm:$0xff] }
 0x29d   : > { %3806 = vpush %v2856_v4  ;;  %v2932_v4 = vld [vmem:[%s5616_s4 + $0x18] sm:$0xff] }
 0x2ca   : > { %s3805_s27 = spop %3804 }
 0x2cb   : > { %v2817_v18 = vstv %s3805_s27  ;;  %s224_s27 = scalar_lea.vmem %s5617_s5, %s3682_s25 }
 0x2cc   : > { %v2859_v61 = vmul.f32 6.1035156e-05, %v2817_v18 }
 0x2ce   : > { %s3807_s28 = spop %3806  ;;  %v2861_v23 = vmul.f32 %v2859_v61, %v2859_v61  ;;  %v2863_v42 = vsub.f32 %v5380_v6, %v2859_v61  ;;  %v2864_v57 = vsub.f32 %v5383_v56, %v2859_v61  ;;  %v2865_v62 = vsub.f32 %v5388_v60, %v2859_v61 }
 0x2cf   : > { %v2858_v51 = vstv %s3807_s28  ;;  %v2866_v19 = vsub.f32 %v5395_v2, %v2859_v61  ;;  %v2867_v17 = vsub.f32 %v5404_v34, %v2859_v61  ;;  %v2868_v11 = vsub.f32 %v5407_v46, %v2859_v61 }
 0x2d0   : > { %v2860_v52 = vmul.f32 6.1035156e-05, %v2858_v51  ;;  %v2869_v15 = vsub.f32 %v5413_v31, %v2859_v61  ;;  %v2870_v26 = vsub.f32 %v5418_v43, %v2859_v61  ;;  %v2871_v27 = vsub.f32 %v5428_v24, %v2859_v61  ;;  %v2897_v31 = vld [vmem:[%s5615_s3] sm:$0xff]  ;;  %v2898_v43 = vld [vmem:[%s5615_s3 + $0x8] sm:$0xff]  ;;  %v2899_v24 = vld [vmem:[%s5615_s3 + $0x10] sm:$0xff] }
 0x2d1   : > { %v2872_v49 = vsub.f32 %v5431_v58, %v2859_v61  ;;  %v2873_v6 = vsub.f32 %v5437_v3, %v2859_v61  ;;  %v2874_v56 = vsub.f32 %v5442_v39, %v2859_v61  ;;  %v2875_v60 = vsub.f32 %v5452_v20, %v2859_v61  ;;  %v2900_v58 = vld [vmem:[%s5615_s3 + $0x18] sm:$0xff] }
 0x2d2   : > { %v2862_v8 = vsub.f32 %v2860_v52, %v2861_v23  ;;  %v2876_v2 = vsub.f32 %v5455_v28, %v2859_v61  ;;  %v2877_v34 = vsub.f32 %v5460_v36, %v2859_v61  ;;  %v2878_v46 = vsub.f32 %v5467_v63, %v2859_v61  ;;  %v2902_v28 = vld [vmem:[%s5615_s3 + $0x28] sm:$0xff]  ;;  %v2907_v63 = vld [vmem:[%s5615_s3 + $0x50] sm:$0xff]  ;;  %v2933_v23 = vld [vmem:[%s5616_s4 + $0x20] sm:$0xff] }
 0x2d4   : > { %v2879_v9 = vadd.f32 1e-05, %v2862_v8  ;;  %v2934_v8 = vld [vmem:[%s5616_s4 + $0x28] sm:$0xff] }
 0x2d6   : > { %4264 = vrsqrt.f32 %v2879_v9  ;;  %v2935_v9 = vld [vmem:[%s5616_s4 + $0x30] sm:$0xff] }
 0x2e0   : > { %v4265_v22 = vpop.eup %4264 }
 0x2e1   : > { %v2881_v3 = vmul.f32 %v4265_v22, %v2863_v42  ;;  %v2882_v39 = vmul.f32 %v4265_v22, %v2864_v57  ;;  %v2883_v20 = vmul.f32 %v4265_v22, %v2865_v62  ;;  %v2884_v35 = vmul.f32 %v4265_v22, %v2866_v19 }
 0x2e2   : > { %v2885_v21 = vmul.f32 %v4265_v22, %v2867_v17  ;;  %v2886_v36 = vmul.f32 %v4265_v22, %v2868_v11  ;;  %v2887_v53 = vmul.f32 %v4265_v22, %v2869_v15  ;;  %v2888_v44 = vmul.f32 %v4265_v22, %v2870_v26  ;;  %v2936_v17 = vld [vmem:[%s5616_s4 + $0x38] sm:$0xff]  ;;  %v2937_v11 = vld [vmem:[%s5616_s4 + $0x40] sm:$0xff]  ;;  %v2938_v15 = vld [vmem:[%s5616_s4 + $0x48] sm:$0xff] }
 0x2e3   : > { %v2889_v29 = vmul.f32 %v4265_v22, %v2871_v27  ;;  %v2890_v37 = vmul.f32 %v4265_v22, %v2872_v49  ;;  %v2891_v41 = vmul.f32 %v4265_v22, %v2873_v6  ;;  %v2892_v25 = vmul.f32 %v4265_v22, %v2874_v56  ;;  %v2939_v56 = vld [vmem:[%s5616_s4 + $0x50] sm:$0xff] }
 0x2e4   : > { %v2893_v7 = vmul.f32 %v4265_v22, %v2875_v60  ;;  %v2894_v10 = vmul.f32 %v4265_v22, %v2876_v2  ;;  %v2895_v12 = vmul.f32 %v4265_v22, %v2877_v34  ;;  %v2896_v40 = vmul.f32 %v4265_v22, %v2878_v46  ;;  %v2940_v22 = vld [vmem:[%s5616_s4 + $0x58] sm:$0xff]  ;;  %v2941_v60 = vld [vmem:[%s5616_s4 + $0x60] sm:$0xff]  ;;  %v2942_v2 = vld [vmem:[%s5616_s4 + $0x68] sm:$0xff] }
 0x2e5   : > { %v2913_v32 = vmul.f32 %v2897_v31, %v2881_v3  ;;  %v2914_v33 = vmul.f32 %v2898_v43, %v2882_v39  ;;  %v2915_v50 = vmul.f32 %v2899_v24, %v2883_v20  ;;  %v2916_v0 = vmul.f32 %v2900_v58, %v2884_v35  ;;  %v2943_v34 = vld [vmem:[%s5616_s4 + $0x70] sm:$0xff]  ;;  %v2944_v46 = vld [vmem:[%s5616_s4 + $0x78] sm:$0xff] }
 0x2e6   : > { %v2917_v18 = vmul.f32 %v2901_v30, %v2885_v21  ;;  %v2918_v61 = vmul.f32 %v2902_v28, %v2886_v36  ;;  %v2919_v51 = vmul.f32 %v2903_v38, %v2887_v53  ;;  %v2920_v52 = vmul.f32 %v2904_v48, %v2888_v44 }
 0x2e7   : > { %v2921_v42 = vmul.f32 %v2905_v55, %v2889_v29  ;;  %v2922_v57 = vmul.f32 %v2906_v59, %v2890_v37  ;;  %v2923_v62 = vmul.f32 %v2907_v63, %v2891_v41  ;;  %v2924_v19 = vmul.f32 %v2908_v45, %v2892_v25 }
 0x2e8   : > { %v2925_v26 = vmul.f32 %v2909_v47, %v2893_v7  ;;  %v2926_v27 = vmul.f32 %v2910_v5, %v2894_v10  ;;  %v2927_v49 = vmul.f32 %v2911_v13, %v2895_v12  ;;  %v2928_v6 = vmul.f32 %v2912_v14, %v2896_v40 }
 0x2e9   : > { %v2945_v31 = vadd.f32 %v2929_v16, %v2913_v32  ;;  %v2946_v43 = vadd.f32 %v2930_v54, %v2914_v33  ;;  %v2947_v24 = vadd.f32 %v2931_v1, %v2915_v50  ;;  %v2948_v58 = vadd.f32 %v2932_v4, %v2916_v0 }
 0x2ea   : > { %v2949_v3 = vadd.f32 %v2933_v23, %v2917_v18  ;;  %v2950_v39 = vadd.f32 %v2934_v8, %v2918_v61  ;;  %v2951_v20 = vadd.f32 %v2935_v9, %v2919_v51  ;;  %v2952_v35 = vadd.f32 %v2936_v17, %v2920_v52 }
 0x2eb   : > { %v2953_v30 = vadd.f32 %v2937_v11, %v2921_v42  ;;  %v2954_v28 = vadd.f32 %v2938_v15, %v2922_v57  ;;  %v2955_v38 = vadd.f32 %v2939_v56, %v2923_v62  ;;  %v2956_v48 = vadd.f32 %v2940_v22, %v2924_v19 }
 0x2ec   : > { %v2957_v21 = vadd.f32 %v2941_v60, %v2925_v26  ;;  %v2958_v36 = vadd.f32 %v2942_v2, %v2926_v27  ;;  %v2959_v53 = vadd.f32 %v2943_v34, %v2927_v49  ;;  %v2960_v44 = vadd.f32 %v2944_v46, %v2928_v6 }
 0x2ed   : > { %vm2961_vm0 = vcmp.ge.f32.partialorder %v2945_v31, 0.0  ;;  %vm2962_vm1 = vcmp.ge.f32.partialorder %v2946_v43, 0.0  ;;  %vm2963_vm2 = vcmp.ge.f32.partialorder %v2947_v24, 0.0  ;;  %vm2964_vm3 = vcmp.ge.f32.partialorder %v2948_v58, 0.0 }
 0x2ee   : > { %vm2965_vm4 = vcmp.ge.f32.partialorder %v2949_v3, 0.0  ;;  %vm2966_vm5 = vcmp.ge.f32.partialorder %v2950_v39, 0.0  ;;  %vm2967_vm6 = vcmp.ge.f32.partialorder %v2951_v20, 0.0  ;;  %vm2968_vm7 = vcmp.ge.f32.partialorder %v2952_v35, 0.0 }
 0x2ef   : > { %vm2969_vm8 = vcmp.ge.f32.partialorder %v2953_v30, 0.0  ;;  %vm2970_vm9 = vcmp.ge.f32.partialorder %v2954_v28, 0.0  ;;  %vm2971_vm10 = vcmp.ge.f32.partialorder %v2955_v38, 0.0  ;;  %vm2972_vm11 = vcmp.ge.f32.partialorder %v2956_v48, 0.0 }
 0x2f0   : > { %vm2973_vm12 = vcmp.ge.f32.partialorder %v2957_v21, 0.0  ;;  %vm2974_vm13 = vcmp.ge.f32.partialorder %v2958_v36, 0.0  ;;  %vm2975_vm14 = vcmp.ge.f32.partialorder %v2959_v53, 0.0  ;;  %vm2976_vm15 = vcmp.ge.f32.partialorder %v2960_v44, 0.0 }
 0x2f1   : > { %v2977_v55 = vmul.f32 0.2, %v2945_v31  ;;  %v2978_v59 = vmul.f32 0.2, %v2946_v43  ;;  %v2979_v63 = vmul.f32 0.2, %v2947_v24 }
 0x2f2   : > { %v2980_v29 = vmul.f32 0.2, %v2948_v58  ;;  %v2981_v37 = vmul.f32 0.2, %v2949_v3  ;;  %v2982_v41 = vmul.f32 0.2, %v2950_v39 }
 0x2f3   : > { %v2983_v25 = vmul.f32 0.2, %v2951_v20  ;;  %v2984_v45 = vmul.f32 0.2, %v2952_v35  ;;  %v2985_v47 = vmul.f32 0.2, %v2953_v30  ;;  %v2993_v5 = vsel %vm2961_vm0, %v2945_v31, %v2977_v55 }
 0x2f4   : > { %v2986_v7 = vmul.f32 0.2, %v2954_v28  ;;  %v2987_v10 = vmul.f32 0.2, %v2955_v38  ;;  %v2988_v12 = vmul.f32 0.2, %v2956_v48  ;;  %v2994_v40 = vsel %vm2962_vm1, %v2946_v43, %v2978_v59 }
 0x2f5   : > { %v2989_v13 = vmul.f32 0.2, %v2957_v21  ;;  %v2990_v14 = vmul.f32 0.2, %v2958_v36  ;;  %v2991_v16 = vmul.f32 0.2, %v2959_v53  ;;  %v2995_v32 = vsel %vm2963_vm2, %v2947_v24, %v2979_v63 }
 0x2f6   : > { %v2992_v33 = vmul.f32 0.2, %v2960_v44  ;;  %v2996_v50 = vsel %vm2964_vm3, %v2948_v58, %v2980_v29  ;;  %v2997_v0 = vsel %vm2965_vm4, %v2949_v3, %v2981_v37  ;;  %v2998_v54 = vsel %vm2966_vm5, %v2950_v39, %v2982_v41 }
 0x2f7   : > { %v2999_v1 = vsel %vm2967_vm6, %v2951_v20, %v2983_v25  ;;  %v3000_v4 = vsel %vm2968_vm7, %v2952_v35, %v2984_v45  ;;  %v3001_v18 = vsel %vm2969_vm8, %v2953_v30, %v2985_v47  ;;  %v3002_v61 = vsel %vm2970_vm9, %v2954_v28, %v2986_v7 }
 0x2f8   : > { %v3003_v51 = vsel %vm2971_vm10, %v2955_v38, %v2987_v10  ;;  %v3004_v52 = vsel %vm2972_vm11, %v2956_v48, %v2988_v12  ;;  %v3005_v23 = vsel %vm2973_vm12, %v2957_v21, %v2989_v13  ;;  %v3006_v8 = vsel %vm2974_vm13, %v2958_v36, %v2990_v14 }
 0x2f9   : > { %v3007_v9 = vsel %vm2975_vm14, %v2959_v53, %v2991_v16  ;;  %v3008_v42 = vsel %vm2976_vm15, %v2960_v44, %v2992_v33  ;;  %v3683_v57 = vpack.c.bf16 %v2994_v40, %v2993_v5  ;;  %v3684_v62 = vpack.c.bf16 %v2996_v50, %v2995_v32 }
 0x2fa   : > { %v3685_v19 = vpack.c.bf16 %v2998_v54, %v2997_v0  ;;  %v3686_v17 = vpack.c.bf16 %v3000_v4, %v2999_v1  ;;  %v3687_v11 = vpack.c.bf16 %v3002_v61, %v3001_v18  ;;  %v3688_v15 = vpack.c.bf16 %v3004_v52, %v3003_v51 }
 0x2fb   : > { %v3689_v26 = vpack.c.bf16 %v3006_v8, %v3005_v23  ;;  %v3690_v27 = vpack.c.bf16 %v3008_v42, %v3007_v9  ;;  %3057 = vst [vmem:[%s224_s27] sm:$0xff] %v3683_v57  ;;  %3058 = vst [vmem:[%s224_s27 + $0x8] sm:$0xff] %v3684_v62 }
 0x2fc   : > { %3059 = vst [vmem:[%s224_s27 + $0x10] sm:$0xff] %v3685_v19  ;;  %3060 = vst [vmem:[%s224_s27 + $0x18] sm:$0xff] %v3686_v17 }
 0x2fd   : > { %3061 = vst [vmem:[%s224_s27 + $0x20] sm:$0xff] %v3687_v11  ;;  %3062 = vst [vmem:[%s224_s27 + $0x28] sm:$0xff] %v3688_v15 }
 0x2fe   : > { %3063 = vst [vmem:[%s224_s27 + $0x30] sm:$0xff] %v3689_v26  ;;  %3064 = vst [vmem:[%s224_s27 + $0x38] sm:$0xff] %v3690_v27 }
 0x2ff PF: > { %s15_s18 = sadd.s32 1, %s4275_s18  }
 0x300   : > { %p12_p4 = scmp.ge.s32.totalorder %s15_s18, 4  }
 0x302   :  { %14 = sbr.rel (!%p12_p4) target bundleno = 1 (0x1), region = 74 }

// kernel: discriminator_forward.7
= control target key start
LH: loop header
LB: loop body
LE: loop exit
PB: predicated region body
PF: predicated region fallthrough
CT: control target
= control target key end

     0   :  { %s11960_s26 = smov 0   ;;  %s15410_s0 = inlined_call_operand.vmem [shape: bf16[2,2,20,1024], index: 0, kind: input, shape index: {}]   ;;  %s15411_s1 = inlined_call_operand.vmem [shape: bf16[4,1024,512], index: 1, kind: input, shape index: {}]   ;;  %s15412_s2 = inlined_call_operand.vmem [shape: f32[1,512], index: 2, kind: input, shape index: {}]   ;;  %s15413_s3 = inlined_call_operand.vmem [shape: f32[1,16,512], index: 3, kind: input, shape index: {}]   ;;  %s15414_s4 = inlined_call_operand.vmem [shape: f32[1,16,512], index: 4, kind: input, shape index: {}]   ;;  %s15415_s5 = inlined_call_operand.vmem [shape: f32[16,512], index: 5, kind: input, shape index: {}]   ;;  %s15416_s6 = inlined_call_operand.<no memory space> [shape: f32[1,1], index: 6, kind: input, shape index: {}]   ;;  %s15417_s7 = inlined_call_operand.vmem [shape: f32[2,1,128], index: 7, kind: output, shape index: {}]  }
   0x1   :  { %v12_v0 = vstv %s15416_s6 }
   0x2   :  { %13 = vst [vmem:[#allocation2] sm:$0x1] %v12_v0 }
   0x3 LB: > { %s8348_s27 = sadd.s32 4294967295, %s11914_s26   ;;  %p8352_p0 = scmp.ge.s32.totalorder %s11914_s26, 1  ;;  %s11914_s26 = sphi %s11960_s26, %s19_s26  }
   0x4   : > { %p239_p1 = scmp.lt.s32.totalorder %s11914_s26, 3 }
   0x6   : > { %p240_p2 = pnand %p8352_p0, %p239_p1 }
   0x7   : > { %v10354_v1 = vld [vmem:[%s15411_s1 + $0x804] ss:$16 sps:$4 sm:$0xff] (!%p240_p2)   ;;  %v10356_v2 = vld [vmem:[%s15411_s1 + $0x80c] ss:$16 sps:$4 sm:$0xff] (!%p240_p2)   ;;  %v10358_v3 = vld [vmem:[%s15411_s1 + $0x800] ss:$16 sps:$4 sm:$0xff] (!%p240_p2)  }
   0x8   : > { %243 = sbr.rel (%p240_p2) target bundleno = 1851 (0x73b), region = 48  ;;  %2127 = vmatprep.subr.bf16.mxu0 (!%p240_p2), %v10354_v1  ;;  %v10359_v4 = vld [vmem:[%s15411_s1 + $0x808] ss:$16 sps:$4 sm:$0xff] (!%p240_p2)   ;;  %2299 = vmatprep.subr.bf16.mxu1 (!%p240_p2), %v10356_v2  ;;  %v10360_v5 = vld [vmem:[%s15411_s1 + $0x824] ss:$16 sps:$4 sm:$0xff] (!%p240_p2)   ;;  %p269_p3 = scmp.lt.s32.totalorder (!%p240_p2), %s8348_s27, 1 }
   0x9   : > { %2128 = vmatpush1.bf16.msra.mxu0 (!%p240_p2), %v10358_v3  ;;  %2300 = vmatpush1.bf16.msra.mxu1 (!%p240_p2), %v10359_v4  ;;  %v10362_v6 = vld [vmem:[%s15411_s1 + $0x82c] ss:$16 sps:$4 sm:$0xff] (!%p240_p2)   ;;  %v10364_v7 = vld [vmem:[%s15411_s1 + $0x820] ss:$16 sps:$4 sm:$0xff] (!%p240_p2)   ;;  %v10365_v8 = vld [vmem:[%s15411_s1 + $0x828] ss:$16 sps:$4 sm:$0xff] (!%p240_p2)  }
   0xa   : > { %2129 = vmatprep.subr.bf16.mxu0 (!%p240_p2), %v10360_v5  ;;  %2301 = vmatprep.subr.bf16.mxu1 (!%p240_p2), %v10362_v6  ;;  %v10366_v9 = vld [vmem:[%s15411_s1 + $0x844] ss:$16 sps:$4 sm:$0xff] (!%p240_p2)   ;;  %v10368_v10 = vld [vmem:[%s15411_s1 + $0x84c] ss:$16 sps:$4 sm:$0xff] (!%p240_p2)   ;;  %v10370_v11 = vld [vmem:[%s15411_s1 + $0x840] ss:$16 sps:$4 sm:$0xff] (!%p240_p2)  }
   0xb   : > { %v10371_v12 = vld [vmem:[%s15411_s1 + $0x848] ss:$16 sps:$4 sm:$0xff] (!%p240_p2)   ;;  %v10372_v13 = vld [vmem:[%s15411_s1 + $0x864] ss:$16 sps:$4 sm:$0xff] (!%p240_p2)   ;;  %v10374_v14 = vld [vmem:[%s15411_s1 + $0x86c] ss:$16 sps:$4 sm:$0xff] (!%p240_p2)  }
   0xc   : > { %v10376_v15 = vld [vmem:[%s15411_s1 + $0x860] ss:$16 sps:$4 sm:$0xff] (!%p240_p2)   ;;  %v10377_v16 = vld [vmem:[%s15411_s1 + $0x868] ss:$16 sps:$4 sm:$0xff] (!%p240_p2)   ;;  %v10378_v17 = vld [vmem:[%s15411_s1 + $0x884] ss:$16 sps:$4 sm:$0xff] (!%p240_p2)  }
   0xd   : > { %2130 = vmatpush1.bf16.msra.mxu0 (!%p240_p2), %v10364_v7  ;;  %2302 = vmatpush1.bf16.msra.mxu1 (!%p240_p2), %v10365_v8  ;;  %v10380_v18 = vld [vmem:[%s15411_s1 + $0x88c] ss:$16 sps:$4 sm:$0xff] (!%p240_p2)   ;;  %v10382_v19 = vld [vmem:[%s15411_s1 + $0x880] ss:$16 sps:$4 sm:$0xff] (!%p240_p2)   ;;  %v10383_v20 = vld [vmem:[%s15411_s1 + $0x888] ss:$16 sps:$4 sm:$0xff] (!%p240_p2)  }
   0xe   : > { %2131 = vmatprep.subr.bf16.mxu0 (!%p240_p2), %v10366_v9  ;;  %2303 = vmatprep.subr.bf16.mxu1 (!%p240_p2), %v10368_v10  ;;  %v10384_v21 = vld [vmem:[%s15411_s1 + $0x8a4] ss:$16 sps:$4 sm:$0xff] (!%p240_p2)   ;;  %v10386_v22 = vld [vmem:[%s15411_s1 + $0x8ac] ss:$16 sps:$4 sm:$0xff] (!%p240_p2)   ;;  %v10388_v23 = vld [vmem:[%s15411_s1 + $0x8a0] ss:$16 sps:$4 sm:$0xff] (!%p240_p2)  }
   0xf   : > { %v10389_v24 = vld [vmem:[%s15411_s1 + $0x8a8] ss:$16 sps:$4 sm:$0xff]   ;;  %v10390_v25 = vld [vmem:[%s15411_s1 + $0x8c4] ss:$16 sps:$4 sm:$0xff]   ;;  %v10392_v26 = vld [vmem:[%s15411_s1 + $0x8cc] ss:$16 sps:$4 sm:$0xff]  }
  0x10   : > { %v10394_v27 = vld [vmem:[%s15411_s1 + $0x8c0] ss:$16 sps:$4 sm:$0xff]   ;;  %v10395_v28 = vld [vmem:[%s15411_s1 + $0x8c8] ss:$16 sps:$4 sm:$0xff]   ;;  %v10396_v29 = vld [vmem:[%s15411_s1 + $0x8e4] ss:$16 sps:$4 sm:$0xff]  }
  0x11   : > { %2132 = vmatpush1.bf16.msra.mxu0 %v10370_v11  ;;  %2304 = vmatpush1.bf16.msra.mxu1 %v10371_v12  ;;  %v10398_v30 = vld [vmem:[%s15411_s1 + $0x8ec] ss:$16 sps:$4 sm:$0xff]   ;;  %v10400_v31 = vld [vmem:[%s15411_s1 + $0x8e0] ss:$16 sps:$4 sm:$0xff]   ;;  %v10401_v32 = vld [vmem:[%s15411_s1 + $0x8e8] ss:$16 sps:$4 sm:$0xff]  }
  0x12   : > { %2133 = vmatprep.subr.bf16.mxu0 %v10372_v13  ;;  %2305 = vmatprep.subr.bf16.mxu1 %v10374_v14  ;;  %v10402_v33 = vld [vmem:[%s15411_s1 + $0x904] ss:$16 sps:$4 sm:$0xff]   ;;  %v10404_v34 = vld [vmem:[%s15411_s1 + $0x90c] ss:$16 sps:$4 sm:$0xff]   ;;  %v10406_v35 = vld [vmem:[%s15411_s1 + $0x900] ss:$16 sps:$4 sm:$0xff]  }
  0x13   : > { %v10407_v36 = vld [vmem:[%s15411_s1 + $0x908] ss:$16 sps:$4 sm:$0xff]   ;;  %s15419_s27 = smov (!%p269_p3, %s8348_s27), 1  ;;  %v10408_v37 = vld [vmem:[%s15411_s1 + $0x924] ss:$16 sps:$4 sm:$0xff]   ;;  %vm4456_vm0 = vcmask 1045504  }
  0x14   : > { %v10410_v38 = vld [vmem:[%s15411_s1 + $0x92c] ss:$16 sps:$4 sm:$0xff]   ;;  %v10412_v39 = vld [vmem:[%s15411_s1 + $0x920] ss:$16 sps:$4 sm:$0xff]   ;;  %s10336_s16 = smul.u32 192, %s15419_s27  ;;  %s276_s19 = scalar_lea.vmem %s15417_s7, %s15419_s27 }
  0x15   : > { %2134 = vmatpush1.bf16.msra.mxu0 %v10376_v15  ;;  %2306 = vmatpush1.bf16.msra.mxu1 %v10377_v16  ;;  %v10413_v40 = vld [vmem:[%s15411_s1 + $0x928] ss:$16 sps:$4 sm:$0xff]   ;;  %v10414_v41 = vld [vmem:[%s15411_s1 + $0x944] ss:$16 sps:$4 sm:$0xff]   ;;  %v10416_v42 = vld [vmem:[%s15411_s1 + $0x94c] ss:$16 sps:$4 sm:$0xff]  }
  0x16   : > { %2135 = vmatprep.subr.bf16.mxu0 %v10378_v17  ;;  %2307 = vmatprep.subr.bf16.mxu1 %v10380_v18  ;;  %v10418_v43 = vld [vmem:[%s15411_s1 + $0x940] ss:$16 sps:$4 sm:$0xff]   ;;  %v10419_v44 = vld [vmem:[%s15411_s1 + $0x948] ss:$16 sps:$4 sm:$0xff]   ;;  %s12110_s30 = scalar_lea.vmem %s15410_s0, %s10336_s16  ;;  %v10420_v45 = vld [vmem:[%s15411_s1 + $0x964] ss:$16 sps:$4 sm:$0xff]  }
  0x17   : > { %v10422_v46 = vld [vmem:[%s15411_s1 + $0x96c] ss:$16 sps:$4 sm:$0xff]   ;;  %v8354_v47 = vld [vmem:[%s12110_s30 + $0x60] sm:$0xff]  ;;  %v10425_v50 = vld [vmem:[%s15411_s1 + $0x968] ss:$16 sps:$4 sm:$0xff]  }
  0x18   : > { %v8358_v48 = vld [vmem:[%s12110_s30 + $0x80] sm:$0xff]  ;;  %v10428_v53 = vld [vmem:[%s15411_s1 + $0x98c] ss:$16 sps:$4 sm:$0xff]   ;;  %v10431_v55 = vld [vmem:[%s15411_s1 + $0x988] ss:$16 sps:$4 sm:$0xff]  }
  0x19   : > { %2136 = vmatpush1.bf16.msra.mxu0 %v10382_v19  ;;  %2308 = vmatpush1.bf16.msra.mxu1 %v10383_v20  ;;  %v10424_v49 = vld [vmem:[%s15411_s1 + $0x960] ss:$16 sps:$4 sm:$0xff]   ;;  %v8619_v51 = vcombine.high %v8354_v47, %v8358_v48  ;;  %v10426_v52 = vld [vmem:[%s15411_s1 + $0x984] ss:$16 sps:$4 sm:$0xff]   ;;  %v10434_v57 = vld [vmem:[%s15411_s1 + $0x9ac] ss:$16 sps:$4 sm:$0xff]   ;;  %v8618_v6 = vcombine.low %v8354_v47, %v8358_v48 }
  0x1a   : > { %2137 = vmatprep.subr.bf16.mxu0 %v10384_v21  ;;  %2309 = vmatprep.subr.bf16.mxu1 %v10386_v22  ;;  %v10430_v54 = vld [vmem:[%s15411_s1 + $0x980] ss:$16 sps:$4 sm:$0xff]   ;;  %v10432_v56 = vld [vmem:[%s15411_s1 + $0x9a4] ss:$16 sps:$4 sm:$0xff]   ;;  %v10437_v59 = vld [vmem:[%s15411_s1 + $0x9a8] ss:$16 sps:$4 sm:$0xff]  }
  0x1b   : > { %2159 = vmatprep.mubr.bf16.mxu0 %v8619_v51  ;;  %2331 = vmatprep.mubr.bf16.mxu1 %v8619_v51  ;;  %v10436_v58 = vld [vmem:[%s15411_s1 + $0x9a0] ss:$16 sps:$4 sm:$0xff]   ;;  %v10438_v60 = vld [vmem:[%s15411_s1 + $0x9c4] ss:$16 sps:$4 sm:$0xff]   ;;  %v10440_v61 = vld [vmem:[%s15411_s1 + $0x9cc] ss:$16 sps:$4 sm:$0xff]  }
  0x1c   : > { %v10442_v62 = vld [vmem:[%s15411_s1 + $0x9c0] ss:$16 sps:$4 sm:$0xff]   ;;  %v10443_v63 = vld [vmem:[%s15411_s1 + $0x9c8] ss:$16 sps:$4 sm:$0xff]   ;;  %v10444_v0 = vld [vmem:[%s15411_s1 + $0x9e4] ss:$16 sps:$4 sm:$0xff]  }
  0x1d   : > { %2138 = vmatpush1.bf16.msra.mxu0 %v10388_v23  ;;  %2310 = vmatpush1.bf16.msra.mxu1 %v10389_v24  ;;  %v10446_v1 = vld [vmem:[%s15411_s1 + $0x9ec] ss:$16 sps:$4 sm:$0xff]   ;;  %v10448_v2 = vld [vmem:[%s15411_s1 + $0x9e0] ss:$16 sps:$4 sm:$0xff]   ;;  %v10449_v3 = vld [vmem:[%s15411_s1 + $0x9e8] ss:$16 sps:$4 sm:$0xff]  }
  0x1e   : > { %2139 = vmatprep.subr.bf16.mxu0 %v10390_v25  ;;  %2311 = vmatprep.subr.bf16.mxu1 %v10392_v26  ;;  %v10452_v4 = vld [vmem:[%s15411_s1 + $0xa04] ss:$16 sps:$4 sm:$0xff]   ;;  %v10455_v5 = vld [vmem:[%s15411_s1 + $0xa0c] ss:$16 sps:$4 sm:$0xff]   ;;  %v10450_v7 = vld [vmem:[%s15411_s1 + $0xa00] ss:$16 sps:$4 sm:$0xff]  }
  0x1f   : > { %v10453_v8 = vld [vmem:[%s15411_s1 + $0xa08] ss:$16 sps:$4 sm:$0xff]   ;;  %v10458_v9 = vld [vmem:[%s15411_s1 + $0xa24] ss:$16 sps:$4 sm:$0xff]   ;;  %v10461_v10 = vld [vmem:[%s15411_s1 + $0xa2c] ss:$16 sps:$4 sm:$0xff]  }
  0x20   : > { %v10456_v11 = vld [vmem:[%s15411_s1 + $0xa20] ss:$16 sps:$4 sm:$0xff]   ;;  %v10459_v12 = vld [vmem:[%s15411_s1 + $0xa28] ss:$16 sps:$4 sm:$0xff]   ;;  %v10464_v13 = vld [vmem:[%s15411_s1 + $0xa44] ss:$16 sps:$4 sm:$0xff]  }
  0x21   : > { %2140 = vmatpush1.bf16.msra.mxu0 %v10394_v27  ;;  %2312 = vmatpush1.bf16.msra.mxu1 %v10395_v28  ;;  %v10467_v14 = vld [vmem:[%s15411_s1 + $0xa4c] ss:$16 sps:$4 sm:$0xff]   ;;  %v10462_v15 = vld [vmem:[%s15411_s1 + $0xa40] ss:$16 sps:$4 sm:$0xff]   ;;  %v10465_v16 = vld [vmem:[%s15411_s1 + $0xa48] ss:$16 sps:$4 sm:$0xff]  }
  0x22   : > { %2141 = vmatprep.subr.bf16.mxu0 %v10396_v29  ;;  %2313 = vmatprep.subr.bf16.mxu1 %v10398_v30  ;;  %v10470_v17 = vld [vmem:[%s15411_s1 + $0xa64] ss:$16 sps:$4 sm:$0xff]   ;;  %v10473_v18 = vld [vmem:[%s15411_s1 + $0xa6c] ss:$16 sps:$4 sm:$0xff]   ;;  %v10468_v19 = vld [vmem:[%s15411_s1 + $0xa60] ss:$16 sps:$4 sm:$0xff]  }
  0x23   : > { %v10471_v20 = vld [vmem:[%s15411_s1 + $0xa68] ss:$16 sps:$4 sm:$0xff]   ;;  %v10476_v21 = vld [vmem:[%s15411_s1 + $0xa84] ss:$16 sps:$4 sm:$0xff]   ;;  %v10479_v22 = vld [vmem:[%s15411_s1 + $0xa8c] ss:$16 sps:$4 sm:$0xff]  }
  0x24   : > { %v10474_v23 = vld [vmem:[%s15411_s1 + $0xa80] ss:$16 sps:$4 sm:$0xff]   ;;  %v10477_v24 = vld [vmem:[%s15411_s1 + $0xa88] ss:$16 sps:$4 sm:$0xff]   ;;  %v10482_v25 = vld [vmem:[%s15411_s1 + $0xaa4] ss:$16 sps:$4 sm:$0xff]  }
  0x25   : > { %2142 = vmatpush1.bf16.msra.mxu0 %v10400_v31  ;;  %2314 = vmatpush1.bf16.msra.mxu1 %v10401_v32  ;;  %v10485_v26 = vld [vmem:[%s15411_s1 + $0xaac] ss:$16 sps:$4 sm:$0xff]   ;;  %v10480_v27 = vld [vmem:[%s15411_s1 + $0xaa0] ss:$16 sps:$4 sm:$0xff]   ;;  %v10483_v28 = vld [vmem:[%s15411_s1 + $0xaa8] ss:$16 sps:$4 sm:$0xff]  }
  0x26   : > { %2143 = vmatprep.subr.bf16.mxu0 %v10402_v33  ;;  %2315 = vmatprep.subr.bf16.mxu1 %v10404_v34  ;;  %v10488_v29 = vld [vmem:[%s15411_s1 + $0xac4] ss:$16 sps:$4 sm:$0xff]   ;;  %v10491_v30 = vld [vmem:[%s15411_s1 + $0xacc] ss:$16 sps:$4 sm:$0xff]   ;;  %v10486_v33 = vld [vmem:[%s15411_s1 + $0xac0] ss:$16 sps:$4 sm:$0xff]  }
  0x27   : > { %v12253_v31 = vld [vmem:[%s12110_s30 + $0x68] sm:$0xff]  ;;  %v10512_v48 = vld [vmem:[%s15411_s1 + $0xb44] ss:$16 sps:$4 sm:$0xff]  }
  0x28   : > { %v12256_v32 = vld [vmem:[%s12110_s30 + $0x88] sm:$0xff] }
  0x29   : > { %2144 = vmatpush1.bf16.msra.mxu0 %v10406_v35  ;;  %2316 = vmatpush1.bf16.msra.mxu1 %v10407_v36  ;;  %v10489_v34 = vld [vmem:[%s15411_s1 + $0xac8] ss:$16 sps:$4 sm:$0xff]   ;;  %v8621_v35 = vcombine.high %v12253_v31, %v12256_v32  ;;  %v10494_v36 = vld [vmem:[%s15411_s1 + $0xae4] ss:$16 sps:$4 sm:$0xff]  }
  0x2a   : > { %2145 = vmatprep.subr.bf16.mxu0 %v10408_v37  ;;  %2317 = vmatprep.subr.bf16.mxu1 %v10410_v38  ;;  %v10497_v37 = vld [vmem:[%s15411_s1 + $0xaec] ss:$16 sps:$4 sm:$0xff]   ;;  %v10492_v38 = vld [vmem:[%s15411_s1 + $0xae0] ss:$16 sps:$4 sm:$0xff]   ;;  %v10507_v47 = vld [vmem:[%s15411_s1 + $0xb28] ss:$16 sps:$4 sm:$0xff]  }
  0x2b   : > { %v10513_v51 = vld [vmem:[%s15411_s1 + $0xb48] ss:$16 sps:$4 sm:$0xff]  }
  0x2d   : > { %2146 = vmatpush1.bf16.msra.mxu0 %v10412_v39  ;;  %2318 = vmatpush1.bf16.msra.mxu1 %v10413_v40  ;;  %v10495_v39 = vld [vmem:[%s15411_s1 + $0xae8] ss:$16 sps:$4 sm:$0xff]   ;;  %v10500_v40 = vld [vmem:[%s15411_s1 + $0xb04] ss:$16 sps:$4 sm:$0xff]  }
  0x2e   : > { %2147 = vmatprep.subr.bf16.mxu0 %v10414_v41  ;;  %2319 = vmatprep.subr.bf16.mxu1 %v10416_v42  ;;  %v10503_v41 = vld [vmem:[%s15411_s1 + $0xb0c] ss:$16 sps:$4 sm:$0xff]   ;;  %v10498_v42 = vld [vmem:[%s15411_s1 + $0xb00] ss:$16 sps:$4 sm:$0xff]  }
  0x31   : > { %2148 = vmatpush1.bf16.msra.mxu0 %v10418_v43  ;;  %2320 = vmatpush1.bf16.msra.mxu1 %v10419_v44  ;;  %v10501_v43 = vld [vmem:[%s15411_s1 + $0xb08] ss:$16 sps:$4 sm:$0xff]   ;;  %v10506_v44 = vld [vmem:[%s15411_s1 + $0xb24] ss:$16 sps:$4 sm:$0xff]  }
  0x32   : > { %2149 = vmatprep.subr.bf16.mxu0 %v10420_v45  ;;  %2321 = vmatprep.subr.bf16.mxu1 %v10422_v46  ;;  %v10509_v45 = vld [vmem:[%s15411_s1 + $0xb2c] ss:$16 sps:$4 sm:$0xff]   ;;  %v10504_v46 = vld [vmem:[%s15411_s1 + $0xb20] ss:$16 sps:$4 sm:$0xff]  }
  0x35   : > { %2150 = vmatpush1.bf16.msra.mxu0 %v10424_v49  ;;  %2322 = vmatpush1.bf16.msra.mxu1 %v10425_v50  ;;  %v10515_v49 = vld [vmem:[%s15411_s1 + $0xb4c] ss:$16 sps:$4 sm:$0xff]   ;;  %v10510_v50 = vld [vmem:[%s15411_s1 + $0xb40] ss:$16 sps:$4 sm:$0xff]  }
  0x36   : > { %2151 = vmatprep.subr.bf16.mxu0 %v10426_v52  ;;  %2323 = vmatprep.subr.bf16.mxu1 %v10428_v53  ;;  %v10518_v52 = vld [vmem:[%s15411_s1 + $0xb64] ss:$16 sps:$4 sm:$0xff]   ;;  %v10521_v53 = vld [vmem:[%s15411_s1 + $0xb6c] ss:$16 sps:$4 sm:$0xff]  }
  0x39   : > { %2152 = vmatpush1.bf16.msra.mxu0 %v10430_v54  ;;  %2324 = vmatpush1.bf16.msra.mxu1 %v10431_v55  ;;  %v10516_v54 = vld [vmem:[%s15411_s1 + $0xb60] ss:$16 sps:$4 sm:$0xff]   ;;  %v10519_v55 = vld [vmem:[%s15411_s1 + $0xb68] ss:$16 sps:$4 sm:$0xff]  }
  0x3a   : > { %2153 = vmatprep.subr.bf16.mxu0 %v10432_v56  ;;  %2325 = vmatprep.subr.bf16.mxu1 %v10434_v57  ;;  %v10524_v56 = vld [vmem:[%s15411_s1 + $0xb84] ss:$16 sps:$4 sm:$0xff]   ;;  %v10527_v57 = vld [vmem:[%s15411_s1 + $0xb8c] ss:$16 sps:$4 sm:$0xff]  }
  0x3d   : > { %2154 = vmatpush1.bf16.msra.mxu0 %v10436_v58  ;;  %2326 = vmatpush1.bf16.msra.mxu1 %v10437_v59  ;;  %v10522_v58 = vld [vmem:[%s15411_s1 + $0xb80] ss:$16 sps:$4 sm:$0xff]   ;;  %v10525_v59 = vld [vmem:[%s15411_s1 + $0xb88] ss:$16 sps:$4 sm:$0xff]  }
  0x3e   : > { %2155 = vmatprep.subr.bf16.mxu0 %v10438_v60  ;;  %2327 = vmatprep.subr.bf16.mxu1 %v10440_v61  ;;  %v10530_v60 = vld [vmem:[%s15411_s1 + $0xba4] ss:$16 sps:$4 sm:$0xff]   ;;  %v10533_v61 = vld [vmem:[%s15411_s1 + $0xbac] ss:$16 sps:$4 sm:$0xff]  }
  0x41   : > { %2156 = vmatpush1.bf16.msra.mxu0 %v10442_v62  ;;  %2328 = vmatpush1.bf16.msra.mxu1 %v10443_v63  ;;  %v10528_v62 = vld [vmem:[%s15411_s1 + $0xba0] ss:$16 sps:$4 sm:$0xff]   ;;  %v10531_v63 = vld [vmem:[%s15411_s1 + $0xba8] ss:$16 sps:$4 sm:$0xff]  }
  0x42   : > { %2157 = vmatprep.subr.bf16.mxu0 %v10444_v0  ;;  %2329 = vmatprep.subr.bf16.mxu1 %v10446_v1  ;;  %v10536_v0 = vld [vmem:[%s15411_s1 + $0xbc4] ss:$16 sps:$4 sm:$0xff]   ;;  %v10539_v1 = vld [vmem:[%s15411_s1 + $0xbcc] ss:$16 sps:$4 sm:$0xff]  }
  0x45   : > { %2158 = vmatpush1.bf16.msra.mxu0 %v10448_v2  ;;  %2330 = vmatpush1.bf16.msra.mxu1 %v10449_v3  ;;  %v10534_v2 = vld [vmem:[%s15411_s1 + $0xbc0] ss:$16 sps:$4 sm:$0xff]   ;;  %v10537_v3 = vld [vmem:[%s15411_s1 + $0xbc8] ss:$16 sps:$4 sm:$0xff]  }
  0x46   : > { %2170 = vmatprep.subr.bf16.mxu0 %v10452_v4  ;;  %2342 = vmatprep.subr.bf16.mxu1 %v10455_v5  ;;  %v10542_v4 = vld [vmem:[%s15411_s1 + $0xbe4] ss:$16 sps:$4 sm:$0xff]   ;;  %v10545_v5 = vld [vmem:[%s15411_s1 + $0xbec] ss:$16 sps:$4 sm:$0xff]  }
  0x48   : > { %2160 = vmatmul.mubr.bf16.vlgmr.msra.gmra.mrb[0].mxu0 %v8618_v6  ;;  %2332 = vmatmul.mubr.bf16.vlgmr.msra.gmra.mrb[0].mxu1 %v8618_v6  ;;  %v10540_v6 = vld [vmem:[%s15411_s1 + $0xbe0] ss:$16 sps:$4 sm:$0xff]  }
  0x49   : > { %2171 = vmatpush1.bf16.msra.mxu0 %v10450_v7  ;;  %2343 = vmatpush1.bf16.msra.mxu1 %v10453_v8  ;;  %v10543_v7 = vld [vmem:[%s15411_s1 + $0xbe8] ss:$16 sps:$4 sm:$0xff]   ;;  %v10548_v8 = vld [vmem:[%s15411_s1 + $0xc04] ss:$16 sps:$4 sm:$0xff]  }
  0x4a   : > { %2172 = vmatprep.subr.bf16.mxu0 %v10458_v9  ;;  %2344 = vmatprep.subr.bf16.mxu1 %v10461_v10  ;;  %v10551_v9 = vld [vmem:[%s15411_s1 + $0xc0c] ss:$16 sps:$4 sm:$0xff]   ;;  %v8620_v10 = vcombine.low %v12253_v31, %v12256_v32  ;;  %v10573_v31 = vld [vmem:[%s15411_s1 + $0xc88] ss:$16 sps:$4 sm:$0xff]   ;;  %v10578_v32 = vld [vmem:[%s15411_s1 + $0xca4] ss:$16 sps:$4 sm:$0xff]  }
  0x4b   : > { %2202 = vmatprep.mubr.bf16.mxu0 %v8621_v35  ;;  %2374 = vmatprep.mubr.bf16.mxu1 %v8621_v35  ;;  %v10579_v35 = vld [vmem:[%s15411_s1 + $0xca8] ss:$16 sps:$4 sm:$0xff]  }
  0x4d   : > { %2173 = vmatpush1.bf16.msra.mxu0 %v10456_v11  ;;  %2345 = vmatpush1.bf16.msra.mxu1 %v10459_v12  ;;  %v10546_v11 = vld [vmem:[%s15411_s1 + $0xc00] ss:$16 sps:$4 sm:$0xff]   ;;  %v10549_v12 = vld [vmem:[%s15411_s1 + $0xc08] ss:$16 sps:$4 sm:$0xff]  }
  0x4e   : > { %2174 = vmatprep.subr.bf16.mxu0 %v10464_v13  ;;  %2346 = vmatprep.subr.bf16.mxu1 %v10467_v14  ;;  %v10554_v13 = vld [vmem:[%s15411_s1 + $0xc24] ss:$16 sps:$4 sm:$0xff]   ;;  %v10557_v14 = vld [vmem:[%s15411_s1 + $0xc2c] ss:$16 sps:$4 sm:$0xff]  }
  0x51   : > { %2175 = vmatpush1.bf16.msra.mxu0 %v10462_v15  ;;  %2347 = vmatpush1.bf16.msra.mxu1 %v10465_v16  ;;  %v12395_v15 = vld [vmem:[%s12110_s30 + $0x70] sm:$0xff] }
  0x52   : > { %2176 = vmatprep.subr.bf16.mxu0 %v10470_v17  ;;  %2348 = vmatprep.subr.bf16.mxu1 %v10473_v18  ;;  %v12398_v16 = vld [vmem:[%s12110_s30 + $0x90] sm:$0xff] }
  0x53   : > { %v8623_v17 = vcombine.high %v12395_v15, %v12398_v16  ;;  %v10552_v18 = vld [vmem:[%s15411_s1 + $0xc20] ss:$16 sps:$4 sm:$0xff]  }
  0x55   : > { %2177 = vmatpush1.bf16.msra.mxu0 %v10468_v19  ;;  %2349 = vmatpush1.bf16.msra.mxu1 %v10471_v20  ;;  %v10555_v19 = vld [vmem:[%s15411_s1 + $0xc28] ss:$16 sps:$4 sm:$0xff]   ;;  %v10560_v20 = vld [vmem:[%s15411_s1 + $0xc44] ss:$16 sps:$4 sm:$0xff]  }
  0x56   : > { %2178 = vmatprep.subr.bf16.mxu0 %v10476_v21  ;;  %2350 = vmatprep.subr.bf16.mxu1 %v10479_v22  ;;  %v10563_v21 = vld [vmem:[%s15411_s1 + $0xc4c] ss:$16 sps:$4 sm:$0xff]   ;;  %v10558_v22 = vld [vmem:[%s15411_s1 + $0xc40] ss:$16 sps:$4 sm:$0xff]  }
  0x59   : > { %2179 = vmatpush1.bf16.msra.mxu0 %v10474_v23  ;;  %2351 = vmatpush1.bf16.msra.mxu1 %v10477_v24  ;;  %v10561_v23 = vld [vmem:[%s15411_s1 + $0xc48] ss:$16 sps:$4 sm:$0xff]   ;;  %v10566_v24 = vld [vmem:[%s15411_s1 + $0xc64] ss:$16 sps:$4 sm:$0xff]  }
  0x5a   : > { %2180 = vmatprep.subr.bf16.mxu0 %v10482_v25  ;;  %2352 = vmatprep.subr.bf16.mxu1 %v10485_v26  ;;  %v10569_v25 = vld [vmem:[%s15411_s1 + $0xc6c] ss:$16 sps:$4 sm:$0xff]   ;;  %v10564_v26 = vld [vmem:[%s15411_s1 + $0xc60] ss:$16 sps:$4 sm:$0xff]  }
  0x5d   : > { %2181 = vmatpush1.bf16.msra.mxu0 %v10480_v27  ;;  %2353 = vmatpush1.bf16.msra.mxu1 %v10483_v28  ;;  %v10567_v27 = vld [vmem:[%s15411_s1 + $0xc68] ss:$16 sps:$4 sm:$0xff]   ;;  %v10572_v28 = vld [vmem:[%s15411_s1 + $0xc84] ss:$16 sps:$4 sm:$0xff]  }
  0x5e   : > { %2182 = vmatprep.subr.bf16.mxu0 %v10488_v29  ;;  %2354 = vmatprep.subr.bf16.mxu1 %v10491_v30  ;;  %v10575_v29 = vld [vmem:[%s15411_s1 + $0xc8c] ss:$16 sps:$4 sm:$0xff]   ;;  %v10570_v30 = vld [vmem:[%s15411_s1 + $0xc80] ss:$16 sps:$4 sm:$0xff]  }
  0x61   : > { %2183 = vmatpush1.bf16.msra.mxu0 %v10486_v33  ;;  %2355 = vmatpush1.bf16.msra.mxu1 %v10489_v34  ;;  %v10581_v33 = vld [vmem:[%s15411_s1 + $0xcac] ss:$16 sps:$4 sm:$0xff]   ;;  %v10576_v34 = vld [vmem:[%s15411_s1 + $0xca0] ss:$16 sps:$4 sm:$0xff]  }
  0x62   : > { %2184 = vmatprep.subr.bf16.mxu0 %v10494_v36  ;;  %2356 = vmatprep.subr.bf16.mxu1 %v10497_v37  ;;  %v10584_v36 = vld [vmem:[%s15411_s1 + $0xcc4] ss:$16 sps:$4 sm:$0xff]   ;;  %v10587_v37 = vld [vmem:[%s15411_s1 + $0xccc] ss:$16 sps:$4 sm:$0xff]  }
  0x65   : > { %2185 = vmatpush1.bf16.msra.mxu0 %v10492_v38  ;;  %2357 = vmatpush1.bf16.msra.mxu1 %v10495_v39  ;;  %v10582_v38 = vld [vmem:[%s15411_s1 + $0xcc0] ss:$16 sps:$4 sm:$0xff]   ;;  %v10585_v39 = vld [vmem:[%s15411_s1 + $0xcc8] ss:$16 sps:$4 sm:$0xff]  }
  0x66   : > { %2186 = vmatprep.subr.bf16.mxu0 %v10500_v40  ;;  %2358 = vmatprep.subr.bf16.mxu1 %v10503_v41  ;;  %v10590_v40 = vld [vmem:[%s15411_s1 + $0xce4] ss:$16 sps:$4 sm:$0xff]   ;;  %v10593_v41 = vld [vmem:[%s15411_s1 + $0xcec] ss:$16 sps:$4 sm:$0xff]  }
  0x69   : > { %2187 = vmatpush1.bf16.msra.mxu0 %v10498_v42  ;;  %2359 = vmatpush1.bf16.msra.mxu1 %v10501_v43  ;;  %v10588_v42 = vld [vmem:[%s15411_s1 + $0xce0] ss:$16 sps:$4 sm:$0xff]   ;;  %v10591_v43 = vld [vmem:[%s15411_s1 + $0xce8] ss:$16 sps:$4 sm:$0xff]  }
  0x6a   : > { %2188 = vmatprep.subr.bf16.mxu0 %v10506_v44  ;;  %2360 = vmatprep.subr.bf16.mxu1 %v10509_v45  ;;  %v10596_v44 = vld [vmem:[%s15411_s1 + $0xd04] ss:$16 sps:$4 sm:$0xff]   ;;  %v10599_v45 = vld [vmem:[%s15411_s1 + $0xd0c] ss:$16 sps:$4 sm:$0xff]  }
  0x6d   : > { %2189 = vmatpush1.bf16.msra.mxu0 %v10504_v46  ;;  %2361 = vmatpush1.bf16.msra.mxu1 %v10507_v47  ;;  %v10594_v46 = vld [vmem:[%s15411_s1 + $0xd00] ss:$16 sps:$4 sm:$0xff]   ;;  %v10597_v47 = vld [vmem:[%s15411_s1 + $0xd08] ss:$16 sps:$4 sm:$0xff]  }
  0x6e   : > { %2190 = vmatprep.subr.bf16.mxu0 %v10512_v48  ;;  %2362 = vmatprep.subr.bf16.mxu1 %v10515_v49  ;;  %v10602_v48 = vld [vmem:[%s15411_s1 + $0xd24] ss:$16 sps:$4 sm:$0xff]   ;;  %v10605_v49 = vld [vmem:[%s15411_s1 + $0xd2c] ss:$16 sps:$4 sm:$0xff]  }
  0x71   : > { %2191 = vmatpush1.bf16.msra.mxu0 %v10510_v50  ;;  %2363 = vmatpush1.bf16.msra.mxu1 %v10513_v51  ;;  %v10600_v50 = vld [vmem:[%s15411_s1 + $0xd20] ss:$16 sps:$4 sm:$0xff]   ;;  %v10603_v51 = vld [vmem:[%s15411_s1 + $0xd28] ss:$16 sps:$4 sm:$0xff]  }
  0x72   : > { %2192 = vmatprep.subr.bf16.mxu0 %v10518_v52  ;;  %2364 = vmatprep.subr.bf16.mxu1 %v10521_v53  ;;  %v10608_v52 = vld [vmem:[%s15411_s1 + $0xd44] ss:$16 sps:$4 sm:$0xff]   ;;  %v10611_v53 = vld [vmem:[%s15411_s1 + $0xd4c] ss:$16 sps:$4 sm:$0xff]  }
  0x75   : > { %2193 = vmatpush1.bf16.msra.mxu0 %v10516_v54  ;;  %2365 = vmatpush1.bf16.msra.mxu1 %v10519_v55  ;;  %v10606_v54 = vld [vmem:[%s15411_s1 + $0xd40] ss:$16 sps:$4 sm:$0xff]   ;;  %v10609_v55 = vld [vmem:[%s15411_s1 + $0xd48] ss:$16 sps:$4 sm:$0xff]  }
  0x76   : > { %2194 = vmatprep.subr.bf16.mxu0 %v10524_v56  ;;  %2366 = vmatprep.subr.bf16.mxu1 %v10527_v57  ;;  %v10614_v56 = vld [vmem:[%s15411_s1 + $0xd64] ss:$16 sps:$4 sm:$0xff]   ;;  %v10617_v57 = vld [vmem:[%s15411_s1 + $0xd6c] ss:$16 sps:$4 sm:$0xff]  }
  0x79   : > { %2195 = vmatpush1.bf16.msra.mxu0 %v10522_v58  ;;  %2367 = vmatpush1.bf16.msra.mxu1 %v10525_v59  ;;  %v10612_v58 = vld [vmem:[%s15411_s1 + $0xd60] ss:$16 sps:$4 sm:$0xff]   ;;  %v10615_v59 = vld [vmem:[%s15411_s1 + $0xd68] ss:$16 sps:$4 sm:$0xff]  }
  0x7a   : > { %2196 = vmatprep.subr.bf16.mxu0 %v10530_v60  ;;  %2368 = vmatprep.subr.bf16.mxu1 %v10533_v61  ;;  %v10620_v60 = vld [vmem:[%s15411_s1 + $0xd84] ss:$16 sps:$4 sm:$0xff]   ;;  %v10623_v61 = vld [vmem:[%s15411_s1 + $0xd8c] ss:$16 sps:$4 sm:$0xff]  }
  0x7d   : > { %2197 = vmatpush1.bf16.msra.mxu0 %v10528_v62  ;;  %2369 = vmatpush1.bf16.msra.mxu1 %v10531_v63  ;;  %v10618_v62 = vld [vmem:[%s15411_s1 + $0xd80] ss:$16 sps:$4 sm:$0xff]   ;;  %v10621_v63 = vld [vmem:[%s15411_s1 + $0xd88] ss:$16 sps:$4 sm:$0xff]  }
  0x7e   : > { %2198 = vmatprep.subr.bf16.mxu0 %v10536_v0  ;;  %2370 = vmatprep.subr.bf16.mxu1 %v10539_v1  ;;  %v10626_v0 = vld [vmem:[%s15411_s1 + $0xda4] ss:$16 sps:$4 sm:$0xff]   ;;  %v10629_v1 = vld [vmem:[%s15411_s1 + $0xdac] ss:$16 sps:$4 sm:$0xff]  }
  0x81   : > { %2199 = vmatpush1.bf16.msra.mxu0 %v10534_v2  ;;  %2371 = vmatpush1.bf16.msra.mxu1 %v10537_v3  ;;  %v10624_v2 = vld [vmem:[%s15411_s1 + $0xda0] ss:$16 sps:$4 sm:$0xff]   ;;  %v10627_v3 = vld [vmem:[%s15411_s1 + $0xda8] ss:$16 sps:$4 sm:$0xff]  }
  0x82   : > { %2200 = vmatprep.subr.bf16.mxu0 %v10542_v4  ;;  %2372 = vmatprep.subr.bf16.mxu1 %v10545_v5  ;;  %v10632_v4 = vld [vmem:[%s15411_s1 + $0xdc4] ss:$16 sps:$4 sm:$0xff]   ;;  %v10635_v5 = vld [vmem:[%s15411_s1 + $0xdcc] ss:$16 sps:$4 sm:$0xff]  }
  0x85   : > { %2201 = vmatpush1.bf16.msra.mxu0 %v10540_v6  ;;  %2373 = vmatpush1.bf16.msra.mxu1 %v10543_v7  ;;  %v10630_v6 = vld [vmem:[%s15411_s1 + $0xdc0] ss:$16 sps:$4 sm:$0xff]   ;;  %v10633_v7 = vld [vmem:[%s15411_s1 + $0xdc8] ss:$16 sps:$4 sm:$0xff]  }
  0x86   : > { %2213 = vmatprep.subr.bf16.mxu0 %v10548_v8  ;;  %2385 = vmatprep.subr.bf16.mxu1 %v10551_v9  ;;  %v10638_v8 = vld [vmem:[%s15411_s1 + $0xde4] ss:$16 sps:$4 sm:$0xff]   ;;  %v10641_v9 = vld [vmem:[%s15411_s1 + $0xdec] ss:$16 sps:$4 sm:$0xff]  }
  0x88   : > { %2203 = vmatmul.mubr.bf16.vlgmr.msra.gmra.mrb[0].mxu0 %v8620_v10  ;;  %2375 = vmatmul.mubr.bf16.vlgmr.msra.gmra.mrb[0].mxu1 %v8620_v10  ;;  %v10636_v10 = vld [vmem:[%s15411_s1 + $0xde0] ss:$16 sps:$4 sm:$0xff]  }
  0x89   : > { %2214 = vmatpush1.bf16.msra.mxu0 %v10546_v11  ;;  %2386 = vmatpush1.bf16.msra.mxu1 %v10549_v12  ;;  %v10639_v11 = vld [vmem:[%s15411_s1 + $0xde8] ss:$16 sps:$4 sm:$0xff]   ;;  %v10644_v12 = vld [vmem:[%s15411_s1 + $0xe04] ss:$16 sps:$4 sm:$0xff]  }
  0x8a   : > { %2215 = vmatprep.subr.bf16.mxu0 %v10554_v13  ;;  %2387 = vmatprep.subr.bf16.mxu1 %v10557_v14  ;;  %v10647_v13 = vld [vmem:[%s15411_s1 + $0xe0c] ss:$16 sps:$4 sm:$0xff]   ;;  %v10642_v14 = vld [vmem:[%s15411_s1 + $0xe00] ss:$16 sps:$4 sm:$0xff]  }
  0x8b   : > { %2245 = vmatprep.mubr.bf16.mxu0 %v8623_v17  ;;  %2417 = vmatprep.mubr.bf16.mxu1 %v8623_v17  ;;  %v10645_v17 = vld [vmem:[%s15411_s1 + $0xe08] ss:$16 sps:$4 sm:$0xff]  }
  0x8d   : > { %2216 = vmatpush1.bf16.msra.mxu0 %v10552_v18  ;;  %2388 = vmatpush1.bf16.msra.mxu1 %v10555_v19  ;;  %v8622_v18 = vcombine.low %v12395_v15, %v12398_v16  ;;  %v12591_v19 = vld [vmem:[%s12110_s30 + $0x78] sm:$0xff]  ;;  %v10648_v15 = vld [vmem:[%s15411_s1 + $0xe20] ss:$16 sps:$4 sm:$0xff]  }
  0x8e   : > { %2217 = vmatprep.subr.bf16.mxu0 %v10560_v20  ;;  %2389 = vmatprep.subr.bf16.mxu1 %v10563_v21  ;;  %v12594_v20 = vld [vmem:[%s12110_s30 + $0x98] sm:$0xff]  ;;  %v10650_v21 = vld [vmem:[%s15411_s1 + $0xe24] ss:$16 sps:$4 sm:$0xff]  }
  0x8f   : > { %v10651_v16 = vld [vmem:[%s15411_s1 + $0xe28] ss:$16 sps:$4 sm:$0xff]  }
  0x91   : > { %2218 = vmatpush1.bf16.msra.mxu0 %v10558_v22  ;;  %2390 = vmatpush1.bf16.msra.mxu1 %v10561_v23  ;;  %v10653_v22 = vld [vmem:[%s15411_s1 + $0xe2c] ss:$16 sps:$4 sm:$0xff]   ;;  %v8625_v23 = vcombine.high %v12591_v19, %v12594_v20 }
  0x92   : > { %2219 = vmatprep.subr.bf16.mxu0 %v10566_v24  ;;  %2391 = vmatprep.subr.bf16.mxu1 %v10569_v25  ;;  %v10656_v24 = vld [vmem:[%s15411_s1 + $0xe44] ss:$16 sps:$4 sm:$0xff]   ;;  %v10659_v25 = vld [vmem:[%s15411_s1 + $0xe4c] ss:$16 sps:$4 sm:$0xff]  }
  0x95   : > { %2220 = vmatpush1.bf16.msra.mxu0 %v10564_v26  ;;  %2392 = vmatpush1.bf16.msra.mxu1 %v10567_v27  ;;  %v10654_v26 = vld [vmem:[%s15411_s1 + $0xe40] ss:$16 sps:$4 sm:$0xff]   ;;  %v10657_v27 = vld [vmem:[%s15411_s1 + $0xe48] ss:$16 sps:$4 sm:$0xff]  }
  0x96   : > { %2221 = vmatprep.subr.bf16.mxu0 %v10572_v28  ;;  %2393 = vmatprep.subr.bf16.mxu1 %v10575_v29  ;;  %v10662_v28 = vld [vmem:[%s15411_s1 + $0xe64] ss:$16 sps:$4 sm:$0xff]   ;;  %v10665_v29 = vld [vmem:[%s15411_s1 + $0xe6c] ss:$16 sps:$4 sm:$0xff]  }
  0x99   : > { %2222 = vmatpush1.bf16.msra.mxu0 %v10570_v30  ;;  %2394 = vmatpush1.bf16.msra.mxu1 %v10573_v31  ;;  %v10660_v30 = vld [vmem:[%s15411_s1 + $0xe60] ss:$16 sps:$4 sm:$0xff]   ;;  %v10663_v31 = vld [vmem:[%s15411_s1 + $0xe68] ss:$16 sps:$4 sm:$0xff]  }
  0x9a   : > { %2223 = vmatprep.subr.bf16.mxu0 %v10578_v32  ;;  %2395 = vmatprep.subr.bf16.mxu1 %v10581_v33  ;;  %v10668_v32 = vld [vmem:[%s15411_s1 + $0xe84] ss:$16 sps:$4 sm:$0xff]   ;;  %v10671_v33 = vld [vmem:[%s15411_s1 + $0xe8c] ss:$16 sps:$4 sm:$0xff]  }
  0x9d   : > { %2224 = vmatpush1.bf16.msra.mxu0 %v10576_v34  ;;  %2396 = vmatpush1.bf16.msra.mxu1 %v10579_v35  ;;  %v10666_v34 = vld [vmem:[%s15411_s1 + $0xe80] ss:$16 sps:$4 sm:$0xff]   ;;  %v10669_v35 = vld [vmem:[%s15411_s1 + $0xe88] ss:$16 sps:$4 sm:$0xff]  }
  0x9e   : > { %2225 = vmatprep.subr.bf16.mxu0 %v10584_v36  ;;  %2397 = vmatprep.subr.bf16.mxu1 %v10587_v37  ;;  %v10674_v36 = vld [vmem:[%s15411_s1 + $0xea4] ss:$16 sps:$4 sm:$0xff]   ;;  %v10677_v37 = vld [vmem:[%s15411_s1 + $0xeac] ss:$16 sps:$4 sm:$0xff]  }
  0xa1   : > { %2226 = vmatpush1.bf16.msra.mxu0 %v10582_v38  ;;  %2398 = vmatpush1.bf16.msra.mxu1 %v10585_v39  ;;  %v10672_v38 = vld [vmem:[%s15411_s1 + $0xea0] ss:$16 sps:$4 sm:$0xff]   ;;  %v10675_v39 = vld [vmem:[%s15411_s1 + $0xea8] ss:$16 sps:$4 sm:$0xff]  }
  0xa2   : > { %2227 = vmatprep.subr.bf16.mxu0 %v10590_v40  ;;  %2399 = vmatprep.subr.bf16.mxu1 %v10593_v41  ;;  %v10680_v40 = vld [vmem:[%s15411_s1 + $0xec4] ss:$16 sps:$4 sm:$0xff]   ;;  %v10683_v41 = vld [vmem:[%s15411_s1 + $0xecc] ss:$16 sps:$4 sm:$0xff]  }
  0xa5   : > { %2228 = vmatpush1.bf16.msra.mxu0 %v10588_v42  ;;  %2400 = vmatpush1.bf16.msra.mxu1 %v10591_v43  ;;  %v10678_v42 = vld [vmem:[%s15411_s1 + $0xec0] ss:$16 sps:$4 sm:$0xff]   ;;  %v10681_v43 = vld [vmem:[%s15411_s1 + $0xec8] ss:$16 sps:$4 sm:$0xff]  }
  0xa6   : > { %2229 = vmatprep.subr.bf16.mxu0 %v10596_v44  ;;  %2401 = vmatprep.subr.bf16.mxu1 %v10599_v45  ;;  %v10686_v44 = vld [vmem:[%s15411_s1 + $0xee4] ss:$16 sps:$4 sm:$0xff]   ;;  %v10689_v45 = vld [vmem:[%s15411_s1 + $0xeec] ss:$16 sps:$4 sm:$0xff]  }
  0xa9   : > { %2230 = vmatpush1.bf16.msra.mxu0 %v10594_v46  ;;  %2402 = vmatpush1.bf16.msra.mxu1 %v10597_v47  ;;  %v10684_v46 = vld [vmem:[%s15411_s1 + $0xee0] ss:$16 sps:$4 sm:$0xff]   ;;  %v10687_v47 = vld [vmem:[%s15411_s1 + $0xee8] ss:$16 sps:$4 sm:$0xff]  }
  0xaa   : > { %2231 = vmatprep.subr.bf16.mxu0 %v10602_v48  ;;  %2403 = vmatprep.subr.bf16.mxu1 %v10605_v49  ;;  %v10692_v48 = vld [vmem:[%s15411_s1 + $0xf04] ss:$16 sps:$4 sm:$0xff]   ;;  %v10695_v49 = vld [vmem:[%s15411_s1 + $0xf0c] ss:$16 sps:$4 sm:$0xff]  }
  0xad   : > { %2232 = vmatpush1.bf16.msra.mxu0 %v10600_v50  ;;  %2404 = vmatpush1.bf16.msra.mxu1 %v10603_v51  ;;  %v10690_v50 = vld [vmem:[%s15411_s1 + $0xf00] ss:$16 sps:$4 sm:$0xff]   ;;  %v10693_v51 = vld [vmem:[%s15411_s1 + $0xf08] ss:$16 sps:$4 sm:$0xff]  }
  0xae   : > { %2233 = vmatprep.subr.bf16.mxu0 %v10608_v52  ;;  %2405 = vmatprep.subr.bf16.mxu1 %v10611_v53  ;;  %v10698_v52 = vld [vmem:[%s15411_s1 + $0xf24] ss:$16 sps:$4 sm:$0xff]   ;;  %v10701_v53 = vld [vmem:[%s15411_s1 + $0xf2c] ss:$16 sps:$4 sm:$0xff]  }
  0xb1   : > { %2234 = vmatpush1.bf16.msra.mxu0 %v10606_v54  ;;  %2406 = vmatpush1.bf16.msra.mxu1 %v10609_v55  ;;  %v10696_v54 = vld [vmem:[%s15411_s1 + $0xf20] ss:$16 sps:$4 sm:$0xff]   ;;  %v10699_v55 = vld [vmem:[%s15411_s1 + $0xf28] ss:$16 sps:$4 sm:$0xff]  }
  0xb2   : > { %2235 = vmatprep.subr.bf16.mxu0 %v10614_v56  ;;  %2407 = vmatprep.subr.bf16.mxu1 %v10617_v57  ;;  %v10704_v56 = vld [vmem:[%s15411_s1 + $0xf44] ss:$16 sps:$4 sm:$0xff]   ;;  %v10707_v57 = vld [vmem:[%s15411_s1 + $0xf4c] ss:$16 sps:$4 sm:$0xff]  }
  0xb5   : > { %2236 = vmatpush1.bf16.msra.mxu0 %v10612_v58  ;;  %2408 = vmatpush1.bf16.msra.mxu1 %v10615_v59  ;;  %v10702_v58 = vld [vmem:[%s15411_s1 + $0xf40] ss:$16 sps:$4 sm:$0xff]   ;;  %v10705_v59 = vld [vmem:[%s15411_s1 + $0xf48] ss:$16 sps:$4 sm:$0xff]  }
  0xb6   : > { %2237 = vmatprep.subr.bf16.mxu0 %v10620_v60  ;;  %2409 = vmatprep.subr.bf16.mxu1 %v10623_v61  ;;  %v10710_v60 = vld [vmem:[%s15411_s1 + $0xf64] ss:$16 sps:$4 sm:$0xff]   ;;  %v10713_v61 = vld [vmem:[%s15411_s1 + $0xf6c] ss:$16 sps:$4 sm:$0xff]  }
  0xb9   : > { %2238 = vmatpush1.bf16.msra.mxu0 %v10618_v62  ;;  %2410 = vmatpush1.bf16.msra.mxu1 %v10621_v63  ;;  %v10708_v62 = vld [vmem:[%s15411_s1 + $0xf60] ss:$16 sps:$4 sm:$0xff]   ;;  %v10711_v63 = vld [vmem:[%s15411_s1 + $0xf68] ss:$16 sps:$4 sm:$0xff]  }
  0xba   : > { %2239 = vmatprep.subr.bf16.mxu0 %v10626_v0  ;;  %2411 = vmatprep.subr.bf16.mxu1 %v10629_v1  ;;  %v10716_v0 = vld [vmem:[%s15411_s1 + $0xf84] ss:$16 sps:$4 sm:$0xff]   ;;  %v10719_v1 = vld [vmem:[%s15411_s1 + $0xf8c] ss:$16 sps:$4 sm:$0xff]  }
  0xbd   : > { %2240 = vmatpush1.bf16.msra.mxu0 %v10624_v2  ;;  %2412 = vmatpush1.bf16.msra.mxu1 %v10627_v3  ;;  %v10714_v2 = vld [vmem:[%s15411_s1 + $0xf80] ss:$16 sps:$4 sm:$0xff]   ;;  %v10717_v3 = vld [vmem:[%s15411_s1 + $0xf88] ss:$16 sps:$4 sm:$0xff]  }
  0xbe   : > { %2241 = vmatprep.subr.bf16.mxu0 %v10632_v4  ;;  %2413 = vmatprep.subr.bf16.mxu1 %v10635_v5  ;;  %v10722_v4 = vld [vmem:[%s15411_s1 + $0xfa4] ss:$16 sps:$4 sm:$0xff]   ;;  %v10725_v5 = vld [vmem:[%s15411_s1 + $0xfac] ss:$16 sps:$4 sm:$0xff]  }
  0xc1   : > { %2242 = vmatpush1.bf16.msra.mxu0 %v10630_v6  ;;  %2414 = vmatpush1.bf16.msra.mxu1 %v10633_v7  ;;  %v10720_v6 = vld [vmem:[%s15411_s1 + $0xfa0] ss:$16 sps:$4 sm:$0xff]   ;;  %v10723_v7 = vld [vmem:[%s15411_s1 + $0xfa8] ss:$16 sps:$4 sm:$0xff]  }
  0xc2   : > { %2243 = vmatprep.subr.bf16.mxu0 %v10638_v8  ;;  %2415 = vmatprep.subr.bf16.mxu1 %v10641_v9  ;;  %v10728_v8 = vld [vmem:[%s15411_s1 + $0xfc4] ss:$16 sps:$4 sm:$0xff]   ;;  %v10731_v9 = vld [vmem:[%s15411_s1 + $0xfcc] ss:$16 sps:$4 sm:$0xff]  }
  0xc5   : > { %2244 = vmatpush1.bf16.msra.mxu0 %v10636_v10  ;;  %2416 = vmatpush1.bf16.msra.mxu1 %v10639_v11  ;;  %v10726_v10 = vld [vmem:[%s15411_s1 + $0xfc0] ss:$16 sps:$4 sm:$0xff]   ;;  %v10729_v11 = vld [vmem:[%s15411_s1 + $0xfc8] ss:$16 sps:$4 sm:$0xff]  }
  0xc6   : > { %2256 = vmatprep.subr.bf16.mxu0 %v10644_v12  ;;  %2428 = vmatprep.subr.bf16.mxu1 %v10647_v13  ;;  %v10734_v12 = vld [vmem:[%s15411_s1 + $0xfe4] ss:$16 sps:$4 sm:$0xff]   ;;  %v10737_v13 = vld [vmem:[%s15411_s1 + $0xfec] ss:$16 sps:$4 sm:$0xff]  }
  0xc8   : > { %2246 = vmatmul.mubr.bf16.vlgmr.msra.gmra.mrb[0].mxu0 %v8622_v18  ;;  %2418 = vmatmul.mubr.bf16.vlgmr.msra.gmra.mrb[0].mxu1 %v8622_v18  ;;  %v10740_v18 = vld [vmem:[%s15411_s1 + $0x4] ss:$16 sps:$4 sm:$0xff]  }
  0xc9   : > { %2257 = vmatpush1.bf16.msra.mxu0 %v10642_v14  ;;  %2429 = vmatpush1.bf16.msra.mxu1 %v10645_v17  ;;  %v10732_v14 = vld [vmem:[%s15411_s1 + $0xfe0] ss:$16 sps:$4 sm:$0xff]   ;;  %v10735_v17 = vld [vmem:[%s15411_s1 + $0xfe8] ss:$16 sps:$4 sm:$0xff]  }
  0xca   : > { %2258 = vmatprep.subr.bf16.mxu0 %v10650_v21  ;;  %2430 = vmatprep.subr.bf16.mxu1 %v10653_v22  ;;  %v10743_v21 = vld [vmem:[%s15411_s1 + $0xc] ss:$16 sps:$4 sm:$0xff]   ;;  %v12785_v22 = vld [vmem:[%s12110_s30] sm:$0xff] }
  0xcb   : > { %2288 = vmatprep.mubr.bf16.mxu0 %v8625_v23  ;;  %2460 = vmatprep.mubr.bf16.mxu1 %v8625_v23  ;;  %v8624_v23 = vcombine.low %v12591_v19, %v12594_v20  ;;  %v10749_v19 = vld [vmem:[%s15411_s1 + $0x2c] ss:$16 sps:$4 sm:$0xff]  }
  0xcd   : > { %2259 = vmatpush1.bf16.msra.mxu0 %v10648_v15  ;;  %2431 = vmatpush1.bf16.msra.mxu1 %v10651_v16  ;;  %v12790_v15 = vld [vmem:[%s12110_s30 + $0x20] sm:$0xff] }
  0xce   : > { %2260 = vmatprep.subr.bf16.mxu0 %v10656_v24  ;;  %2432 = vmatprep.subr.bf16.mxu1 %v10659_v25  ;;  %v10738_v16 = vld [vmem:[%s15411_s1] ss:$16 sps:$4 sm:$0xff]   ;;  %v10741_v24 = vld [vmem:[%s15411_s1 + $0x8] ss:$16 sps:$4 sm:$0xff]   ;;  %v10746_v25 = vld [vmem:[%s15411_s1 + $0x24] ss:$16 sps:$4 sm:$0xff]   ;;  %v8883_v20 = vcombine.high %v12785_v22, %v12790_v15 }
  0xd1   : > { %2261 = vmatpush1.bf16.msra.mxu0 %v10654_v26  ;;  %2433 = vmatpush1.bf16.msra.mxu1 %v10657_v27  ;;  %v10744_v26 = vld [vmem:[%s15411_s1 + $0x20] ss:$16 sps:$4 sm:$0xff]   ;;  %v10747_v27 = vld [vmem:[%s15411_s1 + $0x28] ss:$16 sps:$4 sm:$0xff]  }
  0xd2   : > { %2262 = vmatprep.subr.bf16.mxu0 %v10662_v28  ;;  %2434 = vmatprep.subr.bf16.mxu1 %v10665_v29  ;;  %v10752_v28 = vld [vmem:[%s15411_s1 + $0x44] ss:$16 sps:$4 sm:$0xff]   ;;  %v10755_v29 = vld [vmem:[%s15411_s1 + $0x4c] ss:$16 sps:$4 sm:$0xff]  }
  0xd5   : > { %2263 = vmatpush1.bf16.msra.mxu0 %v10660_v30  ;;  %2435 = vmatpush1.bf16.msra.mxu1 %v10663_v31  ;;  %v10750_v30 = vld [vmem:[%s15411_s1 + $0x40] ss:$16 sps:$4 sm:$0xff]   ;;  %v10753_v31 = vld [vmem:[%s15411_s1 + $0x48] ss:$16 sps:$4 sm:$0xff]  }
  0xd6   : > { %2264 = vmatprep.subr.bf16.mxu0 %v10668_v32  ;;  %2436 = vmatprep.subr.bf16.mxu1 %v10671_v33  ;;  %v10758_v32 = vld [vmem:[%s15411_s1 + $0x64] ss:$16 sps:$4 sm:$0xff]   ;;  %v10761_v33 = vld [vmem:[%s15411_s1 + $0x6c] ss:$16 sps:$4 sm:$0xff]  }
  0xd9   : > { %2265 = vmatpush1.bf16.msra.mxu0 %v10666_v34  ;;  %2437 = vmatpush1.bf16.msra.mxu1 %v10669_v35  ;;  %v10756_v34 = vld [vmem:[%s15411_s1 + $0x60] ss:$16 sps:$4 sm:$0xff]   ;;  %v10759_v35 = vld [vmem:[%s15411_s1 + $0x68] ss:$16 sps:$4 sm:$0xff]  }
  0xda   : > { %2266 = vmatprep.subr.bf16.mxu0 %v10674_v36  ;;  %2438 = vmatprep.subr.bf16.mxu1 %v10677_v37  ;;  %v10764_v36 = vld [vmem:[%s15411_s1 + $0x84] ss:$16 sps:$4 sm:$0xff]   ;;  %v10767_v37 = vld [vmem:[%s15411_s1 + $0x8c] ss:$16 sps:$4 sm:$0xff]  }
  0xdd   : > { %2267 = vmatpush1.bf16.msra.mxu0 %v10672_v38  ;;  %2439 = vmatpush1.bf16.msra.mxu1 %v10675_v39  ;;  %v10762_v38 = vld [vmem:[%s15411_s1 + $0x80] ss:$16 sps:$4 sm:$0xff]   ;;  %v10765_v39 = vld [vmem:[%s15411_s1 + $0x88] ss:$16 sps:$4 sm:$0xff]  }
  0xde   : > { %2268 = vmatprep.subr.bf16.mxu0 %v10680_v40  ;;  %2440 = vmatprep.subr.bf16.mxu1 %v10683_v41  ;;  %v10770_v40 = vld [vmem:[%s15411_s1 + $0xa4] ss:$16 sps:$4 sm:$0xff]   ;;  %v10773_v41 = vld [vmem:[%s15411_s1 + $0xac] ss:$16 sps:$4 sm:$0xff]  }
  0xe1   : > { %2269 = vmatpush1.bf16.msra.mxu0 %v10678_v42  ;;  %2441 = vmatpush1.bf16.msra.mxu1 %v10681_v43  ;;  %v10768_v42 = vld [vmem:[%s15411_s1 + $0xa0] ss:$16 sps:$4 sm:$0xff]   ;;  %v10771_v43 = vld [vmem:[%s15411_s1 + $0xa8] ss:$16 sps:$4 sm:$0xff]  }
  0xe2   : > { %2270 = vmatprep.subr.bf16.mxu0 %v10686_v44  ;;  %2442 = vmatprep.subr.bf16.mxu1 %v10689_v45  ;;  %v10776_v44 = vld [vmem:[%s15411_s1 + $0xc4] ss:$16 sps:$4 sm:$0xff]   ;;  %v10779_v45 = vld [vmem:[%s15411_s1 + $0xcc] ss:$16 sps:$4 sm:$0xff]  }
  0xe5   : > { %2271 = vmatpush1.bf16.msra.mxu0 %v10684_v46  ;;  %2443 = vmatpush1.bf16.msra.mxu1 %v10687_v47  ;;  %v10774_v46 = vld [vmem:[%s15411_s1 + $0xc0] ss:$16 sps:$4 sm:$0xff]   ;;  %v10777_v47 = vld [vmem:[%s15411_s1 + $0xc8] ss:$16 sps:$4 sm:$0xff]  }
  0xe6   : > { %2272 = vmatprep.subr.bf16.mxu0 %v10692_v48  ;;  %2444 = vmatprep.subr.bf16.mxu1 %v10695_v49  ;;  %v10782_v48 = vld [vmem:[%s15411_s1 + $0xe4] ss:$16 sps:$4 sm:$0xff]   ;;  %v10785_v49 = vld [vmem:[%s15411_s1 + $0xec] ss:$16 sps:$4 sm:$0xff]  }
  0xe9   : > { %2273 = vmatpush1.bf16.msra.mxu0 %v10690_v50  ;;  %2445 = vmatpush1.bf16.msra.mxu1 %v10693_v51  ;;  %v10780_v50 = vld [vmem:[%s15411_s1 + $0xe0] ss:$16 sps:$4 sm:$0xff]   ;;  %v10783_v51 = vld [vmem:[%s15411_s1 + $0xe8] ss:$16 sps:$4 sm:$0xff]  }
  0xea   : > { %2274 = vmatprep.subr.bf16.mxu0 %v10698_v52  ;;  %2446 = vmatprep.subr.bf16.mxu1 %v10701_v53  ;;  %v10788_v52 = vld [vmem:[%s15411_s1 + $0x104] ss:$16 sps:$4 sm:$0xff]   ;;  %v10791_v53 = vld [vmem:[%s15411_s1 + $0x10c] ss:$16 sps:$4 sm:$0xff]  }
  0xed   : > { %2275 = vmatpush1.bf16.msra.mxu0 %v10696_v54  ;;  %2447 = vmatpush1.bf16.msra.mxu1 %v10699_v55  ;;  %v10786_v54 = vld [vmem:[%s15411_s1 + $0x100] ss:$16 sps:$4 sm:$0xff]   ;;  %v10789_v55 = vld [vmem:[%s15411_s1 + $0x108] ss:$16 sps:$4 sm:$0xff]  }
  0xee   : > { %2276 = vmatprep.subr.bf16.mxu0 %v10704_v56  ;;  %2448 = vmatprep.subr.bf16.mxu1 %v10707_v57  ;;  %v10794_v56 = vld [vmem:[%s15411_s1 + $0x124] ss:$16 sps:$4 sm:$0xff]   ;;  %v10797_v57 = vld [vmem:[%s15411_s1 + $0x12c] ss:$16 sps:$4 sm:$0xff]  }
  0xf1   : > { %2277 = vmatpush1.bf16.msra.mxu0 %v10702_v58  ;;  %2449 = vmatpush1.bf16.msra.mxu1 %v10705_v59  ;;  %v10792_v58 = vld [vmem:[%s15411_s1 + $0x120] ss:$16 sps:$4 sm:$0xff]   ;;  %v10795_v59 = vld [vmem:[%s15411_s1 + $0x128] ss:$16 sps:$4 sm:$0xff]  }
  0xf2   : > { %2278 = vmatprep.subr.bf16.mxu0 %v10710_v60  ;;  %2450 = vmatprep.subr.bf16.mxu1 %v10713_v61  ;;  %v10800_v60 = vld [vmem:[%s15411_s1 + $0x144] ss:$16 sps:$4 sm:$0xff]   ;;  %v10803_v61 = vld [vmem:[%s15411_s1 + $0x14c] ss:$16 sps:$4 sm:$0xff]  }
  0xf5   : > { %2279 = vmatpush1.bf16.msra.mxu0 %v10708_v62  ;;  %2451 = vmatpush1.bf16.msra.mxu1 %v10711_v63  ;;  %v10798_v62 = vld [vmem:[%s15411_s1 + $0x140] ss:$16 sps:$4 sm:$0xff]   ;;  %v10801_v63 = vld [vmem:[%s15411_s1 + $0x148] ss:$16 sps:$4 sm:$0xff]  }
  0xf6   : > { %2280 = vmatprep.subr.bf16.mxu0 %v10716_v0  ;;  %2452 = vmatprep.subr.bf16.mxu1 %v10719_v1  ;;  %v10806_v0 = vld [vmem:[%s15411_s1 + $0x164] ss:$16 sps:$4 sm:$0xff]   ;;  %v10809_v1 = vld [vmem:[%s15411_s1 + $0x16c] ss:$16 sps:$4 sm:$0xff]  }
  0xf9   : > { %2281 = vmatpush1.bf16.msra.mxu0 %v10714_v2  ;;  %2453 = vmatpush1.bf16.msra.mxu1 %v10717_v3  ;;  %v10804_v2 = vld [vmem:[%s15411_s1 + $0x160] ss:$16 sps:$4 sm:$0xff]   ;;  %v10807_v3 = vld [vmem:[%s15411_s1 + $0x168] ss:$16 sps:$4 sm:$0xff]  }
  0xfa   : > { %2282 = vmatprep.subr.bf16.mxu0 %v10722_v4  ;;  %2454 = vmatprep.subr.bf16.mxu1 %v10725_v5  ;;  %v10812_v4 = vld [vmem:[%s15411_s1 + $0x184] ss:$16 sps:$4 sm:$0xff]   ;;  %v10815_v5 = vld [vmem:[%s15411_s1 + $0x18c] ss:$16 sps:$4 sm:$0xff]  }
  0xfd   : > { %2283 = vmatpush1.bf16.msra.mxu0 %v10720_v6  ;;  %2455 = vmatpush1.bf16.msra.mxu1 %v10723_v7  ;;  %v10810_v6 = vld [vmem:[%s15411_s1 + $0x180] ss:$16 sps:$4 sm:$0xff]   ;;  %v10813_v7 = vld [vmem:[%s15411_s1 + $0x188] ss:$16 sps:$4 sm:$0xff]  }
  0xfe   : > { %2284 = vmatprep.subr.bf16.mxu0 %v10728_v8  ;;  %2456 = vmatprep.subr.bf16.mxu1 %v10731_v9  ;;  %v10818_v8 = vld [vmem:[%s15411_s1 + $0x1a4] ss:$16 sps:$4 sm:$0xff]   ;;  %v10821_v9 = vld [vmem:[%s15411_s1 + $0x1ac] ss:$16 sps:$4 sm:$0xff]  }
 0x101   : > { %2285 = vmatpush1.bf16.msra.mxu0 %v10726_v10  ;;  %2457 = vmatpush1.bf16.msra.mxu1 %v10729_v11  ;;  %v10816_v10 = vld [vmem:[%s15411_s1 + $0x1a0] ss:$16 sps:$4 sm:$0xff]   ;;  %v10819_v11 = vld [vmem:[%s15411_s1 + $0x1a8] ss:$16 sps:$4 sm:$0xff]  }
 0x102   : > { %2286 = vmatprep.subr.bf16.mxu0 %v10734_v12  ;;  %2458 = vmatprep.subr.bf16.mxu1 %v10737_v13  ;;  %v10824_v12 = vld [vmem:[%s15411_s1 + $0x1c4] ss:$16 sps:$4 sm:$0xff]   ;;  %v10827_v13 = vld [vmem:[%s15411_s1 + $0x1cc] ss:$16 sps:$4 sm:$0xff]  }
 0x105   : > { %2287 = vmatpush1.bf16.msra.mxu0 %v10732_v14  ;;  %2459 = vmatpush1.bf16.msra.mxu1 %v10735_v17  ;;  %v10822_v14 = vld [vmem:[%s15411_s1 + $0x1c0] ss:$16 sps:$4 sm:$0xff]   ;;  %v10825_v17 = vld [vmem:[%s15411_s1 + $0x1c8] ss:$16 sps:$4 sm:$0xff]  }
 0x106   : > { %3791 = vmatprep.subr.bf16.mxu0 %v10740_v18  ;;  %3963 = vmatprep.subr.bf16.mxu1 %v10743_v21  ;;  %v10830_v18 = vld [vmem:[%s15411_s1 + $0x1e4] ss:$16 sps:$4 sm:$0xff]   ;;  %v10833_v21 = vld [vmem:[%s15411_s1 + $0x1ec] ss:$16 sps:$4 sm:$0xff]  }
 0x108   : > { %2289 = vmatmul.mubr.bf16.vlgmr.msra.gmra.mrb[0].mxu0 %v8624_v23  ;;  %2461 = vmatmul.mubr.bf16.vlgmr.msra.gmra.mrb[0].mxu1 %v8624_v23  ;;  %v10828_v23 = vld [vmem:[%s15411_s1 + $0x1e0] ss:$16 sps:$4 sm:$0xff]  }
 0x109   : > { %3792 = vmatpush1.bf16.msra.mxu0 %v10738_v16  ;;  %3964 = vmatpush1.bf16.msra.mxu1 %v10741_v24  ;;  %v10831_v16 = vld [vmem:[%s15411_s1 + $0x1e8] ss:$16 sps:$4 sm:$0xff]   ;;  %v10836_v24 = vld [vmem:[%s15411_s1 + $0x204] ss:$16 sps:$4 sm:$0xff]  }
 0x10a   : > { %3793 = vmatprep.subr.bf16.mxu0 %v10746_v25  ;;  %3965 = vmatprep.subr.bf16.mxu1 %v10749_v19  ;;  %v10839_v25 = vld [vmem:[%s15411_s1 + $0x20c] ss:$16 sps:$4 sm:$0xff]  }
 0x10b   : > { %3823 = vmatprep.mubr.bf16.mxu0 %v8883_v20  ;;  %3995 = vmatprep.mubr.bf16.mxu1 %v8883_v20  ;;  %v12987_v19 = vld [vmem:[%s12110_s30 + $0x8] sm:$0xff] }
 0x10c   : > { %v12990_v20 = vld [vmem:[%s12110_s30 + $0x28] sm:$0xff] }
 0x10d   : > { %3794 = vmatpush1.bf16.msra.mxu0 %v10744_v26  ;;  %3966 = vmatpush1.bf16.msra.mxu1 %v10747_v27  ;;  %v8882_v26 = vcombine.low %v12785_v22, %v12790_v15  ;;  %v10834_v27 = vld [vmem:[%s15411_s1 + $0x200] ss:$16 sps:$4 sm:$0xff]   ;;  %v10845_v22 = vld [vmem:[%s15411_s1 + $0x22c] ss:$16 sps:$4 sm:$0xff]   ;;  %v8885_v15 = vcombine.high %v12987_v19, %v12990_v20 }
 0x10e   : > { %3795 = vmatprep.subr.bf16.mxu0 %v10752_v28  ;;  %3967 = vmatprep.subr.bf16.mxu1 %v10755_v29  ;;  %v10837_v28 = vld [vmem:[%s15411_s1 + $0x208] ss:$16 sps:$4 sm:$0xff]   ;;  %v10842_v29 = vld [vmem:[%s15411_s1 + $0x224] ss:$16 sps:$4 sm:$0xff]  }
 0x111   : > { %3796 = vmatpush1.bf16.msra.mxu0 %v10750_v30  ;;  %3968 = vmatpush1.bf16.msra.mxu1 %v10753_v31  ;;  %v10840_v30 = vld [vmem:[%s15411_s1 + $0x220] ss:$16 sps:$4 sm:$0xff]   ;;  %v10843_v31 = vld [vmem:[%s15411_s1 + $0x228] ss:$16 sps:$4 sm:$0xff]  }
 0x112   : > { %3797 = vmatprep.subr.bf16.mxu0 %v10758_v32  ;;  %3969 = vmatprep.subr.bf16.mxu1 %v10761_v33  ;;  %v10848_v32 = vld [vmem:[%s15411_s1 + $0x244] ss:$16 sps:$4 sm:$0xff]   ;;  %v10851_v33 = vld [vmem:[%s15411_s1 + $0x24c] ss:$16 sps:$4 sm:$0xff]  }
 0x115   : > { %3798 = vmatpush1.bf16.msra.mxu0 %v10756_v34  ;;  %3970 = vmatpush1.bf16.msra.mxu1 %v10759_v35  ;;  %v10846_v34 = vld [vmem:[%s15411_s1 + $0x240] ss:$16 sps:$4 sm:$0xff]   ;;  %v10849_v35 = vld [vmem:[%s15411_s1 + $0x248] ss:$16 sps:$4 sm:$0xff]  }
 0x116   : > { %3799 = vmatprep.subr.bf16.mxu0 %v10764_v36  ;;  %3971 = vmatprep.subr.bf16.mxu1 %v10767_v37  ;;  %v10854_v36 = vld [vmem:[%s15411_s1 + $0x264] ss:$16 sps:$4 sm:$0xff]   ;;  %v10857_v37 = vld [vmem:[%s15411_s1 + $0x26c] ss:$16 sps:$4 sm:$0xff]  }
 0x119   : > { %3800 = vmatpush1.bf16.msra.mxu0 %v10762_v38  ;;  %3972 = vmatpush1.bf16.msra.mxu1 %v10765_v39  ;;  %v10852_v38 = vld [vmem:[%s15411_s1 + $0x260] ss:$16 sps:$4 sm:$0xff]   ;;  %v10855_v39 = vld [vmem:[%s15411_s1 + $0x268] ss:$16 sps:$4 sm:$0xff]  }
 0x11a   : > { %3801 = vmatprep.subr.bf16.mxu0 %v10770_v40  ;;  %3973 = vmatprep.subr.bf16.mxu1 %v10773_v41  ;;  %v10860_v40 = vld [vmem:[%s15411_s1 + $0x284] ss:$16 sps:$4 sm:$0xff]   ;;  %v10863_v41 = vld [vmem:[%s15411_s1 + $0x28c] ss:$16 sps:$4 sm:$0xff]  }
 0x11d   : > { %3802 = vmatpush1.bf16.msra.mxu0 %v10768_v42  ;;  %3974 = vmatpush1.bf16.msra.mxu1 %v10771_v43  ;;  %v10858_v42 = vld [vmem:[%s15411_s1 + $0x280] ss:$16 sps:$4 sm:$0xff]   ;;  %v10861_v43 = vld [vmem:[%s15411_s1 + $0x288] ss:$16 sps:$4 sm:$0xff]  }
 0x11e   : > { %3803 = vmatprep.subr.bf16.mxu0 %v10776_v44  ;;  %3975 = vmatprep.subr.bf16.mxu1 %v10779_v45  ;;  %v10866_v44 = vld [vmem:[%s15411_s1 + $0x2a4] ss:$16 sps:$4 sm:$0xff]   ;;  %v10869_v45 = vld [vmem:[%s15411_s1 + $0x2ac] ss:$16 sps:$4 sm:$0xff]  }
 0x121   : > { %3804 = vmatpush1.bf16.msra.mxu0 %v10774_v46  ;;  %3976 = vmatpush1.bf16.msra.mxu1 %v10777_v47  ;;  %v10864_v46 = vld [vmem:[%s15411_s1 + $0x2a0] ss:$16 sps:$4 sm:$0xff]   ;;  %v10867_v47 = vld [vmem:[%s15411_s1 + $0x2a8] ss:$16 sps:$4 sm:$0xff]  }
 0x122   : > { %3805 = vmatprep.subr.bf16.mxu0 %v10782_v48  ;;  %3977 = vmatprep.subr.bf16.mxu1 %v10785_v49  ;;  %v10872_v48 = vld [vmem:[%s15411_s1 + $0x2c4] ss:$16 sps:$4 sm:$0xff]   ;;  %v10875_v49 = vld [vmem:[%s15411_s1 + $0x2cc] ss:$16 sps:$4 sm:$0xff]  }
 0x125   : > { %3806 = vmatpush1.bf16.msra.mxu0 %v10780_v50  ;;  %3978 = vmatpush1.bf16.msra.mxu1 %v10783_v51  ;;  %v10870_v50 = vld [vmem:[%s15411_s1 + $0x2c0] ss:$16 sps:$4 sm:$0xff]   ;;  %v10873_v51 = vld [vmem:[%s15411_s1 + $0x2c8] ss:$16 sps:$4 sm:$0xff]  }
 0x126   : > { %3807 = vmatprep.subr.bf16.mxu0 %v10788_v52  ;;  %3979 = vmatprep.subr.bf16.mxu1 %v10791_v53  ;;  %v10878_v52 = vld [vmem:[%s15411_s1 + $0x2e4] ss:$16 sps:$4 sm:$0xff]   ;;  %v10881_v53 = vld [vmem:[%s15411_s1 + $0x2ec] ss:$16 sps:$4 sm:$0xff]  }
 0x129   : > { %3808 = vmatpush1.bf16.msra.mxu0 %v10786_v54  ;;  %3980 = vmatpush1.bf16.msra.mxu1 %v10789_v55  ;;  %v10876_v54 = vld [vmem:[%s15411_s1 + $0x2e0] ss:$16 sps:$4 sm:$0xff]   ;;  %v10879_v55 = vld [vmem:[%s15411_s1 + $0x2e8] ss:$16 sps:$4 sm:$0xff]  }
 0x12a   : > { %3809 = vmatprep.subr.bf16.mxu0 %v10794_v56  ;;  %3981 = vmatprep.subr.bf16.mxu1 %v10797_v57  ;;  %v10884_v56 = vld [vmem:[%s15411_s1 + $0x304] ss:$16 sps:$4 sm:$0xff]   ;;  %v10887_v57 = vld [vmem:[%s15411_s1 + $0x30c] ss:$16 sps:$4 sm:$0xff]  }
 0x12d   : > { %3810 = vmatpush1.bf16.msra.mxu0 %v10792_v58  ;;  %3982 = vmatpush1.bf16.msra.mxu1 %v10795_v59  ;;  %v10882_v58 = vld [vmem:[%s15411_s1 + $0x300] ss:$16 sps:$4 sm:$0xff]   ;;  %v10885_v59 = vld [vmem:[%s15411_s1 + $0x308] ss:$16 sps:$4 sm:$0xff]  }
 0x12e   : > { %3811 = vmatprep.subr.bf16.mxu0 %v10800_v60  ;;  %3983 = vmatprep.subr.bf16.mxu1 %v10803_v61  ;;  %v10890_v60 = vld [vmem:[%s15411_s1 + $0x324] ss:$16 sps:$4 sm:$0xff]   ;;  %v10893_v61 = vld [vmem:[%s15411_s1 + $0x32c] ss:$16 sps:$4 sm:$0xff]  }
 0x131   : > { %3812 = vmatpush1.bf16.msra.mxu0 %v10798_v62  ;;  %3984 = vmatpush1.bf16.msra.mxu1 %v10801_v63  ;;  %v10888_v62 = vld [vmem:[%s15411_s1 + $0x320] ss:$16 sps:$4 sm:$0xff]   ;;  %v10891_v63 = vld [vmem:[%s15411_s1 + $0x328] ss:$16 sps:$4 sm:$0xff]  }
 0x132   : > { %3813 = vmatprep.subr.bf16.mxu0 %v10806_v0  ;;  %3985 = vmatprep.subr.bf16.mxu1 %v10809_v1  ;;  %v10896_v0 = vld [vmem:[%s15411_s1 + $0x344] ss:$16 sps:$4 sm:$0xff]   ;;  %v10899_v1 = vld [vmem:[%s15411_s1 + $0x34c] ss:$16 sps:$4 sm:$0xff]  }
 0x135   : > { %3814 = vmatpush1.bf16.msra.mxu0 %v10804_v2  ;;  %3986 = vmatpush1.bf16.msra.mxu1 %v10807_v3  ;;  %v10894_v2 = vld [vmem:[%s15411_s1 + $0x340] ss:$16 sps:$4 sm:$0xff]   ;;  %v10897_v3 = vld [vmem:[%s15411_s1 + $0x348] ss:$16 sps:$4 sm:$0xff]  }
 0x136   : > { %3815 = vmatprep.subr.bf16.mxu0 %v10812_v4  ;;  %3987 = vmatprep.subr.bf16.mxu1 %v10815_v5  ;;  %v10902_v4 = vld [vmem:[%s15411_s1 + $0x364] ss:$16 sps:$4 sm:$0xff]   ;;  %v10905_v5 = vld [vmem:[%s15411_s1 + $0x36c] ss:$16 sps:$4 sm:$0xff]  }
 0x139   : > { %3816 = vmatpush1.bf16.msra.mxu0 %v10810_v6  ;;  %3988 = vmatpush1.bf16.msra.mxu1 %v10813_v7  ;;  %v10900_v6 = vld [vmem:[%s15411_s1 + $0x360] ss:$16 sps:$4 sm:$0xff]   ;;  %v10903_v7 = vld [vmem:[%s15411_s1 + $0x368] ss:$16 sps:$4 sm:$0xff]  }
 0x13a   : > { %3817 = vmatprep.subr.bf16.mxu0 %v10818_v8  ;;  %3989 = vmatprep.subr.bf16.mxu1 %v10821_v9  ;;  %v10908_v8 = vld [vmem:[%s15411_s1 + $0x384] ss:$16 sps:$4 sm:$0xff]   ;;  %v10911_v9 = vld [vmem:[%s15411_s1 + $0x38c] ss:$16 sps:$4 sm:$0xff]  }
 0x13d   : > { %3818 = vmatpush1.bf16.msra.mxu0 %v10816_v10  ;;  %3990 = vmatpush1.bf16.msra.mxu1 %v10819_v11  ;;  %v10906_v10 = vld [vmem:[%s15411_s1 + $0x380] ss:$16 sps:$4 sm:$0xff]   ;;  %v10909_v11 = vld [vmem:[%s15411_s1 + $0x388] ss:$16 sps:$4 sm:$0xff]  }
 0x13e   : > { %3819 = vmatprep.subr.bf16.mxu0 %v10824_v12  ;;  %3991 = vmatprep.subr.bf16.mxu1 %v10827_v13  ;;  %v10914_v12 = vld [vmem:[%s15411_s1 + $0x3a4] ss:$16 sps:$4 sm:$0xff]   ;;  %v10917_v13 = vld [vmem:[%s15411_s1 + $0x3ac] ss:$16 sps:$4 sm:$0xff]  }
 0x141   : > { %3820 = vmatpush1.bf16.msra.mxu0 %v10822_v14  ;;  %3992 = vmatpush1.bf16.msra.mxu1 %v10825_v17  ;;  %v10912_v14 = vld [vmem:[%s15411_s1 + $0x3a0] ss:$16 sps:$4 sm:$0xff]   ;;  %v10915_v17 = vld [vmem:[%s15411_s1 + $0x3a8] ss:$16 sps:$4 sm:$0xff]  }
 0x142   : > { %3821 = vmatprep.subr.bf16.mxu0 %v10830_v18  ;;  %3993 = vmatprep.subr.bf16.mxu1 %v10833_v21  ;;  %v10920_v18 = vld [vmem:[%s15411_s1 + $0x3c4] ss:$16 sps:$4 sm:$0xff]   ;;  %v10923_v21 = vld [vmem:[%s15411_s1 + $0x3cc] ss:$16 sps:$4 sm:$0xff]  }
 0x145   : > { %3822 = vmatpush1.bf16.msra.mxu0 %v10828_v23  ;;  %3994 = vmatpush1.bf16.msra.mxu1 %v10831_v16  ;;  %v10918_v23 = vld [vmem:[%s15411_s1 + $0x3c0] ss:$16 sps:$4 sm:$0xff]   ;;  %v10921_v16 = vld [vmem:[%s15411_s1 + $0x3c8] ss:$16 sps:$4 sm:$0xff]  }
 0x146   : > { %3834 = vmatprep.subr.bf16.mxu0 %v10836_v24  ;;  %4006 = vmatprep.subr.bf16.mxu1 %v10839_v25  ;;  %v10926_v24 = vld [vmem:[%s15411_s1 + $0x3e4] ss:$16 sps:$4 sm:$0xff]   ;;  %v10929_v25 = vld [vmem:[%s15411_s1 + $0x3ec] ss:$16 sps:$4 sm:$0xff]  }
 0x148   : > { %3824 = vmatmul.mubr.bf16.vlgmr.msra.gmra.mrb[0].mxu0 %v8882_v26  ;;  %3996 = vmatmul.mubr.bf16.vlgmr.msra.gmra.mrb[0].mxu1 %v8882_v26  ;;  %v10924_v26 = vld [vmem:[%s15411_s1 + $0x3e0] ss:$16 sps:$4 sm:$0xff]  }
 0x149   : > { %3835 = vmatpush1.bf16.msra.mxu0 %v10834_v27  ;;  %4007 = vmatpush1.bf16.msra.mxu1 %v10837_v28  ;;  %v10927_v27 = vld [vmem:[%s15411_s1 + $0x3e8] ss:$16 sps:$4 sm:$0xff]   ;;  %v10932_v28 = vld [vmem:[%s15411_s1 + $0x404] ss:$16 sps:$4 sm:$0xff]  }
 0x14a   : > { %3836 = vmatprep.subr.bf16.mxu0 %v10842_v29  ;;  %4008 = vmatprep.subr.bf16.mxu1 %v10845_v22  ;;  %v10935_v29 = vld [vmem:[%s15411_s1 + $0x40c] ss:$16 sps:$4 sm:$0xff]   ;;  %v13189_v22 = vld [vmem:[%s12110_s30 + $0x10] sm:$0xff] }
 0x14b   : > { %3866 = vmatprep.mubr.bf16.mxu0 %v8885_v15  ;;  %4038 = vmatprep.mubr.bf16.mxu1 %v8885_v15  ;;  %v13192_v15 = vld [vmem:[%s12110_s30 + $0x30] sm:$0xff] }
 0x14d   : > { %3837 = vmatpush1.bf16.msra.mxu0 %v10840_v30  ;;  %4009 = vmatpush1.bf16.msra.mxu1 %v10843_v31  ;;  %v8884_v30 = vcombine.low %v12987_v19, %v12990_v20  ;;  %v10930_v31 = vld [vmem:[%s15411_s1 + $0x400] ss:$16 sps:$4 sm:$0xff]   ;;  %v10941_v19 = vld [vmem:[%s15411_s1 + $0x42c] ss:$16 sps:$4 sm:$0xff]   ;;  %v8887_v20 = vcombine.high %v13189_v22, %v13192_v15 }
 0x14e   : > { %3838 = vmatprep.subr.bf16.mxu0 %v10848_v32  ;;  %4010 = vmatprep.subr.bf16.mxu1 %v10851_v33  ;;  %v10933_v32 = vld [vmem:[%s15411_s1 + $0x408] ss:$16 sps:$4 sm:$0xff]   ;;  %v10938_v33 = vld [vmem:[%s15411_s1 + $0x424] ss:$16 sps:$4 sm:$0xff]  }
 0x151   : > { %3839 = vmatpush1.bf16.msra.mxu0 %v10846_v34  ;;  %4011 = vmatpush1.bf16.msra.mxu1 %v10849_v35  ;;  %v10936_v34 = vld [vmem:[%s15411_s1 + $0x420] ss:$16 sps:$4 sm:$0xff]   ;;  %v10939_v35 = vld [vmem:[%s15411_s1 + $0x428] ss:$16 sps:$4 sm:$0xff]  }
 0x152   : > { %3840 = vmatprep.subr.bf16.mxu0 %v10854_v36  ;;  %4012 = vmatprep.subr.bf16.mxu1 %v10857_v37  ;;  %v10944_v36 = vld [vmem:[%s15411_s1 + $0x444] ss:$16 sps:$4 sm:$0xff]   ;;  %v10947_v37 = vld [vmem:[%s15411_s1 + $0x44c] ss:$16 sps:$4 sm:$0xff]  }
 0x155   : > { %3841 = vmatpush1.bf16.msra.mxu0 %v10852_v38  ;;  %4013 = vmatpush1.bf16.msra.mxu1 %v10855_v39  ;;  %v10942_v38 = vld [vmem:[%s15411_s1 + $0x440] ss:$16 sps:$4 sm:$0xff]   ;;  %v10945_v39 = vld [vmem:[%s15411_s1 + $0x448] ss:$16 sps:$4 sm:$0xff]  }
 0x156   : > { %3842 = vmatprep.subr.bf16.mxu0 %v10860_v40  ;;  %4014 = vmatprep.subr.bf16.mxu1 %v10863_v41  ;;  %v10950_v40 = vld [vmem:[%s15411_s1 + $0x464] ss:$16 sps:$4 sm:$0xff]   ;;  %v10953_v41 = vld [vmem:[%s15411_s1 + $0x46c] ss:$16 sps:$4 sm:$0xff]  }
 0x159   : > { %3843 = vmatpush1.bf16.msra.mxu0 %v10858_v42  ;;  %4015 = vmatpush1.bf16.msra.mxu1 %v10861_v43  ;;  %v10948_v42 = vld [vmem:[%s15411_s1 + $0x460] ss:$16 sps:$4 sm:$0xff]   ;;  %v10951_v43 = vld [vmem:[%s15411_s1 + $0x468] ss:$16 sps:$4 sm:$0xff]  }
 0x15a   : > { %3844 = vmatprep.subr.bf16.mxu0 %v10866_v44  ;;  %4016 = vmatprep.subr.bf16.mxu1 %v10869_v45  ;;  %v10956_v44 = vld [vmem:[%s15411_s1 + $0x484] ss:$16 sps:$4 sm:$0xff]   ;;  %v10959_v45 = vld [vmem:[%s15411_s1 + $0x48c] ss:$16 sps:$4 sm:$0xff]  }
 0x15d   : > { %3845 = vmatpush1.bf16.msra.mxu0 %v10864_v46  ;;  %4017 = vmatpush1.bf16.msra.mxu1 %v10867_v47  ;;  %v10954_v46 = vld [vmem:[%s15411_s1 + $0x480] ss:$16 sps:$4 sm:$0xff]   ;;  %v10957_v47 = vld [vmem:[%s15411_s1 + $0x488] ss:$16 sps:$4 sm:$0xff]  }
 0x15e   : > { %3846 = vmatprep.subr.bf16.mxu0 %v10872_v48  ;;  %4018 = vmatprep.subr.bf16.mxu1 %v10875_v49  ;;  %v10962_v48 = vld [vmem:[%s15411_s1 + $0x4a4] ss:$16 sps:$4 sm:$0xff]   ;;  %v10965_v49 = vld [vmem:[%s15411_s1 + $0x4ac] ss:$16 sps:$4 sm:$0xff]  }
 0x161   : > { %3847 = vmatpush1.bf16.msra.mxu0 %v10870_v50  ;;  %4019 = vmatpush1.bf16.msra.mxu1 %v10873_v51  ;;  %v10960_v50 = vld [vmem:[%s15411_s1 + $0x4a0] ss:$16 sps:$4 sm:$0xff]   ;;  %v10963_v51 = vld [vmem:[%s15411_s1 + $0x4a8] ss:$16 sps:$4 sm:$0xff]  }
 0x162   : > { %3848 = vmatprep.subr.bf16.mxu0 %v10878_v52  ;;  %4020 = vmatprep.subr.bf16.mxu1 %v10881_v53  ;;  %v10968_v52 = vld [vmem:[%s15411_s1 + $0x4c4] ss:$16 sps:$4 sm:$0xff]   ;;  %v10971_v53 = vld [vmem:[%s15411_s1 + $0x4cc] ss:$16 sps:$4 sm:$0xff]  }
 0x165   : > { %3849 = vmatpush1.bf16.msra.mxu0 %v10876_v54  ;;  %4021 = vmatpush1.bf16.msra.mxu1 %v10879_v55  ;;  %v10966_v54 = vld [vmem:[%s15411_s1 + $0x4c0] ss:$16 sps:$4 sm:$0xff]   ;;  %v10969_v55 = vld [vmem:[%s15411_s1 + $0x4c8] ss:$16 sps:$4 sm:$0xff]  }
 0x166   : > { %3850 = vmatprep.subr.bf16.mxu0 %v10884_v56  ;;  %4022 = vmatprep.subr.bf16.mxu1 %v10887_v57  ;;  %v10974_v56 = vld [vmem:[%s15411_s1 + $0x4e4] ss:$16 sps:$4 sm:$0xff]   ;;  %v10977_v57 = vld [vmem:[%s15411_s1 + $0x4ec] ss:$16 sps:$4 sm:$0xff]  }
 0x169   : > { %3851 = vmatpush1.bf16.msra.mxu0 %v10882_v58  ;;  %4023 = vmatpush1.bf16.msra.mxu1 %v10885_v59  ;;  %v10972_v58 = vld [vmem:[%s15411_s1 + $0x4e0] ss:$16 sps:$4 sm:$0xff]   ;;  %v10975_v59 = vld [vmem:[%s15411_s1 + $0x4e8] ss:$16 sps:$4 sm:$0xff]  }
 0x16a   : > { %3852 = vmatprep.subr.bf16.mxu0 %v10890_v60  ;;  %4024 = vmatprep.subr.bf16.mxu1 %v10893_v61  ;;  %v10980_v60 = vld [vmem:[%s15411_s1 + $0x504] ss:$16 sps:$4 sm:$0xff]   ;;  %v10983_v61 = vld [vmem:[%s15411_s1 + $0x50c] ss:$16 sps:$4 sm:$0xff]  }
 0x16d   : > { %3853 = vmatpush1.bf16.msra.mxu0 %v10888_v62  ;;  %4025 = vmatpush1.bf16.msra.mxu1 %v10891_v63  ;;  %v10978_v62 = vld [vmem:[%s15411_s1 + $0x500] ss:$16 sps:$4 sm:$0xff]   ;;  %v10981_v63 = vld [vmem:[%s15411_s1 + $0x508] ss:$16 sps:$4 sm:$0xff]  }
 0x16e   : > { %3854 = vmatprep.subr.bf16.mxu0 %v10896_v0  ;;  %4026 = vmatprep.subr.bf16.mxu1 %v10899_v1  ;;  %v10986_v0 = vld [vmem:[%s15411_s1 + $0x524] ss:$16 sps:$4 sm:$0xff]   ;;  %v10989_v1 = vld [vmem:[%s15411_s1 + $0x52c] ss:$16 sps:$4 sm:$0xff]  }
 0x171   : > { %3855 = vmatpush1.bf16.msra.mxu0 %v10894_v2  ;;  %4027 = vmatpush1.bf16.msra.mxu1 %v10897_v3  ;;  %v10984_v2 = vld [vmem:[%s15411_s1 + $0x520] ss:$16 sps:$4 sm:$0xff]   ;;  %v10987_v3 = vld [vmem:[%s15411_s1 + $0x528] ss:$16 sps:$4 sm:$0xff]  }
 0x172   : > { %3856 = vmatprep.subr.bf16.mxu0 %v10902_v4  ;;  %4028 = vmatprep.subr.bf16.mxu1 %v10905_v5  ;;  %v10992_v4 = vld [vmem:[%s15411_s1 + $0x544] ss:$16 sps:$4 sm:$0xff]   ;;  %v10995_v5 = vld [vmem:[%s15411_s1 + $0x54c] ss:$16 sps:$4 sm:$0xff]  }
 0x175   : > { %3857 = vmatpush1.bf16.msra.mxu0 %v10900_v6  ;;  %4029 = vmatpush1.bf16.msra.mxu1 %v10903_v7  ;;  %v10990_v6 = vld [vmem:[%s15411_s1 + $0x540] ss:$16 sps:$4 sm:$0xff]   ;;  %v10993_v7 = vld [vmem:[%s15411_s1 + $0x548] ss:$16 sps:$4 sm:$0xff]  }
 0x176   : > { %3858 = vmatprep.subr.bf16.mxu0 %v10908_v8  ;;  %4030 = vmatprep.subr.bf16.mxu1 %v10911_v9  ;;  %v10998_v8 = vld [vmem:[%s15411_s1 + $0x564] ss:$16 sps:$4 sm:$0xff]   ;;  %v11001_v9 = vld [vmem:[%s15411_s1 + $0x56c] ss:$16 sps:$4 sm:$0xff]  }
 0x179   : > { %3859 = vmatpush1.bf16.msra.mxu0 %v10906_v10  ;;  %4031 = vmatpush1.bf16.msra.mxu1 %v10909_v11  ;;  %v10996_v10 = vld [vmem:[%s15411_s1 + $0x560] ss:$16 sps:$4 sm:$0xff]   ;;  %v10999_v11 = vld [vmem:[%s15411_s1 + $0x568] ss:$16 sps:$4 sm:$0xff]  }
 0x17a   : > { %3860 = vmatprep.subr.bf16.mxu0 %v10914_v12  ;;  %4032 = vmatprep.subr.bf16.mxu1 %v10917_v13  ;;  %v11004_v12 = vld [vmem:[%s15411_s1 + $0x584] ss:$16 sps:$4 sm:$0xff]   ;;  %v11007_v13 = vld [vmem:[%s15411_s1 + $0x58c] ss:$16 sps:$4 sm:$0xff]  }
 0x17d   : > { %3861 = vmatpush1.bf16.msra.mxu0 %v10912_v14  ;;  %4033 = vmatpush1.bf16.msra.mxu1 %v10915_v17  ;;  %v11002_v14 = vld [vmem:[%s15411_s1 + $0x580] ss:$16 sps:$4 sm:$0xff]   ;;  %v11005_v17 = vld [vmem:[%s15411_s1 + $0x588] ss:$16 sps:$4 sm:$0xff]  }
 0x17e   : > { %3862 = vmatprep.subr.bf16.mxu0 %v10920_v18  ;;  %4034 = vmatprep.subr.bf16.mxu1 %v10923_v21  ;;  %v11010_v18 = vld [vmem:[%s15411_s1 + $0x5a4] ss:$16 sps:$4 sm:$0xff]   ;;  %v11013_v21 = vld [vmem:[%s15411_s1 + $0x5ac] ss:$16 sps:$4 sm:$0xff]  }
 0x181   : > { %3863 = vmatpush1.bf16.msra.mxu0 %v10918_v23  ;;  %4035 = vmatpush1.bf16.msra.mxu1 %v10921_v16  ;;  %v11008_v23 = vld [vmem:[%s15411_s1 + $0x5a0] ss:$16 sps:$4 sm:$0xff]   ;;  %v11011_v16 = vld [vmem:[%s15411_s1 + $0x5a8] ss:$16 sps:$4 sm:$0xff]  }
 0x182   : > { %3864 = vmatprep.subr.bf16.mxu0 %v10926_v24  ;;  %4036 = vmatprep.subr.bf16.mxu1 %v10929_v25  ;;  %v11016_v24 = vld [vmem:[%s15411_s1 + $0x5c4] ss:$16 sps:$4 sm:$0xff]   ;;  %v11019_v25 = vld [vmem:[%s15411_s1 + $0x5cc] ss:$16 sps:$4 sm:$0xff]  }
 0x185   : > { %3865 = vmatpush1.bf16.msra.mxu0 %v10924_v26  ;;  %4037 = vmatpush1.bf16.msra.mxu1 %v10927_v27  ;;  %v11014_v26 = vld [vmem:[%s15411_s1 + $0x5c0] ss:$16 sps:$4 sm:$0xff]   ;;  %v11017_v27 = vld [vmem:[%s15411_s1 + $0x5c8] ss:$16 sps:$4 sm:$0xff]  }
 0x186   : > { %3877 = vmatprep.subr.bf16.mxu0 %v10932_v28  ;;  %4049 = vmatprep.subr.bf16.mxu1 %v10935_v29  ;;  %v11022_v28 = vld [vmem:[%s15411_s1 + $0x5e4] ss:$16 sps:$4 sm:$0xff]   ;;  %v11025_v29 = vld [vmem:[%s15411_s1 + $0x5ec] ss:$16 sps:$4 sm:$0xff]  }
 0x188   : > { %3867 = vmatmul.mubr.bf16.vlgmr.msra.gmra.mrb[0].mxu0 %v8884_v30  ;;  %4039 = vmatmul.mubr.bf16.vlgmr.msra.gmra.mrb[0].mxu1 %v8884_v30  ;;  %v11020_v30 = vld [vmem:[%s15411_s1 + $0x5e0] ss:$16 sps:$4 sm:$0xff]  }
 0x189   : > { %3878 = vmatpush1.bf16.msra.mxu0 %v10930_v31  ;;  %4050 = vmatpush1.bf16.msra.mxu1 %v10933_v32  ;;  %v11023_v31 = vld [vmem:[%s15411_s1 + $0x5e8] ss:$16 sps:$4 sm:$0xff]   ;;  %v11028_v32 = vld [vmem:[%s15411_s1 + $0x604] ss:$16 sps:$4 sm:$0xff]  }
 0x18a   : > { %3879 = vmatprep.subr.bf16.mxu0 %v10938_v33  ;;  %4051 = vmatprep.subr.bf16.mxu1 %v10941_v19  ;;  %v11031_v33 = vld [vmem:[%s15411_s1 + $0x60c] ss:$16 sps:$4 sm:$0xff]  }
 0x18b   : > { %3909 = vmatprep.mubr.bf16.mxu0 %v8887_v20  ;;  %4081 = vmatprep.mubr.bf16.mxu1 %v8887_v20  ;;  %v13391_v19 = vld [vmem:[%s12110_s30 + $0x18] sm:$0xff] }
 0x18c   : > { %v13394_v20 = vld [vmem:[%s12110_s30 + $0x38] sm:$0xff] }
 0x18d   : > { %3880 = vmatpush1.bf16.msra.mxu0 %v10936_v34  ;;  %4052 = vmatpush1.bf16.msra.mxu1 %v10939_v35  ;;  %v8886_v34 = vcombine.low %v13189_v22, %v13192_v15  ;;  %v11026_v35 = vld [vmem:[%s15411_s1 + $0x600] ss:$16 sps:$4 sm:$0xff]   ;;  %v11037_v22 = vld [vmem:[%s15411_s1 + $0x62c] ss:$16 sps:$4 sm:$0xff]   ;;  %v8889_v15 = vcombine.high %v13391_v19, %v13394_v20 }
 0x18e   : > { %3881 = vmatprep.subr.bf16.mxu0 %v10944_v36  ;;  %4053 = vmatprep.subr.bf16.mxu1 %v10947_v37  ;;  %v11029_v36 = vld [vmem:[%s15411_s1 + $0x608] ss:$16 sps:$4 sm:$0xff]   ;;  %v11034_v37 = vld [vmem:[%s15411_s1 + $0x624] ss:$16 sps:$4 sm:$0xff]  }
 0x191   : > { %3882 = vmatpush1.bf16.msra.mxu0 %v10942_v38  ;;  %4054 = vmatpush1.bf16.msra.mxu1 %v10945_v39  ;;  %v11032_v38 = vld [vmem:[%s15411_s1 + $0x620] ss:$16 sps:$4 sm:$0xff]   ;;  %v11035_v39 = vld [vmem:[%s15411_s1 + $0x628] ss:$16 sps:$4 sm:$0xff]  }
 0x192   : > { %3883 = vmatprep.subr.bf16.mxu0 %v10950_v40  ;;  %4055 = vmatprep.subr.bf16.mxu1 %v10953_v41  ;;  %v11040_v40 = vld [vmem:[%s15411_s1 + $0x644] ss:$16 sps:$4 sm:$0xff]   ;;  %v11043_v41 = vld [vmem:[%s15411_s1 + $0x64c] ss:$16 sps:$4 sm:$0xff]  }
 0x195   : > { %3884 = vmatpush1.bf16.msra.mxu0 %v10948_v42  ;;  %4056 = vmatpush1.bf16.msra.mxu1 %v10951_v43  ;;  %v11038_v42 = vld [vmem:[%s15411_s1 + $0x640] ss:$16 sps:$4 sm:$0xff]   ;;  %v11041_v43 = vld [vmem:[%s15411_s1 + $0x648] ss:$16 sps:$4 sm:$0xff]  }
 0x196   : > { %3885 = vmatprep.subr.bf16.mxu0 %v10956_v44  ;;  %4057 = vmatprep.subr.bf16.mxu1 %v10959_v45  ;;  %v11046_v44 = vld [vmem:[%s15411_s1 + $0x664] ss:$16 sps:$4 sm:$0xff]   ;;  %v11049_v45 = vld [vmem:[%s15411_s1 + $0x66c] ss:$16 sps:$4 sm:$0xff]  }
 0x199   : > { %3886 = vmatpush1.bf16.msra.mxu0 %v10954_v46  ;;  %4058 = vmatpush1.bf16.msra.mxu1 %v10957_v47  ;;  %v11044_v46 = vld [vmem:[%s15411_s1 + $0x660] ss:$16 sps:$4 sm:$0xff]   ;;  %v11047_v47 = vld [vmem:[%s15411_s1 + $0x668] ss:$16 sps:$4 sm:$0xff]  }
 0x19a   : > { %3887 = vmatprep.subr.bf16.mxu0 %v10962_v48  ;;  %4059 = vmatprep.subr.bf16.mxu1 %v10965_v49  ;;  %v11052_v48 = vld [vmem:[%s15411_s1 + $0x684] ss:$16 sps:$4 sm:$0xff]   ;;  %v11055_v49 = vld [vmem:[%s15411_s1 + $0x68c] ss:$16 sps:$4 sm:$0xff]  }
 0x19d   : > { %3888 = vmatpush1.bf16.msra.mxu0 %v10960_v50  ;;  %4060 = vmatpush1.bf16.msra.mxu1 %v10963_v51  ;;  %v11050_v50 = vld [vmem:[%s15411_s1 + $0x680] ss:$16 sps:$4 sm:$0xff]   ;;  %v11053_v51 = vld [vmem:[%s15411_s1 + $0x688] ss:$16 sps:$4 sm:$0xff]  }
 0x19e   : > { %3889 = vmatprep.subr.bf16.mxu0 %v10968_v52  ;;  %4061 = vmatprep.subr.bf16.mxu1 %v10971_v53  ;;  %v11058_v52 = vld [vmem:[%s15411_s1 + $0x6a4] ss:$16 sps:$4 sm:$0xff]   ;;  %v11061_v53 = vld [vmem:[%s15411_s1 + $0x6ac] ss:$16 sps:$4 sm:$0xff]  }
 0x1a1   : > { %3890 = vmatpush1.bf16.msra.mxu0 %v10966_v54  ;;  %4062 = vmatpush1.bf16.msra.mxu1 %v10969_v55  ;;  %v11056_v54 = vld [vmem:[%s15411_s1 + $0x6a0] ss:$16 sps:$4 sm:$0xff]   ;;  %v11059_v55 = vld [vmem:[%s15411_s1 + $0x6a8] ss:$16 sps:$4 sm:$0xff]  }
 0x1a2   : > { %3891 = vmatprep.subr.bf16.mxu0 %v10974_v56  ;;  %4063 = vmatprep.subr.bf16.mxu1 %v10977_v57  ;;  %v11064_v56 = vld [vmem:[%s15411_s1 + $0x6c4] ss:$16 sps:$4 sm:$0xff]   ;;  %v11067_v57 = vld [vmem:[%s15411_s1 + $0x6cc] ss:$16 sps:$4 sm:$0xff]  }
 0x1a5   : > { %3892 = vmatpush1.bf16.msra.mxu0 %v10972_v58  ;;  %4064 = vmatpush1.bf16.msra.mxu1 %v10975_v59  ;;  %v11062_v58 = vld [vmem:[%s15411_s1 + $0x6c0] ss:$16 sps:$4 sm:$0xff]   ;;  %v11065_v59 = vld [vmem:[%s15411_s1 + $0x6c8] ss:$16 sps:$4 sm:$0xff]  }
 0x1a6   : > { %3893 = vmatprep.subr.bf16.mxu0 %v10980_v60  ;;  %4065 = vmatprep.subr.bf16.mxu1 %v10983_v61  ;;  %v11070_v60 = vld [vmem:[%s15411_s1 + $0x6e4] ss:$16 sps:$4 sm:$0xff]   ;;  %v11073_v61 = vld [vmem:[%s15411_s1 + $0x6ec] ss:$16 sps:$4 sm:$0xff]  }
 0x1a9   : > { %3894 = vmatpush1.bf16.msra.mxu0 %v10978_v62  ;;  %4066 = vmatpush1.bf16.msra.mxu1 %v10981_v63  ;;  %v11068_v62 = vld [vmem:[%s15411_s1 + $0x6e0] ss:$16 sps:$4 sm:$0xff]   ;;  %v11071_v63 = vld [vmem:[%s15411_s1 + $0x6e8] ss:$16 sps:$4 sm:$0xff]  }
 0x1aa   : > { %3895 = vmatprep.subr.bf16.mxu0 %v10986_v0  ;;  %4067 = vmatprep.subr.bf16.mxu1 %v10989_v1  ;;  %v11076_v0 = vld [vmem:[%s15411_s1 + $0x704] ss:$16 sps:$4 sm:$0xff]   ;;  %v11079_v1 = vld [vmem:[%s15411_s1 + $0x70c] ss:$16 sps:$4 sm:$0xff]  }
 0x1ad   : > { %3896 = vmatpush1.bf16.msra.mxu0 %v10984_v2  ;;  %4068 = vmatpush1.bf16.msra.mxu1 %v10987_v3  ;;  %v11074_v2 = vld [vmem:[%s15411_s1 + $0x700] ss:$16 sps:$4 sm:$0xff]   ;;  %v11077_v3 = vld [vmem:[%s15411_s1 + $0x708] ss:$16 sps:$4 sm:$0xff]  }
 0x1ae   : > { %3897 = vmatprep.subr.bf16.mxu0 %v10992_v4  ;;  %4069 = vmatprep.subr.bf16.mxu1 %v10995_v5  ;;  %v11082_v4 = vld [vmem:[%s15411_s1 + $0x724] ss:$16 sps:$4 sm:$0xff]   ;;  %v11085_v5 = vld [vmem:[%s15411_s1 + $0x72c] ss:$16 sps:$4 sm:$0xff]  }
 0x1b1   : > { %3898 = vmatpush1.bf16.msra.mxu0 %v10990_v6  ;;  %4070 = vmatpush1.bf16.msra.mxu1 %v10993_v7  ;;  %v11080_v6 = vld [vmem:[%s15411_s1 + $0x720] ss:$16 sps:$4 sm:$0xff]   ;;  %v11083_v7 = vld [vmem:[%s15411_s1 + $0x728] ss:$16 sps:$4 sm:$0xff]  }
 0x1b2   : > { %3899 = vmatprep.subr.bf16.mxu0 %v10998_v8  ;;  %4071 = vmatprep.subr.bf16.mxu1 %v11001_v9  ;;  %v11088_v8 = vld [vmem:[%s15411_s1 + $0x744] ss:$16 sps:$4 sm:$0xff]   ;;  %v11091_v9 = vld [vmem:[%s15411_s1 + $0x74c] ss:$16 sps:$4 sm:$0xff]  }
 0x1b5   : > { %3900 = vmatpush1.bf16.msra.mxu0 %v10996_v10  ;;  %4072 = vmatpush1.bf16.msra.mxu1 %v10999_v11  ;;  %v11086_v10 = vld [vmem:[%s15411_s1 + $0x740] ss:$16 sps:$4 sm:$0xff]   ;;  %v11089_v11 = vld [vmem:[%s15411_s1 + $0x748] ss:$16 sps:$4 sm:$0xff]  }
 0x1b6   : > { %3901 = vmatprep.subr.bf16.mxu0 %v11004_v12  ;;  %4073 = vmatprep.subr.bf16.mxu1 %v11007_v13  ;;  %v11094_v12 = vld [vmem:[%s15411_s1 + $0x764] ss:$16 sps:$4 sm:$0xff]   ;;  %v11097_v13 = vld [vmem:[%s15411_s1 + $0x76c] ss:$16 sps:$4 sm:$0xff]  }
 0x1b9   : > { %3902 = vmatpush1.bf16.msra.mxu0 %v11002_v14  ;;  %4074 = vmatpush1.bf16.msra.mxu1 %v11005_v17  ;;  %v11092_v14 = vld [vmem:[%s15411_s1 + $0x760] ss:$16 sps:$4 sm:$0xff]   ;;  %v11095_v17 = vld [vmem:[%s15411_s1 + $0x768] ss:$16 sps:$4 sm:$0xff]  }
 0x1ba   : > { %3903 = vmatprep.subr.bf16.mxu0 %v11010_v18  ;;  %4075 = vmatprep.subr.bf16.mxu1 %v11013_v21  ;;  %v11100_v18 = vld [vmem:[%s15411_s1 + $0x784] ss:$16 sps:$4 sm:$0xff]   ;;  %v11103_v21 = vld [vmem:[%s15411_s1 + $0x78c] ss:$16 sps:$4 sm:$0xff]  }
 0x1bd   : > { %3904 = vmatpush1.bf16.msra.mxu0 %v11008_v23  ;;  %4076 = vmatpush1.bf16.msra.mxu1 %v11011_v16  ;;  %v11098_v23 = vld [vmem:[%s15411_s1 + $0x780] ss:$16 sps:$4 sm:$0xff]   ;;  %v11101_v16 = vld [vmem:[%s15411_s1 + $0x788] ss:$16 sps:$4 sm:$0xff]  }
 0x1be   : > { %3905 = vmatprep.subr.bf16.mxu0 %v11016_v24  ;;  %4077 = vmatprep.subr.bf16.mxu1 %v11019_v25  ;;  %v11106_v24 = vld [vmem:[%s15411_s1 + $0x7a4] ss:$16 sps:$4 sm:$0xff]   ;;  %v11109_v25 = vld [vmem:[%s15411_s1 + $0x7ac] ss:$16 sps:$4 sm:$0xff]  }
 0x1c1   : > { %3906 = vmatpush1.bf16.msra.mxu0 %v11014_v26  ;;  %4078 = vmatpush1.bf16.msra.mxu1 %v11017_v27  ;;  %v11104_v26 = vld [vmem:[%s15411_s1 + $0x7a0] ss:$16 sps:$4 sm:$0xff]   ;;  %v11107_v27 = vld [vmem:[%s15411_s1 + $0x7a8] ss:$16 sps:$4 sm:$0xff]  }
 0x1c2   : > { %3907 = vmatprep.subr.bf16.mxu0 %v11022_v28  ;;  %4079 = vmatprep.subr.bf16.mxu1 %v11025_v29  ;;  %v11112_v28 = vld [vmem:[%s15411_s1 + $0x7c4] ss:$16 sps:$4 sm:$0xff]   ;;  %v11115_v29 = vld [vmem:[%s15411_s1 + $0x7cc] ss:$16 sps:$4 sm:$0xff]  }
 0x1c5   : > { %3908 = vmatpush1.bf16.msra.mxu0 %v11020_v30  ;;  %4080 = vmatpush1.bf16.msra.mxu1 %v11023_v31  ;;  %v11110_v30 = vld [vmem:[%s15411_s1 + $0x7c0] ss:$16 sps:$4 sm:$0xff]   ;;  %v11113_v31 = vld [vmem:[%s15411_s1 + $0x7c8] ss:$16 sps:$4 sm:$0xff]  }
 0x1c6   : > { %3920 = vmatprep.subr.bf16.mxu0 %v11028_v32  ;;  %4092 = vmatprep.subr.bf16.mxu1 %v11031_v33  ;;  %v13575_v32 = vld [vmem:[%s12110_s30] sm:$0xcc] }
 0x1c7   : > { %v13578_v33 = vld [vmem:[%s12110_s30 + $0x20] sm:$0xff] }
 0x1c8   : > { %3910 = vmatmul.mubr.bf16.vlgmr.msra.gmra.mrb[0].mxu0 %v8886_v34  ;;  %4082 = vmatmul.mubr.bf16.vlgmr.msra.gmra.mrb[0].mxu1 %v8886_v34  ;;  %v13581_v34 = vld [vmem:[%s12110_s30 + $0x40] sm:$0x33] }
 0x1c9   : > { %3921 = vmatpush1.bf16.msra.mxu0 %v11026_v35  ;;  %4093 = vmatpush1.bf16.msra.mxu1 %v11029_v36  ;;  %v11118_v35 = vld [vmem:[%s15411_s1 + $0x7e4] ss:$16 sps:$4 sm:$0xff]   ;;  %v11121_v36 = vld [vmem:[%s15411_s1 + $0x7ec] ss:$16 sps:$4 sm:$0xff]  }
 0x1ca   : > { %3922 = vmatprep.subr.bf16.mxu0 %v11034_v37  ;;  %4094 = vmatprep.subr.bf16.mxu1 %v11037_v22  ;;  %v9403_v37 = vcombine.high %v13575_v32, %v13578_v33  ;;  %v9411_v22 = vcombine.high %v13581_v34, %v13581_v34 }
 0x1cb   : > { %3952 = vmatprep.mubr.bf16.mxu0 %v8889_v15  ;;  %4124 = vmatprep.mubr.bf16.mxu1 %v8889_v15  ;;  %v11116_v15 = vld [vmem:[%s15411_s1 + $0x7e0] ss:$16 sps:$4 sm:$0xff]  }
 0x1cd   : > { %3923 = vmatpush1.bf16.msra.mxu0 %v11032_v38  ;;  %4095 = vmatpush1.bf16.msra.mxu1 %v11035_v39  ;;  %v11119_v38 = vld [vmem:[%s15411_s1 + $0x7e8] ss:$16 sps:$4 sm:$0xff]   ;;  %v11124_v39 = vld [vmem:[%s15411_s1 + $0x1004] ss:$16 sps:$4 sm:$0xff]  }
 0x1ce   : > { %3924 = vmatprep.subr.bf16.mxu0 %v11040_v40  ;;  %4096 = vmatprep.subr.bf16.mxu1 %v11043_v41  ;;  %v11127_v40 = vld [vmem:[%s15411_s1 + $0x100c] ss:$16 sps:$4 sm:$0xff]   ;;  %v8888_v41 = vcombine.low %v13391_v19, %v13394_v20 }
 0x1cf   : > { %v11133_v19 = vld [vmem:[%s15411_s1 + $0x102c] ss:$16 sps:$4 sm:$0xff]  }
 0x1d1   : > { %3925 = vmatpush1.bf16.msra.mxu0 %v11038_v42  ;;  %4097 = vmatpush1.bf16.msra.mxu1 %v11041_v43  ;;  %v4460_v42 = vrot.slane %v9403_v37, 2  ;;  %v4461_v43 = vrot.slane %v9411_v22, 2  ;;  %v11205_v37 = vld [vmem:[%s15411_s1 + $0x11ac] ss:$16 sps:$4 sm:$0xff]   ;;  %v11200_v22 = vld [vmem:[%s15411_s1 + $0x11a0] ss:$16 sps:$4 sm:$0xff]  }
 0x1d2   : > { %3926 = vmatprep.subr.bf16.mxu0 %v11046_v44  ;;  %4098 = vmatprep.subr.bf16.mxu1 %v11049_v45  ;;  %v11122_v44 = vld [vmem:[%s15411_s1 + $0x1000] ss:$16 sps:$4 sm:$0xff]   ;;  %v11125_v45 = vld [vmem:[%s15411_s1 + $0x1008] ss:$16 sps:$4 sm:$0xff]  }
 0x1d3   : > { %v4462_v20 = vsel %vm4456_vm0, %v4460_v42, %v4461_v43  ;;  %v13783_v42 = vld [vmem:[%s12110_s30 + $0x8] sm:$0xcc]  ;;  %v9402_v43 = vcombine.low %v13575_v32, %v13578_v33  ;;  %v11212_v32 = vld [vmem:[%s15411_s1 + $0x11e0] ss:$16 sps:$4 sm:$0xff]  }
 0x1d5   : > { %3927 = vmatpush1.bf16.msra.mxu0 %v11044_v46  ;;  %4099 = vmatpush1.bf16.msra.mxu1 %v11047_v47  ;;  %v11130_v46 = vld [vmem:[%s15411_s1 + $0x1024] ss:$16 sps:$4 sm:$0xff]   ;;  %v11128_v47 = vld [vmem:[%s15411_s1 + $0x1020] ss:$16 sps:$4 sm:$0xff]  }
 0x1d6   : > { %3928 = vmatprep.subr.bf16.mxu0 %v11052_v48  ;;  %4100 = vmatprep.subr.bf16.mxu1 %v11055_v49  ;;  %v11131_v48 = vld [vmem:[%s15411_s1 + $0x1028] ss:$16 sps:$4 sm:$0xff]   ;;  %v11136_v49 = vld [vmem:[%s15411_s1 + $0x1044] ss:$16 sps:$4 sm:$0xff]  }
 0x1d9   : > { %3929 = vmatpush1.bf16.msra.mxu0 %v11050_v50  ;;  %4101 = vmatpush1.bf16.msra.mxu1 %v11053_v51  ;;  %v11139_v50 = vld [vmem:[%s15411_s1 + $0x104c] ss:$16 sps:$4 sm:$0xff]   ;;  %v11134_v51 = vld [vmem:[%s15411_s1 + $0x1040] ss:$16 sps:$4 sm:$0xff]  }
 0x1da   : > { %3930 = vmatprep.subr.bf16.mxu0 %v11058_v52  ;;  %4102 = vmatprep.subr.bf16.mxu1 %v11061_v53  ;;  %v11137_v52 = vld [vmem:[%s15411_s1 + $0x1048] ss:$16 sps:$4 sm:$0xff]   ;;  %v11142_v53 = vld [vmem:[%s15411_s1 + $0x1064] ss:$16 sps:$4 sm:$0xff]  }
 0x1dd   : > { %3931 = vmatpush1.bf16.msra.mxu0 %v11056_v54  ;;  %4103 = vmatpush1.bf16.msra.mxu1 %v11059_v55  ;;  %v11145_v54 = vld [vmem:[%s15411_s1 + $0x106c] ss:$16 sps:$4 sm:$0xff]   ;;  %v11140_v55 = vld [vmem:[%s15411_s1 + $0x1060] ss:$16 sps:$4 sm:$0xff]  }
 0x1de   : > { %3932 = vmatprep.subr.bf16.mxu0 %v11064_v56  ;;  %4104 = vmatprep.subr.bf16.mxu1 %v11067_v57  ;;  %v11143_v56 = vld [vmem:[%s15411_s1 + $0x1068] ss:$16 sps:$4 sm:$0xff]   ;;  %v11148_v57 = vld [vmem:[%s15411_s1 + $0x1084] ss:$16 sps:$4 sm:$0xff]  }
 0x1e1   : > { %3933 = vmatpush1.bf16.msra.mxu0 %v11062_v58  ;;  %4105 = vmatpush1.bf16.msra.mxu1 %v11065_v59  ;;  %v11151_v58 = vld [vmem:[%s15411_s1 + $0x108c] ss:$16 sps:$4 sm:$0xff]   ;;  %v11146_v59 = vld [vmem:[%s15411_s1 + $0x1080] ss:$16 sps:$4 sm:$0xff]  }
 0x1e2   : > { %3934 = vmatprep.subr.bf16.mxu0 %v11070_v60  ;;  %4106 = vmatprep.subr.bf16.mxu1 %v11073_v61  ;;  %v11149_v60 = vld [vmem:[%s15411_s1 + $0x1088] ss:$16 sps:$4 sm:$0xff]   ;;  %v11154_v61 = vld [vmem:[%s15411_s1 + $0x10a4] ss:$16 sps:$4 sm:$0xff]  }
 0x1e5   : > { %3935 = vmatpush1.bf16.msra.mxu0 %v11068_v62  ;;  %4107 = vmatpush1.bf16.msra.mxu1 %v11071_v63  ;;  %v11157_v62 = vld [vmem:[%s15411_s1 + $0x10ac] ss:$16 sps:$4 sm:$0xff]   ;;  %v11152_v63 = vld [vmem:[%s15411_s1 + $0x10a0] ss:$16 sps:$4 sm:$0xff]  }
 0x1e6   : > { %3936 = vmatprep.subr.bf16.mxu0 %v11076_v0  ;;  %4108 = vmatprep.subr.bf16.mxu1 %v11079_v1  ;;  %v11155_v0 = vld [vmem:[%s15411_s1 + $0x10a8] ss:$16 sps:$4 sm:$0xff]   ;;  %v11160_v1 = vld [vmem:[%s15411_s1 + $0x10c4] ss:$16 sps:$4 sm:$0xff]  }
 0x1e9   : > { %3937 = vmatpush1.bf16.msra.mxu0 %v11074_v2  ;;  %4109 = vmatpush1.bf16.msra.mxu1 %v11077_v3  ;;  %v11163_v2 = vld [vmem:[%s15411_s1 + $0x10cc] ss:$16 sps:$4 sm:$0xff]   ;;  %v11158_v3 = vld [vmem:[%s15411_s1 + $0x10c0] ss:$16 sps:$4 sm:$0xff]  }
 0x1ea   : > { %3938 = vmatprep.subr.bf16.mxu0 %v11082_v4  ;;  %4110 = vmatprep.subr.bf16.mxu1 %v11085_v5  ;;  %v11161_v4 = vld [vmem:[%s15411_s1 + $0x10c8] ss:$16 sps:$4 sm:$0xff]   ;;  %v11166_v5 = vld [vmem:[%s15411_s1 + $0x10e4] ss:$16 sps:$4 sm:$0xff]  }
 0x1ed   : > { %3939 = vmatpush1.bf16.msra.mxu0 %v11080_v6  ;;  %4111 = vmatpush1.bf16.msra.mxu1 %v11083_v7  ;;  %v11169_v6 = vld [vmem:[%s15411_s1 + $0x10ec] ss:$16 sps:$4 sm:$0xff]   ;;  %v11164_v7 = vld [vmem:[%s15411_s1 + $0x10e0] ss:$16 sps:$4 sm:$0xff]  }
 0x1ee   : > { %3940 = vmatprep.subr.bf16.mxu0 %v11088_v8  ;;  %4112 = vmatprep.subr.bf16.mxu1 %v11091_v9  ;;  %v11167_v8 = vld [vmem:[%s15411_s1 + $0x10e8] ss:$16 sps:$4 sm:$0xff]   ;;  %v11172_v9 = vld [vmem:[%s15411_s1 + $0x1104] ss:$16 sps:$4 sm:$0xff]  }
 0x1f1   : > { %3941 = vmatpush1.bf16.msra.mxu0 %v11086_v10  ;;  %4113 = vmatpush1.bf16.msra.mxu1 %v11089_v11  ;;  %v11175_v10 = vld [vmem:[%s15411_s1 + $0x110c] ss:$16 sps:$4 sm:$0xff]   ;;  %v11170_v11 = vld [vmem:[%s15411_s1 + $0x1100] ss:$16 sps:$4 sm:$0xff]  }
 0x1f2   : > { %3942 = vmatprep.subr.bf16.mxu0 %v11094_v12  ;;  %4114 = vmatprep.subr.bf16.mxu1 %v11097_v13  ;;  %v11173_v12 = vld [vmem:[%s15411_s1 + $0x1108] ss:$16 sps:$4 sm:$0xff]   ;;  %v11178_v13 = vld [vmem:[%s15411_s1 + $0x1124] ss:$16 sps:$4 sm:$0xff]  }
 0x1f5   : > { %3943 = vmatpush1.bf16.msra.mxu0 %v11092_v14  ;;  %4115 = vmatpush1.bf16.msra.mxu1 %v11095_v17  ;;  %v11181_v14 = vld [vmem:[%s15411_s1 + $0x112c] ss:$16 sps:$4 sm:$0xff]   ;;  %v11176_v17 = vld [vmem:[%s15411_s1 + $0x1120] ss:$16 sps:$4 sm:$0xff]  }
 0x1f6   : > { %3944 = vmatprep.subr.bf16.mxu0 %v11100_v18  ;;  %4116 = vmatprep.subr.bf16.mxu1 %v11103_v21  ;;  %v11179_v18 = vld [vmem:[%s15411_s1 + $0x1128] ss:$16 sps:$4 sm:$0xff]   ;;  %v11184_v21 = vld [vmem:[%s15411_s1 + $0x1144] ss:$16 sps:$4 sm:$0xff]  }
 0x1f9   : > { %3945 = vmatpush1.bf16.msra.mxu0 %v11098_v23  ;;  %4117 = vmatpush1.bf16.msra.mxu1 %v11101_v16  ;;  %v11187_v23 = vld [vmem:[%s15411_s1 + $0x114c] ss:$16 sps:$4 sm:$0xff]   ;;  %v11182_v16 = vld [vmem:[%s15411_s1 + $0x1140] ss:$16 sps:$4 sm:$0xff]  }
 0x1fa   : > { %3946 = vmatprep.subr.bf16.mxu0 %v11106_v24  ;;  %4118 = vmatprep.subr.bf16.mxu1 %v11109_v25  ;;  %v11185_v24 = vld [vmem:[%s15411_s1 + $0x1148] ss:$16 sps:$4 sm:$0xff]   ;;  %v11190_v25 = vld [vmem:[%s15411_s1 + $0x1164] ss:$16 sps:$4 sm:$0xff]  }
 0x1fd   : > { %3947 = vmatpush1.bf16.msra.mxu0 %v11104_v26  ;;  %4119 = vmatpush1.bf16.msra.mxu1 %v11107_v27  ;;  %v11193_v26 = vld [vmem:[%s15411_s1 + $0x116c] ss:$16 sps:$4 sm:$0xff]   ;;  %v11188_v27 = vld [vmem:[%s15411_s1 + $0x1160] ss:$16 sps:$4 sm:$0xff]  }
 0x1fe   : > { %3948 = vmatprep.subr.bf16.mxu0 %v11112_v28  ;;  %4120 = vmatprep.subr.bf16.mxu1 %v11115_v29  ;;  %v11191_v28 = vld [vmem:[%s15411_s1 + $0x1168] ss:$16 sps:$4 sm:$0xff]   ;;  %v11196_v29 = vld [vmem:[%s15411_s1 + $0x1184] ss:$16 sps:$4 sm:$0xff]  }
 0x201   : > { %3949 = vmatpush1.bf16.msra.mxu0 %v11110_v30  ;;  %4121 = vmatpush1.bf16.msra.mxu1 %v11113_v31  ;;  %v11199_v30 = vld [vmem:[%s15411_s1 + $0x118c] ss:$16 sps:$4 sm:$0xff]   ;;  %v11194_v31 = vld [vmem:[%s15411_s1 + $0x1180] ss:$16 sps:$4 sm:$0xff]  }
 0x202   : > { %3950 = vmatprep.subr.bf16.mxu0 %v11118_v35  ;;  %4122 = vmatprep.subr.bf16.mxu1 %v11121_v36  ;;  %v11197_v35 = vld [vmem:[%s15411_s1 + $0x1188] ss:$16 sps:$4 sm:$0xff]   ;;  %v11202_v36 = vld [vmem:[%s15411_s1 + $0x11a4] ss:$16 sps:$4 sm:$0xff]  }
 0x205   : > { %3951 = vmatpush1.bf16.msra.mxu0 %v11116_v15  ;;  %4123 = vmatpush1.bf16.msra.mxu1 %v11119_v38  ;;  %v11203_v15 = vld [vmem:[%s15411_s1 + $0x11a8] ss:$16 sps:$4 sm:$0xff]   ;;  %v11208_v38 = vld [vmem:[%s15411_s1 + $0x11c4] ss:$16 sps:$4 sm:$0xff]  }
 0x206   : > { %5769 = vmatprep.subr.bf16.mxu0 %v11124_v39  ;;  %5941 = vmatprep.subr.bf16.mxu1 %v11127_v40  ;;  %v11211_v39 = vld [vmem:[%s15411_s1 + $0x11cc] ss:$16 sps:$4 sm:$0xff]   ;;  %v11206_v40 = vld [vmem:[%s15411_s1 + $0x11c0] ss:$16 sps:$4 sm:$0xff]  }
 0x208   : > { %3953 = vmatmul.mubr.bf16.vlgmr.msra.gmra.mrb[0].mxu0 %v8888_v41  ;;  %4125 = vmatmul.mubr.bf16.vlgmr.msra.gmra.mrb[0].mxu1 %v8888_v41  ;;  %v11209_v41 = vld [vmem:[%s15411_s1 + $0x11c8] ss:$16 sps:$4 sm:$0xff]  }
 0x209   : > { %5770 = vmatpush1.bf16.msra.mxu0 %v11122_v44  ;;  %5942 = vmatpush1.bf16.msra.mxu1 %v11125_v45  ;;  %v9410_v44 = vcombine.low %v13581_v34, %v13581_v34  ;;  %v13790_v45 = vld [vmem:[%s12110_s30 + $0x28] sm:$0xff] }
 0x20a   : > { %5771 = vmatprep.subr.bf16.mxu0 %v11130_v46  ;;  %5943 = vmatprep.subr.bf16.mxu1 %v11133_v19  ;;  %v13793_v46 = vld [vmem:[%s12110_s30 + $0x48] sm:$0x33]  ;;  %v11214_v19 = vld [vmem:[%s15411_s1 + $0x11e4] ss:$16 sps:$4 sm:$0xff]   ;;  %v9405_v33 = vcombine.high %v13783_v42, %v13790_v45 }
 0x20b   : > { %5801 = vmatprep.mubr.bf16.mxu0 %v4462_v20  ;;  %5973 = vmatprep.mubr.bf16.mxu1 %v4462_v20  ;;  %v11217_v20 = vld [vmem:[%s15411_s1 + $0x11ec] ss:$16 sps:$4 sm:$0xff]   ;;  %v9413_v34 = vcombine.high %v13793_v46, %v13793_v46 }
 0x20d   : > { %5772 = vmatpush1.bf16.msra.mxu0 %v11128_v47  ;;  %5944 = vmatpush1.bf16.msra.mxu1 %v11131_v48  ;;  %v11215_v47 = vld [vmem:[%s15411_s1 + $0x11e8] ss:$16 sps:$4 sm:$0xff]   ;;  %v4457_v48 = vrot.slane %v9402_v43, 2 }
 0x20e   : > { %5773 = vmatprep.subr.bf16.mxu0 %v11136_v49  ;;  %5945 = vmatprep.subr.bf16.mxu1 %v11139_v50  ;;  %v4458_v49 = vrot.slane %v9410_v44, 2  ;;  %v11221_v50 = vld [vmem:[%s15411_s1 + $0x1204] ss:$16 sps:$4 sm:$0xff]   ;;  %v11289_v43 = vld [vmem:[%s15411_s1 + $0x1368] ss:$16 sps:$4 sm:$0xff]  }
 0x20f   : > { %v11294_v44 = vld [vmem:[%s15411_s1 + $0x1384] ss:$16 sps:$4 sm:$0xff]  }
 0x211   : > { %5774 = vmatpush1.bf16.msra.mxu0 %v11134_v51  ;;  %5946 = vmatpush1.bf16.msra.mxu1 %v11137_v52  ;;  %v11224_v51 = vld [vmem:[%s15411_s1 + $0x120c] ss:$16 sps:$4 sm:$0xff]   ;;  %v4466_v52 = vrot.slane %v9405_v33, 2  ;;  %v11300_v33 = vld [vmem:[%s15411_s1 + $0x13a4] ss:$16 sps:$4 sm:$0xff]  }
 0x212   : > { %5775 = vmatprep.subr.bf16.mxu0 %v11142_v53  ;;  %5947 = vmatprep.subr.bf16.mxu1 %v11145_v54  ;;  %v4467_v53 = vrot.slane %v9413_v34, 2  ;;  %v11219_v54 = vld [vmem:[%s15411_s1 + $0x1200] ss:$16 sps:$4 sm:$0xff]   ;;  %v11303_v34 = vld [vmem:[%s15411_s1 + $0x13ac] ss:$16 sps:$4 sm:$0xff]  }
 0x215   : > { %5776 = vmatpush1.bf16.msra.mxu0 %v11140_v55  ;;  %5948 = vmatpush1.bf16.msra.mxu1 %v11143_v56  ;;  %v11222_v55 = vld [vmem:[%s15411_s1 + $0x1208] ss:$16 sps:$4 sm:$0xff]   ;;  %v4459_v56 = vsel %vm4456_vm0, %v4457_v48, %v4458_v49  ;;  %v11306_v49 = vld [vmem:[%s15411_s1 + $0x13c4] ss:$16 sps:$4 sm:$0xff]  }
 0x216   : > { %5777 = vmatprep.subr.bf16.mxu0 %v11148_v57  ;;  %5949 = vmatprep.subr.bf16.mxu1 %v11151_v58  ;;  %v11228_v57 = vld [vmem:[%s15411_s1 + $0x1224] ss:$16 sps:$4 sm:$0xff]   ;;  %v11231_v58 = vld [vmem:[%s15411_s1 + $0x122c] ss:$16 sps:$4 sm:$0xff]   ;;  %v11301_v48 = vld [vmem:[%s15411_s1 + $0x13a8] ss:$16 sps:$4 sm:$0xff]  }
 0x219   : > { %5778 = vmatpush1.bf16.msra.mxu0 %v11146_v59  ;;  %5950 = vmatpush1.bf16.msra.mxu1 %v11149_v60  ;;  %v4468_v59 = vsel %vm4456_vm0, %v4466_v52, %v4467_v53  ;;  %v11226_v60 = vld [vmem:[%s15411_s1 + $0x1220] ss:$16 sps:$4 sm:$0xff]   ;;  %v11307_v52 = vld [vmem:[%s15411_s1 + $0x13c8] ss:$16 sps:$4 sm:$0xff]   ;;  %v9404_v53 = vcombine.low %v13783_v42, %v13790_v45 }
 0x21a   : > { %5779 = vmatprep.subr.bf16.mxu0 %v11154_v61  ;;  %5951 = vmatprep.subr.bf16.mxu1 %v11157_v62  ;;  %v11229_v61 = vld [vmem:[%s15411_s1 + $0x1228] ss:$16 sps:$4 sm:$0xff]   ;;  %v11234_v62 = vld [vmem:[%s15411_s1 + $0x1244] ss:$16 sps:$4 sm:$0xff]  }
 0x21d   : > { %5780 = vmatpush1.bf16.msra.mxu0 %v11152_v63  ;;  %5952 = vmatpush1.bf16.msra.mxu1 %v11155_v0  ;;  %v11237_v63 = vld [vmem:[%s15411_s1 + $0x124c] ss:$16 sps:$4 sm:$0xff]   ;;  %v11232_v0 = vld [vmem:[%s15411_s1 + $0x1240] ss:$16 sps:$4 sm:$0xff]  }
 0x21e   : > { %5781 = vmatprep.subr.bf16.mxu0 %v11160_v1  ;;  %5953 = vmatprep.subr.bf16.mxu1 %v11163_v2  ;;  %v11235_v1 = vld [vmem:[%s15411_s1 + $0x1248] ss:$16 sps:$4 sm:$0xff]   ;;  %v11240_v2 = vld [vmem:[%s15411_s1 + $0x1264] ss:$16 sps:$4 sm:$0xff]  }
 0x221   : > { %5782 = vmatpush1.bf16.msra.mxu0 %v11158_v3  ;;  %5954 = vmatpush1.bf16.msra.mxu1 %v11161_v4  ;;  %v11243_v3 = vld [vmem:[%s15411_s1 + $0x126c] ss:$16 sps:$4 sm:$0xff]   ;;  %v11238_v4 = vld [vmem:[%s15411_s1 + $0x1260] ss:$16 sps:$4 sm:$0xff]  }
 0x222   : > { %5783 = vmatprep.subr.bf16.mxu0 %v11166_v5  ;;  %5955 = vmatprep.subr.bf16.mxu1 %v11169_v6  ;;  %v11241_v5 = vld [vmem:[%s15411_s1 + $0x1268] ss:$16 sps:$4 sm:$0xff]   ;;  %v11246_v6 = vld [vmem:[%s15411_s1 + $0x1284] ss:$16 sps:$4 sm:$0xff]  }
 0x225   : > { %5784 = vmatpush1.bf16.msra.mxu0 %v11164_v7  ;;  %5956 = vmatpush1.bf16.msra.mxu1 %v11167_v8  ;;  %v11249_v7 = vld [vmem:[%s15411_s1 + $0x128c] ss:$16 sps:$4 sm:$0xff]   ;;  %v11244_v8 = vld [vmem:[%s15411_s1 + $0x1280] ss:$16 sps:$4 sm:$0xff]  }
 0x226   : > { %5785 = vmatprep.subr.bf16.mxu0 %v11172_v9  ;;  %5957 = vmatprep.subr.bf16.mxu1 %v11175_v10  ;;  %v11247_v9 = vld [vmem:[%s15411_s1 + $0x1288] ss:$16 sps:$4 sm:$0xff]   ;;  %v11252_v10 = vld [vmem:[%s15411_s1 + $0x12a4] ss:$16 sps:$4 sm:$0xff]  }
 0x229   : > { %5786 = vmatpush1.bf16.msra.mxu0 %v11170_v11  ;;  %5958 = vmatpush1.bf16.msra.mxu1 %v11173_v12  ;;  %v11255_v11 = vld [vmem:[%s15411_s1 + $0x12ac] ss:$16 sps:$4 sm:$0xff]   ;;  %v11250_v12 = vld [vmem:[%s15411_s1 + $0x12a0] ss:$16 sps:$4 sm:$0xff]  }
 0x22a   : > { %5787 = vmatprep.subr.bf16.mxu0 %v11178_v13  ;;  %5959 = vmatprep.subr.bf16.mxu1 %v11181_v14  ;;  %v11253_v13 = vld [vmem:[%s15411_s1 + $0x12a8] ss:$16 sps:$4 sm:$0xff]   ;;  %v11258_v14 = vld [vmem:[%s15411_s1 + $0x12c4] ss:$16 sps:$4 sm:$0xff]  }
 0x22d   : > { %5788 = vmatpush1.bf16.msra.mxu0 %v11176_v17  ;;  %5960 = vmatpush1.bf16.msra.mxu1 %v11179_v18  ;;  %v11261_v17 = vld [vmem:[%s15411_s1 + $0x12cc] ss:$16 sps:$4 sm:$0xff]   ;;  %v11256_v18 = vld [vmem:[%s15411_s1 + $0x12c0] ss:$16 sps:$4 sm:$0xff]  }
 0x22e   : > { %5789 = vmatprep.subr.bf16.mxu0 %v11184_v21  ;;  %5961 = vmatprep.subr.bf16.mxu1 %v11187_v23  ;;  %v11259_v21 = vld [vmem:[%s15411_s1 + $0x12c8] ss:$16 sps:$4 sm:$0xff]   ;;  %v11264_v23 = vld [vmem:[%s15411_s1 + $0x12e4] ss:$16 sps:$4 sm:$0xff]  }
 0x231   : > { %5790 = vmatpush1.bf16.msra.mxu0 %v11182_v16  ;;  %5962 = vmatpush1.bf16.msra.mxu1 %v11185_v24  ;;  %v11267_v16 = vld [vmem:[%s15411_s1 + $0x12ec] ss:$16 sps:$4 sm:$0xff]   ;;  %v11262_v24 = vld [vmem:[%s15411_s1 + $0x12e0] ss:$16 sps:$4 sm:$0xff]  }
 0x232   : > { %5791 = vmatprep.subr.bf16.mxu0 %v11190_v25  ;;  %5963 = vmatprep.subr.bf16.mxu1 %v11193_v26  ;;  %v11265_v25 = vld [vmem:[%s15411_s1 + $0x12e8] ss:$16 sps:$4 sm:$0xff]   ;;  %v11270_v26 = vld [vmem:[%s15411_s1 + $0x1304] ss:$16 sps:$4 sm:$0xff]  }
 0x235   : > { %5792 = vmatpush1.bf16.msra.mxu0 %v11188_v27  ;;  %5964 = vmatpush1.bf16.msra.mxu1 %v11191_v28  ;;  %v11273_v27 = vld [vmem:[%s15411_s1 + $0x130c] ss:$16 sps:$4 sm:$0xff]   ;;  %v11268_v28 = vld [vmem:[%s15411_s1 + $0x1300] ss:$16 sps:$4 sm:$0xff]  }
 0x236   : > { %5793 = vmatprep.subr.bf16.mxu0 %v11196_v29  ;;  %5965 = vmatprep.subr.bf16.mxu1 %v11199_v30  ;;  %v11271_v29 = vld [vmem:[%s15411_s1 + $0x1308] ss:$16 sps:$4 sm:$0xff]   ;;  %v11276_v30 = vld [vmem:[%s15411_s1 + $0x1324] ss:$16 sps:$4 sm:$0xff]  }
 0x239   : > { %5794 = vmatpush1.bf16.msra.mxu0 %v11194_v31  ;;  %5966 = vmatpush1.bf16.msra.mxu1 %v11197_v35  ;;  %v11279_v31 = vld [vmem:[%s15411_s1 + $0x132c] ss:$16 sps:$4 sm:$0xff]   ;;  %v11274_v35 = vld [vmem:[%s15411_s1 + $0x1320] ss:$16 sps:$4 sm:$0xff]  }
 0x23a   : > { %5795 = vmatprep.subr.bf16.mxu0 %v11202_v36  ;;  %5967 = vmatprep.subr.bf16.mxu1 %v11205_v37  ;;  %v11277_v36 = vld [vmem:[%s15411_s1 + $0x1328] ss:$16 sps:$4 sm:$0xff]   ;;  %v11282_v37 = vld [vmem:[%s15411_s1 + $0x1344] ss:$16 sps:$4 sm:$0xff]  }
 0x23d   : > { %5796 = vmatpush1.bf16.msra.mxu0 %v11200_v22  ;;  %5968 = vmatpush1.bf16.msra.mxu1 %v11203_v15  ;;  %v11285_v22 = vld [vmem:[%s15411_s1 + $0x134c] ss:$16 sps:$4 sm:$0xff]   ;;  %v11280_v15 = vld [vmem:[%s15411_s1 + $0x1340] ss:$16 sps:$4 sm:$0xff]  }
 0x23e   : > { %5797 = vmatprep.subr.bf16.mxu0 %v11208_v38  ;;  %5969 = vmatprep.subr.bf16.mxu1 %v11211_v39  ;;  %v11283_v38 = vld [vmem:[%s15411_s1 + $0x1348] ss:$16 sps:$4 sm:$0xff]   ;;  %v11288_v39 = vld [vmem:[%s15411_s1 + $0x1364] ss:$16 sps:$4 sm:$0xff]  }
 0x241   : > { %5798 = vmatpush1.bf16.msra.mxu0 %v11206_v40  ;;  %5970 = vmatpush1.bf16.msra.mxu1 %v11209_v41  ;;  %v11291_v40 = vld [vmem:[%s15411_s1 + $0x136c] ss:$16 sps:$4 sm:$0xff]   ;;  %v11286_v41 = vld [vmem:[%s15411_s1 + $0x1360] ss:$16 sps:$4 sm:$0xff]  }
 0x242   : > { %5799 = vmatprep.subr.bf16.mxu0 %v11214_v19  ;;  %5971 = vmatprep.subr.bf16.mxu1 %v11217_v20  ;;  %v11297_v19 = vld [vmem:[%s15411_s1 + $0x138c] ss:$16 sps:$4 sm:$0xff]   ;;  %v11292_v20 = vld [vmem:[%s15411_s1 + $0x1380] ss:$16 sps:$4 sm:$0xff]  }
 0x245   : > { %5800 = vmatpush1.bf16.msra.mxu0 %v11212_v32  ;;  %5972 = vmatpush1.bf16.msra.mxu1 %v11215_v47  ;;  %v11295_v32 = vld [vmem:[%s15411_s1 + $0x1388] ss:$16 sps:$4 sm:$0xff]   ;;  %v11298_v47 = vld [vmem:[%s15411_s1 + $0x13a0] ss:$16 sps:$4 sm:$0xff]  }
 0x246   : > { %5812 = vmatprep.subr.bf16.mxu0 %v11221_v50  ;;  %5984 = vmatprep.subr.bf16.mxu1 %v11224_v51  ;;  %v11309_v50 = vld [vmem:[%s15411_s1 + $0x13cc] ss:$16 sps:$4 sm:$0xff]   ;;  %v11304_v51 = vld [vmem:[%s15411_s1 + $0x13c0] ss:$16 sps:$4 sm:$0xff]  }
 0x248   : > { %5802 = vmatmul.mubr.bf16.vlgmr.msra.gmra.mrb[0].mxu0 %v4459_v56  ;;  %5974 = vmatmul.mubr.bf16.vlgmr.msra.gmra.mrb[0].mxu1 %v4459_v56  ;;  %v14001_v56 = vld [vmem:[%s12110_s30 + $0x30] sm:$0xff] }
 0x249   : > { %5813 = vmatpush1.bf16.msra.mxu0 %v11219_v54  ;;  %5985 = vmatpush1.bf16.msra.mxu1 %v11222_v55  ;;  %v9412_v54 = vcombine.low %v13793_v46, %v13793_v46  ;;  %v13998_v55 = vld [vmem:[%s12110_s30 + $0x10] sm:$0xcc] }
 0x24a   : > { %5814 = vmatprep.subr.bf16.mxu0 %v11228_v57  ;;  %5986 = vmatprep.subr.bf16.mxu1 %v11231_v58  ;;  %v14004_v57 = vld [vmem:[%s12110_s30 + $0x50] sm:$0x33]  ;;  %v9407_v42 = vcombine.high %v13998_v55, %v14001_v56 }
 0x24b   : > { %5844 = vmatprep.mubr.bf16.mxu0 %v4468_v59  ;;  %6016 = vmatprep.mubr.bf16.mxu1 %v4468_v59  ;;  %v11312_v58 = vld [vmem:[%s15411_s1 + $0x13e4] ss:$16 sps:$4 sm:$0xff]   ;;  %v11315_v59 = vld [vmem:[%s15411_s1 + $0x13ec] ss:$16 sps:$4 sm:$0xff]   ;;  %v9415_v45 = vcombine.high %v14004_v57, %v14004_v57  ;;  %v11310_v46 = vld [vmem:[%s15411_s1 + $0x13e0] ss:$16 sps:$4 sm:$0xff]  }
 0x24d   : > { %5815 = vmatpush1.bf16.msra.mxu0 %v11226_v60  ;;  %5987 = vmatpush1.bf16.msra.mxu1 %v11229_v61  ;;  %v11313_v60 = vld [vmem:[%s15411_s1 + $0x13e8] ss:$16 sps:$4 sm:$0xff]   ;;  %v4463_v61 = vrot.slane %v9404_v53, 2 }
 0x24e   : > { %5816 = vmatprep.subr.bf16.mxu0 %v11234_v62  ;;  %5988 = vmatprep.subr.bf16.mxu1 %v11237_v63  ;;  %v4464_v62 = vrot.slane %v9412_v54, 2  ;;  %v11319_v63 = vld [vmem:[%s15411_s1 + $0x1404] ss:$16 sps:$4 sm:$0xff]   ;;  %v11387_v53 = vld [vmem:[%s15411_s1 + $0x1568] ss:$16 sps:$4 sm:$0xff]  }
 0x24f   : > { %v11392_v54 = vld [vmem:[%s15411_s1 + $0x1584] ss:$16 sps:$4 sm:$0xff]  }
 0x251   : > { %5817 = vmatpush1.bf16.msra.mxu0 %v11232_v0  ;;  %5989 = vmatpush1.bf16.msra.mxu1 %v11235_v1  ;;  %v11322_v0 = vld [vmem:[%s15411_s1 + $0x140c] ss:$16 sps:$4 sm:$0xff]   ;;  %v4472_v1 = vrot.slane %v9407_v42, 2  ;;  %v11393_v42 = vld [vmem:[%s15411_s1 + $0x1588] ss:$16 sps:$4 sm:$0xff]  }
 0x252   : > { %5818 = vmatprep.subr.bf16.mxu0 %v11240_v2  ;;  %5990 = vmatprep.subr.bf16.mxu1 %v11243_v3  ;;  %v4473_v2 = vrot.slane %v9415_v45, 2  ;;  %v11317_v3 = vld [vmem:[%s15411_s1 + $0x1400] ss:$16 sps:$4 sm:$0xff]   ;;  %v11398_v45 = vld [vmem:[%s15411_s1 + $0x15a4] ss:$16 sps:$4 sm:$0xff]  }
 0x255   : > { %5819 = vmatpush1.bf16.msra.mxu0 %v11238_v4  ;;  %5991 = vmatpush1.bf16.msra.mxu1 %v11241_v5  ;;  %v11320_v4 = vld [vmem:[%s15411_s1 + $0x1408] ss:$16 sps:$4 sm:$0xff]   ;;  %v4465_v5 = vsel %vm4456_vm0, %v4463_v61, %v4464_v62  ;;  %v11404_v62 = vld [vmem:[%s15411_s1 + $0x15c4] ss:$16 sps:$4 sm:$0xff]  }
 0x256   : > { %5820 = vmatprep.subr.bf16.mxu0 %v11246_v6  ;;  %5992 = vmatprep.subr.bf16.mxu1 %v11249_v7  ;;  %v11326_v6 = vld [vmem:[%s15411_s1 + $0x1424] ss:$16 sps:$4 sm:$0xff]   ;;  %v11329_v7 = vld [vmem:[%s15411_s1 + $0x142c] ss:$16 sps:$4 sm:$0xff]   ;;  %v11399_v61 = vld [vmem:[%s15411_s1 + $0x15a8] ss:$16 sps:$4 sm:$0xff]  }
 0x259   : > { %5821 = vmatpush1.bf16.msra.mxu0 %v11244_v8  ;;  %5993 = vmatpush1.bf16.msra.mxu1 %v11247_v9  ;;  %v4474_v8 = vsel %vm4456_vm0, %v4472_v1, %v4473_v2  ;;  %v11324_v9 = vld [vmem:[%s15411_s1 + $0x1420] ss:$16 sps:$4 sm:$0xff]   ;;  %v11405_v1 = vld [vmem:[%s15411_s1 + $0x15c8] ss:$16 sps:$4 sm:$0xff]   ;;  %v9406_v2 = vcombine.low %v13998_v55, %v14001_v56 }
 0x25a   : > { %5822 = vmatprep.subr.bf16.mxu0 %v11252_v10  ;;  %5994 = vmatprep.subr.bf16.mxu1 %v11255_v11  ;;  %v11327_v10 = vld [vmem:[%s15411_s1 + $0x1428] ss:$16 sps:$4 sm:$0xff]   ;;  %v11332_v11 = vld [vmem:[%s15411_s1 + $0x1444] ss:$16 sps:$4 sm:$0xff]  }
 0x25d   : > { %5823 = vmatpush1.bf16.msra.mxu0 %v11250_v12  ;;  %5995 = vmatpush1.bf16.msra.mxu1 %v11253_v13  ;;  %v11335_v12 = vld [vmem:[%s15411_s1 + $0x144c] ss:$16 sps:$4 sm:$0xff]   ;;  %v11330_v13 = vld [vmem:[%s15411_s1 + $0x1440] ss:$16 sps:$4 sm:$0xff]  }
 0x25e   : > { %5824 = vmatprep.subr.bf16.mxu0 %v11258_v14  ;;  %5996 = vmatprep.subr.bf16.mxu1 %v11261_v17  ;;  %v11333_v14 = vld [vmem:[%s15411_s1 + $0x1448] ss:$16 sps:$4 sm:$0xff]   ;;  %v11338_v17 = vld [vmem:[%s15411_s1 + $0x1464] ss:$16 sps:$4 sm:$0xff]  }
 0x261   : > { %5825 = vmatpush1.bf16.msra.mxu0 %v11256_v18  ;;  %5997 = vmatpush1.bf16.msra.mxu1 %v11259_v21  ;;  %v11341_v18 = vld [vmem:[%s15411_s1 + $0x146c] ss:$16 sps:$4 sm:$0xff]   ;;  %v11336_v21 = vld [vmem:[%s15411_s1 + $0x1460] ss:$16 sps:$4 sm:$0xff]  }
 0x262   : > { %5826 = vmatprep.subr.bf16.mxu0 %v11264_v23  ;;  %5998 = vmatprep.subr.bf16.mxu1 %v11267_v16  ;;  %v11339_v23 = vld [vmem:[%s15411_s1 + $0x1468] ss:$16 sps:$4 sm:$0xff]   ;;  %v11344_v16 = vld [vmem:[%s15411_s1 + $0x1484] ss:$16 sps:$4 sm:$0xff]  }
 0x265   : > { %5827 = vmatpush1.bf16.msra.mxu0 %v11262_v24  ;;  %5999 = vmatpush1.bf16.msra.mxu1 %v11265_v25  ;;  %v11347_v24 = vld [vmem:[%s15411_s1 + $0x148c] ss:$16 sps:$4 sm:$0xff]   ;;  %v11342_v25 = vld [vmem:[%s15411_s1 + $0x1480] ss:$16 sps:$4 sm:$0xff]  }
 0x266   : > { %5828 = vmatprep.subr.bf16.mxu0 %v11270_v26  ;;  %6000 = vmatprep.subr.bf16.mxu1 %v11273_v27  ;;  %v11345_v26 = vld [vmem:[%s15411_s1 + $0x1488] ss:$16 sps:$4 sm:$0xff]   ;;  %v11350_v27 = vld [vmem:[%s15411_s1 + $0x14a4] ss:$16 sps:$4 sm:$0xff]  }
 0x269   : > { %5829 = vmatpush1.bf16.msra.mxu0 %v11268_v28  ;;  %6001 = vmatpush1.bf16.msra.mxu1 %v11271_v29  ;;  %v11353_v28 = vld [vmem:[%s15411_s1 + $0x14ac] ss:$16 sps:$4 sm:$0xff]   ;;  %v11348_v29 = vld [vmem:[%s15411_s1 + $0x14a0] ss:$16 sps:$4 sm:$0xff]  }
 0x26a   : > { %5830 = vmatprep.subr.bf16.mxu0 %v11276_v30  ;;  %6002 = vmatprep.subr.bf16.mxu1 %v11279_v31  ;;  %v11351_v30 = vld [vmem:[%s15411_s1 + $0x14a8] ss:$16 sps:$4 sm:$0xff]   ;;  %v11356_v31 = vld [vmem:[%s15411_s1 + $0x14c4] ss:$16 sps:$4 sm:$0xff]  }
 0x26d   : > { %5831 = vmatpush1.bf16.msra.mxu0 %v11274_v35  ;;  %6003 = vmatpush1.bf16.msra.mxu1 %v11277_v36  ;;  %v11359_v35 = vld [vmem:[%s15411_s1 + $0x14cc] ss:$16 sps:$4 sm:$0xff]   ;;  %v11354_v36 = vld [vmem:[%s15411_s1 + $0x14c0] ss:$16 sps:$4 sm:$0xff]  }
 0x26e   : > { %5832 = vmatprep.subr.bf16.mxu0 %v11282_v37  ;;  %6004 = vmatprep.subr.bf16.mxu1 %v11285_v22  ;;  %v11357_v37 = vld [vmem:[%s15411_s1 + $0x14c8] ss:$16 sps:$4 sm:$0xff]   ;;  %v11362_v22 = vld [vmem:[%s15411_s1 + $0x14e4] ss:$16 sps:$4 sm:$0xff]  }
 0x271   : > { %5833 = vmatpush1.bf16.msra.mxu0 %v11280_v15  ;;  %6005 = vmatpush1.bf16.msra.mxu1 %v11283_v38  ;;  %v11365_v15 = vld [vmem:[%s15411_s1 + $0x14ec] ss:$16 sps:$4 sm:$0xff]   ;;  %v11360_v38 = vld [vmem:[%s15411_s1 + $0x14e0] ss:$16 sps:$4 sm:$0xff]  }
 0x272   : > { %5834 = vmatprep.subr.bf16.mxu0 %v11288_v39  ;;  %6006 = vmatprep.subr.bf16.mxu1 %v11291_v40  ;;  %v11363_v39 = vld [vmem:[%s15411_s1 + $0x14e8] ss:$16 sps:$4 sm:$0xff]   ;;  %v11368_v40 = vld [vmem:[%s15411_s1 + $0x1504] ss:$16 sps:$4 sm:$0xff]  }
 0x275   : > { %5835 = vmatpush1.bf16.msra.mxu0 %v11286_v41  ;;  %6007 = vmatpush1.bf16.msra.mxu1 %v11289_v43  ;;  %v11371_v41 = vld [vmem:[%s15411_s1 + $0x150c] ss:$16 sps:$4 sm:$0xff]   ;;  %v11366_v43 = vld [vmem:[%s15411_s1 + $0x1500] ss:$16 sps:$4 sm:$0xff]  }
 0x276   : > { %5836 = vmatprep.subr.bf16.mxu0 %v11294_v44  ;;  %6008 = vmatprep.subr.bf16.mxu1 %v11297_v19  ;;  %v11369_v44 = vld [vmem:[%s15411_s1 + $0x1508] ss:$16 sps:$4 sm:$0xff]   ;;  %v11374_v19 = vld [vmem:[%s15411_s1 + $0x1524] ss:$16 sps:$4 sm:$0xff]  }
 0x279   : > { %5837 = vmatpush1.bf16.msra.mxu0 %v11292_v20  ;;  %6009 = vmatpush1.bf16.msra.mxu1 %v11295_v32  ;;  %v11377_v20 = vld [vmem:[%s15411_s1 + $0x152c] ss:$16 sps:$4 sm:$0xff]   ;;  %v11372_v32 = vld [vmem:[%s15411_s1 + $0x1520] ss:$16 sps:$4 sm:$0xff]  }
 0x27a   : > { %5838 = vmatprep.subr.bf16.mxu0 %v11300_v33  ;;  %6010 = vmatprep.subr.bf16.mxu1 %v11303_v34  ;;  %v11375_v33 = vld [vmem:[%s15411_s1 + $0x1528] ss:$16 sps:$4 sm:$0xff]   ;;  %v11380_v34 = vld [vmem:[%s15411_s1 + $0x1544] ss:$16 sps:$4 sm:$0xff]  }
 0x27d   : > { %5839 = vmatpush1.bf16.msra.mxu0 %v11298_v47  ;;  %6011 = vmatpush1.bf16.msra.mxu1 %v11301_v48  ;;  %v11383_v47 = vld [vmem:[%s15411_s1 + $0x154c] ss:$16 sps:$4 sm:$0xff]   ;;  %v11378_v48 = vld [vmem:[%s15411_s1 + $0x1540] ss:$16 sps:$4 sm:$0xff]  }
 0x27e   : > { %5840 = vmatprep.subr.bf16.mxu0 %v11306_v49  ;;  %6012 = vmatprep.subr.bf16.mxu1 %v11309_v50  ;;  %v11381_v49 = vld [vmem:[%s15411_s1 + $0x1548] ss:$16 sps:$4 sm:$0xff]   ;;  %v11386_v50 = vld [vmem:[%s15411_s1 + $0x1564] ss:$16 sps:$4 sm:$0xff]  }
 0x281   : > { %5841 = vmatpush1.bf16.msra.mxu0 %v11304_v51  ;;  %6013 = vmatpush1.bf16.msra.mxu1 %v11307_v52  ;;  %v11389_v51 = vld [vmem:[%s15411_s1 + $0x156c] ss:$16 sps:$4 sm:$0xff]   ;;  %v11384_v52 = vld [vmem:[%s15411_s1 + $0x1560] ss:$16 sps:$4 sm:$0xff]  }
 0x282   : > { %5842 = vmatprep.subr.bf16.mxu0 %v11312_v58  ;;  %6014 = vmatprep.subr.bf16.mxu1 %v11315_v59  ;;  %v11395_v58 = vld [vmem:[%s15411_s1 + $0x158c] ss:$16 sps:$4 sm:$0xff]   ;;  %v11390_v59 = vld [vmem:[%s15411_s1 + $0x1580] ss:$16 sps:$4 sm:$0xff]  }
 0x285   : > { %5843 = vmatpush1.bf16.msra.mxu0 %v11310_v46  ;;  %6015 = vmatpush1.bf16.msra.mxu1 %v11313_v60  ;;  %v11401_v46 = vld [vmem:[%s15411_s1 + $0x15ac] ss:$16 sps:$4 sm:$0xff]   ;;  %v11396_v60 = vld [vmem:[%s15411_s1 + $0x15a0] ss:$16 sps:$4 sm:$0xff]  }
 0x286   : > { %5855 = vmatprep.subr.bf16.mxu0 %v11319_v63  ;;  %6027 = vmatprep.subr.bf16.mxu1 %v11322_v0  ;;  %v11407_v63 = vld [vmem:[%s15411_s1 + $0x15cc] ss:$16 sps:$4 sm:$0xff]   ;;  %v11402_v0 = vld [vmem:[%s15411_s1 + $0x15c0] ss:$16 sps:$4 sm:$0xff]  }
 0x288   : > { %5845 = vmatmul.mubr.bf16.vlgmr.msra.gmra.mrb[0].mxu0 %v4465_v5  ;;  %6017 = vmatmul.mubr.bf16.vlgmr.msra.gmra.mrb[0].mxu1 %v4465_v5  ;;  %v14212_v5 = vld [vmem:[%s12110_s30 + $0x38] sm:$0xff] }
 0x289   : > { %5856 = vmatpush1.bf16.msra.mxu0 %v11317_v3  ;;  %6028 = vmatpush1.bf16.msra.mxu1 %v11320_v4  ;;  %v9414_v3 = vcombine.low %v14004_v57, %v14004_v57  ;;  %v14209_v4 = vld [vmem:[%s12110_s30 + $0x18] sm:$0xcc]  ;;  %v11408_v57 = vld [vmem:[%s15411_s1 + $0x15e0] ss:$16 sps:$4 sm:$0xff]  }
 0x28a   : > { %5857 = vmatprep.subr.bf16.mxu0 %v11326_v6  ;;  %6029 = vmatprep.subr.bf16.mxu1 %v11329_v7  ;;  %v14215_v6 = vld [vmem:[%s12110_s30 + $0x58] sm:$0x33]  ;;  %v11410_v7 = vld [vmem:[%s15411_s1 + $0x15e4] ss:$16 sps:$4 sm:$0xff]   ;;  %v9409_v55 = vcombine.high %v14209_v4, %v14212_v5 }
 0x28b   : > { %5887 = vmatprep.mubr.bf16.mxu0 %v4474_v8  ;;  %6059 = vmatprep.mubr.bf16.mxu1 %v4474_v8  ;;  %v11413_v8 = vld [vmem:[%s15411_s1 + $0x15ec] ss:$16 sps:$4 sm:$0xff]   ;;  %v9417_v56 = vcombine.high %v14215_v6, %v14215_v6 }
 0x28d   : > { %5858 = vmatpush1.bf16.msra.mxu0 %v11324_v9  ;;  %6030 = vmatpush1.bf16.msra.mxu1 %v11327_v10  ;;  %v11411_v9 = vld [vmem:[%s15411_s1 + $0x15e8] ss:$16 sps:$4 sm:$0xff]   ;;  %v4469_v10 = vrot.slane %v9406_v2, 2 }
 0x28e   : > { %5859 = vmatprep.subr.bf16.mxu0 %v11332_v11  ;;  %6031 = vmatprep.subr.bf16.mxu1 %v11335_v12  ;;  %v4470_v11 = vrot.slane %v9414_v3, 2  ;;  %v11417_v12 = vld [vmem:[%s15411_s1 + $0x1604] ss:$16 sps:$4 sm:$0xff]   ;;  %v11485_v2 = vld [vmem:[%s15411_s1 + $0x1768] ss:$16 sps:$4 sm:$0xff]  }
 0x28f   : > { %v11490_v3 = vld [vmem:[%s15411_s1 + $0x1784] ss:$16 sps:$4 sm:$0xff]  }
 0x291   : > { %5860 = vmatpush1.bf16.msra.mxu0 %v11330_v13  ;;  %6032 = vmatpush1.bf16.msra.mxu1 %v11333_v14  ;;  %v11420_v13 = vld [vmem:[%s15411_s1 + $0x160c] ss:$16 sps:$4 sm:$0xff]   ;;  %v4478_v14 = vrot.slane %v9409_v55, 2  ;;  %v11491_v55 = vld [vmem:[%s15411_s1 + $0x1788] ss:$16 sps:$4 sm:$0xff]  }
 0x292   : > { %5861 = vmatprep.subr.bf16.mxu0 %v11338_v17  ;;  %6033 = vmatprep.subr.bf16.mxu1 %v11341_v18  ;;  %v4479_v17 = vrot.slane %v9417_v56, 2  ;;  %v11415_v18 = vld [vmem:[%s15411_s1 + $0x1600] ss:$16 sps:$4 sm:$0xff]   ;;  %v11496_v56 = vld [vmem:[%s15411_s1 + $0x17a4] ss:$16 sps:$4 sm:$0xff]  }
 0x295   : > { %5862 = vmatpush1.bf16.msra.mxu0 %v11336_v21  ;;  %6034 = vmatpush1.bf16.msra.mxu1 %v11339_v23  ;;  %v11418_v21 = vld [vmem:[%s15411_s1 + $0x1608] ss:$16 sps:$4 sm:$0xff]   ;;  %v4471_v23 = vsel %vm4456_vm0, %v4469_v10, %v4470_v11  ;;  %v11502_v11 = vld [vmem:[%s15411_s1 + $0x17c4] ss:$16 sps:$4 sm:$0xff]  }
 0x296   : > { %5863 = vmatprep.subr.bf16.mxu0 %v11344_v16  ;;  %6035 = vmatprep.subr.bf16.mxu1 %v11347_v24  ;;  %v11424_v16 = vld [vmem:[%s15411_s1 + $0x1624] ss:$16 sps:$4 sm:$0xff]   ;;  %v11427_v24 = vld [vmem:[%s15411_s1 + $0x162c] ss:$16 sps:$4 sm:$0xff]   ;;  %v11497_v10 = vld [vmem:[%s15411_s1 + $0x17a8] ss:$16 sps:$4 sm:$0xff]  }
 0x299   : > { %5864 = vmatpush1.bf16.msra.mxu0 %v11342_v25  ;;  %6036 = vmatpush1.bf16.msra.mxu1 %v11345_v26  ;;  %v4480_v25 = vsel %vm4456_vm0, %v4478_v14, %v4479_v17  ;;  %v11422_v26 = vld [vmem:[%s15411_s1 + $0x1620] ss:$16 sps:$4 sm:$0xff]   ;;  %v11503_v14 = vld [vmem:[%s15411_s1 + $0x17c8] ss:$16 sps:$4 sm:$0xff]   ;;  %v9408_v17 = vcombine.low %v14209_v4, %v14212_v5 }
 0x29a   : > { %5865 = vmatprep.subr.bf16.mxu0 %v11350_v27  ;;  %6037 = vmatprep.subr.bf16.mxu1 %v11353_v28  ;;  %v11425_v27 = vld [vmem:[%s15411_s1 + $0x1628] ss:$16 sps:$4 sm:$0xff]   ;;  %v11430_v28 = vld [vmem:[%s15411_s1 + $0x1644] ss:$16 sps:$4 sm:$0xff]  }
 0x29d   : > { %5866 = vmatpush1.bf16.msra.mxu0 %v11348_v29  ;;  %6038 = vmatpush1.bf16.msra.mxu1 %v11351_v30  ;;  %v11433_v29 = vld [vmem:[%s15411_s1 + $0x164c] ss:$16 sps:$4 sm:$0xff]   ;;  %v11428_v30 = vld [vmem:[%s15411_s1 + $0x1640] ss:$16 sps:$4 sm:$0xff]  }
 0x29e   : > { %5867 = vmatprep.subr.bf16.mxu0 %v11356_v31  ;;  %6039 = vmatprep.subr.bf16.mxu1 %v11359_v35  ;;  %v11431_v31 = vld [vmem:[%s15411_s1 + $0x1648] ss:$16 sps:$4 sm:$0xff]   ;;  %v11436_v35 = vld [vmem:[%s15411_s1 + $0x1664] ss:$16 sps:$4 sm:$0xff]  }
 0x2a1   : > { %5868 = vmatpush1.bf16.msra.mxu0 %v11354_v36  ;;  %6040 = vmatpush1.bf16.msra.mxu1 %v11357_v37  ;;  %v11439_v36 = vld [vmem:[%s15411_s1 + $0x166c] ss:$16 sps:$4 sm:$0xff]   ;;  %v11434_v37 = vld [vmem:[%s15411_s1 + $0x1660] ss:$16 sps:$4 sm:$0xff]  }
 0x2a2   : > { %5869 = vmatprep.subr.bf16.mxu0 %v11362_v22  ;;  %6041 = vmatprep.subr.bf16.mxu1 %v11365_v15  ;;  %v11437_v22 = vld [vmem:[%s15411_s1 + $0x1668] ss:$16 sps:$4 sm:$0xff]   ;;  %v11442_v15 = vld [vmem:[%s15411_s1 + $0x1684] ss:$16 sps:$4 sm:$0xff]  }
 0x2a5   : > { %5870 = vmatpush1.bf16.msra.mxu0 %v11360_v38  ;;  %6042 = vmatpush1.bf16.msra.mxu1 %v11363_v39  ;;  %v11445_v38 = vld [vmem:[%s15411_s1 + $0x168c] ss:$16 sps:$4 sm:$0xff]   ;;  %v11440_v39 = vld [vmem:[%s15411_s1 + $0x1680] ss:$16 sps:$4 sm:$0xff]  }
 0x2a6   : > { %5871 = vmatprep.subr.bf16.mxu0 %v11368_v40  ;;  %6043 = vmatprep.subr.bf16.mxu1 %v11371_v41  ;;  %v11443_v40 = vld [vmem:[%s15411_s1 + $0x1688] ss:$16 sps:$4 sm:$0xff]   ;;  %v11448_v41 = vld [vmem:[%s15411_s1 + $0x16a4] ss:$16 sps:$4 sm:$0xff]  }
 0x2a9   : > { %5872 = vmatpush1.bf16.msra.mxu0 %v11366_v43  ;;  %6044 = vmatpush1.bf16.msra.mxu1 %v11369_v44  ;;  %v11451_v43 = vld [vmem:[%s15411_s1 + $0x16ac] ss:$16 sps:$4 sm:$0xff]   ;;  %v11446_v44 = vld [vmem:[%s15411_s1 + $0x16a0] ss:$16 sps:$4 sm:$0xff]  }
 0x2aa   : > { %5873 = vmatprep.subr.bf16.mxu0 %v11374_v19  ;;  %6045 = vmatprep.subr.bf16.mxu1 %v11377_v20  ;;  %v11449_v19 = vld [vmem:[%s15411_s1 + $0x16a8] ss:$16 sps:$4 sm:$0xff]   ;;  %v11454_v20 = vld [vmem:[%s15411_s1 + $0x16c4] ss:$16 sps:$4 sm:$0xff]  }
 0x2ad   : > { %5874 = vmatpush1.bf16.msra.mxu0 %v11372_v32  ;;  %6046 = vmatpush1.bf16.msra.mxu1 %v11375_v33  ;;  %v11457_v32 = vld [vmem:[%s15411_s1 + $0x16cc] ss:$16 sps:$4 sm:$0xff]   ;;  %v11452_v33 = vld [vmem:[%s15411_s1 + $0x16c0] ss:$16 sps:$4 sm:$0xff]  }
 0x2ae   : > { %5875 = vmatprep.subr.bf16.mxu0 %v11380_v34  ;;  %6047 = vmatprep.subr.bf16.mxu1 %v11383_v47  ;;  %v11455_v34 = vld [vmem:[%s15411_s1 + $0x16c8] ss:$16 sps:$4 sm:$0xff]   ;;  %v11460_v47 = vld [vmem:[%s15411_s1 + $0x16e4] ss:$16 sps:$4 sm:$0xff]  }
 0x2b1   : > { %5876 = vmatpush1.bf16.msra.mxu0 %v11378_v48  ;;  %6048 = vmatpush1.bf16.msra.mxu1 %v11381_v49  ;;  %v11463_v48 = vld [vmem:[%s15411_s1 + $0x16ec] ss:$16 sps:$4 sm:$0xff]   ;;  %v11458_v49 = vld [vmem:[%s15411_s1 + $0x16e0] ss:$16 sps:$4 sm:$0xff]  }
 0x2b2   : > { %5877 = vmatprep.subr.bf16.mxu0 %v11386_v50  ;;  %6049 = vmatprep.subr.bf16.mxu1 %v11389_v51  ;;  %v11461_v50 = vld [vmem:[%s15411_s1 + $0x16e8] ss:$16 sps:$4 sm:$0xff]   ;;  %v11466_v51 = vld [vmem:[%s15411_s1 + $0x1704] ss:$16 sps:$4 sm:$0xff]  }
 0x2b5   : > { %5878 = vmatpush1.bf16.msra.mxu0 %v11384_v52  ;;  %6050 = vmatpush1.bf16.msra.mxu1 %v11387_v53  ;;  %v11469_v52 = vld [vmem:[%s15411_s1 + $0x170c] ss:$16 sps:$4 sm:$0xff]   ;;  %v11464_v53 = vld [vmem:[%s15411_s1 + $0x1700] ss:$16 sps:$4 sm:$0xff]  }
 0x2b6   : > { %5879 = vmatprep.subr.bf16.mxu0 %v11392_v54  ;;  %6051 = vmatprep.subr.bf16.mxu1 %v11395_v58  ;;  %v11467_v54 = vld [vmem:[%s15411_s1 + $0x1708] ss:$16 sps:$4 sm:$0xff]   ;;  %v11472_v58 = vld [vmem:[%s15411_s1 + $0x1724] ss:$16 sps:$4 sm:$0xff]  }
 0x2b9   : > { %5880 = vmatpush1.bf16.msra.mxu0 %v11390_v59  ;;  %6052 = vmatpush1.bf16.msra.mxu1 %v11393_v42  ;;  %v11475_v59 = vld [vmem:[%s15411_s1 + $0x172c] ss:$16 sps:$4 sm:$0xff]   ;;  %v11470_v42 = vld [vmem:[%s15411_s1 + $0x1720] ss:$16 sps:$4 sm:$0xff]  }
 0x2ba   : > { %5881 = vmatprep.subr.bf16.mxu0 %v11398_v45  ;;  %6053 = vmatprep.subr.bf16.mxu1 %v11401_v46  ;;  %v11473_v45 = vld [vmem:[%s15411_s1 + $0x1728] ss:$16 sps:$4 sm:$0xff]   ;;  %v11478_v46 = vld [vmem:[%s15411_s1 + $0x1744] ss:$16 sps:$4 sm:$0xff]  }
 0x2bd   : > { %5882 = vmatpush1.bf16.msra.mxu0 %v11396_v60  ;;  %6054 = vmatpush1.bf16.msra.mxu1 %v11399_v61  ;;  %v11481_v60 = vld [vmem:[%s15411_s1 + $0x174c] ss:$16 sps:$4 sm:$0xff]   ;;  %v11476_v61 = vld [vmem:[%s15411_s1 + $0x1740] ss:$16 sps:$4 sm:$0xff]  }
 0x2be   : > { %5883 = vmatprep.subr.bf16.mxu0 %v11404_v62  ;;  %6055 = vmatprep.subr.bf16.mxu1 %v11407_v63  ;;  %v11479_v62 = vld [vmem:[%s15411_s1 + $0x1748] ss:$16 sps:$4 sm:$0xff]   ;;  %v11484_v63 = vld [vmem:[%s15411_s1 + $0x1764] ss:$16 sps:$4 sm:$0xff]  }
 0x2c1   : > { %5884 = vmatpush1.bf16.msra.mxu0 %v11402_v0  ;;  %6056 = vmatpush1.bf16.msra.mxu1 %v11405_v1  ;;  %v11487_v0 = vld [vmem:[%s15411_s1 + $0x176c] ss:$16 sps:$4 sm:$0xff]   ;;  %v11482_v1 = vld [vmem:[%s15411_s1 + $0x1760] ss:$16 sps:$4 sm:$0xff]  }
 0x2c2   : > { %5885 = vmatprep.subr.bf16.mxu0 %v11410_v7  ;;  %6057 = vmatprep.subr.bf16.mxu1 %v11413_v8  ;;  %v11493_v7 = vld [vmem:[%s15411_s1 + $0x178c] ss:$16 sps:$4 sm:$0xff]   ;;  %v11488_v8 = vld [vmem:[%s15411_s1 + $0x1780] ss:$16 sps:$4 sm:$0xff]  }
 0x2c5   : > { %5886 = vmatpush1.bf16.msra.mxu0 %v11408_v57  ;;  %6058 = vmatpush1.bf16.msra.mxu1 %v11411_v9  ;;  %v11499_v57 = vld [vmem:[%s15411_s1 + $0x17ac] ss:$16 sps:$4 sm:$0xff]   ;;  %v11494_v9 = vld [vmem:[%s15411_s1 + $0x17a0] ss:$16 sps:$4 sm:$0xff]  }
 0x2c6   : > { %5898 = vmatprep.subr.bf16.mxu0 %v11417_v12  ;;  %6070 = vmatprep.subr.bf16.mxu1 %v11420_v13  ;;  %v11505_v12 = vld [vmem:[%s15411_s1 + $0x17cc] ss:$16 sps:$4 sm:$0xff]   ;;  %v11500_v13 = vld [vmem:[%s15411_s1 + $0x17c0] ss:$16 sps:$4 sm:$0xff]  }
 0x2c8   : > { %5888 = vmatmul.mubr.bf16.vlgmr.msra.gmra.mrb[0].mxu0 %v4471_v23  ;;  %6060 = vmatmul.mubr.bf16.vlgmr.msra.gmra.mrb[0].mxu1 %v4471_v23  ;;  %v14423_v23 = vld [vmem:[%s12110_s30 + $0x80] sm:$0xff] }
 0x2c9   : > { %5899 = vmatpush1.bf16.msra.mxu0 %v11415_v18  ;;  %6071 = vmatpush1.bf16.msra.mxu1 %v11418_v21  ;;  %v9416_v18 = vcombine.low %v14215_v6, %v14215_v6  ;;  %v14420_v21 = vld [vmem:[%s12110_s30 + $0x60] sm:$0xcc] }
 0x2ca   : > { %5900 = vmatprep.subr.bf16.mxu0 %v11424_v16  ;;  %6072 = vmatprep.subr.bf16.mxu1 %v11427_v24  ;;  %v14426_v16 = vld [vmem:[%s12110_s30 + $0xa0] sm:$0x33]  ;;  %v9943_v4 = vcombine.high %v14420_v21, %v14423_v23 }
 0x2cb   : > { %5930 = vmatprep.mubr.bf16.mxu0 %v4480_v25  ;;  %6102 = vmatprep.mubr.bf16.mxu1 %v4480_v25  ;;  %v11508_v24 = vld [vmem:[%s15411_s1 + $0x17e4] ss:$16 sps:$4 sm:$0xff]   ;;  %v11511_v25 = vld [vmem:[%s15411_s1 + $0x17ec] ss:$16 sps:$4 sm:$0xff]   ;;  %v9951_v5 = vcombine.high %v14426_v16, %v14426_v16  ;;  %v11506_v6 = vld [vmem:[%s15411_s1 + $0x17e0] ss:$16 sps:$4 sm:$0xff]  }
 0x2cd   : > { %5901 = vmatpush1.bf16.msra.mxu0 %v11422_v26  ;;  %6073 = vmatpush1.bf16.msra.mxu1 %v11425_v27  ;;  %v11509_v26 = vld [vmem:[%s15411_s1 + $0x17e8] ss:$16 sps:$4 sm:$0xff]   ;;  %v4475_v27 = vrot.slane %v9408_v17, 2 }
 0x2ce   : > { %5902 = vmatprep.subr.bf16.mxu0 %v11430_v28  ;;  %6074 = vmatprep.subr.bf16.mxu1 %v11433_v29  ;;  %v4476_v28 = vrot.slane %v9416_v18, 2  ;;  %v11515_v29 = vld [vmem:[%s15411_s1 + $0x1804] ss:$16 sps:$4 sm:$0xff]   ;;  %v11583_v17 = vld [vmem:[%s15411_s1 + $0x1968] ss:$16 sps:$4 sm:$0xff]  }
 0x2cf   : > { %v11588_v18 = vld [vmem:[%s15411_s1 + $0x1984] ss:$16 sps:$4 sm:$0xff]  }
 0x2d1   : > { %5903 = vmatpush1.bf16.msra.mxu0 %v11428_v30  ;;  %6075 = vmatpush1.bf16.msra.mxu1 %v11431_v31  ;;  %v11518_v30 = vld [vmem:[%s15411_s1 + $0x180c] ss:$16 sps:$4 sm:$0xff]   ;;  %v6445_v31 = vrot.slane %v9943_v4, 2  ;;  %v11589_v4 = vld [vmem:[%s15411_s1 + $0x1988] ss:$16 sps:$4 sm:$0xff]  }
 0x2d2   : > { %5904 = vmatprep.subr.bf16.mxu0 %v11436_v35  ;;  %6076 = vmatprep.subr.bf16.mxu1 %v11439_v36  ;;  %v6446_v35 = vrot.slane %v9951_v5, 2  ;;  %v11513_v36 = vld [vmem:[%s15411_s1 + $0x1800] ss:$16 sps:$4 sm:$0xff]   ;;  %v11594_v5 = vld [vmem:[%s15411_s1 + $0x19a4] ss:$16 sps:$4 sm:$0xff]  }
 0x2d5   : > { %5905 = vmatpush1.bf16.msra.mxu0 %v11434_v37  ;;  %6077 = vmatpush1.bf16.msra.mxu1 %v11437_v22  ;;  %v11516_v37 = vld [vmem:[%s15411_s1 + $0x1808] ss:$16 sps:$4 sm:$0xff]   ;;  %v4477_v22 = vsel %vm4456_vm0, %v4475_v27, %v4476_v28  ;;  %v11600_v28 = vld [vmem:[%s15411_s1 + $0x19c4] ss:$16 sps:$4 sm:$0xff]  }
 0x2d6   : > { %5906 = vmatprep.subr.bf16.mxu0 %v11442_v15  ;;  %6078 = vmatprep.subr.bf16.mxu1 %v11445_v38  ;;  %v11522_v15 = vld [vmem:[%s15411_s1 + $0x1824] ss:$16 sps:$4 sm:$0xff]   ;;  %v11525_v38 = vld [vmem:[%s15411_s1 + $0x182c] ss:$16 sps:$4 sm:$0xff]   ;;  %v11595_v27 = vld [vmem:[%s15411_s1 + $0x19a8] ss:$16 sps:$4 sm:$0xff]  }
 0x2d9   : > { %5907 = vmatpush1.bf16.msra.mxu0 %v11440_v39  ;;  %6079 = vmatpush1.bf16.msra.mxu1 %v11443_v40  ;;  %v6447_v39 = vsel %vm4456_vm0, %v6445_v31, %v6446_v35  ;;  %v11520_v40 = vld [vmem:[%s15411_s1 + $0x1820] ss:$16 sps:$4 sm:$0xff]   ;;  %v11601_v31 = vld [vmem:[%s15411_s1 + $0x19c8] ss:$16 sps:$4 sm:$0xff]   ;;  %v9942_v35 = vcombine.low %v14420_v21, %v14423_v23 }
 0x2da   : > { %5908 = vmatprep.subr.bf16.mxu0 %v11448_v41  ;;  %6080 = vmatprep.subr.bf16.mxu1 %v11451_v43  ;;  %v11523_v41 = vld [vmem:[%s15411_s1 + $0x1828] ss:$16 sps:$4 sm:$0xff]   ;;  %v11528_v43 = vld [vmem:[%s15411_s1 + $0x1844] ss:$16 sps:$4 sm:$0xff]  }
 0x2dd   : > { %5909 = vmatpush1.bf16.msra.mxu0 %v11446_v44  ;;  %6081 = vmatpush1.bf16.msra.mxu1 %v11449_v19  ;;  %v11531_v44 = vld [vmem:[%s15411_s1 + $0x184c] ss:$16 sps:$4 sm:$0xff]   ;;  %v11526_v19 = vld [vmem:[%s15411_s1 + $0x1840] ss:$16 sps:$4 sm:$0xff]  }
 0x2de   : > { %5910 = vmatprep.subr.bf16.mxu0 %v11454_v20  ;;  %6082 = vmatprep.subr.bf16.mxu1 %v11457_v32  ;;  %v11529_v20 = vld [vmem:[%s15411_s1 + $0x1848] ss:$16 sps:$4 sm:$0xff]   ;;  %v11534_v32 = vld [vmem:[%s15411_s1 + $0x1864] ss:$16 sps:$4 sm:$0xff]  }
 0x2e1   : > { %5911 = vmatpush1.bf16.msra.mxu0 %v11452_v33  ;;  %6083 = vmatpush1.bf16.msra.mxu1 %v11455_v34  ;;  %v11537_v33 = vld [vmem:[%s15411_s1 + $0x186c] ss:$16 sps:$4 sm:$0xff]   ;;  %v11532_v34 = vld [vmem:[%s15411_s1 + $0x1860] ss:$16 sps:$4 sm:$0xff]  }
 0x2e2   : > { %5912 = vmatprep.subr.bf16.mxu0 %v11460_v47  ;;  %6084 = vmatprep.subr.bf16.mxu1 %v11463_v48  ;;  %v11535_v47 = vld [vmem:[%s15411_s1 + $0x1868] ss:$16 sps:$4 sm:$0xff]   ;;  %v11540_v48 = vld [vmem:[%s15411_s1 + $0x1884] ss:$16 sps:$4 sm:$0xff]  }
 0x2e5   : > { %5913 = vmatpush1.bf16.msra.mxu0 %v11458_v49  ;;  %6085 = vmatpush1.bf16.msra.mxu1 %v11461_v50  ;;  %v11543_v49 = vld [vmem:[%s15411_s1 + $0x188c] ss:$16 sps:$4 sm:$0xff]   ;;  %v11538_v50 = vld [vmem:[%s15411_s1 + $0x1880] ss:$16 sps:$4 sm:$0xff]  }
 0x2e6   : > { %5914 = vmatprep.subr.bf16.mxu0 %v11466_v51  ;;  %6086 = vmatprep.subr.bf16.mxu1 %v11469_v52  ;;  %v11541_v51 = vld [vmem:[%s15411_s1 + $0x1888] ss:$16 sps:$4 sm:$0xff]   ;;  %v11546_v52 = vld [vmem:[%s15411_s1 + $0x18a4] ss:$16 sps:$4 sm:$0xff]  }
 0x2e9   : > { %5915 = vmatpush1.bf16.msra.mxu0 %v11464_v53  ;;  %6087 = vmatpush1.bf16.msra.mxu1 %v11467_v54  ;;  %v11549_v53 = vld [vmem:[%s15411_s1 + $0x18ac] ss:$16 sps:$4 sm:$0xff]   ;;  %v11544_v54 = vld [vmem:[%s15411_s1 + $0x18a0] ss:$16 sps:$4 sm:$0xff]  }
 0x2ea   : > { %5916 = vmatprep.subr.bf16.mxu0 %v11472_v58  ;;  %6088 = vmatprep.subr.bf16.mxu1 %v11475_v59  ;;  %v11547_v58 = vld [vmem:[%s15411_s1 + $0x18a8] ss:$16 sps:$4 sm:$0xff]   ;;  %v11552_v59 = vld [vmem:[%s15411_s1 + $0x18c4] ss:$16 sps:$4 sm:$0xff]  }
 0x2ed   : > { %5917 = vmatpush1.bf16.msra.mxu0 %v11470_v42  ;;  %6089 = vmatpush1.bf16.msra.mxu1 %v11473_v45  ;;  %v11555_v42 = vld [vmem:[%s15411_s1 + $0x18cc] ss:$16 sps:$4 sm:$0xff]   ;;  %v11550_v45 = vld [vmem:[%s15411_s1 + $0x18c0] ss:$16 sps:$4 sm:$0xff]  }
 0x2ee   : > { %5918 = vmatprep.subr.bf16.mxu0 %v11478_v46  ;;  %6090 = vmatprep.subr.bf16.mxu1 %v11481_v60  ;;  %v11553_v46 = vld [vmem:[%s15411_s1 + $0x18c8] ss:$16 sps:$4 sm:$0xff]   ;;  %v11558_v60 = vld [vmem:[%s15411_s1 + $0x18e4] ss:$16 sps:$4 sm:$0xff]  }
 0x2f1   : > { %5919 = vmatpush1.bf16.msra.mxu0 %v11476_v61  ;;  %6091 = vmatpush1.bf16.msra.mxu1 %v11479_v62  ;;  %v11561_v61 = vld [vmem:[%s15411_s1 + $0x18ec] ss:$16 sps:$4 sm:$0xff]   ;;  %v11556_v62 = vld [vmem:[%s15411_s1 + $0x18e0] ss:$16 sps:$4 sm:$0xff]  }
 0x2f2   : > { %5920 = vmatprep.subr.bf16.mxu0 %v11484_v63  ;;  %6092 = vmatprep.subr.bf16.mxu1 %v11487_v0  ;;  %v11559_v63 = vld [vmem:[%s15411_s1 + $0x18e8] ss:$16 sps:$4 sm:$0xff]   ;;  %v11564_v0 = vld [vmem:[%s15411_s1 + $0x1904] ss:$16 sps:$4 sm:$0xff]  }
 0x2f5   : > { %5921 = vmatpush1.bf16.msra.mxu0 %v11482_v1  ;;  %6093 = vmatpush1.bf16.msra.mxu1 %v11485_v2  ;;  %v11567_v1 = vld [vmem:[%s15411_s1 + $0x190c] ss:$16 sps:$4 sm:$0xff]   ;;  %v11562_v2 = vld [vmem:[%s15411_s1 + $0x1900] ss:$16 sps:$4 sm:$0xff]  }
 0x2f6   : > { %5922 = vmatprep.subr.bf16.mxu0 %v11490_v3  ;;  %6094 = vmatprep.subr.bf16.mxu1 %v11493_v7  ;;  %v11565_v3 = vld [vmem:[%s15411_s1 + $0x1908] ss:$16 sps:$4 sm:$0xff]   ;;  %v11570_v7 = vld [vmem:[%s15411_s1 + $0x1924] ss:$16 sps:$4 sm:$0xff]  }
 0x2f9   : > { %5923 = vmatpush1.bf16.msra.mxu0 %v11488_v8  ;;  %6095 = vmatpush1.bf16.msra.mxu1 %v11491_v55  ;;  %v11573_v8 = vld [vmem:[%s15411_s1 + $0x192c] ss:$16 sps:$4 sm:$0xff]   ;;  %v11568_v55 = vld [vmem:[%s15411_s1 + $0x1920] ss:$16 sps:$4 sm:$0xff]  }
 0x2fa   : > { %5924 = vmatprep.subr.bf16.mxu0 %v11496_v56  ;;  %6096 = vmatprep.subr.bf16.mxu1 %v11499_v57  ;;  %v11571_v56 = vld [vmem:[%s15411_s1 + $0x1928] ss:$16 sps:$4 sm:$0xff]   ;;  %v11576_v57 = vld [vmem:[%s15411_s1 + $0x1944] ss:$16 sps:$4 sm:$0xff]  }
 0x2fd   : > { %5925 = vmatpush1.bf16.msra.mxu0 %v11494_v9  ;;  %6097 = vmatpush1.bf16.msra.mxu1 %v11497_v10  ;;  %v11579_v9 = vld [vmem:[%s15411_s1 + $0x194c] ss:$16 sps:$4 sm:$0xff]   ;;  %v11574_v10 = vld [vmem:[%s15411_s1 + $0x1940] ss:$16 sps:$4 sm:$0xff]  }
 0x2fe   : > { %5926 = vmatprep.subr.bf16.mxu0 %v11502_v11  ;;  %6098 = vmatprep.subr.bf16.mxu1 %v11505_v12  ;;  %v11577_v11 = vld [vmem:[%s15411_s1 + $0x1948] ss:$16 sps:$4 sm:$0xff]   ;;  %v11582_v12 = vld [vmem:[%s15411_s1 + $0x1964] ss:$16 sps:$4 sm:$0xff]  }
 0x301   : > { %5927 = vmatpush1.bf16.msra.mxu0 %v11500_v13  ;;  %6099 = vmatpush1.bf16.msra.mxu1 %v11503_v14  ;;  %v11585_v13 = vld [vmem:[%s15411_s1 + $0x196c] ss:$16 sps:$4 sm:$0xff]   ;;  %v11580_v14 = vld [vmem:[%s15411_s1 + $0x1960] ss:$16 sps:$4 sm:$0xff]  }
 0x302   : > { %5928 = vmatprep.subr.bf16.mxu0 %v11508_v24  ;;  %6100 = vmatprep.subr.bf16.mxu1 %v11511_v25  ;;  %v11591_v24 = vld [vmem:[%s15411_s1 + $0x198c] ss:$16 sps:$4 sm:$0xff]   ;;  %v11586_v25 = vld [vmem:[%s15411_s1 + $0x1980] ss:$16 sps:$4 sm:$0xff]  }
 0x305   : > { %5929 = vmatpush1.bf16.msra.mxu0 %v11506_v6  ;;  %6101 = vmatpush1.bf16.msra.mxu1 %v11509_v26  ;;  %v11597_v6 = vld [vmem:[%s15411_s1 + $0x19ac] ss:$16 sps:$4 sm:$0xff]   ;;  %v11592_v26 = vld [vmem:[%s15411_s1 + $0x19a0] ss:$16 sps:$4 sm:$0xff]  }
 0x306   : > { %7754 = vmatprep.subr.bf16.mxu0 %v11515_v29  ;;  %7926 = vmatprep.subr.bf16.mxu1 %v11518_v30  ;;  %v11603_v29 = vld [vmem:[%s15411_s1 + $0x19cc] ss:$16 sps:$4 sm:$0xff]   ;;  %v11598_v30 = vld [vmem:[%s15411_s1 + $0x19c0] ss:$16 sps:$4 sm:$0xff]  }
 0x308   : > { %5931 = vmatmul.mubr.bf16.vlgmr.msra.gmra.mrb[0].mxu0 %v4477_v22  ;;  %6103 = vmatmul.mubr.bf16.vlgmr.msra.gmra.mrb[0].mxu1 %v4477_v22  ;;  %v14634_v22 = vld [vmem:[%s12110_s30 + $0x88] sm:$0xff] }
 0x309   : > { %7755 = vmatpush1.bf16.msra.mxu0 %v11513_v36  ;;  %7927 = vmatpush1.bf16.msra.mxu1 %v11516_v37  ;;  %v9950_v36 = vcombine.low %v14426_v16, %v14426_v16  ;;  %v14631_v37 = vld [vmem:[%s12110_s30 + $0x68] sm:$0xcc]  ;;  %v11604_v16 = vld [vmem:[%s15411_s1 + $0x19e0] ss:$16 sps:$4 sm:$0xff]  }
 0x30a   : > { %7756 = vmatprep.subr.bf16.mxu0 %v11522_v15  ;;  %7928 = vmatprep.subr.bf16.mxu1 %v11525_v38  ;;  %v14637_v15 = vld [vmem:[%s12110_s30 + $0xa8] sm:$0x33]  ;;  %v11606_v38 = vld [vmem:[%s15411_s1 + $0x19e4] ss:$16 sps:$4 sm:$0xff]   ;;  %v9945_v21 = vcombine.high %v14631_v37, %v14634_v22 }
 0x30b   : > { %7786 = vmatprep.mubr.bf16.mxu0 %v6447_v39  ;;  %7958 = vmatprep.mubr.bf16.mxu1 %v6447_v39  ;;  %v11609_v39 = vld [vmem:[%s15411_s1 + $0x19ec] ss:$16 sps:$4 sm:$0xff]   ;;  %v9953_v23 = vcombine.high %v14637_v15, %v14637_v15 }
 0x30d   : > { %7757 = vmatpush1.bf16.msra.mxu0 %v11520_v40  ;;  %7929 = vmatpush1.bf16.msra.mxu1 %v11523_v41  ;;  %v11607_v40 = vld [vmem:[%s15411_s1 + $0x19e8] ss:$16 sps:$4 sm:$0xff]   ;;  %v6442_v41 = vrot.slane %v9942_v35, 2 }
 0x30e   : > { %7758 = vmatprep.subr.bf16.mxu0 %v11528_v43  ;;  %7930 = vmatprep.subr.bf16.mxu1 %v11531_v44  ;;  %v6443_v43 = vrot.slane %v9950_v36, 2  ;;  %v11613_v44 = vld [vmem:[%s15411_s1 + $0x1a04] ss:$16 sps:$4 sm:$0xff]   ;;  %v11681_v35 = vld [vmem:[%s15411_s1 + $0x1b68] ss:$16 sps:$4 sm:$0xff]  }
 0x30f   : > { %v11686_v36 = vld [vmem:[%s15411_s1 + $0x1b84] ss:$16 sps:$4 sm:$0xff]  }
 0x311   : > { %7759 = vmatpush1.bf16.msra.mxu0 %v11526_v19  ;;  %7931 = vmatpush1.bf16.msra.mxu1 %v11529_v20  ;;  %v11616_v19 = vld [vmem:[%s15411_s1 + $0x1a0c] ss:$16 sps:$4 sm:$0xff]   ;;  %v6451_v20 = vrot.slane %v9945_v21, 2  ;;  %v11687_v21 = vld [vmem:[%s15411_s1 + $0x1b88] ss:$16 sps:$4 sm:$0xff]  }
 0x312   : > { %7760 = vmatprep.subr.bf16.mxu0 %v11534_v32  ;;  %7932 = vmatprep.subr.bf16.mxu1 %v11537_v33  ;;  %v6452_v32 = vrot.slane %v9953_v23, 2  ;;  %v11611_v33 = vld [vmem:[%s15411_s1 + $0x1a00] ss:$16 sps:$4 sm:$0xff]   ;;  %v11692_v23 = vld [vmem:[%s15411_s1 + $0x1ba4] ss:$16 sps:$4 sm:$0xff]  }
 0x315   : > { %7761 = vmatpush1.bf16.msra.mxu0 %v11532_v34  ;;  %7933 = vmatpush1.bf16.msra.mxu1 %v11535_v47  ;;  %v11614_v34 = vld [vmem:[%s15411_s1 + $0x1a08] ss:$16 sps:$4 sm:$0xff]   ;;  %v6444_v47 = vsel %vm4456_vm0, %v6442_v41, %v6443_v43  ;;  %v11698_v43 = vld [vmem:[%s15411_s1 + $0x1bc4] ss:$16 sps:$4 sm:$0xff]  }
 0x316   : > { %7762 = vmatprep.subr.bf16.mxu0 %v11540_v48  ;;  %7934 = vmatprep.subr.bf16.mxu1 %v11543_v49  ;;  %v11620_v48 = vld [vmem:[%s15411_s1 + $0x1a24] ss:$16 sps:$4 sm:$0xff]   ;;  %v11623_v49 = vld [vmem:[%s15411_s1 + $0x1a2c] ss:$16 sps:$4 sm:$0xff]   ;;  %v11693_v41 = vld [vmem:[%s15411_s1 + $0x1ba8] ss:$16 sps:$4 sm:$0xff]  }
 0x319   : > { %7763 = vmatpush1.bf16.msra.mxu0 %v11538_v50  ;;  %7935 = vmatpush1.bf16.msra.mxu1 %v11541_v51  ;;  %v6453_v50 = vsel %vm4456_vm0, %v6451_v20, %v6452_v32  ;;  %v11618_v51 = vld [vmem:[%s15411_s1 + $0x1a20] ss:$16 sps:$4 sm:$0xff]   ;;  %v11699_v20 = vld [vmem:[%s15411_s1 + $0x1bc8] ss:$16 sps:$4 sm:$0xff]   ;;  %v9944_v32 = vcombine.low %v14631_v37, %v14634_v22 }
 0x31a   : > { %7764 = vmatprep.subr.bf16.mxu0 %v11546_v52  ;;  %7936 = vmatprep.subr.bf16.mxu1 %v11549_v53  ;;  %v11621_v52 = vld [vmem:[%s15411_s1 + $0x1a28] ss:$16 sps:$4 sm:$0xff]   ;;  %v11626_v53 = vld [vmem:[%s15411_s1 + $0x1a44] ss:$16 sps:$4 sm:$0xff]  }
 0x31d   : > { %7765 = vmatpush1.bf16.msra.mxu0 %v11544_v54  ;;  %7937 = vmatpush1.bf16.msra.mxu1 %v11547_v58  ;;  %v11629_v54 = vld [vmem:[%s15411_s1 + $0x1a4c] ss:$16 sps:$4 sm:$0xff]   ;;  %v11624_v58 = vld [vmem:[%s15411_s1 + $0x1a40] ss:$16 sps:$4 sm:$0xff]  }
 0x31e   : > { %7766 = vmatprep.subr.bf16.mxu0 %v11552_v59  ;;  %7938 = vmatprep.subr.bf16.mxu1 %v11555_v42  ;;  %v11627_v59 = vld [vmem:[%s15411_s1 + $0x1a48] ss:$16 sps:$4 sm:$0xff]   ;;  %v11632_v42 = vld [vmem:[%s15411_s1 + $0x1a64] ss:$16 sps:$4 sm:$0xff]  }
 0x321   : > { %7767 = vmatpush1.bf16.msra.mxu0 %v11550_v45  ;;  %7939 = vmatpush1.bf16.msra.mxu1 %v11553_v46  ;;  %v11635_v45 = vld [vmem:[%s15411_s1 + $0x1a6c] ss:$16 sps:$4 sm:$0xff]   ;;  %v11630_v46 = vld [vmem:[%s15411_s1 + $0x1a60] ss:$16 sps:$4 sm:$0xff]  }
 0x322   : > { %7768 = vmatprep.subr.bf16.mxu0 %v11558_v60  ;;  %7940 = vmatprep.subr.bf16.mxu1 %v11561_v61  ;;  %v11633_v60 = vld [vmem:[%s15411_s1 + $0x1a68] ss:$16 sps:$4 sm:$0xff]   ;;  %v11638_v61 = vld [vmem:[%s15411_s1 + $0x1a84] ss:$16 sps:$4 sm:$0xff]  }
 0x325   : > { %7769 = vmatpush1.bf16.msra.mxu0 %v11556_v62  ;;  %7941 = vmatpush1.bf16.msra.mxu1 %v11559_v63  ;;  %v11641_v62 = vld [vmem:[%s15411_s1 + $0x1a8c] ss:$16 sps:$4 sm:$0xff]   ;;  %v11636_v63 = vld [vmem:[%s15411_s1 + $0x1a80] ss:$16 sps:$4 sm:$0xff]  }
 0x326   : > { %7770 = vmatprep.subr.bf16.mxu0 %v11564_v0  ;;  %7942 = vmatprep.subr.bf16.mxu1 %v11567_v1  ;;  %v11639_v0 = vld [vmem:[%s15411_s1 + $0x1a88] ss:$16 sps:$4 sm:$0xff]   ;;  %v11644_v1 = vld [vmem:[%s15411_s1 + $0x1aa4] ss:$16 sps:$4 sm:$0xff]  }
 0x329   : > { %7771 = vmatpush1.bf16.msra.mxu0 %v11562_v2  ;;  %7943 = vmatpush1.bf16.msra.mxu1 %v11565_v3  ;;  %v11647_v2 = vld [vmem:[%s15411_s1 + $0x1aac] ss:$16 sps:$4 sm:$0xff]   ;;  %v11642_v3 = vld [vmem:[%s15411_s1 + $0x1aa0] ss:$16 sps:$4 sm:$0xff]  }
 0x32a   : > { %7772 = vmatprep.subr.bf16.mxu0 %v11570_v7  ;;  %7944 = vmatprep.subr.bf16.mxu1 %v11573_v8  ;;  %v11645_v7 = vld [vmem:[%s15411_s1 + $0x1aa8] ss:$16 sps:$4 sm:$0xff]   ;;  %v11650_v8 = vld [vmem:[%s15411_s1 + $0x1ac4] ss:$16 sps:$4 sm:$0xff]  }
 0x32d   : > { %7773 = vmatpush1.bf16.msra.mxu0 %v11568_v55  ;;  %7945 = vmatpush1.bf16.msra.mxu1 %v11571_v56  ;;  %v11653_v55 = vld [vmem:[%s15411_s1 + $0x1acc] ss:$16 sps:$4 sm:$0xff]   ;;  %v11648_v56 = vld [vmem:[%s15411_s1 + $0x1ac0] ss:$16 sps:$4 sm:$0xff]  }
 0x32e   : > { %7774 = vmatprep.subr.bf16.mxu0 %v11576_v57  ;;  %7946 = vmatprep.subr.bf16.mxu1 %v11579_v9  ;;  %v11651_v57 = vld [vmem:[%s15411_s1 + $0x1ac8] ss:$16 sps:$4 sm:$0xff]   ;;  %v11656_v9 = vld [vmem:[%s15411_s1 + $0x1ae4] ss:$16 sps:$4 sm:$0xff]  }
 0x331   : > { %7775 = vmatpush1.bf16.msra.mxu0 %v11574_v10  ;;  %7947 = vmatpush1.bf16.msra.mxu1 %v11577_v11  ;;  %v11659_v10 = vld [vmem:[%s15411_s1 + $0x1aec] ss:$16 sps:$4 sm:$0xff]   ;;  %v11654_v11 = vld [vmem:[%s15411_s1 + $0x1ae0] ss:$16 sps:$4 sm:$0xff]  }
 0x332   : > { %7776 = vmatprep.subr.bf16.mxu0 %v11582_v12  ;;  %7948 = vmatprep.subr.bf16.mxu1 %v11585_v13  ;;  %v11657_v12 = vld [vmem:[%s15411_s1 + $0x1ae8] ss:$16 sps:$4 sm:$0xff]   ;;  %v11662_v13 = vld [vmem:[%s15411_s1 + $0x1b04] ss:$16 sps:$4 sm:$0xff]  }
 0x335   : > { %7777 = vmatpush1.bf16.msra.mxu0 %v11580_v14  ;;  %7949 = vmatpush1.bf16.msra.mxu1 %v11583_v17  ;;  %v11665_v14 = vld [vmem:[%s15411_s1 + $0x1b0c] ss:$16 sps:$4 sm:$0xff]   ;;  %v11660_v17 = vld [vmem:[%s15411_s1 + $0x1b00] ss:$16 sps:$4 sm:$0xff]  }
 0x336   : > { %7778 = vmatprep.subr.bf16.mxu0 %v11588_v18  ;;  %7950 = vmatprep.subr.bf16.mxu1 %v11591_v24  ;;  %v11663_v18 = vld [vmem:[%s15411_s1 + $0x1b08] ss:$16 sps:$4 sm:$0xff]   ;;  %v11668_v24 = vld [vmem:[%s15411_s1 + $0x1b24] ss:$16 sps:$4 sm:$0xff]  }
 0x339   : > { %7779 = vmatpush1.bf16.msra.mxu0 %v11586_v25  ;;  %7951 = vmatpush1.bf16.msra.mxu1 %v11589_v4  ;;  %v11671_v25 = vld [vmem:[%s15411_s1 + $0x1b2c] ss:$16 sps:$4 sm:$0xff]   ;;  %v11666_v4 = vld [vmem:[%s15411_s1 + $0x1b20] ss:$16 sps:$4 sm:$0xff]  }
 0x33a   : > { %7780 = vmatprep.subr.bf16.mxu0 %v11594_v5  ;;  %7952 = vmatprep.subr.bf16.mxu1 %v11597_v6  ;;  %v11669_v5 = vld [vmem:[%s15411_s1 + $0x1b28] ss:$16 sps:$4 sm:$0xff]   ;;  %v11674_v6 = vld [vmem:[%s15411_s1 + $0x1b44] ss:$16 sps:$4 sm:$0xff]  }
 0x33d   : > { %7781 = vmatpush1.bf16.msra.mxu0 %v11592_v26  ;;  %7953 = vmatpush1.bf16.msra.mxu1 %v11595_v27  ;;  %v11677_v26 = vld [vmem:[%s15411_s1 + $0x1b4c] ss:$16 sps:$4 sm:$0xff]   ;;  %v11672_v27 = vld [vmem:[%s15411_s1 + $0x1b40] ss:$16 sps:$4 sm:$0xff]  }
 0x33e   : > { %7782 = vmatprep.subr.bf16.mxu0 %v11600_v28  ;;  %7954 = vmatprep.subr.bf16.mxu1 %v11603_v29  ;;  %v11675_v28 = vld [vmem:[%s15411_s1 + $0x1b48] ss:$16 sps:$4 sm:$0xff]   ;;  %v11680_v29 = vld [vmem:[%s15411_s1 + $0x1b64] ss:$16 sps:$4 sm:$0xff]  }
 0x341   : > { %7783 = vmatpush1.bf16.msra.mxu0 %v11598_v30  ;;  %7955 = vmatpush1.bf16.msra.mxu1 %v11601_v31  ;;  %v11683_v30 = vld [vmem:[%s15411_s1 + $0x1b6c] ss:$16 sps:$4 sm:$0xff]   ;;  %v11678_v31 = vld [vmem:[%s15411_s1 + $0x1b60] ss:$16 sps:$4 sm:$0xff]  }
 0x342   : > { %7784 = vmatprep.subr.bf16.mxu0 %v11606_v38  ;;  %7956 = vmatprep.subr.bf16.mxu1 %v11609_v39  ;;  %v11689_v38 = vld [vmem:[%s15411_s1 + $0x1b8c] ss:$16 sps:$4 sm:$0xff]   ;;  %v11684_v39 = vld [vmem:[%s15411_s1 + $0x1b80] ss:$16 sps:$4 sm:$0xff]  }
 0x345   : > { %7785 = vmatpush1.bf16.msra.mxu0 %v11604_v16  ;;  %7957 = vmatpush1.bf16.msra.mxu1 %v11607_v40  ;;  %v11695_v16 = vld [vmem:[%s15411_s1 + $0x1bac] ss:$16 sps:$4 sm:$0xff]   ;;  %v11690_v40 = vld [vmem:[%s15411_s1 + $0x1ba0] ss:$16 sps:$4 sm:$0xff]  }
 0x346   : > { %7797 = vmatprep.subr.bf16.mxu0 %v11613_v44  ;;  %7969 = vmatprep.subr.bf16.mxu1 %v11616_v19  ;;  %v11701_v44 = vld [vmem:[%s15411_s1 + $0x1bcc] ss:$16 sps:$4 sm:$0xff]   ;;  %v11696_v19 = vld [vmem:[%s15411_s1 + $0x1bc0] ss:$16 sps:$4 sm:$0xff]  }
 0x348   : > { %7787 = vmatmul.mubr.bf16.vlgmr.msra.gmra.mrb[0].mxu0 %v6444_v47  ;;  %7959 = vmatmul.mubr.bf16.vlgmr.msra.gmra.mrb[0].mxu1 %v6444_v47  ;;  %v14845_v47 = vld [vmem:[%s12110_s30 + $0x90] sm:$0xff] }
 0x349   : > { %7798 = vmatpush1.bf16.msra.mxu0 %v11611_v33  ;;  %7970 = vmatpush1.bf16.msra.mxu1 %v11614_v34  ;;  %v9952_v33 = vcombine.low %v14637_v15, %v14637_v15  ;;  %v14842_v34 = vld [vmem:[%s12110_s30 + $0x70] sm:$0xcc] }
 0x34a   : > { %7799 = vmatprep.subr.bf16.mxu0 %v11620_v48  ;;  %7971 = vmatprep.subr.bf16.mxu1 %v11623_v49  ;;  %v14848_v48 = vld [vmem:[%s12110_s30 + $0xb0] sm:$0x33]  ;;  %v9947_v37 = vcombine.high %v14842_v34, %v14845_v47 }
 0x34b   : > { %7829 = vmatprep.mubr.bf16.mxu0 %v6453_v50  ;;  %8001 = vmatprep.mubr.bf16.mxu1 %v6453_v50  ;;  %v11704_v49 = vld [vmem:[%s15411_s1 + $0x1be4] ss:$16 sps:$4 sm:$0xff]   ;;  %v11707_v50 = vld [vmem:[%s15411_s1 + $0x1bec] ss:$16 sps:$4 sm:$0xff]   ;;  %v9955_v22 = vcombine.high %v14848_v48, %v14848_v48  ;;  %v11702_v15 = vld [vmem:[%s15411_s1 + $0x1be0] ss:$16 sps:$4 sm:$0xff]  }
 0x34d   : > { %7800 = vmatpush1.bf16.msra.mxu0 %v11618_v51  ;;  %7972 = vmatpush1.bf16.msra.mxu1 %v11621_v52  ;;  %v11705_v51 = vld [vmem:[%s15411_s1 + $0x1be8] ss:$16 sps:$4 sm:$0xff]   ;;  %v6448_v52 = vrot.slane %v9944_v32, 2 }
 0x34e   : > { %7801 = vmatprep.subr.bf16.mxu0 %v11626_v53  ;;  %7973 = vmatprep.subr.bf16.mxu1 %v11629_v54  ;;  %v6449_v53 = vrot.slane %v9952_v33, 2  ;;  %v11711_v54 = vld [vmem:[%s15411_s1 + $0x1c04] ss:$16 sps:$4 sm:$0xff]   ;;  %v11779_v32 = vld [vmem:[%s15411_s1 + $0x1d68] ss:$16 sps:$4 sm:$0xff]  }
 0x34f   : > { %v11784_v33 = vld [vmem:[%s15411_s1 + $0x1d84] ss:$16 sps:$4 sm:$0xff]  }
 0x351   : > { %7802 = vmatpush1.bf16.msra.mxu0 %v11624_v58  ;;  %7974 = vmatpush1.bf16.msra.mxu1 %v11627_v59  ;;  %v11714_v58 = vld [vmem:[%s15411_s1 + $0x1c0c] ss:$16 sps:$4 sm:$0xff]   ;;  %v6457_v59 = vrot.slane %v9947_v37, 2  ;;  %v11785_v37 = vld [vmem:[%s15411_s1 + $0x1d88] ss:$16 sps:$4 sm:$0xff]  }
 0x352   : > { %7803 = vmatprep.subr.bf16.mxu0 %v11632_v42  ;;  %7975 = vmatprep.subr.bf16.mxu1 %v11635_v45  ;;  %v6458_v42 = vrot.slane %v9955_v22, 2  ;;  %v11709_v45 = vld [vmem:[%s15411_s1 + $0x1c00] ss:$16 sps:$4 sm:$0xff]   ;;  %v11790_v22 = vld [vmem:[%s15411_s1 + $0x1da4] ss:$16 sps:$4 sm:$0xff]  }
 0x355   : > { %7804 = vmatpush1.bf16.msra.mxu0 %v11630_v46  ;;  %7976 = vmatpush1.bf16.msra.mxu1 %v11633_v60  ;;  %v11712_v46 = vld [vmem:[%s15411_s1 + $0x1c08] ss:$16 sps:$4 sm:$0xff]   ;;  %v6450_v60 = vsel %vm4456_vm0, %v6448_v52, %v6449_v53  ;;  %v11796_v53 = vld [vmem:[%s15411_s1 + $0x1dc4] ss:$16 sps:$4 sm:$0xff]  }
 0x356   : > { %7805 = vmatprep.subr.bf16.mxu0 %v11638_v61  ;;  %7977 = vmatprep.subr.bf16.mxu1 %v11641_v62  ;;  %v11718_v61 = vld [vmem:[%s15411_s1 + $0x1c24] ss:$16 sps:$4 sm:$0xff]   ;;  %v11721_v62 = vld [vmem:[%s15411_s1 + $0x1c2c] ss:$16 sps:$4 sm:$0xff]   ;;  %v11791_v52 = vld [vmem:[%s15411_s1 + $0x1da8] ss:$16 sps:$4 sm:$0xff]  }
 0x359   : > { %7806 = vmatpush1.bf16.msra.mxu0 %v11636_v63  ;;  %7978 = vmatpush1.bf16.msra.mxu1 %v11639_v0  ;;  %v6459_v63 = vsel %vm4456_vm0, %v6457_v59, %v6458_v42  ;;  %v11716_v0 = vld [vmem:[%s15411_s1 + $0x1c20] ss:$16 sps:$4 sm:$0xff]   ;;  %v11797_v59 = vld [vmem:[%s15411_s1 + $0x1dc8] ss:$16 sps:$4 sm:$0xff]   ;;  %v9946_v42 = vcombine.low %v14842_v34, %v14845_v47 }
 0x35a   : > { %7807 = vmatprep.subr.bf16.mxu0 %v11644_v1  ;;  %7979 = vmatprep.subr.bf16.mxu1 %v11647_v2  ;;  %v11719_v1 = vld [vmem:[%s15411_s1 + $0x1c28] ss:$16 sps:$4 sm:$0xff]   ;;  %v11724_v2 = vld [vmem:[%s15411_s1 + $0x1c44] ss:$16 sps:$4 sm:$0xff]  }
 0x35d   : > { %7808 = vmatpush1.bf16.msra.mxu0 %v11642_v3  ;;  %7980 = vmatpush1.bf16.msra.mxu1 %v11645_v7  ;;  %v11727_v3 = vld [vmem:[%s15411_s1 + $0x1c4c] ss:$16 sps:$4 sm:$0xff]   ;;  %v11722_v7 = vld [vmem:[%s15411_s1 + $0x1c40] ss:$16 sps:$4 sm:$0xff]  }
 0x35e   : > { %7809 = vmatprep.subr.bf16.mxu0 %v11650_v8  ;;  %7981 = vmatprep.subr.bf16.mxu1 %v11653_v55  ;;  %v11725_v8 = vld [vmem:[%s15411_s1 + $0x1c48] ss:$16 sps:$4 sm:$0xff]   ;;  %v11730_v55 = vld [vmem:[%s15411_s1 + $0x1c64] ss:$16 sps:$4 sm:$0xff]  }
 0x361   : > { %7810 = vmatpush1.bf16.msra.mxu0 %v11648_v56  ;;  %7982 = vmatpush1.bf16.msra.mxu1 %v11651_v57  ;;  %v11733_v56 = vld [vmem:[%s15411_s1 + $0x1c6c] ss:$16 sps:$4 sm:$0xff]   ;;  %v11728_v57 = vld [vmem:[%s15411_s1 + $0x1c60] ss:$16 sps:$4 sm:$0xff]  }
 0x362   : > { %7811 = vmatprep.subr.bf16.mxu0 %v11656_v9  ;;  %7983 = vmatprep.subr.bf16.mxu1 %v11659_v10  ;;  %v11731_v9 = vld [vmem:[%s15411_s1 + $0x1c68] ss:$16 sps:$4 sm:$0xff]   ;;  %v11736_v10 = vld [vmem:[%s15411_s1 + $0x1c84] ss:$16 sps:$4 sm:$0xff]  }
 0x365   : > { %7812 = vmatpush1.bf16.msra.mxu0 %v11654_v11  ;;  %7984 = vmatpush1.bf16.msra.mxu1 %v11657_v12  ;;  %v11739_v11 = vld [vmem:[%s15411_s1 + $0x1c8c] ss:$16 sps:$4 sm:$0xff]   ;;  %v11734_v12 = vld [vmem:[%s15411_s1 + $0x1c80] ss:$16 sps:$4 sm:$0xff]  }
 0x366   : > { %7813 = vmatprep.subr.bf16.mxu0 %v11662_v13  ;;  %7985 = vmatprep.subr.bf16.mxu1 %v11665_v14  ;;  %v11737_v13 = vld [vmem:[%s15411_s1 + $0x1c88] ss:$16 sps:$4 sm:$0xff]   ;;  %v11742_v14 = vld [vmem:[%s15411_s1 + $0x1ca4] ss:$16 sps:$4 sm:$0xff]  }
 0x369   : > { %7814 = vmatpush1.bf16.msra.mxu0 %v11660_v17  ;;  %7986 = vmatpush1.bf16.msra.mxu1 %v11663_v18  ;;  %v11745_v17 = vld [vmem:[%s15411_s1 + $0x1cac] ss:$16 sps:$4 sm:$0xff]   ;;  %v11740_v18 = vld [vmem:[%s15411_s1 + $0x1ca0] ss:$16 sps:$4 sm:$0xff]  }
 0x36a   : > { %7815 = vmatprep.subr.bf16.mxu0 %v11668_v24  ;;  %7987 = vmatprep.subr.bf16.mxu1 %v11671_v25  ;;  %v11743_v24 = vld [vmem:[%s15411_s1 + $0x1ca8] ss:$16 sps:$4 sm:$0xff]   ;;  %v11748_v25 = vld [vmem:[%s15411_s1 + $0x1cc4] ss:$16 sps:$4 sm:$0xff]  }
 0x36d   : > { %7816 = vmatpush1.bf16.msra.mxu0 %v11666_v4  ;;  %7988 = vmatpush1.bf16.msra.mxu1 %v11669_v5  ;;  %v11751_v4 = vld [vmem:[%s15411_s1 + $0x1ccc] ss:$16 sps:$4 sm:$0xff]   ;;  %v11746_v5 = vld [vmem:[%s15411_s1 + $0x1cc0] ss:$16 sps:$4 sm:$0xff]  }
 0x36e   : > { %7817 = vmatprep.subr.bf16.mxu0 %v11674_v6  ;;  %7989 = vmatprep.subr.bf16.mxu1 %v11677_v26  ;;  %v11749_v6 = vld [vmem:[%s15411_s1 + $0x1cc8] ss:$16 sps:$4 sm:$0xff]   ;;  %v11754_v26 = vld [vmem:[%s15411_s1 + $0x1ce4] ss:$16 sps:$4 sm:$0xff]  }
 0x371   : > { %7818 = vmatpush1.bf16.msra.mxu0 %v11672_v27  ;;  %7990 = vmatpush1.bf16.msra.mxu1 %v11675_v28  ;;  %v11757_v27 = vld [vmem:[%s15411_s1 + $0x1cec] ss:$16 sps:$4 sm:$0xff]   ;;  %v11752_v28 = vld [vmem:[%s15411_s1 + $0x1ce0] ss:$16 sps:$4 sm:$0xff]  }
 0x372   : > { %7819 = vmatprep.subr.bf16.mxu0 %v11680_v29  ;;  %7991 = vmatprep.subr.bf16.mxu1 %v11683_v30  ;;  %v11755_v29 = vld [vmem:[%s15411_s1 + $0x1ce8] ss:$16 sps:$4 sm:$0xff]   ;;  %v11760_v30 = vld [vmem:[%s15411_s1 + $0x1d04] ss:$16 sps:$4 sm:$0xff]  }
 0x375   : > { %7820 = vmatpush1.bf16.msra.mxu0 %v11678_v31  ;;  %7992 = vmatpush1.bf16.msra.mxu1 %v11681_v35  ;;  %v11763_v31 = vld [vmem:[%s15411_s1 + $0x1d0c] ss:$16 sps:$4 sm:$0xff]   ;;  %v11758_v35 = vld [vmem:[%s15411_s1 + $0x1d00] ss:$16 sps:$4 sm:$0xff]  }
 0x376   : > { %7821 = vmatprep.subr.bf16.mxu0 %v11686_v36  ;;  %7993 = vmatprep.subr.bf16.mxu1 %v11689_v38  ;;  %v11761_v36 = vld [vmem:[%s15411_s1 + $0x1d08] ss:$16 sps:$4 sm:$0xff]   ;;  %v11766_v38 = vld [vmem:[%s15411_s1 + $0x1d24] ss:$16 sps:$4 sm:$0xff]  }
 0x379   : > { %7822 = vmatpush1.bf16.msra.mxu0 %v11684_v39  ;;  %7994 = vmatpush1.bf16.msra.mxu1 %v11687_v21  ;;  %v11769_v39 = vld [vmem:[%s15411_s1 + $0x1d2c] ss:$16 sps:$4 sm:$0xff]   ;;  %v11764_v21 = vld [vmem:[%s15411_s1 + $0x1d20] ss:$16 sps:$4 sm:$0xff]  }
 0x37a   : > { %7823 = vmatprep.subr.bf16.mxu0 %v11692_v23  ;;  %7995 = vmatprep.subr.bf16.mxu1 %v11695_v16  ;;  %v11767_v23 = vld [vmem:[%s15411_s1 + $0x1d28] ss:$16 sps:$4 sm:$0xff]   ;;  %v11772_v16 = vld [vmem:[%s15411_s1 + $0x1d44] ss:$16 sps:$4 sm:$0xff]  }
 0x37d   : > { %7824 = vmatpush1.bf16.msra.mxu0 %v11690_v40  ;;  %7996 = vmatpush1.bf16.msra.mxu1 %v11693_v41  ;;  %v11775_v40 = vld [vmem:[%s15411_s1 + $0x1d4c] ss:$16 sps:$4 sm:$0xff]   ;;  %v11770_v41 = vld [vmem:[%s15411_s1 + $0x1d40] ss:$16 sps:$4 sm:$0xff]  }
 0x37e   : > { %7825 = vmatprep.subr.bf16.mxu0 %v11698_v43  ;;  %7997 = vmatprep.subr.bf16.mxu1 %v11701_v44  ;;  %v11773_v43 = vld [vmem:[%s15411_s1 + $0x1d48] ss:$16 sps:$4 sm:$0xff]   ;;  %v11778_v44 = vld [vmem:[%s15411_s1 + $0x1d64] ss:$16 sps:$4 sm:$0xff]  }
 0x381   : > { %7826 = vmatpush1.bf16.msra.mxu0 %v11696_v19  ;;  %7998 = vmatpush1.bf16.msra.mxu1 %v11699_v20  ;;  %v11781_v19 = vld [vmem:[%s15411_s1 + $0x1d6c] ss:$16 sps:$4 sm:$0xff]   ;;  %v11776_v20 = vld [vmem:[%s15411_s1 + $0x1d60] ss:$16 sps:$4 sm:$0xff]  }
 0x382   : > { %7827 = vmatprep.subr.bf16.mxu0 %v11704_v49  ;;  %7999 = vmatprep.subr.bf16.mxu1 %v11707_v50  ;;  %v11787_v49 = vld [vmem:[%s15411_s1 + $0x1d8c] ss:$16 sps:$4 sm:$0xff]   ;;  %v11782_v50 = vld [vmem:[%s15411_s1 + $0x1d80] ss:$16 sps:$4 sm:$0xff]  }
 0x385   : > { %7828 = vmatpush1.bf16.msra.mxu0 %v11702_v15  ;;  %8000 = vmatpush1.bf16.msra.mxu1 %v11705_v51  ;;  %v11793_v15 = vld [vmem:[%s15411_s1 + $0x1dac] ss:$16 sps:$4 sm:$0xff]   ;;  %v11788_v51 = vld [vmem:[%s15411_s1 + $0x1da0] ss:$16 sps:$4 sm:$0xff]  }
 0x386   : > { %7840 = vmatprep.subr.bf16.mxu0 %v11711_v54  ;;  %8012 = vmatprep.subr.bf16.mxu1 %v11714_v58  ;;  %v11799_v54 = vld [vmem:[%s15411_s1 + $0x1dcc] ss:$16 sps:$4 sm:$0xff]   ;;  %v11794_v58 = vld [vmem:[%s15411_s1 + $0x1dc0] ss:$16 sps:$4 sm:$0xff]  }
 0x388   : > { %7830 = vmatmul.mubr.bf16.vlgmr.msra.gmra.mrb[0].mxu0 %v6450_v60  ;;  %8002 = vmatmul.mubr.bf16.vlgmr.msra.gmra.mrb[0].mxu1 %v6450_v60  ;;  %v15056_v60 = vld [vmem:[%s12110_s30 + $0x98] sm:$0xff] }
 0x389   : > { %7841 = vmatpush1.bf16.msra.mxu0 %v11709_v45  ;;  %8013 = vmatpush1.bf16.msra.mxu1 %v11712_v46  ;;  %v9954_v45 = vcombine.low %v14848_v48, %v14848_v48  ;;  %v15053_v46 = vld [vmem:[%s12110_s30 + $0x78] sm:$0xcc]  ;;  %v11800_v48 = vld [vmem:[%s15411_s1 + $0x1de0] ss:$16 sps:$4 sm:$0xff]  }
 0x38a   : > { %7842 = vmatprep.subr.bf16.mxu0 %v11718_v61  ;;  %8014 = vmatprep.subr.bf16.mxu1 %v11721_v62  ;;  %v15059_v61 = vld [vmem:[%s12110_s30 + $0xb8] sm:$0x33]  ;;  %v11802_v62 = vld [vmem:[%s15411_s1 + $0x1de4] ss:$16 sps:$4 sm:$0xff]   ;;  %v9949_v34 = vcombine.high %v15053_v46, %v15056_v60 }
 0x38b   : > { %7872 = vmatprep.mubr.bf16.mxu0 %v6459_v63  ;;  %8044 = vmatprep.mubr.bf16.mxu1 %v6459_v63  ;;  %v11805_v63 = vld [vmem:[%s15411_s1 + $0x1dec] ss:$16 sps:$4 sm:$0xff]   ;;  %v9957_v47 = vcombine.high %v15059_v61, %v15059_v61 }
 0x38d   : > { %7843 = vmatpush1.bf16.msra.mxu0 %v11716_v0  ;;  %8015 = vmatpush1.bf16.msra.mxu1 %v11719_v1  ;;  %v11803_v0 = vld [vmem:[%s15411_s1 + $0x1de8] ss:$16 sps:$4 sm:$0xff]   ;;  %v6454_v1 = vrot.slane %v9946_v42, 2 }
 0x38e   : > { %7844 = vmatprep.subr.bf16.mxu0 %v11724_v2  ;;  %8016 = vmatprep.subr.bf16.mxu1 %v11727_v3  ;;  %v6455_v2 = vrot.slane %v9954_v45, 2  ;;  %v11809_v3 = vld [vmem:[%s15411_s1 + $0x1e04] ss:$16 sps:$4 sm:$0xff]   ;;  %v11877_v42 = vld [vmem:[%s15411_s1 + $0x1f68] ss:$16 sps:$4 sm:$0xff]  }
 0x38f   : > { %v11882_v45 = vld [vmem:[%s15411_s1 + $0x1f84] ss:$16 sps:$4 sm:$0xff]  }
 0x391   : > { %7845 = vmatpush1.bf16.msra.mxu0 %v11722_v7  ;;  %8017 = vmatpush1.bf16.msra.mxu1 %v11725_v8  ;;  %v11812_v7 = vld [vmem:[%s15411_s1 + $0x1e0c] ss:$16 sps:$4 sm:$0xff]   ;;  %v6463_v8 = vrot.slane %v9949_v34, 2  ;;  %v11883_v34 = vld [vmem:[%s15411_s1 + $0x1f88] ss:$16 sps:$4 sm:$0xff]  }
 0x392   : > { %7846 = vmatprep.subr.bf16.mxu0 %v11730_v55  ;;  %8018 = vmatprep.subr.bf16.mxu1 %v11733_v56  ;;  %v6464_v55 = vrot.slane %v9957_v47, 2  ;;  %v11807_v56 = vld [vmem:[%s15411_s1 + $0x1e00] ss:$16 sps:$4 sm:$0xff]   ;;  %v11888_v47 = vld [vmem:[%s15411_s1 + $0x1fa4] ss:$16 sps:$4 sm:$0xff]  }
 0x395   : > { %7847 = vmatpush1.bf16.msra.mxu0 %v11728_v57  ;;  %8019 = vmatpush1.bf16.msra.mxu1 %v11731_v9  ;;  %v11810_v57 = vld [vmem:[%s15411_s1 + $0x1e08] ss:$16 sps:$4 sm:$0xff]   ;;  %v6456_v9 = vsel %vm4456_vm0, %v6454_v1, %v6455_v2  ;;  %v11894_v2 = vld [vmem:[%s15411_s1 + $0x1fc4] ss:$16 sps:$4 sm:$0xff]  }
 0x396   : > { %7848 = vmatprep.subr.bf16.mxu0 %v11736_v10  ;;  %8020 = vmatprep.subr.bf16.mxu1 %v11739_v11  ;;  %v11816_v10 = vld [vmem:[%s15411_s1 + $0x1e24] ss:$16 sps:$4 sm:$0xff]   ;;  %v11819_v11 = vld [vmem:[%s15411_s1 + $0x1e2c] ss:$16 sps:$4 sm:$0xff]   ;;  %v11889_v1 = vld [vmem:[%s15411_s1 + $0x1fa8] ss:$16 sps:$4 sm:$0xff]  }
 0x399   : > { %7849 = vmatpush1.bf16.msra.mxu0 %v11734_v12  ;;  %8021 = vmatpush1.bf16.msra.mxu1 %v11737_v13  ;;  %v6465_v12 = vsel %vm4456_vm0, %v6463_v8, %v6464_v55  ;;  %v11814_v13 = vld [vmem:[%s15411_s1 + $0x1e20] ss:$16 sps:$4 sm:$0xff]   ;;  %v11895_v8 = vld [vmem:[%s15411_s1 + $0x1fc8] ss:$16 sps:$4 sm:$0xff]   ;;  %v9948_v55 = vcombine.low %v15053_v46, %v15056_v60 }
 0x39a   : > { %7850 = vmatprep.subr.bf16.mxu0 %v11742_v14  ;;  %8022 = vmatprep.subr.bf16.mxu1 %v11745_v17  ;;  %v11817_v14 = vld [vmem:[%s15411_s1 + $0x1e28] ss:$16 sps:$4 sm:$0xff]   ;;  %v11822_v17 = vld [vmem:[%s15411_s1 + $0x1e44] ss:$16 sps:$4 sm:$0xff]  }
 0x39b   : > { %v11901_v46 = vld [vmem:[%s15411_s1 + $0x1fe8] ss:$16 sps:$4 sm:$0xff]   ;;  %v6460_v60 = vrot.slane %v9948_v55, 2 }
 0x39d   : > { %7851 = vmatpush1.bf16.msra.mxu0 %v11740_v18  ;;  %8023 = vmatpush1.bf16.msra.mxu1 %v11743_v24  ;;  %v11825_v18 = vld [vmem:[%s15411_s1 + $0x1e4c] ss:$16 sps:$4 sm:$0xff]   ;;  %v11820_v24 = vld [vmem:[%s15411_s1 + $0x1e40] ss:$16 sps:$4 sm:$0xff]  }
 0x39e   : > { %7852 = vmatprep.subr.bf16.mxu0 %v11748_v25  ;;  %8024 = vmatprep.subr.bf16.mxu1 %v11751_v4  ;;  %v11823_v25 = vld [vmem:[%s15411_s1 + $0x1e48] ss:$16 sps:$4 sm:$0xff]   ;;  %v11828_v4 = vld [vmem:[%s15411_s1 + $0x1e64] ss:$16 sps:$4 sm:$0xff]  }
 0x3a1   : > { %7853 = vmatpush1.bf16.msra.mxu0 %v11746_v5  ;;  %8025 = vmatpush1.bf16.msra.mxu1 %v11749_v6  ;;  %v11831_v5 = vld [vmem:[%s15411_s1 + $0x1e6c] ss:$16 sps:$4 sm:$0xff]   ;;  %v11826_v6 = vld [vmem:[%s15411_s1 + $0x1e60] ss:$16 sps:$4 sm:$0xff]  }
 0x3a2   : > { %7854 = vmatprep.subr.bf16.mxu0 %v11754_v26  ;;  %8026 = vmatprep.subr.bf16.mxu1 %v11757_v27  ;;  %v11829_v26 = vld [vmem:[%s15411_s1 + $0x1e68] ss:$16 sps:$4 sm:$0xff]   ;;  %v11834_v27 = vld [vmem:[%s15411_s1 + $0x1e84] ss:$16 sps:$4 sm:$0xff]  }
 0x3a5   : > { %7855 = vmatpush1.bf16.msra.mxu0 %v11752_v28  ;;  %8027 = vmatpush1.bf16.msra.mxu1 %v11755_v29  ;;  %v11837_v28 = vld [vmem:[%s15411_s1 + $0x1e8c] ss:$16 sps:$4 sm:$0xff]   ;;  %v11832_v29 = vld [vmem:[%s15411_s1 + $0x1e80] ss:$16 sps:$4 sm:$0xff]  }
 0x3a6   : > { %7856 = vmatprep.subr.bf16.mxu0 %v11760_v30  ;;  %8028 = vmatprep.subr.bf16.mxu1 %v11763_v31  ;;  %v11835_v30 = vld [vmem:[%s15411_s1 + $0x1e88] ss:$16 sps:$4 sm:$0xff]   ;;  %v11840_v31 = vld [vmem:[%s15411_s1 + $0x1ea4] ss:$16 sps:$4 sm:$0xff]  }
 0x3a9   : > { %7857 = vmatpush1.bf16.msra.mxu0 %v11758_v35  ;;  %8029 = vmatpush1.bf16.msra.mxu1 %v11761_v36  ;;  %v11843_v35 = vld [vmem:[%s15411_s1 + $0x1eac] ss:$16 sps:$4 sm:$0xff]   ;;  %v11838_v36 = vld [vmem:[%s15411_s1 + $0x1ea0] ss:$16 sps:$4 sm:$0xff]  }
 0x3aa   : > { %7858 = vmatprep.subr.bf16.mxu0 %v11766_v38  ;;  %8030 = vmatprep.subr.bf16.mxu1 %v11769_v39  ;;  %v11841_v38 = vld [vmem:[%s15411_s1 + $0x1ea8] ss:$16 sps:$4 sm:$0xff]   ;;  %v11846_v39 = vld [vmem:[%s15411_s1 + $0x1ec4] ss:$16 sps:$4 sm:$0xff]  }
 0x3ad   : > { %7859 = vmatpush1.bf16.msra.mxu0 %v11764_v21  ;;  %8031 = vmatpush1.bf16.msra.mxu1 %v11767_v23  ;;  %v11849_v21 = vld [vmem:[%s15411_s1 + $0x1ecc] ss:$16 sps:$4 sm:$0xff]   ;;  %v11844_v23 = vld [vmem:[%s15411_s1 + $0x1ec0] ss:$16 sps:$4 sm:$0xff]  }
 0x3ae   : > { %7860 = vmatprep.subr.bf16.mxu0 %v11772_v16  ;;  %8032 = vmatprep.subr.bf16.mxu1 %v11775_v40  ;;  %v11847_v16 = vld [vmem:[%s15411_s1 + $0x1ec8] ss:$16 sps:$4 sm:$0xff]   ;;  %v11852_v40 = vld [vmem:[%s15411_s1 + $0x1ee4] ss:$16 sps:$4 sm:$0xff]  }
 0x3b1   : > { %7861 = vmatpush1.bf16.msra.mxu0 %v11770_v41  ;;  %8033 = vmatpush1.bf16.msra.mxu1 %v11773_v43  ;;  %v11855_v41 = vld [vmem:[%s15411_s1 + $0x1eec] ss:$16 sps:$4 sm:$0xff]   ;;  %v11850_v43 = vld [vmem:[%s15411_s1 + $0x1ee0] ss:$16 sps:$4 sm:$0xff]  }
 0x3b2   : > { %7862 = vmatprep.subr.bf16.mxu0 %v11778_v44  ;;  %8034 = vmatprep.subr.bf16.mxu1 %v11781_v19  ;;  %v11853_v44 = vld [vmem:[%s15411_s1 + $0x1ee8] ss:$16 sps:$4 sm:$0xff]   ;;  %v11858_v19 = vld [vmem:[%s15411_s1 + $0x1f04] ss:$16 sps:$4 sm:$0xff]  }
 0x3b5   : > { %7863 = vmatpush1.bf16.msra.mxu0 %v11776_v20  ;;  %8035 = vmatpush1.bf16.msra.mxu1 %v11779_v32  ;;  %v11861_v20 = vld [vmem:[%s15411_s1 + $0x1f0c] ss:$16 sps:$4 sm:$0xff]   ;;  %v11856_v32 = vld [vmem:[%s15411_s1 + $0x1f00] ss:$16 sps:$4 sm:$0xff]  }
 0x3b6   : > { %7864 = vmatprep.subr.bf16.mxu0 %v11784_v33  ;;  %8036 = vmatprep.subr.bf16.mxu1 %v11787_v49  ;;  %v11859_v33 = vld [vmem:[%s15411_s1 + $0x1f08] ss:$16 sps:$4 sm:$0xff]   ;;  %v11864_v49 = vld [vmem:[%s15411_s1 + $0x1f24] ss:$16 sps:$4 sm:$0xff]  }
 0x3b9   : > { %7865 = vmatpush1.bf16.msra.mxu0 %v11782_v50  ;;  %8037 = vmatpush1.bf16.msra.mxu1 %v11785_v37  ;;  %v11867_v50 = vld [vmem:[%s15411_s1 + $0x1f2c] ss:$16 sps:$4 sm:$0xff]   ;;  %v11862_v37 = vld [vmem:[%s15411_s1 + $0x1f20] ss:$16 sps:$4 sm:$0xff]  }
 0x3ba   : > { %7866 = vmatprep.subr.bf16.mxu0 %v11790_v22  ;;  %8038 = vmatprep.subr.bf16.mxu1 %v11793_v15  ;;  %v11865_v22 = vld [vmem:[%s15411_s1 + $0x1f28] ss:$16 sps:$4 sm:$0xff]   ;;  %v11870_v15 = vld [vmem:[%s15411_s1 + $0x1f44] ss:$16 sps:$4 sm:$0xff]  }
 0x3bd   : > { %7867 = vmatpush1.bf16.msra.mxu0 %v11788_v51  ;;  %8039 = vmatpush1.bf16.msra.mxu1 %v11791_v52  ;;  %v11873_v51 = vld [vmem:[%s15411_s1 + $0x1f4c] ss:$16 sps:$4 sm:$0xff]   ;;  %v11868_v52 = vld [vmem:[%s15411_s1 + $0x1f40] ss:$16 sps:$4 sm:$0xff]  }
 0x3be   : > { %7868 = vmatprep.subr.bf16.mxu0 %v11796_v53  ;;  %8040 = vmatprep.subr.bf16.mxu1 %v11799_v54  ;;  %v11871_v53 = vld [vmem:[%s15411_s1 + $0x1f48] ss:$16 sps:$4 sm:$0xff]   ;;  %v11876_v54 = vld [vmem:[%s15411_s1 + $0x1f64] ss:$16 sps:$4 sm:$0xff]  }
 0x3c1   : > { %7869 = vmatpush1.bf16.msra.mxu0 %v11794_v58  ;;  %8041 = vmatpush1.bf16.msra.mxu1 %v11797_v59  ;;  %v11879_v58 = vld [vmem:[%s15411_s1 + $0x1f6c] ss:$16 sps:$4 sm:$0xff]   ;;  %v11874_v59 = vld [vmem:[%s15411_s1 + $0x1f60] ss:$16 sps:$4 sm:$0xff]  }
 0x3c2   : > { %7870 = vmatprep.subr.bf16.mxu0 %v11802_v62  ;;  %8042 = vmatprep.subr.bf16.mxu1 %v11805_v63  ;;  %v11885_v62 = vld [vmem:[%s15411_s1 + $0x1f8c] ss:$16 sps:$4 sm:$0xff]   ;;  %v11880_v63 = vld [vmem:[%s15411_s1 + $0x1f80] ss:$16 sps:$4 sm:$0xff]  }
 0x3c5   : > { %7871 = vmatpush1.bf16.msra.mxu0 %v11800_v48  ;;  %8043 = vmatpush1.bf16.msra.mxu1 %v11803_v0  ;;  %v11891_v48 = vld [vmem:[%s15411_s1 + $0x1fac] ss:$16 sps:$4 sm:$0xff]   ;;  %v11886_v0 = vld [vmem:[%s15411_s1 + $0x1fa0] ss:$16 sps:$4 sm:$0xff]  }
 0x3c6   : > { %7883 = vmatprep.subr.bf16.mxu0 %v11809_v3  ;;  %8055 = vmatprep.subr.bf16.mxu1 %v11812_v7  ;;  %v11897_v3 = vld [vmem:[%s15411_s1 + $0x1fcc] ss:$16 sps:$4 sm:$0xff]   ;;  %v11892_v7 = vld [vmem:[%s15411_s1 + $0x1fc0] ss:$16 sps:$4 sm:$0xff]  }
 0x3c8   : > { %7873 = vmatmul.mubr.bf16.vlgmr.msra.gmra.mrb[0].mxu0 %v6456_v9  ;;  %8045 = vmatmul.mubr.bf16.vlgmr.msra.gmra.mrb[0].mxu1 %v6456_v9  ;;  %v11903_v9 = vld [vmem:[%s15411_s1 + $0x1fec] ss:$16 sps:$4 sm:$0xff]  }
 0x3c9   : > { %7884 = vmatpush1.bf16.msra.mxu0 %v11807_v56  ;;  %8056 = vmatpush1.bf16.msra.mxu1 %v11810_v57  ;;  %v9956_v56 = vcombine.low %v15059_v61, %v15059_v61  ;;  %v11900_v57 = vld [vmem:[%s15411_s1 + $0x1fe4] ss:$16 sps:$4 sm:$0xff]  }
 0x3ca   : > { %7885 = vmatprep.subr.bf16.mxu0 %v11816_v10  ;;  %8057 = vmatprep.subr.bf16.mxu1 %v11819_v11  ;;  %v11898_v10 = vld [vmem:[%s15411_s1 + $0x1fe0] ss:$16 sps:$4 sm:$0xff]  }
 0x3cb   : > { %7915 = vmatprep.mubr.bf16.mxu0 %v6465_v12  ;;  %8087 = vmatprep.mubr.bf16.mxu1 %v6465_v12  ;;  %v6461_v61 = vrot.slane %v9956_v56, 2  ;;  %v8108_v12 = vlaneseq }
 0x3cd   : > { %7886 = vmatpush1.bf16.msra.mxu0 %v11814_v13  ;;  %8058 = vmatpush1.bf16.msra.mxu1 %v11817_v14  ;;  %v6462_v11 = vsel %vm4456_vm0, %v6460_v60, %v6461_v61  ;;  %v15276_v13 = vshrl.u32 %v8108_v12, 7 }
 0x3ce   : > { %7887 = vmatprep.subr.bf16.mxu0 %v11822_v17  ;;  %8059 = vmatprep.subr.bf16.mxu1 %v11825_v18  ;;  %v8106_v17 = vld [vmem:[%s15412_s2] sm:$0xf] }
 0x3cf   : > { %v8110_v14 = vsub.s32 0, %v15276_v13  ;;  %v8118_v18 = vsub.s32 2, %v15276_v13 }
 0x3d1   : > { %7888 = vmatpush1.bf16.msra.mxu0 %v11820_v24  ;;  %8060 = vmatpush1.bf16.msra.mxu1 %v11823_v25  ;;  %v8114_v24 = vsub.s32 1, %v15276_v13  ;;  %v8122_v25 = vsub.s32 3, %v15276_v13 }
 0x3d2   : > { %7889 = vmatprep.subr.bf16.mxu0 %v11828_v4  ;;  %8061 = vmatprep.subr.bf16.mxu1 %v11831_v5  ;;  %v8111_v4 = vrot.slane %v8106_v17, %v8110_v14  ;;  %v8119_v5 = vrot.slane %v8106_v17, %v8118_v18 }
 0x3d5   : > { %7890 = vmatpush1.bf16.msra.mxu0 %v11826_v6  ;;  %8062 = vmatpush1.bf16.msra.mxu1 %v11829_v26  ;;  %v8115_v6 = vrot.slane %v8106_v17, %v8114_v24 }
 0x3d6   : > { %7891 = vmatprep.subr.bf16.mxu0 %v11834_v27  ;;  %8063 = vmatprep.subr.bf16.mxu1 %v11837_v28  ;;  %v8123_v28 = vrot.slane %v8106_v17, %v8122_v25 }
 0x3d9   : > { %7892 = vmatpush1.bf16.msra.mxu0 %v11832_v29  ;;  %8064 = vmatpush1.bf16.msra.mxu1 %v11835_v30 }
 0x3da   : > { %7893 = vmatprep.subr.bf16.mxu0 %v11840_v31  ;;  %8065 = vmatprep.subr.bf16.mxu1 %v11843_v35 }
 0x3dd   : > { %7894 = vmatpush1.bf16.msra.mxu0 %v11838_v36  ;;  %8066 = vmatpush1.bf16.msra.mxu1 %v11841_v38 }
 0x3de   : > { %7895 = vmatprep.subr.bf16.mxu0 %v11846_v39  ;;  %8067 = vmatprep.subr.bf16.mxu1 %v11849_v21 }
 0x3e1   : > { %7896 = vmatpush1.bf16.msra.mxu0 %v11844_v23  ;;  %8068 = vmatpush1.bf16.msra.mxu1 %v11847_v16 }
 0x3e2   : > { %7897 = vmatprep.subr.bf16.mxu0 %v11852_v40  ;;  %8069 = vmatprep.subr.bf16.mxu1 %v11855_v41 }
 0x3e5   : > { %7898 = vmatpush1.bf16.msra.mxu0 %v11850_v43  ;;  %8070 = vmatpush1.bf16.msra.mxu1 %v11853_v44 }
 0x3e6   : > { %7899 = vmatprep.subr.bf16.mxu0 %v11858_v19  ;;  %8071 = vmatprep.subr.bf16.mxu1 %v11861_v20 }
 0x3e9   : > { %7900 = vmatpush1.bf16.msra.mxu0 %v11856_v32  ;;  %8072 = vmatpush1.bf16.msra.mxu1 %v11859_v33 }
 0x3ea   : > { %7901 = vmatprep.subr.bf16.mxu0 %v11864_v49  ;;  %8073 = vmatprep.subr.bf16.mxu1 %v11867_v50 }
 0x3ed   : > { %7902 = vmatpush1.bf16.msra.mxu0 %v11862_v37  ;;  %8074 = vmatpush1.bf16.msra.mxu1 %v11865_v22 }
 0x3ee   : > { %7903 = vmatprep.subr.bf16.mxu0 %v11870_v15  ;;  %8075 = vmatprep.subr.bf16.mxu1 %v11873_v51 }
 0x3f1   : > { %7904 = vmatpush1.bf16.msra.mxu0 %v11868_v52  ;;  %8076 = vmatpush1.bf16.msra.mxu1 %v11871_v53 }
 0x3f2   : > { %7905 = vmatprep.subr.bf16.mxu0 %v11876_v54  ;;  %8077 = vmatprep.subr.bf16.mxu1 %v11879_v58 }
 0x3f5   : > { %7906 = vmatpush1.bf16.msra.mxu0 %v11874_v59  ;;  %8078 = vmatpush1.bf16.msra.mxu1 %v11877_v42 }
 0x3f6   : > { %7907 = vmatprep.subr.bf16.mxu0 %v11882_v45  ;;  %8079 = vmatprep.subr.bf16.mxu1 %v11885_v62 }
 0x3f9   : > { %7908 = vmatpush1.bf16.msra.mxu0 %v11880_v63  ;;  %8080 = vmatpush1.bf16.msra.mxu1 %v11883_v34 }
 0x3fa   : > { %7909 = vmatprep.subr.bf16.mxu0 %v11888_v47  ;;  %8081 = vmatprep.subr.bf16.mxu1 %v11891_v48 }
 0x3fd   : > { %7910 = vmatpush1.bf16.msra.mxu0 %v11886_v0  ;;  %8082 = vmatpush1.bf16.msra.mxu1 %v11889_v1 }
 0x3fe   : > { %7911 = vmatprep.subr.bf16.mxu0 %v11894_v2  ;;  %8083 = vmatprep.subr.bf16.mxu1 %v11897_v3 }
 0x401   : > { %7912 = vmatpush1.bf16.msra.mxu0 %v11892_v7  ;;  %8084 = vmatpush1.bf16.msra.mxu1 %v11895_v8 }
 0x402   : > { %7913 = vmatprep.subr.bf16.mxu0 %v11900_v57  ;;  %8085 = vmatprep.subr.bf16.mxu1 %v11903_v9 }
 0x405   : > { %7914 = vmatpush1.bf16.msra.mxu0 %v11898_v10  ;;  %8086 = vmatpush1.bf16.msra.mxu1 %v11901_v46 }
 0x408   : > { %7916 = vmatmul.mubr.bf16.vlgmr.msra.gmra.mrb[0].mxu0 %v6462_v11  ;;  %8088 = vmatmul.mubr.bf16.vlgmr.msra.gmra.mrb[0].mxu1 %v6462_v11 }
 0x4db   : > { %v7917_v26 = vpop.f32.mrb[0].mxu0  ;;  %v8089_v27 = vpop.f32.mrb[0].mxu1 }
 0x4dc   : > { %v15287_v29 = vadd.f32 %v8111_v4, %v7917_v26  ;;  %v7919_v30 = vpop.f32.mrb[1].mxu0  ;;  %v8091_v31 = vpop.f32.mrb[1].mxu1  ;;  %v15289_v35 = vadd.f32 %v8119_v5, %v8089_v27 }
 0x4dd   : > { %v15291_v36 = vadd.f32 %v8115_v6, %v7919_v30  ;;  %v7921_v38 = vpop.f32.mrb[2].mxu0  ;;  %v8093_v39 = vpop.f32.mrb[2].mxu1  ;;  %v15299_v43 = vadd.f32 %v8123_v28, %v8091_v31 }
 0x4de   : > { %v8153_v21 = vmul.f32 %v15287_v29, %v15287_v29  ;;  %v7923_v23 = vpop.f32.mrb[3].mxu0  ;;  %v8095_v16 = vpop.f32.mrb[3].mxu1  ;;  %v8155_v44 = vmul.f32 %v15289_v35, %v15289_v35  ;;  %v15304_v32 = vadd.f32 %v8111_v4, %v7921_v38  ;;  %v8134_v52 = vadd.f32 %v8119_v5, %v8093_v39 }
 0x4df   : > { %v8136_v40 = vadd.f32 %v15291_v36, %v15287_v29  ;;  %v8154_v41 = vmul.f32 %v15291_v36, %v15291_v36  ;;  %v8156_v49 = vmul.f32 %v15299_v43, %v15299_v43  ;;  %v15309_v37 = vadd.f32 %v8115_v6, %v7923_v23 }
 0x4e0   : > { %v8157_v51 = vmul.f32 %v15304_v32, %v15304_v32  ;;  %v8159_v59 = vmul.f32 %v8134_v52, %v8134_v52  ;;  %v15317_v42 = vadd.f32 %v8123_v28, %v8095_v16  ;;  %v8200_v28 = vld [vmem:[%s15413_s3] sm:$0xff] }
 0x4e1   : > { %v8161_v19 = vadd.f32 %v8154_v41, %v8153_v21  ;;  %v8137_v20 = vadd.f32 %v8136_v40, %v15289_v35  ;;  %v8158_v54 = vmul.f32 %v15309_v37, %v15309_v37  ;;  %v8204_v41 = vld [vmem:[%s15413_s3 + $0x20] sm:$0xff] }
 0x4e2   : > { %v8160_v47 = vmul.f32 %v15317_v42, %v15317_v42 }
 0x4e3   : > { %v8138_v33 = vadd.f32 %v8137_v20, %v15299_v43  ;;  %v8162_v50 = vadd.f32 %v8161_v19, %v8155_v44  ;;  %v8216_v20 = vld [vmem:[%s15414_s4] sm:$0xff] }
 0x4e5   : > { %v8163_v22 = vadd.f32 %v8162_v50, %v8156_v49  ;;  %v8139_v15 = vadd.f32 %v8138_v33, %v15304_v32  ;;  %v8218_v33 = vld [vmem:[%s15414_s4 + $0x10] sm:$0xff]  ;;  %v8205_v49 = vld [vmem:[%s15413_s3 + $0x28] sm:$0xff] }
 0x4e7   : > { %v8164_v53 = vadd.f32 %v8163_v22, %v8157_v51  ;;  %v8140_v58 = vadd.f32 %v8139_v15, %v15309_v37  ;;  %v8219_v51 = vld [vmem:[%s15414_s4 + $0x18] sm:$0xff] }
 0x4e9   : > { %v8141_v45 = vadd.f32 %v8140_v58, %v8134_v52  ;;  %v8165_v62 = vadd.f32 %v8164_v53, %v8158_v54  ;;  %v8206_v53 = vld [vmem:[%s15413_s3 + $0x30] sm:$0xff]  ;;  %v8220_v58 = vld [vmem:[%s15414_s4 + $0x20] sm:$0xff] }
 0x4eb   : > { %v8142_v63 = vadd.f32 %v8141_v45, %v15317_v42  ;;  %v8166_v34 = vadd.f32 %v8165_v62, %v8159_v59 }
 0x4ed   : > { %8143 = vadd.xlane.f32.xlu0 %v8142_v63  ;;  %v8167_v48 = vadd.f32 %v8166_v34, %v8160_v47 }
 0x4f1   : > { %8168 = vadd.xlane.f32.xlu0 %v8167_v48  ;;  %v8207_v48 = vld [vmem:[%s15413_s3 + $0x38] sm:$0xff] }
 0x57a   : > { %v8144_v0 = vpop.xlane.xlu0 %8143 }
 0x57b   : > { %v8145_v1 = vrot.slane %v8144_v0, 4 }
 0x57d   : > { %v8146_v2 = vadd.f32 %v8145_v1, %v8144_v0  ;;  %v8221_v0 = vld [vmem:[%s15414_s4 + $0x28] sm:$0xff]  ;;  %v8222_v1 = vld [vmem:[%s15414_s4 + $0x30] sm:$0xff] }
 0x57e   : > { %v8169_v3 = vpop.xlane.xlu0 %8168 }
 0x57f   : > { %v8147_v7 = vrot.slane %v8146_v2, 2  ;;  %v8170_v8 = vrot.slane %v8169_v3, 4 }
 0x581   : > { %v8171_v55 = vadd.f32 %v8170_v8, %v8169_v3  ;;  %v8148_v56 = vadd.f32 %v8147_v7, %v8146_v2 }
 0x583   : > { %v8172_v57 = vrot.slane %v8171_v55, 2  ;;  %v8149_v9 = vrot.slane %v8148_v56, 1 }
 0x585   : > { %v8173_v10 = vadd.f32 %v8172_v57, %v8171_v55  ;;  %v8150_v46 = vadd.f32 %v8149_v9, %v8148_v56  ;;  %v8256_v9 = vld [vmem:[%s15415_s5] sm:$0xff] }
 0x587   : > { %10337 = vpush %v8150_v46  ;;  %v8174_v60 = vrot.slane %v8173_v10, 1  ;;  %v8223_v46 = vld [vmem:[%s15414_s4 + $0x38] sm:$0xff] }
 0x589   : > { %v8175_v61 = vadd.f32 %v8174_v60, %v8173_v10  ;;  %v8257_v10 = vld [vmem:[%s15415_s5 + $0x8] sm:$0xff] }
 0x58b   : > { %10339 = vpush %v8175_v61 }
 0x5b8   : > { %s10338_s10 = spop %10337 }
 0x5b9   : > { %v8152_v11 = vstv %s10338_s10 }
 0x5ba   : > { %v8178_v12 = vmul.f32 0.00012207031, %v8152_v11 }
 0x5bc   : > { %s10340_s11 = spop %10339  ;;  %v8180_v24 = vmul.f32 %v8178_v12, %v8178_v12  ;;  %v8182_v5 = vsub.f32 %v15287_v29, %v8178_v12  ;;  %v8183_v6 = vsub.f32 %v15291_v36, %v8178_v12  ;;  %v8184_v26 = vsub.f32 %v15289_v35, %v8178_v12  ;;  %v8201_v29 = vld [vmem:[%s15413_s3 + $0x8] sm:$0xff]  ;;  %v8202_v35 = vld [vmem:[%s15413_s3 + $0x10] sm:$0xff]  ;;  %v8203_v36 = vld [vmem:[%s15413_s3 + $0x18] sm:$0xff] }
 0x5bd   : > { %v8177_v17 = vstv %s10340_s11  ;;  %v8185_v27 = vsub.f32 %v15299_v43, %v8178_v12  ;;  %v8186_v31 = vsub.f32 %v15304_v32, %v8178_v12  ;;  %v8187_v38 = vsub.f32 %v15309_v37, %v8178_v12  ;;  %v8217_v32 = vld [vmem:[%s15414_s4 + $0x8] sm:$0xff] }
 0x5be   : > { %v8179_v18 = vmul.f32 0.00012207031, %v8177_v17  ;;  %v8188_v39 = vsub.f32 %v8134_v52, %v8178_v12  ;;  %v8189_v52 = vsub.f32 %v15317_v42, %v8178_v12 }
 0x5c0   : > { %v8181_v25 = vsub.f32 %v8179_v18, %v8180_v24  ;;  %v8258_v18 = vld [vmem:[%s15415_s5 + $0x10] sm:$0xff] }
 0x5c2   : > { %v8190_v4 = vadd.f32 1e-05, %v8181_v25 }
 0x5c4   : > { %11906 = vrsqrt.f32 %v8190_v4 }
 0x5ce   : > { %v11907_v30 = vpop.eup %11906 }
 0x5cf   : > { %v8192_v21 = vmul.f32 %v11907_v30, %v8182_v5  ;;  %v8193_v23 = vmul.f32 %v11907_v30, %v8183_v6  ;;  %v8194_v16 = vmul.f32 %v11907_v30, %v8184_v26  ;;  %v8195_v40 = vmul.f32 %v11907_v30, %v8185_v27  ;;  %v8259_v26 = vld [vmem:[%s15415_s5 + $0x18] sm:$0xff] }
 0x5d0   : > { %v8196_v43 = vmul.f32 %v11907_v30, %v8186_v31  ;;  %v8197_v44 = vmul.f32 %v11907_v30, %v8187_v38  ;;  %v8198_v19 = vmul.f32 %v11907_v30, %v8188_v39  ;;  %v8199_v63 = vmul.f32 %v11907_v30, %v8189_v52  ;;  %v8260_v38 = vld [vmem:[%s15415_s5 + $0x20] sm:$0xff] }
 0x5d1   : > { %v8208_v50 = vmul.f32 %v8200_v28, %v8192_v21  ;;  %v8209_v37 = vmul.f32 %v8201_v29, %v8193_v23  ;;  %v8210_v22 = vmul.f32 %v8202_v35, %v8194_v16  ;;  %v8211_v15 = vmul.f32 %v8203_v36, %v8195_v40  ;;  %v8261_v21 = vld [vmem:[%s15415_s5 + $0x28] sm:$0xff] }
 0x5d2   : > { %v8212_v54 = vmul.f32 %v8204_v41, %v8196_v43  ;;  %v8213_v34 = vmul.f32 %v8205_v49, %v8197_v44  ;;  %v8214_v42 = vmul.f32 %v8206_v53, %v8198_v19  ;;  %v8215_v55 = vmul.f32 %v8207_v48, %v8199_v63  ;;  %v8262_v41 = vld [vmem:[%s15415_s5 + $0x30] sm:$0xff] }
 0x5d3   : > { %v8224_v59 = vadd.f32 %v8216_v20, %v8208_v50  ;;  %v8225_v45 = vadd.f32 %v8217_v32, %v8209_v37  ;;  %v8226_v62 = vadd.f32 %v8218_v33, %v8210_v22  ;;  %v8227_v47 = vadd.f32 %v8219_v51, %v8211_v15  ;;  %v8263_v20 = vld [vmem:[%s15415_s5 + $0x38] sm:$0xff] }
 0x5d4   : > { %v8228_v2 = vadd.f32 %v8220_v58, %v8212_v54  ;;  %v8229_v56 = vadd.f32 %v8221_v0, %v8213_v34  ;;  %v8230_v11 = vadd.f32 %v8222_v1, %v8214_v42  ;;  %v8231_v4 = vadd.f32 %v8223_v46, %v8215_v55 }
 0x5d5   : > { %vm8232_vm1 = vcmp.ge.f32.partialorder %v8224_v59, 0.0  ;;  %vm8233_vm2 = vcmp.ge.f32.partialorder %v8225_v45, 0.0  ;;  %vm8234_vm3 = vcmp.ge.f32.partialorder %v8226_v62, 0.0  ;;  %v8240_v3 = vmul.f32 0.2, %v8224_v59 }
 0x5d6   : > { %v8241_v7 = vmul.f32 0.2, %v8225_v45  ;;  %v8242_v8 = vmul.f32 0.2, %v8226_v62  ;;  %v8243_v57 = vmul.f32 0.2, %v8227_v47 }
 0x5d7   : > { %vm8235_vm4 = vcmp.ge.f32.partialorder %v8227_v47, 0.0  ;;  %v8248_v60 = vsel %vm8232_vm1, %v8224_v59, %v8240_v3  ;;  %v8244_v12 = vmul.f32 0.2, %v8228_v2  ;;  %vm8236_vm5 = vcmp.ge.f32.partialorder %v8228_v2, 0.0 }
 0x5d8   : > { %v8249_v61 = vsel %vm8233_vm2, %v8225_v45, %v8241_v7  ;;  %v8250_v17 = vsel %vm8234_vm3, %v8226_v62, %v8242_v8  ;;  %v8264_v24 = vmul.f32 %v8256_v9, %v8248_v60  ;;  %v8245_v5 = vmul.f32 0.2, %v8229_v56  ;;  %v8289_v45 = vld [vmem:[#allocation2] sm:$0x1] }
 0x5d9   : > { %v8265_v25 = vmul.f32 %v8257_v10, %v8249_v61  ;;  %v8251_v6 = vsel %vm8235_vm4, %v8227_v47, %v8243_v57  ;;  %vm8237_vm6 = vcmp.ge.f32.partialorder %v8229_v56, 0.0  ;;  %v8266_v27 = vmul.f32 %v8258_v18, %v8250_v17 }
 0x5da   : > { %v8246_v30 = vmul.f32 0.2, %v8230_v11  ;;  %v8252_v31 = vsel %vm8236_vm5, %v8228_v2, %v8244_v12  ;;  %vm8238_vm7 = vcmp.ge.f32.partialorder %v8230_v11, 0.0  ;;  %v8267_v39 = vmul.f32 %v8259_v26, %v8251_v6 }
 0x5db   : > { %v8272_v28 = vadd.f32 %v8265_v25, %v8264_v24  ;;  %v8247_v35 = vmul.f32 0.2, %v8231_v4  ;;  %v8253_v36 = vsel %vm8237_vm6, %v8229_v56, %v8245_v5  ;;  %vm8239_vm8 = vcmp.ge.f32.partialorder %v8231_v4, 0.0 }
 0x5dc   : > { %v8268_v23 = vmul.f32 %v8260_v38, %v8252_v31  ;;  %v8254_v40 = vsel %vm8238_vm7, %v8230_v11, %v8246_v30  ;;  %v8269_v43 = vmul.f32 %v8261_v21, %v8253_v36  ;;  %v11916_v22 = vmov 0  }
 0x5dd   : > { %v8273_v29 = vadd.f32 %v8272_v28, %v8266_v27  ;;  %v8255_v19 = vsel %vm8239_vm8, %v8231_v4, %v8247_v35  ;;  %v8270_v32 = vmul.f32 %v8262_v41, %v8254_v40  ;;  %10352 = vset.pattern.permute.xlu1 %v11916_v22  ;;  %10353 = vset.pattern.permute.xlu0 %v11916_v22 }
 0x5de   : > { %v8271_v49 = vmul.f32 %v8263_v20, %v8255_v19 }
 0x5df   : > { %v8274_v16 = vadd.f32 %v8273_v29, %v8267_v39 }
 0x5e1   : > { %v8275_v44 = vadd.f32 %v8274_v16, %v8268_v23 }
 0x5e3   : > { %v8276_v33 = vadd.f32 %v8275_v44, %v8269_v43 }
 0x5e5   : > { %v8277_v50 = vadd.f32 %v8276_v33, %v8270_v32 }
 0x5e7   : > { %v8278_v37 = vadd.f32 %v8277_v50, %v8271_v49 }
 0x5e9   : > { %8279 = vadd.xlane.f32.xlu1 %v8278_v37 }
 0x676   : > { %v8280_v15 = vpop.xlane.xlu1 %8279 }
 0x677   : > { %v8281_v51 = vrot.slane %v8280_v15, 4 }
 0x679   : > { %v8282_v52 = vadd.f32 %v8281_v51, %v8280_v15 }
 0x67b   : > { %v8283_v53 = vrot.slane %v8282_v52, 2 }
 0x67d   : > { %v8284_v54 = vadd.f32 %v8283_v53, %v8282_v52 }
 0x67f   : > { %v8285_v58 = vrot.slane %v8284_v54, 1 }
 0x681   : > { %v8286_v59 = vadd.f32 %v8285_v58, %v8284_v54 }
 0x683   : > { %10341 = vpush %v8286_v59 }
 0x6b4   : > { %s10342_s16 = spop %10341 }
 0x6b5   : > { %v8288_v62 = vstv %s10342_s16 }
 0x6b6   : > { %v8290_v63 = vadd.f32 %v8289_v45, %v8288_v62 }
 0x6b8   : > { %8293 = vperm.xlu1 %10352, %v8290_v63  }
 0x737   : > { %v8294_v34 = vpop.permute.xlu1 %8293 }
 0x738   : > { %v8299_v47 = vrot.slane %v8294_v34, %v8110_v14 }
 0x73a   : > { %8300 = vst [vmem:[%s276_s19] sm:$0x1] %v8299_v47 }
 0x73b PF: > { %s19_s26 = sadd.s32 1, %s11914_s26  }
 0x73c   : > { %p16_p4 = scmp.ge.s32.totalorder %s19_s26, 4  }
 0x73e   :  { %18 = sbr.rel (!%p16_p4) target bundleno = 3 (0x3), region = 82 }

</bundles_post_ra>
